<compile_context>
chip_gen: v5e
topology: v5e:2x2
jax: 0.10.0
libtpu: 0.0.40
codegen_flags: <defaults>
</compile_context>

<pallas_src>
import math
import numpy as np
import jax
import jax.numpy as jnp
from jax.experimental import pallas as pl
from jax.experimental.pallas import tpu as pltpu

# ----------------------------- configuration (small shapes) ---------------------------------
DIM = 4
S_EMB_DIM = 32
HIDDEN_DIM = 32
HARMONICS_DIM = 8
T_DIM = 16
TRAJ_LEN = 8
BSZ = 2

LOG_VAR_RANGE = 4.0
T_SCALE = 1.0
PF_STD_PER_TRAJ = math.sqrt(T_SCALE)
DT = 1.0 / TRAJ_LEN
SQRT_DT = math.sqrt(DT)
PF_LOGVAR_OFFSET = math.log(PF_STD_PER_TRAJ) * 2.0
PI = math.pi
TWO_PI = 2.0 * math.pi
SQRT_2_OVER_PI = math.sqrt(2.0 / math.pi)

# ----------------------------- packed-weight slab layout -------------------------------------
# All segment row offsets are multiples of 8 (sublane aligned); lane width = HIDDEN = S_EMB = 32.
ROW_SW1 = 0                      # (DIM, HIDDEN)        rows 0..3
ROW_SB1 = 8                      # (1, HIDDEN)
ROW_SW2 = 16                     # (HIDDEN, S_EMB)
ROW_SB2 = 48                     # (1, S_EMB)
ROW_JW1S = 56                    # (S_EMB, HIDDEN)
ROW_JW2 = 88                     # (HIDDEN, HIDDEN)
ROW_JB2 = 120                    # (1, HIDDEN)
ROW_JW3 = 128                    # (HIDDEN, 2*DIM) zero-padded to 32 cols
ROW_JB3 = 160                    # (1, 2*DIM)      zero-padded to 32 cols
ROW_TC = 168                     # (TRAJ_LEN, HIDDEN)  precomputed t_emb @ jW1_t + jb1
SLAB_ROWS = ROW_TC + TRAJ_LEN    # 176
SLAB_COLS = HIDDEN_DIM           # 32

OUT_LANES = 128                  # lane-dense packed output: [state(DIM) | logpf | logpb | 0...]
N_WRAP_KERNEL = 3                # kernel wrap unroll |k| <= 3 (tail < e^-40 of max)


# ----------------------------- math helpers (kernel + reference) -----------------------------
def _gelu(x):
    # tanh-approximation GELU (== torch nn.GELU(approximate='tanh')); tanh -> EUP slot on TPU.
    return 0.5 * x * (1.0 + jnp.tanh(SQRT_2_OVER_PI * (x + 0.044715 * x * x * x)))


def _wrap(v):
    # (v + pi) % (2*pi) - pi   with Python/torch remainder semantics (floor-based)
    u = (v + PI) * (1.0 / TWO_PI)
    return (u - jnp.floor(u)) * TWO_PI - PI


def _wrapped_gaussian_log_prob(delta, mean, std, n_wrap):
    # delta, mean: (B, D); std: (B, D) array or python float.  Returns (B, 1).
    # logsumexp over wrap offsets k in [-n_wrap, n_wrap], then sum over D.
    if isinstance(std, (int, float)):
        inv_std = 1.0 / std
        log_coeff = -math.log(std * math.sqrt(TWO_PI))
    else:
        inv_std = 1.0 / std                               # one divide per call, hoisted out of k-loop
        log_coeff = -jnp.log(std * math.sqrt(TWO_PI))
    centered = delta - mean
    comps = []
    for k in range(-n_wrap, n_wrap + 1):
        z = (centered + (k * TWO_PI)) * inv_std
        comps.append(-0.5 * (z * z) + log_coeff)
    m = comps[0]
    for c in comps[1:]:
        m = jnp.maximum(m, c)
    acc = jnp.exp(comps[0] - m)
    for c in comps[1:]:
        acc = acc + jnp.exp(c - m)
    return jnp.sum(m + jnp.log(acc), axis=-1, keepdims=True)


# ----------------------------- Pallas kernel (whole trajectory in one invocation) ------------
def gfn_traj_kernel(s0_ref, noise_ref, w_ref, out_ref):
    # --- load weights once (static, sublane-aligned slices of the packed slab) ---------------
    sW1 = w_ref[ROW_SW1:ROW_SW1 + DIM, :]            # (DIM, HIDDEN)
    sb1 = w_ref[ROW_SB1:ROW_SB1 + 1, :]              # (1, HIDDEN)
    sW2 = w_ref[ROW_SW2:ROW_SW2 + HIDDEN_DIM, :]     # (HIDDEN, S_EMB)
    sb2 = w_ref[ROW_SB2:ROW_SB2 + 1, :]              # (1, S_EMB)
    jW1s = w_ref[ROW_JW1S:ROW_JW1S + S_EMB_DIM, :]   # (S_EMB, HIDDEN)
    jW2 = w_ref[ROW_JW2:ROW_JW2 + HIDDEN_DIM, :]     # (HIDDEN, HIDDEN)
    jb2 = w_ref[ROW_JB2:ROW_JB2 + 1, :]              # (1, HIDDEN)
    jW3 = w_ref[ROW_JW3:ROW_JW3 + HIDDEN_DIM, :]     # (HIDDEN, 32) cols >= 2*DIM are zero
    jb3 = w_ref[ROW_JB3:ROW_JB3 + 1, :]              # (1, 32)
    tc_all = w_ref[ROW_TC:ROW_TC + TRAJ_LEN, :]      # (T, HIDDEN) precomputed time contribution
    noise_all = noise_ref[...]                       # (T*BSZ, DIM)

    s = s0_ref[...]                                  # running state, carried in vregs
    st_rows, pf_rows, pb_rows = [], [], []

    for t in range(TRAJ_LEN):                        # fully unrolled (T is static & small)
        eps = noise_all[t * BSZ:(t + 1) * BSZ, :]    # (BSZ, DIM) -- precomputed randn
        tc = tc_all[t:t + 1, :]                      # (1, HIDDEN) = t_emb(t) @ jW1_t + jb1

        # s_model (StateEncoding MLP)
        s_emb = jnp.dot(_gelu(jnp.dot(s, sW1, preferred_element_type=jnp.float32) + sb1),
                        sW2, preferred_element_type=jnp.float32) + sb2           # (BSZ, S_EMB)

        # joint_model (JointPolicy MLP); time path already folded into tc
        h = _gelu(jnp.dot(s_emb, jW1s, preferred_element_type=jnp.float32) + tc)
        h = _gelu(jnp.dot(h, jW2, preferred_element_type=jnp.float32) + jb2)
        o3 = jnp.dot(h, jW3, preferred_element_type=jnp.float32) + jb3           # (BSZ, 32)
        pf_mean = o3[:, 0:DIM]                                                   # (BSZ, DIM)
        logvar_raw = o3[:, DIM:2 * DIM]

        # split_params: learned_variance=True; exploration_std None -> sample logvars unchanged
        pflogvars = jnp.tanh(logvar_raw) * LOG_VAR_RANGE + PF_LOGVAR_OFFSET
        std = jnp.exp(0.5 * pflogvars)

        s_next = s + DT * pf_mean + SQRT_DT * std * eps
        s_wrapped = _wrap(s_next)
        delta_s = _wrap(s_wrapped - s)
        lpf = _wrapped_gaussian_log_prob(delta_s, DT * pf_mean, SQRT_DT * std, N_WRAP_KERNEL)

        if t == 0:
            lpb = jnp.zeros((BSZ, 1), jnp.float32)   # logpb[:, 0] stays zero
        else:
            # learn_pb=False -> back corrections are ones; back_mean - s == -s/(t+1)
            back_std = math.sqrt((PF_STD_PER_TRAJ ** 2) * DT * t / (t + 1.0))    # python scalar
            delta_b = _wrap(s - s_wrapped)
            lpb = _wrapped_gaussian_log_prob(delta_b, -s_wrapped * (1.0 / (t + 1.0)),
                                             back_std, N_WRAP_KERNEL)

        st_rows.append(s_wrapped)
        pf_rows.append(lpf)
        pb_rows.append(lpb)
        s = s_wrapped

    # single lane-dense writeback: (T*BSZ, 128) = [states | logpf | logpb | zero pad]
    states_all = jnp.concatenate(st_rows, axis=0)    # (T*BSZ, DIM)
    lpf_all = jnp.concatenate(pf_rows, axis=0)       # (T*BSZ, 1)
    lpb_all = jnp.concatenate(pb_rows, axis=0)       # (T*BSZ, 1)
    pad = jnp.zeros((TRAJ_LEN * BSZ, OUT_LANES - DIM - 2), jnp.float32)
    out_ref[...] = jnp.concatenate([states_all, lpf_all, lpb_all, pad], axis=-1)


# ----------------------------- weight packing -------------------------------------------------
def pack_weight_slab(p, t_contrib):
    slab = jnp.zeros((SLAB_ROWS, SLAB_COLS), jnp.float32)
    slab = slab.at[ROW_SW1:ROW_SW1 + DIM, :].set(p['sW1'])
    slab = slab.at[ROW_SB1:ROW_SB1 + 1, :].set(p['sb1'])
    slab = slab.at[ROW_SW2:ROW_SW2 + HIDDEN_DIM, :].set(p['sW2'])
    slab = slab.at[ROW_SB2:ROW_SB2 + 1, :].set(p['sb2'])
    slab = slab.at[ROW_JW1S:ROW_JW1S + S_EMB_DIM, :].set(p['jW1'][:S_EMB_DIM])
    slab = slab.at[ROW_JW2:ROW_JW2 + HIDDEN_DIM, :].set(p['jW2'])
    slab = slab.at[ROW_JB2:ROW_JB2 + 1, :].set(p['jb2'])
    slab = slab.at[ROW_JW3:ROW_JW3 + HIDDEN_DIM, 0:2 * DIM].set(p['jW3'])
    slab = slab.at[ROW_JB3:ROW_JB3 + 1, 0:2 * DIM].set(p['jb3'])
    slab = slab.at[ROW_TC:ROW_TC + TRAJ_LEN, :].set(t_contrib)
    return slab


# ----------------------------- wrapper --------------------------------------------------------
def gfn_forward(s0, noise, t_feat, params):
    """Equivalent of GFN.forward(s) == get_trajectory_fwd(s, None, None)."""
    T = noise.shape[0]
    bsz, dim = s0.shape

    # Hoist the time path (pure function of step index) out of the kernel:
    # t_contrib[t] = TimeEncoding(t*dt) @ jW1_t + jb1   -> (T, HIDDEN)
    t_emb_all = _gelu(t_feat @ params['tW1'] + params['tb1']) @ params['tW2'] + params['tb2']
    t_contrib = t_emb_all @ params['jW1'][S_EMB_DIM:] + params['jb1']

    slab = pack_weight_slab(params, t_contrib)
    noise2d = noise.reshape(T * bsz, dim)

    grid_spec = pltpu.PrefetchScalarGridSpec(
        num_scalar_prefetch=0,
        grid=(1,),                                           # whole trajectory in one invocation
        in_specs=[
            pl.BlockSpec((bsz, dim), lambda i: (0, 0)),              # s0
            pl.BlockSpec((T * bsz, dim), lambda i: (0, 0)),          # all per-step noise
            pl.BlockSpec((SLAB_ROWS, SLAB_COLS), lambda i: (0, 0)),  # packed weights + t_contrib
        ],
        out_specs=pl.BlockSpec((T * bsz, OUT_LANES), lambda i: (0, 0)),
    )

    packed = pl.pallas_call(
        gfn_traj_kernel,
        out_shape=jax.ShapeDtypeStruct((T * bsz, OUT_LANES), jnp.float32),
        grid_spec=grid_spec,
        compiler_params=pltpu.CompilerParams(dimension_semantics=("arbitrary",)),
    )(s0, noise2d, slab)

    states_steps = packed[:, :dim].reshape(T, bsz, dim)
    logpf = packed[:, dim].reshape(T, bsz).T                 # (bsz, T)
    logpb = packed[:, dim + 1].reshape(T, bsz).T             # (bsz, T)
    states = jnp.concatenate([s0[None], states_steps], axis=0).transpose(1, 0, 2)  # (bsz, T+1, dim)
    # flow_model is a scalar nn.Parameter (0.0): logf[:, i] = flow for i < T, logf[:, T] stays 0
    logf = jnp.zeros((bsz, T + 1), jnp.float32).at[:, :T].set(params['flow'])
    return states, logpf, logpb, logf


# ----------------------------- pure-JAX reference (original semantics, |k| <= 10) ------------
def reference_wrapped_log_prob(delta, mean, std):
    std = jnp.broadcast_to(jnp.asarray(std, jnp.float32), delta.shape)
    ks = jnp.arange(-10, 11, dtype=jnp.float32)
    z = (delta[..., None] + ks * TWO_PI - mean[..., None]) / std[..., None]
    comp = -0.5 * z * z - jnp.log(std[..., None] * math.sqrt(TWO_PI))
    return jax.scipy.special.logsumexp(comp, axis=-1).sum(axis=-1)


def reference_forward(s0, noise, t_feat, p):
    T = noise.shape[0]
    bsz, dim = s0.shape
    s = s0
    states, logpf, logpb = [s0], [], []
    for i in range(T):
        tf = t_feat[i:i + 1]
        t_emb = _gelu(tf @ p['tW1'] + p['tb1']) @ p['tW2'] + p['tb2']
        t_emb = jnp.broadcast_to(t_emb, (bsz, T_DIM))
        s_emb = _gelu(s @ p['sW1'] + p['sb1']) @ p['sW2'] + p['sb2']
        x = jnp.concatenate([s_emb, t_emb], axis=-1)
        h = _gelu(x @ p['jW1'] + p['jb1'])
        h = _gelu(h @ p['jW2'] + p['jb2'])
        o = h @ p['jW3'] + p['jb3']
        pf_mean = o[:, :dim]
        pflogvars = jnp.tanh(o[:, dim:]) * LOG_VAR_RANGE + PF_LOGVAR_OFFSET
        std = jnp.exp(0.5 * pflogvars)
        s_next = s + DT * pf_mean + SQRT_DT * std * noise[i]
        s_wrapped = _wrap(s_next)
        delta_s = _wrap(s_wrapped - s)
        logpf.append(reference_wrapped_log_prob(delta_s, DT * pf_mean, SQRT_DT * std))
        if i > 0:
            back_mean = s_wrapped - s_wrapped / (i + 1.0)
            back_var = (PF_STD_PER_TRAJ ** 2) * DT * i / (i + 1.0)
            delta_b = _wrap(s - s_wrapped)
            logpb.append(reference_wrapped_log_prob(delta_b, back_mean - s_wrapped,
                                                    math.sqrt(back_var)))
        else:
            logpb.append(jnp.zeros((bsz,), jnp.float32))
        s = s_wrapped
        states.append(s)
    return (jnp.stack(states, axis=1), jnp.stack(logpf, axis=1), jnp.stack(logpb, axis=1))


# ----------------------------- deterministic parameter init ----------------------------------
def init_linear(key, fan_in, fan_out):
    kw, kb = jax.random.split(key)
    bound = 1.0 / math.sqrt(fan_in)
    W = jax.random.uniform(kw, (fan_in, fan_out), jnp.float32, -bound, bound)
    b = jax.random.uniform(kb, (1, fan_out), jnp.float32, -bound, bound)
    return W, b


def init_params(key):
    ks = jax.random.split(key, 8)
    p = {}
    # TimeEncoding
    p['tW1'], p['tb1'] = init_linear(ks[0], 2 * HARMONICS_DIM, HIDDEN_DIM)
    p['tW2'], p['tb2'] = init_linear(ks[1], HIDDEN_DIM, T_DIM)
    # StateEncoding
    p['sW1'], p['sb1'] = init_linear(ks[2], DIM, HIDDEN_DIM)
    p['sW2'], p['sb2'] = init_linear(ks[3], HIDDEN_DIM, S_EMB_DIM)
    # JointPolicy
    p['jW1'], p['jb1'] = init_linear(ks[4], S_EMB_DIM + T_DIM, HIDDEN_DIM)
    p['jW2'], p['jb2'] = init_linear(ks[5], HIDDEN_DIM, HIDDEN_DIM)
    p['jW3'], p['jb3'] = init_linear(ks[6], HIDDEN_DIM, 2 * DIM)
    # flow_model = nn.Parameter(torch.tensor(0.0))
    p['flow'] = jnp.float32(0.0)
    return p


def make_time_features(T):
    # sin/cos harmonic features of t = i*dt (pure function of step index — matches the
    # TimeEncoding registered `pe` buffer).
    steps = jnp.arange(T, dtype=jnp.float32) * DT
    pe = (jnp.arange(1, HARMONICS_DIM + 1, dtype=jnp.float32) * TWO_PI)[None, :]
    ang = steps[:, None] * pe
    return jnp.concatenate([jnp.sin(ang), jnp.cos(ang)], axis=-1)     # (T, 2*HARMONICS_DIM)


if __name__ == "__main__":
    key = jax.random.PRNGKey(0)
    k_s, k_n, k_p = jax.random.split(key, 3)

    s0 = jax.random.uniform(k_s, (BSZ, DIM), jnp.float32, -math.pi, math.pi)
    # torch.randn_like(s) inside the loop -> precomputed deterministic per-step noise
    noise = jax.random.normal(k_n, (TRAJ_LEN, BSZ, DIM), dtype=jnp.float32)
    params = init_params(k_p)
    t_feat = make_time_features(TRAJ_LEN)

    out = gfn_forward(s0, noise, t_feat, params)
    out = jax.block_until_ready(out)
    states, logpf, logpb, logf = out

    # sanity / correctness check vs pure-JAX reference (original |k|<=10 wrapped sum)
    states_r, logpf_r, logpb_r = reference_forward(s0, noise, t_feat, params)
    assert states.shape == (BSZ, TRAJ_LEN + 1, DIM)
    assert logpf.shape == (BSZ, TRAJ_LEN) and logpb.shape == (BSZ, TRAJ_LEN)
    assert logf.shape == (BSZ, TRAJ_LEN + 1)
    np.testing.assert_allclose(np.asarray(states), np.asarray(states_r), rtol=1e-2, atol=1e-2)
    np.testing.assert_allclose(np.asarray(logpf), np.asarray(logpf_r), rtol=1e-2, atol=1e-2)
    np.testing.assert_allclose(np.asarray(logpb), np.asarray(logpb_r), rtol=1e-2, atol=1e-2)

    print("KERNEL_OK")
</pallas_src>

<mosaic_0001>
module attributes {stable_mosaic.version = 11 : i64} {
  func.func @gfn_traj_kernel(%arg0: i32, %arg1: memref<2x4xf32, #tpu.memory_space<vmem>>, %arg2: memref<16x4xf32, #tpu.memory_space<vmem>>, %arg3: memref<176x32xf32, #tpu.memory_space<vmem>>, %arg4: memref<16x128xf32, #tpu.memory_space<vmem>>) attributes {dimension_semantics = [#tpu.dimension_semantics<arbitrary>], iteration_bounds = array<i64: 1>, scalar_prefetch = 0 : i64, scratch_operands = 0 : i64, tpu.core_type = #tpu.core_type<tc>, window_params = [{pipeline_mode = #tpu.pipeline_mode<synchronous>, transform_indices = @transform_0, window_bounds = array<i64: 2, 4>}, {pipeline_mode = #tpu.pipeline_mode<synchronous>, transform_indices = @transform_1, window_bounds = array<i64: 16, 4>}, {pipeline_mode = #tpu.pipeline_mode<synchronous>, transform_indices = @transform_2, window_bounds = array<i64: 176, 32>}, {pipeline_mode = #tpu.pipeline_mode<synchronous>, transform_indices = @transform_3, window_bounds = array<i64: 16, 128>}]} {
    %c0 = arith.constant 0 : index
    %c0_0 = arith.constant 0 : index
    %0 = vector.load %arg3[%c0, %c0_0] : memref<176x32xf32, #tpu.memory_space<vmem>>, vector<4x32xf32>
    %c8 = arith.constant 8 : index
    %c0_1 = arith.constant 0 : index
    %1 = vector.load %arg3[%c8, %c0_1] : memref<176x32xf32, #tpu.memory_space<vmem>>, vector<1x32xf32>
    %c16 = arith.constant 16 : index
    %c0_2 = arith.constant 0 : index
    %2 = vector.load %arg3[%c16, %c0_2] : memref<176x32xf32, #tpu.memory_space<vmem>>, vector<32x32xf32>
    %c48 = arith.constant 48 : index
    %c0_3 = arith.constant 0 : index
    %3 = vector.load %arg3[%c48, %c0_3] : memref<176x32xf32, #tpu.memory_space<vmem>>, vector<1x32xf32>
    %c56 = arith.constant 56 : index
    %c0_4 = arith.constant 0 : index
    %4 = vector.load %arg3[%c56, %c0_4] : memref<176x32xf32, #tpu.memory_space<vmem>>, vector<32x32xf32>
    %c88 = arith.constant 88 : index
    %c0_5 = arith.constant 0 : index
    %5 = vector.load %arg3[%c88, %c0_5] : memref<176x32xf32, #tpu.memory_space<vmem>>, vector<32x32xf32>
    %c120 = arith.constant 120 : index
    %c0_6 = arith.constant 0 : index
    %6 = vector.load %arg3[%c120, %c0_6] : memref<176x32xf32, #tpu.memory_space<vmem>>, vector<1x32xf32>
    %c128 = arith.constant 128 : index
    %c0_7 = arith.constant 0 : index
    %7 = vector.load %arg3[%c128, %c0_7] : memref<176x32xf32, #tpu.memory_space<vmem>>, vector<32x32xf32>
    %c160 = arith.constant 160 : index
    %c0_8 = arith.constant 0 : index
    %8 = vector.load %arg3[%c160, %c0_8] : memref<176x32xf32, #tpu.memory_space<vmem>>, vector<1x32xf32>
    %c168 = arith.constant 168 : index
    %c0_9 = arith.constant 0 : index
    %9 = vector.load %arg3[%c168, %c0_9] : memref<176x32xf32, #tpu.memory_space<vmem>>, vector<8x32xf32>
    %c0_10 = arith.constant 0 : index
    %c0_11 = arith.constant 0 : index
    %10 = vector.load %arg2[%c0_10, %c0_11] : memref<16x4xf32, #tpu.memory_space<vmem>>, vector<16x4xf32>
    %c0_12 = arith.constant 0 : index
    %c0_13 = arith.constant 0 : index
    %11 = vector.load %arg1[%c0_12, %c0_13] : memref<2x4xf32, #tpu.memory_space<vmem>>, vector<2x4xf32>
    %12 = vector.extract_strided_slice %10 {offsets = [0, 0], sizes = [2, 4], strides = [1, 1]} : vector<16x4xf32> to vector<2x4xf32>
    %13 = vector.extract_strided_slice %9 {offsets = [0, 0], sizes = [1, 32], strides = [1, 1]} : vector<8x32xf32> to vector<1x32xf32>
    %cst = arith.constant dense<0.000000e+00> : vector<2x32xf32>
    %14 = tpu.matmul %11, %0, %cst {dimension_numbers = #tpu.dot_dimension_numbers<[1], [0], [0], [1], [0, 0, 1, 1], [], []>} : vector<2x4xf32>, vector<4x32xf32>, vector<2x32xf32> -> vector<2x32xf32>
    %15 = vector.broadcast %1 : vector<1x32xf32> to vector<2x32xf32>
    %16 = arith.addf %14, %15 : vector<2x32xf32>
    %cst_14 = arith.constant 5.000000e-01 : f32
    %17 = vector.broadcast %cst_14 : f32 to vector<2x32xf32>
    %18 = arith.mulf %17, %16 : vector<2x32xf32>
    %cst_15 = arith.constant 4.471500e-02 : f32
    %19 = vector.broadcast %cst_15 : f32 to vector<2x32xf32>
    %20 = arith.mulf %19, %16 : vector<2x32xf32>
    %21 = arith.mulf %20, %16 : vector<2x32xf32>
    %22 = arith.mulf %21, %16 : vector<2x32xf32>
    %23 = arith.addf %16, %22 : vector<2x32xf32>
    %cst_16 = arith.constant 0.797884583 : f32
    %24 = vector.broadcast %cst_16 : f32 to vector<2x32xf32>
    %25 = arith.mulf %24, %23 : vector<2x32xf32>
    %26 = math.tanh %25 : vector<2x32xf32>
    %cst_17 = arith.constant 1.000000e+00 : f32
    %27 = vector.broadcast %cst_17 : f32 to vector<2x32xf32>
    %28 = arith.addf %27, %26 : vector<2x32xf32>
    %29 = arith.mulf %18, %28 : vector<2x32xf32>
    %cst_18 = arith.constant dense<0.000000e+00> : vector<2x32xf32>
    %30 = tpu.matmul %29, %2, %cst_18 {dimension_numbers = #tpu.dot_dimension_numbers<[1], [0], [0], [1], [0, 0, 1, 1], [], []>} : vector<2x32xf32>, vector<32x32xf32>, vector<2x32xf32> -> vector<2x32xf32>
    %31 = vector.broadcast %3 : vector<1x32xf32> to vector<2x32xf32>
    %32 = arith.addf %30, %31 : vector<2x32xf32>
    %cst_19 = arith.constant dense<0.000000e+00> : vector<2x32xf32>
    %33 = tpu.matmul %32, %4, %cst_19 {dimension_numbers = #tpu.dot_dimension_numbers<[1], [0], [0], [1], [0, 0, 1, 1], [], []>} : vector<2x32xf32>, vector<32x32xf32>, vector<2x32xf32> -> vector<2x32xf32>
    %34 = vector.broadcast %13 : vector<1x32xf32> to vector<2x32xf32>
    %35 = arith.addf %33, %34 : vector<2x32xf32>
    %cst_20 = arith.constant 5.000000e-01 : f32
    %36 = vector.broadcast %cst_20 : f32 to vector<2x32xf32>
    %37 = arith.mulf %36, %35 : vector<2x32xf32>
    %cst_21 = arith.constant 4.471500e-02 : f32
    %38 = vector.broadcast %cst_21 : f32 to vector<2x32xf32>
    %39 = arith.mulf %38, %35 : vector<2x32xf32>
    %40 = arith.mulf %39, %35 : vector<2x32xf32>
    %41 = arith.mulf %40, %35 : vector<2x32xf32>
    %42 = arith.addf %35, %41 : vector<2x32xf32>
    %cst_22 = arith.constant 0.797884583 : f32
    %43 = vector.broadcast %cst_22 : f32 to vector<2x32xf32>
    %44 = arith.mulf %43, %42 : vector<2x32xf32>
    %45 = math.tanh %44 : vector<2x32xf32>
    %cst_23 = arith.constant 1.000000e+00 : f32
    %46 = vector.broadcast %cst_23 : f32 to vector<2x32xf32>
    %47 = arith.addf %46, %45 : vector<2x32xf32>
    %48 = arith.mulf %37, %47 : vector<2x32xf32>
    %cst_24 = arith.constant dense<0.000000e+00> : vector<2x32xf32>
    %49 = tpu.matmul %48, %5, %cst_24 {dimension_numbers = #tpu.dot_dimension_numbers<[1], [0], [0], [1], [0, 0, 1, 1], [], []>} : vector<2x32xf32>, vector<32x32xf32>, vector<2x32xf32> -> vector<2x32xf32>
    %50 = vector.broadcast %6 : vector<1x32xf32> to vector<2x32xf32>
    %51 = arith.addf %49, %50 : vector<2x32xf32>
    %cst_25 = arith.constant 5.000000e-01 : f32
    %52 = vector.broadcast %cst_25 : f32 to vector<2x32xf32>
    %53 = arith.mulf %52, %51 : vector<2x32xf32>
    %cst_26 = arith.constant 4.471500e-02 : f32
    %54 = vector.broadcast %cst_26 : f32 to vector<2x32xf32>
    %55 = arith.mulf %54, %51 : vector<2x32xf32>
    %56 = arith.mulf %55, %51 : vector<2x32xf32>
    %57 = arith.mulf %56, %51 : vector<2x32xf32>
    %58 = arith.addf %51, %57 : vector<2x32xf32>
    %cst_27 = arith.constant 0.797884583 : f32
    %59 = vector.broadcast %cst_27 : f32 to vector<2x32xf32>
    %60 = arith.mulf %59, %58 : vector<2x32xf32>
    %61 = math.tanh %60 : vector<2x32xf32>
    %cst_28 = arith.constant 1.000000e+00 : f32
    %62 = vector.broadcast %cst_28 : f32 to vector<2x32xf32>
    %63 = arith.addf %62, %61 : vector<2x32xf32>
    %64 = arith.mulf %53, %63 : vector<2x32xf32>
    %cst_29 = arith.constant dense<0.000000e+00> : vector<2x32xf32>
    %65 = tpu.matmul %64, %7, %cst_29 {dimension_numbers = #tpu.dot_dimension_numbers<[1], [0], [0], [1], [0, 0, 1, 1], [], []>} : vector<2x32xf32>, vector<32x32xf32>, vector<2x32xf32> -> vector<2x32xf32>
    %66 = vector.broadcast %8 : vector<1x32xf32> to vector<2x32xf32>
    %67 = arith.addf %65, %66 : vector<2x32xf32>
    %68 = vector.extract_strided_slice %67 {offsets = [0, 0], sizes = [2, 4], strides = [1, 1]} : vector<2x32xf32> to vector<2x4xf32>
    %69 = vector.extract_strided_slice %67 {offsets = [0, 4], sizes = [2, 4], strides = [1, 1]} : vector<2x32xf32> to vector<2x4xf32>
    %70 = math.tanh %69 : vector<2x4xf32>
    %cst_30 = arith.constant 4.000000e+00 : f32
    %71 = vector.broadcast %cst_30 : f32 to vector<2x4xf32>
    %72 = arith.mulf %70, %71 : vector<2x4xf32>
    %cst_31 = arith.constant 0.000000e+00 : f32
    %73 = vector.broadcast %cst_31 : f32 to vector<2x4xf32>
    %74 = arith.addf %72, %73 : vector<2x4xf32>
    %cst_32 = arith.constant 5.000000e-01 : f32
    %75 = vector.broadcast %cst_32 : f32 to vector<2x4xf32>
    %76 = arith.mulf %75, %74 : vector<2x4xf32>
    %77 = math.exp %76 : vector<2x4xf32>
    %cst_33 = arith.constant 1.250000e-01 : f32
    %78 = vector.broadcast %cst_33 : f32 to vector<2x4xf32>
    %79 = arith.mulf %78, %68 : vector<2x4xf32>
    %80 = arith.addf %11, %79 : vector<2x4xf32>
    %cst_34 = arith.constant 0.353553385 : f32
    %81 = vector.broadcast %cst_34 : f32 to vector<2x4xf32>
    %82 = arith.mulf %81, %77 : vector<2x4xf32>
    %83 = arith.mulf %82, %12 : vector<2x4xf32>
    %84 = arith.addf %80, %83 : vector<2x4xf32>
    %cst_35 = arith.constant 3.14159274 : f32
    %85 = vector.broadcast %cst_35 : f32 to vector<2x4xf32>
    %86 = arith.addf %84, %85 : vector<2x4xf32>
    %cst_36 = arith.constant 0.159154937 : f32
    %87 = vector.broadcast %cst_36 : f32 to vector<2x4xf32>
    %88 = arith.mulf %86, %87 : vector<2x4xf32>
    %89 = math.floor %88 : vector<2x4xf32>
    %90 = arith.subf %88, %89 : vector<2x4xf32>
    %cst_37 = arith.constant 6.28318548 : f32
    %91 = vector.broadcast %cst_37 : f32 to vector<2x4xf32>
    %92 = arith.mulf %90, %91 : vector<2x4xf32>
    %cst_38 = arith.constant 3.14159274 : f32
    %93 = vector.broadcast %cst_38 : f32 to vector<2x4xf32>
    %94 = arith.subf %92, %93 : vector<2x4xf32>
    %95 = arith.subf %94, %11 : vector<2x4xf32>
    %cst_39 = arith.constant 3.14159274 : f32
    %96 = vector.broadcast %cst_39 : f32 to vector<2x4xf32>
    %97 = arith.addf %95, %96 : vector<2x4xf32>
    %cst_40 = arith.constant 0.159154937 : f32
    %98 = vector.broadcast %cst_40 : f32 to vector<2x4xf32>
    %99 = arith.mulf %97, %98 : vector<2x4xf32>
    %100 = math.floor %99 : vector<2x4xf32>
    %101 = arith.subf %99, %100 : vector<2x4xf32>
    %cst_41 = arith.constant 6.28318548 : f32
    %102 = vector.broadcast %cst_41 : f32 to vector<2x4xf32>
    %103 = arith.mulf %101, %102 : vector<2x4xf32>
    %cst_42 = arith.constant 3.14159274 : f32
    %104 = vector.broadcast %cst_42 : f32 to vector<2x4xf32>
    %105 = arith.subf %103, %104 : vector<2x4xf32>
    %cst_43 = arith.constant 1.250000e-01 : f32
    %106 = vector.broadcast %cst_43 : f32 to vector<2x4xf32>
    %107 = arith.mulf %106, %68 : vector<2x4xf32>
    %cst_44 = arith.constant 0.353553385 : f32
    %108 = vector.broadcast %cst_44 : f32 to vector<2x4xf32>
    %109 = arith.mulf %108, %77 : vector<2x4xf32>
    %cst_45 = arith.constant 1.000000e+00 : f32
    %110 = vector.broadcast %cst_45 : f32 to vector<2x4xf32>
    %111 = arith.divf %110, %109 : vector<2x4xf32>
    %cst_46 = arith.constant 2.50662827 : f32
    %112 = vector.broadcast %cst_46 : f32 to vector<2x4xf32>
    %113 = arith.mulf %109, %112 : vector<2x4xf32>
    %114 = math.log %113 : vector<2x4xf32>
    %cst_47 = arith.constant 0.000000e+00 : f32
    %115 = vector.broadcast %cst_47 : f32 to vector<2x4xf32>
    %116 = arith.subf %115, %114 : vector<2x4xf32>
    %117 = arith.subf %105, %107 : vector<2x4xf32>
    %cst_48 = arith.constant -18.849556 : f32
    %118 = vector.broadcast %cst_48 : f32 to vector<2x4xf32>
    %119 = arith.addf %117, %118 : vector<2x4xf32>
    %120 = arith.mulf %119, %111 : vector<2x4xf32>
    %121 = arith.mulf %120, %120 : vector<2x4xf32>
    %cst_49 = arith.constant -5.000000e-01 : f32
    %122 = vector.broadcast %cst_49 : f32 to vector<2x4xf32>
    %123 = arith.mulf %122, %121 : vector<2x4xf32>
    %124 = arith.addf %123, %116 : vector<2x4xf32>
    %cst_50 = arith.constant -12.566371 : f32
    %125 = vector.broadcast %cst_50 : f32 to vector<2x4xf32>
    %126 = arith.addf %117, %125 : vector<2x4xf32>
    %127 = arith.mulf %126, %111 : vector<2x4xf32>
    %128 = arith.mulf %127, %127 : vector<2x4xf32>
    %cst_51 = arith.constant -5.000000e-01 : f32
    %129 = vector.broadcast %cst_51 : f32 to vector<2x4xf32>
    %130 = arith.mulf %129, %128 : vector<2x4xf32>
    %131 = arith.addf %130, %116 : vector<2x4xf32>
    %cst_52 = arith.constant -6.28318548 : f32
    %132 = vector.broadcast %cst_52 : f32 to vector<2x4xf32>
    %133 = arith.addf %117, %132 : vector<2x4xf32>
    %134 = arith.mulf %133, %111 : vector<2x4xf32>
    %135 = arith.mulf %134, %134 : vector<2x4xf32>
    %cst_53 = arith.constant -5.000000e-01 : f32
    %136 = vector.broadcast %cst_53 : f32 to vector<2x4xf32>
    %137 = arith.mulf %136, %135 : vector<2x4xf32>
    %138 = arith.addf %137, %116 : vector<2x4xf32>
    %cst_54 = arith.constant 0.000000e+00 : f32
    %139 = vector.broadcast %cst_54 : f32 to vector<2x4xf32>
    %140 = arith.addf %117, %139 : vector<2x4xf32>
    %141 = arith.mulf %140, %111 : vector<2x4xf32>
    %142 = arith.mulf %141, %141 : vector<2x4xf32>
    %cst_55 = arith.constant -5.000000e-01 : f32
    %143 = vector.broadcast %cst_55 : f32 to vector<2x4xf32>
    %144 = arith.mulf %143, %142 : vector<2x4xf32>
    %145 = arith.addf %144, %116 : vector<2x4xf32>
    %cst_56 = arith.constant 6.28318548 : f32
    %146 = vector.broadcast %cst_56 : f32 to vector<2x4xf32>
    %147 = arith.addf %117, %146 : vector<2x4xf32>
    %148 = arith.mulf %147, %111 : vector<2x4xf32>
    %149 = arith.mulf %148, %148 : vector<2x4xf32>
    %cst_57 = arith.constant -5.000000e-01 : f32
    %150 = vector.broadcast %cst_57 : f32 to vector<2x4xf32>
    %151 = arith.mulf %150, %149 : vector<2x4xf32>
    %152 = arith.addf %151, %116 : vector<2x4xf32>
    %cst_58 = arith.constant 12.566371 : f32
    %153 = vector.broadcast %cst_58 : f32 to vector<2x4xf32>
    %154 = arith.addf %117, %153 : vector<2x4xf32>
    %155 = arith.mulf %154, %111 : vector<2x4xf32>
    %156 = arith.mulf %155, %155 : vector<2x4xf32>
    %cst_59 = arith.constant -5.000000e-01 : f32
    %157 = vector.broadcast %cst_59 : f32 to vector<2x4xf32>
    %158 = arith.mulf %157, %156 : vector<2x4xf32>
    %159 = arith.addf %158, %116 : vector<2x4xf32>
    %cst_60 = arith.constant 18.849556 : f32
    %160 = vector.broadcast %cst_60 : f32 to vector<2x4xf32>
    %161 = arith.addf %117, %160 : vector<2x4xf32>
    %162 = arith.mulf %161, %111 : vector<2x4xf32>
    %163 = arith.mulf %162, %162 : vector<2x4xf32>
    %cst_61 = arith.constant -5.000000e-01 : f32
    %164 = vector.broadcast %cst_61 : f32 to vector<2x4xf32>
    %165 = arith.mulf %164, %163 : vector<2x4xf32>
    %166 = arith.addf %165, %116 : vector<2x4xf32>
    %167 = arith.maximumf %124, %131 : vector<2x4xf32>
    %168 = arith.maximumf %167, %138 : vector<2x4xf32>
    %169 = arith.maximumf %168, %145 : vector<2x4xf32>
    %170 = arith.maximumf %169, %152 : vector<2x4xf32>
    %171 = arith.maximumf %170, %159 : vector<2x4xf32>
    %172 = arith.maximumf %171, %166 : vector<2x4xf32>
    %173 = arith.subf %124, %172 : vector<2x4xf32>
    %174 = math.exp %173 : vector<2x4xf32>
    %175 = arith.subf %131, %172 : vector<2x4xf32>
    %176 = math.exp %175 : vector<2x4xf32>
    %177 = arith.addf %174, %176 : vector<2x4xf32>
    %178 = arith.subf %138, %172 : vector<2x4xf32>
    %179 = math.exp %178 : vector<2x4xf32>
    %180 = arith.addf %177, %179 : vector<2x4xf32>
    %181 = arith.subf %145, %172 : vector<2x4xf32>
    %182 = math.exp %181 : vector<2x4xf32>
    %183 = arith.addf %180, %182 : vector<2x4xf32>
    %184 = arith.subf %152, %172 : vector<2x4xf32>
    %185 = math.exp %184 : vector<2x4xf32>
    %186 = arith.addf %183, %185 : vector<2x4xf32>
    %187 = arith.subf %159, %172 : vector<2x4xf32>
    %188 = math.exp %187 : vector<2x4xf32>
    %189 = arith.addf %186, %188 : vector<2x4xf32>
    %190 = arith.subf %166, %172 : vector<2x4xf32>
    %191 = math.exp %190 : vector<2x4xf32>
    %192 = arith.addf %189, %191 : vector<2x4xf32>
    %193 = math.log %192 : vector<2x4xf32>
    %194 = arith.addf %172, %193 : vector<2x4xf32>
    %cst_62 = arith.constant dense<0.000000e+00> : vector<2xf32>
    %195 = vector.multi_reduction <add>, %194, %cst_62 [1] : vector<2x4xf32> to vector<2xf32>
    %196 = vector.shape_cast %195 : vector<2xf32> to vector<2x1xf32>
    %cst_63 = arith.constant 0.000000e+00 : f32
    %197 = vector.broadcast %cst_63 : f32 to vector<2x1xf32>
    %198 = vector.extract_strided_slice %10 {offsets = [2, 0], sizes = [2, 4], strides = [1, 1]} : vector<16x4xf32> to vector<2x4xf32>
    %199 = vector.extract_strided_slice %9 {offsets = [1, 0], sizes = [1, 32], strides = [1, 1]} : vector<8x32xf32> to vector<1x32xf32>
    %cst_64 = arith.constant dense<0.000000e+00> : vector<2x32xf32>
    %200 = tpu.matmul %94, %0, %cst_64 {dimension_numbers = #tpu.dot_dimension_numbers<[1], [0], [0], [1], [0, 0, 1, 1], [], []>} : vector<2x4xf32>, vector<4x32xf32>, vector<2x32xf32> -> vector<2x32xf32>
    %201 = vector.broadcast %1 : vector<1x32xf32> to vector<2x32xf32>
    %202 = arith.addf %200, %201 : vector<2x32xf32>
    %cst_65 = arith.constant 5.000000e-01 : f32
    %203 = vector.broadcast %cst_65 : f32 to vector<2x32xf32>
    %204 = arith.mulf %203, %202 : vector<2x32xf32>
    %cst_66 = arith.constant 4.471500e-02 : f32
    %205 = vector.broadcast %cst_66 : f32 to vector<2x32xf32>
    %206 = arith.mulf %205, %202 : vector<2x32xf32>
    %207 = arith.mulf %206, %202 : vector<2x32xf32>
    %208 = arith.mulf %207, %202 : vector<2x32xf32>
    %209 = arith.addf %202, %208 : vector<2x32xf32>
    %cst_67 = arith.constant 0.797884583 : f32
    %210 = vector.broadcast %cst_67 : f32 to vector<2x32xf32>
    %211 = arith.mulf %210, %209 : vector<2x32xf32>
    %212 = math.tanh %211 : vector<2x32xf32>
    %cst_68 = arith.constant 1.000000e+00 : f32
    %213 = vector.broadcast %cst_68 : f32 to vector<2x32xf32>
    %214 = arith.addf %213, %212 : vector<2x32xf32>
    %215 = arith.mulf %204, %214 : vector<2x32xf32>
    %cst_69 = arith.constant dense<0.000000e+00> : vector<2x32xf32>
    %216 = tpu.matmul %215, %2, %cst_69 {dimension_numbers = #tpu.dot_dimension_numbers<[1], [0], [0], [1], [0, 0, 1, 1], [], []>} : vector<2x32xf32>, vector<32x32xf32>, vector<2x32xf32> -> vector<2x32xf32>
    %217 = vector.broadcast %3 : vector<1x32xf32> to vector<2x32xf32>
    %218 = arith.addf %216, %217 : vector<2x32xf32>
    %cst_70 = arith.constant dense<0.000000e+00> : vector<2x32xf32>
    %219 = tpu.matmul %218, %4, %cst_70 {dimension_numbers = #tpu.dot_dimension_numbers<[1], [0], [0], [1], [0, 0, 1, 1], [], []>} : vector<2x32xf32>, vector<32x32xf32>, vector<2x32xf32> -> vector<2x32xf32>
    %220 = vector.broadcast %199 : vector<1x32xf32> to vector<2x32xf32>
    %221 = arith.addf %219, %220 : vector<2x32xf32>
    %cst_71 = arith.constant 5.000000e-01 : f32
    %222 = vector.broadcast %cst_71 : f32 to vector<2x32xf32>
    %223 = arith.mulf %222, %221 : vector<2x32xf32>
    %cst_72 = arith.constant 4.471500e-02 : f32
    %224 = vector.broadcast %cst_72 : f32 to vector<2x32xf32>
    %225 = arith.mulf %224, %221 : vector<2x32xf32>
    %226 = arith.mulf %225, %221 : vector<2x32xf32>
    %227 = arith.mulf %226, %221 : vector<2x32xf32>
    %228 = arith.addf %221, %227 : vector<2x32xf32>
    %cst_73 = arith.constant 0.797884583 : f32
    %229 = vector.broadcast %cst_73 : f32 to vector<2x32xf32>
    %230 = arith.mulf %229, %228 : vector<2x32xf32>
    %231 = math.tanh %230 : vector<2x32xf32>
    %cst_74 = arith.constant 1.000000e+00 : f32
    %232 = vector.broadcast %cst_74 : f32 to vector<2x32xf32>
    %233 = arith.addf %232, %231 : vector<2x32xf32>
    %234 = arith.mulf %223, %233 : vector<2x32xf32>
    %cst_75 = arith.constant dense<0.000000e+00> : vector<2x32xf32>
    %235 = tpu.matmul %234, %5, %cst_75 {dimension_numbers = #tpu.dot_dimension_numbers<[1], [0], [0], [1], [0, 0, 1, 1], [], []>} : vector<2x32xf32>, vector<32x32xf32>, vector<2x32xf32> -> vector<2x32xf32>
    %236 = vector.broadcast %6 : vector<1x32xf32> to vector<2x32xf32>
    %237 = arith.addf %235, %236 : vector<2x32xf32>
    %cst_76 = arith.constant 5.000000e-01 : f32
    %238 = vector.broadcast %cst_76 : f32 to vector<2x32xf32>
    %239 = arith.mulf %238, %237 : vector<2x32xf32>
    %cst_77 = arith.constant 4.471500e-02 : f32
    %240 = vector.broadcast %cst_77 : f32 to vector<2x32xf32>
    %241 = arith.mulf %240, %237 : vector<2x32xf32>
    %242 = arith.mulf %241, %237 : vector<2x32xf32>
    %243 = arith.mulf %242, %237 : vector<2x32xf32>
    %244 = arith.addf %237, %243 : vector<2x32xf32>
    %cst_78 = arith.constant 0.797884583 : f32
    %245 = vector.broadcast %cst_78 : f32 to vector<2x32xf32>
    %246 = arith.mulf %245, %244 : vector<2x32xf32>
    %247 = math.tanh %246 : vector<2x32xf32>
    %cst_79 = arith.constant 1.000000e+00 : f32
    %248 = vector.broadcast %cst_79 : f32 to vector<2x32xf32>
    %249 = arith.addf %248, %247 : vector<2x32xf32>
    %250 = arith.mulf %239, %249 : vector<2x32xf32>
    %cst_80 = arith.constant dense<0.000000e+00> : vector<2x32xf32>
    %251 = tpu.matmul %250, %7, %cst_80 {dimension_numbers = #tpu.dot_dimension_numbers<[1], [0], [0], [1], [0, 0, 1, 1], [], []>} : vector<2x32xf32>, vector<32x32xf32>, vector<2x32xf32> -> vector<2x32xf32>
    %252 = vector.broadcast %8 : vector<1x32xf32> to vector<2x32xf32>
    %253 = arith.addf %251, %252 : vector<2x32xf32>
    %254 = vector.extract_strided_slice %253 {offsets = [0, 0], sizes = [2, 4], strides = [1, 1]} : vector<2x32xf32> to vector<2x4xf32>
    %255 = vector.extract_strided_slice %253 {offsets = [0, 4], sizes = [2, 4], strides = [1, 1]} : vector<2x32xf32> to vector<2x4xf32>
    %256 = math.tanh %255 : vector<2x4xf32>
    %cst_81 = arith.constant 4.000000e+00 : f32
    %257 = vector.broadcast %cst_81 : f32 to vector<2x4xf32>
    %258 = arith.mulf %256, %257 : vector<2x4xf32>
    %cst_82 = arith.constant 0.000000e+00 : f32
    %259 = vector.broadcast %cst_82 : f32 to vector<2x4xf32>
    %260 = arith.addf %258, %259 : vector<2x4xf32>
    %cst_83 = arith.constant 5.000000e-01 : f32
    %261 = vector.broadcast %cst_83 : f32 to vector<2x4xf32>
    %262 = arith.mulf %261, %260 : vector<2x4xf32>
    %263 = math.exp %262 : vector<2x4xf32>
    %cst_84 = arith.constant 1.250000e-01 : f32
    %264 = vector.broadcast %cst_84 : f32 to vector<2x4xf32>
    %265 = arith.mulf %264, %254 : vector<2x4xf32>
    %266 = arith.addf %94, %265 : vector<2x4xf32>
    %cst_85 = arith.constant 0.353553385 : f32
    %267 = vector.broadcast %cst_85 : f32 to vector<2x4xf32>
    %268 = arith.mulf %267, %263 : vector<2x4xf32>
    %269 = arith.mulf %268, %198 : vector<2x4xf32>
    %270 = arith.addf %266, %269 : vector<2x4xf32>
    %cst_86 = arith.constant 3.14159274 : f32
    %271 = vector.broadcast %cst_86 : f32 to vector<2x4xf32>
    %272 = arith.addf %270, %271 : vector<2x4xf32>
    %cst_87 = arith.constant 0.159154937 : f32
    %273 = vector.broadcast %cst_87 : f32 to vector<2x4xf32>
    %274 = arith.mulf %272, %273 : vector<2x4xf32>
    %275 = math.floor %274 : vector<2x4xf32>
    %276 = arith.subf %274, %275 : vector<2x4xf32>
    %cst_88 = arith.constant 6.28318548 : f32
    %277 = vector.broadcast %cst_88 : f32 to vector<2x4xf32>
    %278 = arith.mulf %276, %277 : vector<2x4xf32>
    %cst_89 = arith.constant 3.14159274 : f32
    %279 = vector.broadcast %cst_89 : f32 to vector<2x4xf32>
    %280 = arith.subf %278, %279 : vector<2x4xf32>
    %281 = arith.subf %280, %94 : vector<2x4xf32>
    %cst_90 = arith.constant 3.14159274 : f32
    %282 = vector.broadcast %cst_90 : f32 to vector<2x4xf32>
    %283 = arith.addf %281, %282 : vector<2x4xf32>
    %cst_91 = arith.constant 0.159154937 : f32
    %284 = vector.broadcast %cst_91 : f32 to vector<2x4xf32>
    %285 = arith.mulf %283, %284 : vector<2x4xf32>
    %286 = math.floor %285 : vector<2x4xf32>
    %287 = arith.subf %285, %286 : vector<2x4xf32>
    %cst_92 = arith.constant 6.28318548 : f32
    %288 = vector.broadcast %cst_92 : f32 to vector<2x4xf32>
    %289 = arith.mulf %287, %288 : vector<2x4xf32>
    %cst_93 = arith.constant 3.14159274 : f32
    %290 = vector.broadcast %cst_93 : f32 to vector<2x4xf32>
    %291 = arith.subf %289, %290 : vector<2x4xf32>
    %cst_94 = arith.constant 1.250000e-01 : f32
    %292 = vector.broadcast %cst_94 : f32 to vector<2x4xf32>
    %293 = arith.mulf %292, %254 : vector<2x4xf32>
    %cst_95 = arith.constant 0.353553385 : f32
    %294 = vector.broadcast %cst_95 : f32 to vector<2x4xf32>
    %295 = arith.mulf %294, %263 : vector<2x4xf32>
    %cst_96 = arith.constant 1.000000e+00 : f32
    %296 = vector.broadcast %cst_96 : f32 to vector<2x4xf32>
    %297 = arith.divf %296, %295 : vector<2x4xf32>
    %cst_97 = arith.constant 2.50662827 : f32
    %298 = vector.broadcast %cst_97 : f32 to vector<2x4xf32>
    %299 = arith.mulf %295, %298 : vector<2x4xf32>
    %300 = math.log %299 : vector<2x4xf32>
    %cst_98 = arith.constant 0.000000e+00 : f32
    %301 = vector.broadcast %cst_98 : f32 to vector<2x4xf32>
    %302 = arith.subf %301, %300 : vector<2x4xf32>
    %303 = arith.subf %291, %293 : vector<2x4xf32>
    %cst_99 = arith.constant -18.849556 : f32
    %304 = vector.broadcast %cst_99 : f32 to vector<2x4xf32>
    %305 = arith.addf %303, %304 : vector<2x4xf32>
    %306 = arith.mulf %305, %297 : vector<2x4xf32>
    %307 = arith.mulf %306, %306 : vector<2x4xf32>
    %cst_100 = arith.constant -5.000000e-01 : f32
    %308 = vector.broadcast %cst_100 : f32 to vector<2x4xf32>
    %309 = arith.mulf %308, %307 : vector<2x4xf32>
    %310 = arith.addf %309, %302 : vector<2x4xf32>
    %cst_101 = arith.constant -12.566371 : f32
    %311 = vector.broadcast %cst_101 : f32 to vector<2x4xf32>
    %312 = arith.addf %303, %311 : vector<2x4xf32>
    %313 = arith.mulf %312, %297 : vector<2x4xf32>
    %314 = arith.mulf %313, %313 : vector<2x4xf32>
    %cst_102 = arith.constant -5.000000e-01 : f32
    %315 = vector.broadcast %cst_102 : f32 to vector<2x4xf32>
    %316 = arith.mulf %315, %314 : vector<2x4xf32>
    %317 = arith.addf %316, %302 : vector<2x4xf32>
    %cst_103 = arith.constant -6.28318548 : f32
    %318 = vector.broadcast %cst_103 : f32 to vector<2x4xf32>
    %319 = arith.addf %303, %318 : vector<2x4xf32>
    %320 = arith.mulf %319, %297 : vector<2x4xf32>
    %321 = arith.mulf %320, %320 : vector<2x4xf32>
    %cst_104 = arith.constant -5.000000e-01 : f32
    %322 = vector.broadcast %cst_104 : f32 to vector<2x4xf32>
    %323 = arith.mulf %322, %321 : vector<2x4xf32>
    %324 = arith.addf %323, %302 : vector<2x4xf32>
    %cst_105 = arith.constant 0.000000e+00 : f32
    %325 = vector.broadcast %cst_105 : f32 to vector<2x4xf32>
    %326 = arith.addf %303, %325 : vector<2x4xf32>
    %327 = arith.mulf %326, %297 : vector<2x4xf32>
    %328 = arith.mulf %327, %327 : vector<2x4xf32>
    %cst_106 = arith.constant -5.000000e-01 : f32
    %329 = vector.broadcast %cst_106 : f32 to vector<2x4xf32>
    %330 = arith.mulf %329, %328 : vector<2x4xf32>
    %331 = arith.addf %330, %302 : vector<2x4xf32>
    %cst_107 = arith.constant 6.28318548 : f32
    %332 = vector.broadcast %cst_107 : f32 to vector<2x4xf32>
    %333 = arith.addf %303, %332 : vector<2x4xf32>
    %334 = arith.mulf %333, %297 : vector<2x4xf32>
    %335 = arith.mulf %334, %334 : vector<2x4xf32>
    %cst_108 = arith.constant -5.000000e-01 : f32
    %336 = vector.broadcast %cst_108 : f32 to vector<2x4xf32>
    %337 = arith.mulf %336, %335 : vector<2x4xf32>
    %338 = arith.addf %337, %302 : vector<2x4xf32>
    %cst_109 = arith.constant 12.566371 : f32
    %339 = vector.broadcast %cst_109 : f32 to vector<2x4xf32>
    %340 = arith.addf %303, %339 : vector<2x4xf32>
    %341 = arith.mulf %340, %297 : vector<2x4xf32>
    %342 = arith.mulf %341, %341 : vector<2x4xf32>
    %cst_110 = arith.constant -5.000000e-01 : f32
    %343 = vector.broadcast %cst_110 : f32 to vector<2x4xf32>
    %344 = arith.mulf %343, %342 : vector<2x4xf32>
    %345 = arith.addf %344, %302 : vector<2x4xf32>
    %cst_111 = arith.constant 18.849556 : f32
    %346 = vector.broadcast %cst_111 : f32 to vector<2x4xf32>
    %347 = arith.addf %303, %346 : vector<2x4xf32>
    %348 = arith.mulf %347, %297 : vector<2x4xf32>
    %349 = arith.mulf %348, %348 : vector<2x4xf32>
    %cst_112 = arith.constant -5.000000e-01 : f32
    %350 = vector.broadcast %cst_112 : f32 to vector<2x4xf32>
    %351 = arith.mulf %350, %349 : vector<2x4xf32>
    %352 = arith.addf %351, %302 : vector<2x4xf32>
    %353 = arith.maximumf %310, %317 : vector<2x4xf32>
    %354 = arith.maximumf %353, %324 : vector<2x4xf32>
    %355 = arith.maximumf %354, %331 : vector<2x4xf32>
    %356 = arith.maximumf %355, %338 : vector<2x4xf32>
    %357 = arith.maximumf %356, %345 : vector<2x4xf32>
    %358 = arith.maximumf %357, %352 : vector<2x4xf32>
    %359 = arith.subf %310, %358 : vector<2x4xf32>
    %360 = math.exp %359 : vector<2x4xf32>
    %361 = arith.subf %317, %358 : vector<2x4xf32>
    %362 = math.exp %361 : vector<2x4xf32>
    %363 = arith.addf %360, %362 : vector<2x4xf32>
    %364 = arith.subf %324, %358 : vector<2x4xf32>
    %365 = math.exp %364 : vector<2x4xf32>
    %366 = arith.addf %363, %365 : vector<2x4xf32>
    %367 = arith.subf %331, %358 : vector<2x4xf32>
    %368 = math.exp %367 : vector<2x4xf32>
    %369 = arith.addf %366, %368 : vector<2x4xf32>
    %370 = arith.subf %338, %358 : vector<2x4xf32>
    %371 = math.exp %370 : vector<2x4xf32>
    %372 = arith.addf %369, %371 : vector<2x4xf32>
    %373 = arith.subf %345, %358 : vector<2x4xf32>
    %374 = math.exp %373 : vector<2x4xf32>
    %375 = arith.addf %372, %374 : vector<2x4xf32>
    %376 = arith.subf %352, %358 : vector<2x4xf32>
    %377 = math.exp %376 : vector<2x4xf32>
    %378 = arith.addf %375, %377 : vector<2x4xf32>
    %379 = math.log %378 : vector<2x4xf32>
    %380 = arith.addf %358, %379 : vector<2x4xf32>
    %cst_113 = arith.constant dense<0.000000e+00> : vector<2xf32>
    %381 = vector.multi_reduction <add>, %380, %cst_113 [1] : vector<2x4xf32> to vector<2xf32>
    %382 = vector.shape_cast %381 : vector<2xf32> to vector<2x1xf32>
    %383 = arith.subf %94, %280 : vector<2x4xf32>
    %cst_114 = arith.constant 3.14159274 : f32
    %384 = vector.broadcast %cst_114 : f32 to vector<2x4xf32>
    %385 = arith.addf %383, %384 : vector<2x4xf32>
    %cst_115 = arith.constant 0.159154937 : f32
    %386 = vector.broadcast %cst_115 : f32 to vector<2x4xf32>
    %387 = arith.mulf %385, %386 : vector<2x4xf32>
    %388 = math.floor %387 : vector<2x4xf32>
    %389 = arith.subf %387, %388 : vector<2x4xf32>
    %cst_116 = arith.constant 6.28318548 : f32
    %390 = vector.broadcast %cst_116 : f32 to vector<2x4xf32>
    %391 = arith.mulf %389, %390 : vector<2x4xf32>
    %cst_117 = arith.constant 3.14159274 : f32
    %392 = vector.broadcast %cst_117 : f32 to vector<2x4xf32>
    %393 = arith.subf %391, %392 : vector<2x4xf32>
    %cst_118 = arith.constant 0.000000e+00 : f32
    %394 = vector.broadcast %cst_118 : f32 to vector<2x4xf32>
    %395 = arith.subf %394, %280 : vector<2x4xf32>
    %cst_119 = arith.constant 5.000000e-01 : f32
    %396 = vector.broadcast %cst_119 : f32 to vector<2x4xf32>
    %397 = arith.mulf %395, %396 : vector<2x4xf32>
    %398 = arith.subf %393, %397 : vector<2x4xf32>
    %cst_120 = arith.constant -18.849556 : f32
    %399 = vector.broadcast %cst_120 : f32 to vector<2x4xf32>
    %400 = arith.addf %398, %399 : vector<2x4xf32>
    %cst_121 = arith.constant 4.000000e+00 : f32
    %401 = vector.broadcast %cst_121 : f32 to vector<2x4xf32>
    %402 = arith.mulf %400, %401 : vector<2x4xf32>
    %403 = arith.mulf %402, %402 : vector<2x4xf32>
    %cst_122 = arith.constant -5.000000e-01 : f32
    %404 = vector.broadcast %cst_122 : f32 to vector<2x4xf32>
    %405 = arith.mulf %404, %403 : vector<2x4xf32>
    %cst_123 = arith.constant 0.467355818 : f32
    %406 = vector.broadcast %cst_123 : f32 to vector<2x4xf32>
    %407 = arith.addf %405, %406 : vector<2x4xf32>
    %cst_124 = arith.constant -12.566371 : f32
    %408 = vector.broadcast %cst_124 : f32 to vector<2x4xf32>
    %409 = arith.addf %398, %408 : vector<2x4xf32>
    %cst_125 = arith.constant 4.000000e+00 : f32
    %410 = vector.broadcast %cst_125 : f32 to vector<2x4xf32>
    %411 = arith.mulf %409, %410 : vector<2x4xf32>
    %412 = arith.mulf %411, %411 : vector<2x4xf32>
    %cst_126 = arith.constant -5.000000e-01 : f32
    %413 = vector.broadcast %cst_126 : f32 to vector<2x4xf32>
    %414 = arith.mulf %413, %412 : vector<2x4xf32>
    %cst_127 = arith.constant 0.467355818 : f32
    %415 = vector.broadcast %cst_127 : f32 to vector<2x4xf32>
    %416 = arith.addf %414, %415 : vector<2x4xf32>
    %cst_128 = arith.constant -6.28318548 : f32
    %417 = vector.broadcast %cst_128 : f32 to vector<2x4xf32>
    %418 = arith.addf %398, %417 : vector<2x4xf32>
    %cst_129 = arith.constant 4.000000e+00 : f32
    %419 = vector.broadcast %cst_129 : f32 to vector<2x4xf32>
    %420 = arith.mulf %418, %419 : vector<2x4xf32>
    %421 = arith.mulf %420, %420 : vector<2x4xf32>
    %cst_130 = arith.constant -5.000000e-01 : f32
    %422 = vector.broadcast %cst_130 : f32 to vector<2x4xf32>
    %423 = arith.mulf %422, %421 : vector<2x4xf32>
    %cst_131 = arith.constant 0.467355818 : f32
    %424 = vector.broadcast %cst_131 : f32 to vector<2x4xf32>
    %425 = arith.addf %423, %424 : vector<2x4xf32>
    %cst_132 = arith.constant 0.000000e+00 : f32
    %426 = vector.broadcast %cst_132 : f32 to vector<2x4xf32>
    %427 = arith.addf %398, %426 : vector<2x4xf32>
    %cst_133 = arith.constant 4.000000e+00 : f32
    %428 = vector.broadcast %cst_133 : f32 to vector<2x4xf32>
    %429 = arith.mulf %427, %428 : vector<2x4xf32>
    %430 = arith.mulf %429, %429 : vector<2x4xf32>
    %cst_134 = arith.constant -5.000000e-01 : f32
    %431 = vector.broadcast %cst_134 : f32 to vector<2x4xf32>
    %432 = arith.mulf %431, %430 : vector<2x4xf32>
    %cst_135 = arith.constant 0.467355818 : f32
    %433 = vector.broadcast %cst_135 : f32 to vector<2x4xf32>
    %434 = arith.addf %432, %433 : vector<2x4xf32>
    %cst_136 = arith.constant 6.28318548 : f32
    %435 = vector.broadcast %cst_136 : f32 to vector<2x4xf32>
    %436 = arith.addf %398, %435 : vector<2x4xf32>
    %cst_137 = arith.constant 4.000000e+00 : f32
    %437 = vector.broadcast %cst_137 : f32 to vector<2x4xf32>
    %438 = arith.mulf %436, %437 : vector<2x4xf32>
    %439 = arith.mulf %438, %438 : vector<2x4xf32>
    %cst_138 = arith.constant -5.000000e-01 : f32
    %440 = vector.broadcast %cst_138 : f32 to vector<2x4xf32>
    %441 = arith.mulf %440, %439 : vector<2x4xf32>
    %cst_139 = arith.constant 0.467355818 : f32
    %442 = vector.broadcast %cst_139 : f32 to vector<2x4xf32>
    %443 = arith.addf %441, %442 : vector<2x4xf32>
    %cst_140 = arith.constant 12.566371 : f32
    %444 = vector.broadcast %cst_140 : f32 to vector<2x4xf32>
    %445 = arith.addf %398, %444 : vector<2x4xf32>
    %cst_141 = arith.constant 4.000000e+00 : f32
    %446 = vector.broadcast %cst_141 : f32 to vector<2x4xf32>
    %447 = arith.mulf %445, %446 : vector<2x4xf32>
    %448 = arith.mulf %447, %447 : vector<2x4xf32>
    %cst_142 = arith.constant -5.000000e-01 : f32
    %449 = vector.broadcast %cst_142 : f32 to vector<2x4xf32>
    %450 = arith.mulf %449, %448 : vector<2x4xf32>
    %cst_143 = arith.constant 0.467355818 : f32
    %451 = vector.broadcast %cst_143 : f32 to vector<2x4xf32>
    %452 = arith.addf %450, %451 : vector<2x4xf32>
    %cst_144 = arith.constant 18.849556 : f32
    %453 = vector.broadcast %cst_144 : f32 to vector<2x4xf32>
    %454 = arith.addf %398, %453 : vector<2x4xf32>
    %cst_145 = arith.constant 4.000000e+00 : f32
    %455 = vector.broadcast %cst_145 : f32 to vector<2x4xf32>
    %456 = arith.mulf %454, %455 : vector<2x4xf32>
    %457 = arith.mulf %456, %456 : vector<2x4xf32>
    %cst_146 = arith.constant -5.000000e-01 : f32
    %458 = vector.broadcast %cst_146 : f32 to vector<2x4xf32>
    %459 = arith.mulf %458, %457 : vector<2x4xf32>
    %cst_147 = arith.constant 0.467355818 : f32
    %460 = vector.broadcast %cst_147 : f32 to vector<2x4xf32>
    %461 = arith.addf %459, %460 : vector<2x4xf32>
    %462 = arith.maximumf %407, %416 : vector<2x4xf32>
    %463 = arith.maximumf %462, %425 : vector<2x4xf32>
    %464 = arith.maximumf %463, %434 : vector<2x4xf32>
    %465 = arith.maximumf %464, %443 : vector<2x4xf32>
    %466 = arith.maximumf %465, %452 : vector<2x4xf32>
    %467 = arith.maximumf %466, %461 : vector<2x4xf32>
    %468 = arith.subf %407, %467 : vector<2x4xf32>
    %469 = math.exp %468 : vector<2x4xf32>
    %470 = arith.subf %416, %467 : vector<2x4xf32>
    %471 = math.exp %470 : vector<2x4xf32>
    %472 = arith.addf %469, %471 : vector<2x4xf32>
    %473 = arith.subf %425, %467 : vector<2x4xf32>
    %474 = math.exp %473 : vector<2x4xf32>
    %475 = arith.addf %472, %474 : vector<2x4xf32>
    %476 = arith.subf %434, %467 : vector<2x4xf32>
    %477 = math.exp %476 : vector<2x4xf32>
    %478 = arith.addf %475, %477 : vector<2x4xf32>
    %479 = arith.subf %443, %467 : vector<2x4xf32>
    %480 = math.exp %479 : vector<2x4xf32>
    %481 = arith.addf %478, %480 : vector<2x4xf32>
    %482 = arith.subf %452, %467 : vector<2x4xf32>
    %483 = math.exp %482 : vector<2x4xf32>
    %484 = arith.addf %481, %483 : vector<2x4xf32>
    %485 = arith.subf %461, %467 : vector<2x4xf32>
    %486 = math.exp %485 : vector<2x4xf32>
    %487 = arith.addf %484, %486 : vector<2x4xf32>
    %488 = math.log %487 : vector<2x4xf32>
    %489 = arith.addf %467, %488 : vector<2x4xf32>
    %cst_148 = arith.constant dense<0.000000e+00> : vector<2xf32>
    %490 = vector.multi_reduction <add>, %489, %cst_148 [1] : vector<2x4xf32> to vector<2xf32>
    %491 = vector.shape_cast %490 : vector<2xf32> to vector<2x1xf32>
    %492 = vector.extract_strided_slice %10 {offsets = [4, 0], sizes = [2, 4], strides = [1, 1]} : vector<16x4xf32> to vector<2x4xf32>
    %493 = vector.extract_strided_slice %9 {offsets = [2, 0], sizes = [1, 32], strides = [1, 1]} : vector<8x32xf32> to vector<1x32xf32>
    %cst_149 = arith.constant dense<0.000000e+00> : vector<2x32xf32>
    %494 = tpu.matmul %280, %0, %cst_149 {dimension_numbers = #tpu.dot_dimension_numbers<[1], [0], [0], [1], [0, 0, 1, 1], [], []>} : vector<2x4xf32>, vector<4x32xf32>, vector<2x32xf32> -> vector<2x32xf32>
    %495 = vector.broadcast %1 : vector<1x32xf32> to vector<2x32xf32>
    %496 = arith.addf %494, %495 : vector<2x32xf32>
    %cst_150 = arith.constant 5.000000e-01 : f32
    %497 = vector.broadcast %cst_150 : f32 to vector<2x32xf32>
    %498 = arith.mulf %497, %496 : vector<2x32xf32>
    %cst_151 = arith.constant 4.471500e-02 : f32
    %499 = vector.broadcast %cst_151 : f32 to vector<2x32xf32>
    %500 = arith.mulf %499, %496 : vector<2x32xf32>
    %501 = arith.mulf %500, %496 : vector<2x32xf32>
    %502 = arith.mulf %501, %496 : vector<2x32xf32>
    %503 = arith.addf %496, %502 : vector<2x32xf32>
    %cst_152 = arith.constant 0.797884583 : f32
    %504 = vector.broadcast %cst_152 : f32 to vector<2x32xf32>
    %505 = arith.mulf %504, %503 : vector<2x32xf32>
    %506 = math.tanh %505 : vector<2x32xf32>
    %cst_153 = arith.constant 1.000000e+00 : f32
    %507 = vector.broadcast %cst_153 : f32 to vector<2x32xf32>
    %508 = arith.addf %507, %506 : vector<2x32xf32>
    %509 = arith.mulf %498, %508 : vector<2x32xf32>
    %cst_154 = arith.constant dense<0.000000e+00> : vector<2x32xf32>
    %510 = tpu.matmul %509, %2, %cst_154 {dimension_numbers = #tpu.dot_dimension_numbers<[1], [0], [0], [1], [0, 0, 1, 1], [], []>} : vector<2x32xf32>, vector<32x32xf32>, vector<2x32xf32> -> vector<2x32xf32>
    %511 = vector.broadcast %3 : vector<1x32xf32> to vector<2x32xf32>
    %512 = arith.addf %510, %511 : vector<2x32xf32>
    %cst_155 = arith.constant dense<0.000000e+00> : vector<2x32xf32>
    %513 = tpu.matmul %512, %4, %cst_155 {dimension_numbers = #tpu.dot_dimension_numbers<[1], [0], [0], [1], [0, 0, 1, 1], [], []>} : vector<2x32xf32>, vector<32x32xf32>, vector<2x32xf32> -> vector<2x32xf32>
    %514 = vector.broadcast %493 : vector<1x32xf32> to vector<2x32xf32>
    %515 = arith.addf %513, %514 : vector<2x32xf32>
    %cst_156 = arith.constant 5.000000e-01 : f32
    %516 = vector.broadcast %cst_156 : f32 to vector<2x32xf32>
    %517 = arith.mulf %516, %515 : vector<2x32xf32>
    %cst_157 = arith.constant 4.471500e-02 : f32
    %518 = vector.broadcast %cst_157 : f32 to vector<2x32xf32>
    %519 = arith.mulf %518, %515 : vector<2x32xf32>
    %520 = arith.mulf %519, %515 : vector<2x32xf32>
    %521 = arith.mulf %520, %515 : vector<2x32xf32>
    %522 = arith.addf %515, %521 : vector<2x32xf32>
    %cst_158 = arith.constant 0.797884583 : f32
    %523 = vector.broadcast %cst_158 : f32 to vector<2x32xf32>
    %524 = arith.mulf %523, %522 : vector<2x32xf32>
    %525 = math.tanh %524 : vector<2x32xf32>
    %cst_159 = arith.constant 1.000000e+00 : f32
    %526 = vector.broadcast %cst_159 : f32 to vector<2x32xf32>
    %527 = arith.addf %526, %525 : vector<2x32xf32>
    %528 = arith.mulf %517, %527 : vector<2x32xf32>
    %cst_160 = arith.constant dense<0.000000e+00> : vector<2x32xf32>
    %529 = tpu.matmul %528, %5, %cst_160 {dimension_numbers = #tpu.dot_dimension_numbers<[1], [0], [0], [1], [0, 0, 1, 1], [], []>} : vector<2x32xf32>, vector<32x32xf32>, vector<2x32xf32> -> vector<2x32xf32>
    %530 = vector.broadcast %6 : vector<1x32xf32> to vector<2x32xf32>
    %531 = arith.addf %529, %530 : vector<2x32xf32>
    %cst_161 = arith.constant 5.000000e-01 : f32
    %532 = vector.broadcast %cst_161 : f32 to vector<2x32xf32>
    %533 = arith.mulf %532, %531 : vector<2x32xf32>
    %cst_162 = arith.constant 4.471500e-02 : f32
    %534 = vector.broadcast %cst_162 : f32 to vector<2x32xf32>
    %535 = arith.mulf %534, %531 : vector<2x32xf32>
    %536 = arith.mulf %535, %531 : vector<2x32xf32>
    %537 = arith.mulf %536, %531 : vector<2x32xf32>
    %538 = arith.addf %531, %537 : vector<2x32xf32>
    %cst_163 = arith.constant 0.797884583 : f32
    %539 = vector.broadcast %cst_163 : f32 to vector<2x32xf32>
    %540 = arith.mulf %539, %538 : vector<2x32xf32>
    %541 = math.tanh %540 : vector<2x32xf32>
    %cst_164 = arith.constant 1.000000e+00 : f32
    %542 = vector.broadcast %cst_164 : f32 to vector<2x32xf32>
    %543 = arith.addf %542, %541 : vector<2x32xf32>
    %544 = arith.mulf %533, %543 : vector<2x32xf32>
    %cst_165 = arith.constant dense<0.000000e+00> : vector<2x32xf32>
    %545 = tpu.matmul %544, %7, %cst_165 {dimension_numbers = #tpu.dot_dimension_numbers<[1], [0], [0], [1], [0, 0, 1, 1], [], []>} : vector<2x32xf32>, vector<32x32xf32>, vector<2x32xf32> -> vector<2x32xf32>
    %546 = vector.broadcast %8 : vector<1x32xf32> to vector<2x32xf32>
    %547 = arith.addf %545, %546 : vector<2x32xf32>
    %548 = vector.extract_strided_slice %547 {offsets = [0, 0], sizes = [2, 4], strides = [1, 1]} : vector<2x32xf32> to vector<2x4xf32>
    %549 = vector.extract_strided_slice %547 {offsets = [0, 4], sizes = [2, 4], strides = [1, 1]} : vector<2x32xf32> to vector<2x4xf32>
    %550 = math.tanh %549 : vector<2x4xf32>
    %cst_166 = arith.constant 4.000000e+00 : f32
    %551 = vector.broadcast %cst_166 : f32 to vector<2x4xf32>
    %552 = arith.mulf %550, %551 : vector<2x4xf32>
    %cst_167 = arith.constant 0.000000e+00 : f32
    %553 = vector.broadcast %cst_167 : f32 to vector<2x4xf32>
    %554 = arith.addf %552, %553 : vector<2x4xf32>
    %cst_168 = arith.constant 5.000000e-01 : f32
    %555 = vector.broadcast %cst_168 : f32 to vector<2x4xf32>
    %556 = arith.mulf %555, %554 : vector<2x4xf32>
    %557 = math.exp %556 : vector<2x4xf32>
    %cst_169 = arith.constant 1.250000e-01 : f32
    %558 = vector.broadcast %cst_169 : f32 to vector<2x4xf32>
    %559 = arith.mulf %558, %548 : vector<2x4xf32>
    %560 = arith.addf %280, %559 : vector<2x4xf32>
    %cst_170 = arith.constant 0.353553385 : f32
    %561 = vector.broadcast %cst_170 : f32 to vector<2x4xf32>
    %562 = arith.mulf %561, %557 : vector<2x4xf32>
    %563 = arith.mulf %562, %492 : vector<2x4xf32>
    %564 = arith.addf %560, %563 : vector<2x4xf32>
    %cst_171 = arith.constant 3.14159274 : f32
    %565 = vector.broadcast %cst_171 : f32 to vector<2x4xf32>
    %566 = arith.addf %564, %565 : vector<2x4xf32>
    %cst_172 = arith.constant 0.159154937 : f32
    %567 = vector.broadcast %cst_172 : f32 to vector<2x4xf32>
    %568 = arith.mulf %566, %567 : vector<2x4xf32>
    %569 = math.floor %568 : vector<2x4xf32>
    %570 = arith.subf %568, %569 : vector<2x4xf32>
    %cst_173 = arith.constant 6.28318548 : f32
    %571 = vector.broadcast %cst_173 : f32 to vector<2x4xf32>
    %572 = arith.mulf %570, %571 : vector<2x4xf32>
    %cst_174 = arith.constant 3.14159274 : f32
    %573 = vector.broadcast %cst_174 : f32 to vector<2x4xf32>
    %574 = arith.subf %572, %573 : vector<2x4xf32>
    %575 = arith.subf %574, %280 : vector<2x4xf32>
    %cst_175 = arith.constant 3.14159274 : f32
    %576 = vector.broadcast %cst_175 : f32 to vector<2x4xf32>
    %577 = arith.addf %575, %576 : vector<2x4xf32>
    %cst_176 = arith.constant 0.159154937 : f32
    %578 = vector.broadcast %cst_176 : f32 to vector<2x4xf32>
    %579 = arith.mulf %577, %578 : vector<2x4xf32>
    %580 = math.floor %579 : vector<2x4xf32>
    %581 = arith.subf %579, %580 : vector<2x4xf32>
    %cst_177 = arith.constant 6.28318548 : f32
    %582 = vector.broadcast %cst_177 : f32 to vector<2x4xf32>
    %583 = arith.mulf %581, %582 : vector<2x4xf32>
    %cst_178 = arith.constant 3.14159274 : f32
    %584 = vector.broadcast %cst_178 : f32 to vector<2x4xf32>
    %585 = arith.subf %583, %584 : vector<2x4xf32>
    %cst_179 = arith.constant 1.250000e-01 : f32
    %586 = vector.broadcast %cst_179 : f32 to vector<2x4xf32>
    %587 = arith.mulf %586, %548 : vector<2x4xf32>
    %cst_180 = arith.constant 0.353553385 : f32
    %588 = vector.broadcast %cst_180 : f32 to vector<2x4xf32>
    %589 = arith.mulf %588, %557 : vector<2x4xf32>
    %cst_181 = arith.constant 1.000000e+00 : f32
    %590 = vector.broadcast %cst_181 : f32 to vector<2x4xf32>
    %591 = arith.divf %590, %589 : vector<2x4xf32>
    %cst_182 = arith.constant 2.50662827 : f32
    %592 = vector.broadcast %cst_182 : f32 to vector<2x4xf32>
    %593 = arith.mulf %589, %592 : vector<2x4xf32>
    %594 = math.log %593 : vector<2x4xf32>
    %cst_183 = arith.constant 0.000000e+00 : f32
    %595 = vector.broadcast %cst_183 : f32 to vector<2x4xf32>
    %596 = arith.subf %595, %594 : vector<2x4xf32>
    %597 = arith.subf %585, %587 : vector<2x4xf32>
    %cst_184 = arith.constant -18.849556 : f32
    %598 = vector.broadcast %cst_184 : f32 to vector<2x4xf32>
    %599 = arith.addf %597, %598 : vector<2x4xf32>
    %600 = arith.mulf %599, %591 : vector<2x4xf32>
    %601 = arith.mulf %600, %600 : vector<2x4xf32>
    %cst_185 = arith.constant -5.000000e-01 : f32
    %602 = vector.broadcast %cst_185 : f32 to vector<2x4xf32>
    %603 = arith.mulf %602, %601 : vector<2x4xf32>
    %604 = arith.addf %603, %596 : vector<2x4xf32>
    %cst_186 = arith.constant -12.566371 : f32
    %605 = vector.broadcast %cst_186 : f32 to vector<2x4xf32>
    %606 = arith.addf %597, %605 : vector<2x4xf32>
    %607 = arith.mulf %606, %591 : vector<2x4xf32>
    %608 = arith.mulf %607, %607 : vector<2x4xf32>
    %cst_187 = arith.constant -5.000000e-01 : f32
    %609 = vector.broadcast %cst_187 : f32 to vector<2x4xf32>
    %610 = arith.mulf %609, %608 : vector<2x4xf32>
    %611 = arith.addf %610, %596 : vector<2x4xf32>
    %cst_188 = arith.constant -6.28318548 : f32
    %612 = vector.broadcast %cst_188 : f32 to vector<2x4xf32>
    %613 = arith.addf %597, %612 : vector<2x4xf32>
    %614 = arith.mulf %613, %591 : vector<2x4xf32>
    %615 = arith.mulf %614, %614 : vector<2x4xf32>
    %cst_189 = arith.constant -5.000000e-01 : f32
    %616 = vector.broadcast %cst_189 : f32 to vector<2x4xf32>
    %617 = arith.mulf %616, %615 : vector<2x4xf32>
    %618 = arith.addf %617, %596 : vector<2x4xf32>
    %cst_190 = arith.constant 0.000000e+00 : f32
    %619 = vector.broadcast %cst_190 : f32 to vector<2x4xf32>
    %620 = arith.addf %597, %619 : vector<2x4xf32>
    %621 = arith.mulf %620, %591 : vector<2x4xf32>
    %622 = arith.mulf %621, %621 : vector<2x4xf32>
    %cst_191 = arith.constant -5.000000e-01 : f32
    %623 = vector.broadcast %cst_191 : f32 to vector<2x4xf32>
    %624 = arith.mulf %623, %622 : vector<2x4xf32>
    %625 = arith.addf %624, %596 : vector<2x4xf32>
    %cst_192 = arith.constant 6.28318548 : f32
    %626 = vector.broadcast %cst_192 : f32 to vector<2x4xf32>
    %627 = arith.addf %597, %626 : vector<2x4xf32>
    %628 = arith.mulf %627, %591 : vector<2x4xf32>
    %629 = arith.mulf %628, %628 : vector<2x4xf32>
    %cst_193 = arith.constant -5.000000e-01 : f32
    %630 = vector.broadcast %cst_193 : f32 to vector<2x4xf32>
    %631 = arith.mulf %630, %629 : vector<2x4xf32>
    %632 = arith.addf %631, %596 : vector<2x4xf32>
    %cst_194 = arith.constant 12.566371 : f32
    %633 = vector.broadcast %cst_194 : f32 to vector<2x4xf32>
    %634 = arith.addf %597, %633 : vector<2x4xf32>
    %635 = arith.mulf %634, %591 : vector<2x4xf32>
    %636 = arith.mulf %635, %635 : vector<2x4xf32>
    %cst_195 = arith.constant -5.000000e-01 : f32
    %637 = vector.broadcast %cst_195 : f32 to vector<2x4xf32>
    %638 = arith.mulf %637, %636 : vector<2x4xf32>
    %639 = arith.addf %638, %596 : vector<2x4xf32>
    %cst_196 = arith.constant 18.849556 : f32
    %640 = vector.broadcast %cst_196 : f32 to vector<2x4xf32>
    %641 = arith.addf %597, %640 : vector<2x4xf32>
    %642 = arith.mulf %641, %591 : vector<2x4xf32>
    %643 = arith.mulf %642, %642 : vector<2x4xf32>
    %cst_197 = arith.constant -5.000000e-01 : f32
    %644 = vector.broadcast %cst_197 : f32 to vector<2x4xf32>
    %645 = arith.mulf %644, %643 : vector<2x4xf32>
    %646 = arith.addf %645, %596 : vector<2x4xf32>
    %647 = arith.maximumf %604, %611 : vector<2x4xf32>
    %648 = arith.maximumf %647, %618 : vector<2x4xf32>
    %649 = arith.maximumf %648, %625 : vector<2x4xf32>
    %650 = arith.maximumf %649, %632 : vector<2x4xf32>
    %651 = arith.maximumf %650, %639 : vector<2x4xf32>
    %652 = arith.maximumf %651, %646 : vector<2x4xf32>
    %653 = arith.subf %604, %652 : vector<2x4xf32>
    %654 = math.exp %653 : vector<2x4xf32>
    %655 = arith.subf %611, %652 : vector<2x4xf32>
    %656 = math.exp %655 : vector<2x4xf32>
    %657 = arith.addf %654, %656 : vector<2x4xf32>
    %658 = arith.subf %618, %652 : vector<2x4xf32>
    %659 = math.exp %658 : vector<2x4xf32>
    %660 = arith.addf %657, %659 : vector<2x4xf32>
    %661 = arith.subf %625, %652 : vector<2x4xf32>
    %662 = math.exp %661 : vector<2x4xf32>
    %663 = arith.addf %660, %662 : vector<2x4xf32>
    %664 = arith.subf %632, %652 : vector<2x4xf32>
    %665 = math.exp %664 : vector<2x4xf32>
    %666 = arith.addf %663, %665 : vector<2x4xf32>
    %667 = arith.subf %639, %652 : vector<2x4xf32>
    %668 = math.exp %667 : vector<2x4xf32>
    %669 = arith.addf %666, %668 : vector<2x4xf32>
    %670 = arith.subf %646, %652 : vector<2x4xf32>
    %671 = math.exp %670 : vector<2x4xf32>
    %672 = arith.addf %669, %671 : vector<2x4xf32>
    %673 = math.log %672 : vector<2x4xf32>
    %674 = arith.addf %652, %673 : vector<2x4xf32>
    %cst_198 = arith.constant dense<0.000000e+00> : vector<2xf32>
    %675 = vector.multi_reduction <add>, %674, %cst_198 [1] : vector<2x4xf32> to vector<2xf32>
    %676 = vector.shape_cast %675 : vector<2xf32> to vector<2x1xf32>
    %677 = arith.subf %280, %574 : vector<2x4xf32>
    %cst_199 = arith.constant 3.14159274 : f32
    %678 = vector.broadcast %cst_199 : f32 to vector<2x4xf32>
    %679 = arith.addf %677, %678 : vector<2x4xf32>
    %cst_200 = arith.constant 0.159154937 : f32
    %680 = vector.broadcast %cst_200 : f32 to vector<2x4xf32>
    %681 = arith.mulf %679, %680 : vector<2x4xf32>
    %682 = math.floor %681 : vector<2x4xf32>
    %683 = arith.subf %681, %682 : vector<2x4xf32>
    %cst_201 = arith.constant 6.28318548 : f32
    %684 = vector.broadcast %cst_201 : f32 to vector<2x4xf32>
    %685 = arith.mulf %683, %684 : vector<2x4xf32>
    %cst_202 = arith.constant 3.14159274 : f32
    %686 = vector.broadcast %cst_202 : f32 to vector<2x4xf32>
    %687 = arith.subf %685, %686 : vector<2x4xf32>
    %cst_203 = arith.constant 0.000000e+00 : f32
    %688 = vector.broadcast %cst_203 : f32 to vector<2x4xf32>
    %689 = arith.subf %688, %574 : vector<2x4xf32>
    %cst_204 = arith.constant 0.333333343 : f32
    %690 = vector.broadcast %cst_204 : f32 to vector<2x4xf32>
    %691 = arith.mulf %689, %690 : vector<2x4xf32>
    %692 = arith.subf %687, %691 : vector<2x4xf32>
    %cst_205 = arith.constant -18.849556 : f32
    %693 = vector.broadcast %cst_205 : f32 to vector<2x4xf32>
    %694 = arith.addf %692, %693 : vector<2x4xf32>
    %cst_206 = arith.constant 3.46410155 : f32
    %695 = vector.broadcast %cst_206 : f32 to vector<2x4xf32>
    %696 = arith.mulf %694, %695 : vector<2x4xf32>
    %697 = arith.mulf %696, %696 : vector<2x4xf32>
    %cst_207 = arith.constant -5.000000e-01 : f32
    %698 = vector.broadcast %cst_207 : f32 to vector<2x4xf32>
    %699 = arith.mulf %698, %697 : vector<2x4xf32>
    %cst_208 = arith.constant 0.323514789 : f32
    %700 = vector.broadcast %cst_208 : f32 to vector<2x4xf32>
    %701 = arith.addf %699, %700 : vector<2x4xf32>
    %cst_209 = arith.constant -12.566371 : f32
    %702 = vector.broadcast %cst_209 : f32 to vector<2x4xf32>
    %703 = arith.addf %692, %702 : vector<2x4xf32>
    %cst_210 = arith.constant 3.46410155 : f32
    %704 = vector.broadcast %cst_210 : f32 to vector<2x4xf32>
    %705 = arith.mulf %703, %704 : vector<2x4xf32>
    %706 = arith.mulf %705, %705 : vector<2x4xf32>
    %cst_211 = arith.constant -5.000000e-01 : f32
    %707 = vector.broadcast %cst_211 : f32 to vector<2x4xf32>
    %708 = arith.mulf %707, %706 : vector<2x4xf32>
    %cst_212 = arith.constant 0.323514789 : f32
    %709 = vector.broadcast %cst_212 : f32 to vector<2x4xf32>
    %710 = arith.addf %708, %709 : vector<2x4xf32>
    %cst_213 = arith.constant -6.28318548 : f32
    %711 = vector.broadcast %cst_213 : f32 to vector<2x4xf32>
    %712 = arith.addf %692, %711 : vector<2x4xf32>
    %cst_214 = arith.constant 3.46410155 : f32
    %713 = vector.broadcast %cst_214 : f32 to vector<2x4xf32>
    %714 = arith.mulf %712, %713 : vector<2x4xf32>
    %715 = arith.mulf %714, %714 : vector<2x4xf32>
    %cst_215 = arith.constant -5.000000e-01 : f32
    %716 = vector.broadcast %cst_215 : f32 to vector<2x4xf32>
    %717 = arith.mulf %716, %715 : vector<2x4xf32>
    %cst_216 = arith.constant 0.323514789 : f32
    %718 = vector.broadcast %cst_216 : f32 to vector<2x4xf32>
    %719 = arith.addf %717, %718 : vector<2x4xf32>
    %cst_217 = arith.constant 0.000000e+00 : f32
    %720 = vector.broadcast %cst_217 : f32 to vector<2x4xf32>
    %721 = arith.addf %692, %720 : vector<2x4xf32>
    %cst_218 = arith.constant 3.46410155 : f32
    %722 = vector.broadcast %cst_218 : f32 to vector<2x4xf32>
    %723 = arith.mulf %721, %722 : vector<2x4xf32>
    %724 = arith.mulf %723, %723 : vector<2x4xf32>
    %cst_219 = arith.constant -5.000000e-01 : f32
    %725 = vector.broadcast %cst_219 : f32 to vector<2x4xf32>
    %726 = arith.mulf %725, %724 : vector<2x4xf32>
    %cst_220 = arith.constant 0.323514789 : f32
    %727 = vector.broadcast %cst_220 : f32 to vector<2x4xf32>
    %728 = arith.addf %726, %727 : vector<2x4xf32>
    %cst_221 = arith.constant 6.28318548 : f32
    %729 = vector.broadcast %cst_221 : f32 to vector<2x4xf32>
    %730 = arith.addf %692, %729 : vector<2x4xf32>
    %cst_222 = arith.constant 3.46410155 : f32
    %731 = vector.broadcast %cst_222 : f32 to vector<2x4xf32>
    %732 = arith.mulf %730, %731 : vector<2x4xf32>
    %733 = arith.mulf %732, %732 : vector<2x4xf32>
    %cst_223 = arith.constant -5.000000e-01 : f32
    %734 = vector.broadcast %cst_223 : f32 to vector<2x4xf32>
    %735 = arith.mulf %734, %733 : vector<2x4xf32>
    %cst_224 = arith.constant 0.323514789 : f32
    %736 = vector.broadcast %cst_224 : f32 to vector<2x4xf32>
    %737 = arith.addf %735, %736 : vector<2x4xf32>
    %cst_225 = arith.constant 12.566371 : f32
    %738 = vector.broadcast %cst_225 : f32 to vector<2x4xf32>
    %739 = arith.addf %692, %738 : vector<2x4xf32>
    %cst_226 = arith.constant 3.46410155 : f32
    %740 = vector.broadcast %cst_226 : f32 to vector<2x4xf32>
    %741 = arith.mulf %739, %740 : vector<2x4xf32>
    %742 = arith.mulf %741, %741 : vector<2x4xf32>
    %cst_227 = arith.constant -5.000000e-01 : f32
    %743 = vector.broadcast %cst_227 : f32 to vector<2x4xf32>
    %744 = arith.mulf %743, %742 : vector<2x4xf32>
    %cst_228 = arith.constant 0.323514789 : f32
    %745 = vector.broadcast %cst_228 : f32 to vector<2x4xf32>
    %746 = arith.addf %744, %745 : vector<2x4xf32>
    %cst_229 = arith.constant 18.849556 : f32
    %747 = vector.broadcast %cst_229 : f32 to vector<2x4xf32>
    %748 = arith.addf %692, %747 : vector<2x4xf32>
    %cst_230 = arith.constant 3.46410155 : f32
    %749 = vector.broadcast %cst_230 : f32 to vector<2x4xf32>
    %750 = arith.mulf %748, %749 : vector<2x4xf32>
    %751 = arith.mulf %750, %750 : vector<2x4xf32>
    %cst_231 = arith.constant -5.000000e-01 : f32
    %752 = vector.broadcast %cst_231 : f32 to vector<2x4xf32>
    %753 = arith.mulf %752, %751 : vector<2x4xf32>
    %cst_232 = arith.constant 0.323514789 : f32
    %754 = vector.broadcast %cst_232 : f32 to vector<2x4xf32>
    %755 = arith.addf %753, %754 : vector<2x4xf32>
    %756 = arith.maximumf %701, %710 : vector<2x4xf32>
    %757 = arith.maximumf %756, %719 : vector<2x4xf32>
    %758 = arith.maximumf %757, %728 : vector<2x4xf32>
    %759 = arith.maximumf %758, %737 : vector<2x4xf32>
    %760 = arith.maximumf %759, %746 : vector<2x4xf32>
    %761 = arith.maximumf %760, %755 : vector<2x4xf32>
    %762 = arith.subf %701, %761 : vector<2x4xf32>
    %763 = math.exp %762 : vector<2x4xf32>
    %764 = arith.subf %710, %761 : vector<2x4xf32>
    %765 = math.exp %764 : vector<2x4xf32>
    %766 = arith.addf %763, %765 : vector<2x4xf32>
    %767 = arith.subf %719, %761 : vector<2x4xf32>
    %768 = math.exp %767 : vector<2x4xf32>
    %769 = arith.addf %766, %768 : vector<2x4xf32>
    %770 = arith.subf %728, %761 : vector<2x4xf32>
    %771 = math.exp %770 : vector<2x4xf32>
    %772 = arith.addf %769, %771 : vector<2x4xf32>
    %773 = arith.subf %737, %761 : vector<2x4xf32>
    %774 = math.exp %773 : vector<2x4xf32>
    %775 = arith.addf %772, %774 : vector<2x4xf32>
    %776 = arith.subf %746, %761 : vector<2x4xf32>
    %777 = math.exp %776 : vector<2x4xf32>
    %778 = arith.addf %775, %777 : vector<2x4xf32>
    %779 = arith.subf %755, %761 : vector<2x4xf32>
    %780 = math.exp %779 : vector<2x4xf32>
    %781 = arith.addf %778, %780 : vector<2x4xf32>
    %782 = math.log %781 : vector<2x4xf32>
    %783 = arith.addf %761, %782 : vector<2x4xf32>
    %cst_233 = arith.constant dense<0.000000e+00> : vector<2xf32>
    %784 = vector.multi_reduction <add>, %783, %cst_233 [1] : vector<2x4xf32> to vector<2xf32>
    %785 = vector.shape_cast %784 : vector<2xf32> to vector<2x1xf32>
    %786 = vector.extract_strided_slice %10 {offsets = [6, 0], sizes = [2, 4], strides = [1, 1]} : vector<16x4xf32> to vector<2x4xf32>
    %787 = vector.extract_strided_slice %9 {offsets = [3, 0], sizes = [1, 32], strides = [1, 1]} : vector<8x32xf32> to vector<1x32xf32>
    %cst_234 = arith.constant dense<0.000000e+00> : vector<2x32xf32>
    %788 = tpu.matmul %574, %0, %cst_234 {dimension_numbers = #tpu.dot_dimension_numbers<[1], [0], [0], [1], [0, 0, 1, 1], [], []>} : vector<2x4xf32>, vector<4x32xf32>, vector<2x32xf32> -> vector<2x32xf32>
    %789 = vector.broadcast %1 : vector<1x32xf32> to vector<2x32xf32>
    %790 = arith.addf %788, %789 : vector<2x32xf32>
    %cst_235 = arith.constant 5.000000e-01 : f32
    %791 = vector.broadcast %cst_235 : f32 to vector<2x32xf32>
    %792 = arith.mulf %791, %790 : vector<2x32xf32>
    %cst_236 = arith.constant 4.471500e-02 : f32
    %793 = vector.broadcast %cst_236 : f32 to vector<2x32xf32>
    %794 = arith.mulf %793, %790 : vector<2x32xf32>
    %795 = arith.mulf %794, %790 : vector<2x32xf32>
    %796 = arith.mulf %795, %790 : vector<2x32xf32>
    %797 = arith.addf %790, %796 : vector<2x32xf32>
    %cst_237 = arith.constant 0.797884583 : f32
    %798 = vector.broadcast %cst_237 : f32 to vector<2x32xf32>
    %799 = arith.mulf %798, %797 : vector<2x32xf32>
    %800 = math.tanh %799 : vector<2x32xf32>
    %cst_238 = arith.constant 1.000000e+00 : f32
    %801 = vector.broadcast %cst_238 : f32 to vector<2x32xf32>
    %802 = arith.addf %801, %800 : vector<2x32xf32>
    %803 = arith.mulf %792, %802 : vector<2x32xf32>
    %cst_239 = arith.constant dense<0.000000e+00> : vector<2x32xf32>
    %804 = tpu.matmul %803, %2, %cst_239 {dimension_numbers = #tpu.dot_dimension_numbers<[1], [0], [0], [1], [0, 0, 1, 1], [], []>} : vector<2x32xf32>, vector<32x32xf32>, vector<2x32xf32> -> vector<2x32xf32>
    %805 = vector.broadcast %3 : vector<1x32xf32> to vector<2x32xf32>
    %806 = arith.addf %804, %805 : vector<2x32xf32>
    %cst_240 = arith.constant dense<0.000000e+00> : vector<2x32xf32>
    %807 = tpu.matmul %806, %4, %cst_240 {dimension_numbers = #tpu.dot_dimension_numbers<[1], [0], [0], [1], [0, 0, 1, 1], [], []>} : vector<2x32xf32>, vector<32x32xf32>, vector<2x32xf32> -> vector<2x32xf32>
    %808 = vector.broadcast %787 : vector<1x32xf32> to vector<2x32xf32>
    %809 = arith.addf %807, %808 : vector<2x32xf32>
    %cst_241 = arith.constant 5.000000e-01 : f32
    %810 = vector.broadcast %cst_241 : f32 to vector<2x32xf32>
    %811 = arith.mulf %810, %809 : vector<2x32xf32>
    %cst_242 = arith.constant 4.471500e-02 : f32
    %812 = vector.broadcast %cst_242 : f32 to vector<2x32xf32>
    %813 = arith.mulf %812, %809 : vector<2x32xf32>
    %814 = arith.mulf %813, %809 : vector<2x32xf32>
    %815 = arith.mulf %814, %809 : vector<2x32xf32>
    %816 = arith.addf %809, %815 : vector<2x32xf32>
    %cst_243 = arith.constant 0.797884583 : f32
    %817 = vector.broadcast %cst_243 : f32 to vector<2x32xf32>
    %818 = arith.mulf %817, %816 : vector<2x32xf32>
    %819 = math.tanh %818 : vector<2x32xf32>
    %cst_244 = arith.constant 1.000000e+00 : f32
    %820 = vector.broadcast %cst_244 : f32 to vector<2x32xf32>
    %821 = arith.addf %820, %819 : vector<2x32xf32>
    %822 = arith.mulf %811, %821 : vector<2x32xf32>
    %cst_245 = arith.constant dense<0.000000e+00> : vector<2x32xf32>
    %823 = tpu.matmul %822, %5, %cst_245 {dimension_numbers = #tpu.dot_dimension_numbers<[1], [0], [0], [1], [0, 0, 1, 1], [], []>} : vector<2x32xf32>, vector<32x32xf32>, vector<2x32xf32> -> vector<2x32xf32>
    %824 = vector.broadcast %6 : vector<1x32xf32> to vector<2x32xf32>
    %825 = arith.addf %823, %824 : vector<2x32xf32>
    %cst_246 = arith.constant 5.000000e-01 : f32
    %826 = vector.broadcast %cst_246 : f32 to vector<2x32xf32>
    %827 = arith.mulf %826, %825 : vector<2x32xf32>
    %cst_247 = arith.constant 4.471500e-02 : f32
    %828 = vector.broadcast %cst_247 : f32 to vector<2x32xf32>
    %829 = arith.mulf %828, %825 : vector<2x32xf32>
    %830 = arith.mulf %829, %825 : vector<2x32xf32>
    %831 = arith.mulf %830, %825 : vector<2x32xf32>
    %832 = arith.addf %825, %831 : vector<2x32xf32>
    %cst_248 = arith.constant 0.797884583 : f32
    %833 = vector.broadcast %cst_248 : f32 to vector<2x32xf32>
    %834 = arith.mulf %833, %832 : vector<2x32xf32>
    %835 = math.tanh %834 : vector<2x32xf32>
    %cst_249 = arith.constant 1.000000e+00 : f32
    %836 = vector.broadcast %cst_249 : f32 to vector<2x32xf32>
    %837 = arith.addf %836, %835 : vector<2x32xf32>
    %838 = arith.mulf %827, %837 : vector<2x32xf32>
    %cst_250 = arith.constant dense<0.000000e+00> : vector<2x32xf32>
    %839 = tpu.matmul %838, %7, %cst_250 {dimension_numbers = #tpu.dot_dimension_numbers<[1], [0], [0], [1], [0, 0, 1, 1], [], []>} : vector<2x32xf32>, vector<32x32xf32>, vector<2x32xf32> -> vector<2x32xf32>
    %840 = vector.broadcast %8 : vector<1x32xf32> to vector<2x32xf32>
    %841 = arith.addf %839, %840 : vector<2x32xf32>
    %842 = vector.extract_strided_slice %841 {offsets = [0, 0], sizes = [2, 4], strides = [1, 1]} : vector<2x32xf32> to vector<2x4xf32>
    %843 = vector.extract_strided_slice %841 {offsets = [0, 4], sizes = [2, 4], strides = [1, 1]} : vector<2x32xf32> to vector<2x4xf32>
    %844 = math.tanh %843 : vector<2x4xf32>
    %cst_251 = arith.constant 4.000000e+00 : f32
    %845 = vector.broadcast %cst_251 : f32 to vector<2x4xf32>
    %846 = arith.mulf %844, %845 : vector<2x4xf32>
    %cst_252 = arith.constant 0.000000e+00 : f32
    %847 = vector.broadcast %cst_252 : f32 to vector<2x4xf32>
    %848 = arith.addf %846, %847 : vector<2x4xf32>
    %cst_253 = arith.constant 5.000000e-01 : f32
    %849 = vector.broadcast %cst_253 : f32 to vector<2x4xf32>
    %850 = arith.mulf %849, %848 : vector<2x4xf32>
    %851 = math.exp %850 : vector<2x4xf32>
    %cst_254 = arith.constant 1.250000e-01 : f32
    %852 = vector.broadcast %cst_254 : f32 to vector<2x4xf32>
    %853 = arith.mulf %852, %842 : vector<2x4xf32>
    %854 = arith.addf %574, %853 : vector<2x4xf32>
    %cst_255 = arith.constant 0.353553385 : f32
    %855 = vector.broadcast %cst_255 : f32 to vector<2x4xf32>
    %856 = arith.mulf %855, %851 : vector<2x4xf32>
    %857 = arith.mulf %856, %786 : vector<2x4xf32>
    %858 = arith.addf %854, %857 : vector<2x4xf32>
    %cst_256 = arith.constant 3.14159274 : f32
    %859 = vector.broadcast %cst_256 : f32 to vector<2x4xf32>
    %860 = arith.addf %858, %859 : vector<2x4xf32>
    %cst_257 = arith.constant 0.159154937 : f32
    %861 = vector.broadcast %cst_257 : f32 to vector<2x4xf32>
    %862 = arith.mulf %860, %861 : vector<2x4xf32>
    %863 = math.floor %862 : vector<2x4xf32>
    %864 = arith.subf %862, %863 : vector<2x4xf32>
    %cst_258 = arith.constant 6.28318548 : f32
    %865 = vector.broadcast %cst_258 : f32 to vector<2x4xf32>
    %866 = arith.mulf %864, %865 : vector<2x4xf32>
    %cst_259 = arith.constant 3.14159274 : f32
    %867 = vector.broadcast %cst_259 : f32 to vector<2x4xf32>
    %868 = arith.subf %866, %867 : vector<2x4xf32>
    %869 = arith.subf %868, %574 : vector<2x4xf32>
    %cst_260 = arith.constant 3.14159274 : f32
    %870 = vector.broadcast %cst_260 : f32 to vector<2x4xf32>
    %871 = arith.addf %869, %870 : vector<2x4xf32>
    %cst_261 = arith.constant 0.159154937 : f32
    %872 = vector.broadcast %cst_261 : f32 to vector<2x4xf32>
    %873 = arith.mulf %871, %872 : vector<2x4xf32>
    %874 = math.floor %873 : vector<2x4xf32>
    %875 = arith.subf %873, %874 : vector<2x4xf32>
    %cst_262 = arith.constant 6.28318548 : f32
    %876 = vector.broadcast %cst_262 : f32 to vector<2x4xf32>
    %877 = arith.mulf %875, %876 : vector<2x4xf32>
    %cst_263 = arith.constant 3.14159274 : f32
    %878 = vector.broadcast %cst_263 : f32 to vector<2x4xf32>
    %879 = arith.subf %877, %878 : vector<2x4xf32>
    %cst_264 = arith.constant 1.250000e-01 : f32
    %880 = vector.broadcast %cst_264 : f32 to vector<2x4xf32>
    %881 = arith.mulf %880, %842 : vector<2x4xf32>
    %cst_265 = arith.constant 0.353553385 : f32
    %882 = vector.broadcast %cst_265 : f32 to vector<2x4xf32>
    %883 = arith.mulf %882, %851 : vector<2x4xf32>
    %cst_266 = arith.constant 1.000000e+00 : f32
    %884 = vector.broadcast %cst_266 : f32 to vector<2x4xf32>
    %885 = arith.divf %884, %883 : vector<2x4xf32>
    %cst_267 = arith.constant 2.50662827 : f32
    %886 = vector.broadcast %cst_267 : f32 to vector<2x4xf32>
    %887 = arith.mulf %883, %886 : vector<2x4xf32>
    %888 = math.log %887 : vector<2x4xf32>
    %cst_268 = arith.constant 0.000000e+00 : f32
    %889 = vector.broadcast %cst_268 : f32 to vector<2x4xf32>
    %890 = arith.subf %889, %888 : vector<2x4xf32>
    %891 = arith.subf %879, %881 : vector<2x4xf32>
    %cst_269 = arith.constant -18.849556 : f32
    %892 = vector.broadcast %cst_269 : f32 to vector<2x4xf32>
    %893 = arith.addf %891, %892 : vector<2x4xf32>
    %894 = arith.mulf %893, %885 : vector<2x4xf32>
    %895 = arith.mulf %894, %894 : vector<2x4xf32>
    %cst_270 = arith.constant -5.000000e-01 : f32
    %896 = vector.broadcast %cst_270 : f32 to vector<2x4xf32>
    %897 = arith.mulf %896, %895 : vector<2x4xf32>
    %898 = arith.addf %897, %890 : vector<2x4xf32>
    %cst_271 = arith.constant -12.566371 : f32
    %899 = vector.broadcast %cst_271 : f32 to vector<2x4xf32>
    %900 = arith.addf %891, %899 : vector<2x4xf32>
    %901 = arith.mulf %900, %885 : vector<2x4xf32>
    %902 = arith.mulf %901, %901 : vector<2x4xf32>
    %cst_272 = arith.constant -5.000000e-01 : f32
    %903 = vector.broadcast %cst_272 : f32 to vector<2x4xf32>
    %904 = arith.mulf %903, %902 : vector<2x4xf32>
    %905 = arith.addf %904, %890 : vector<2x4xf32>
    %cst_273 = arith.constant -6.28318548 : f32
    %906 = vector.broadcast %cst_273 : f32 to vector<2x4xf32>
    %907 = arith.addf %891, %906 : vector<2x4xf32>
    %908 = arith.mulf %907, %885 : vector<2x4xf32>
    %909 = arith.mulf %908, %908 : vector<2x4xf32>
    %cst_274 = arith.constant -5.000000e-01 : f32
    %910 = vector.broadcast %cst_274 : f32 to vector<2x4xf32>
    %911 = arith.mulf %910, %909 : vector<2x4xf32>
    %912 = arith.addf %911, %890 : vector<2x4xf32>
    %cst_275 = arith.constant 0.000000e+00 : f32
    %913 = vector.broadcast %cst_275 : f32 to vector<2x4xf32>
    %914 = arith.addf %891, %913 : vector<2x4xf32>
    %915 = arith.mulf %914, %885 : vector<2x4xf32>
    %916 = arith.mulf %915, %915 : vector<2x4xf32>
    %cst_276 = arith.constant -5.000000e-01 : f32
    %917 = vector.broadcast %cst_276 : f32 to vector<2x4xf32>
    %918 = arith.mulf %917, %916 : vector<2x4xf32>
    %919 = arith.addf %918, %890 : vector<2x4xf32>
    %cst_277 = arith.constant 6.28318548 : f32
    %920 = vector.broadcast %cst_277 : f32 to vector<2x4xf32>
    %921 = arith.addf %891, %920 : vector<2x4xf32>
    %922 = arith.mulf %921, %885 : vector<2x4xf32>
    %923 = arith.mulf %922, %922 : vector<2x4xf32>
    %cst_278 = arith.constant -5.000000e-01 : f32
    %924 = vector.broadcast %cst_278 : f32 to vector<2x4xf32>
    %925 = arith.mulf %924, %923 : vector<2x4xf32>
    %926 = arith.addf %925, %890 : vector<2x4xf32>
    %cst_279 = arith.constant 12.566371 : f32
    %927 = vector.broadcast %cst_279 : f32 to vector<2x4xf32>
    %928 = arith.addf %891, %927 : vector<2x4xf32>
    %929 = arith.mulf %928, %885 : vector<2x4xf32>
    %930 = arith.mulf %929, %929 : vector<2x4xf32>
    %cst_280 = arith.constant -5.000000e-01 : f32
    %931 = vector.broadcast %cst_280 : f32 to vector<2x4xf32>
    %932 = arith.mulf %931, %930 : vector<2x4xf32>
    %933 = arith.addf %932, %890 : vector<2x4xf32>
    %cst_281 = arith.constant 18.849556 : f32
    %934 = vector.broadcast %cst_281 : f32 to vector<2x4xf32>
    %935 = arith.addf %891, %934 : vector<2x4xf32>
    %936 = arith.mulf %935, %885 : vector<2x4xf32>
    %937 = arith.mulf %936, %936 : vector<2x4xf32>
    %cst_282 = arith.constant -5.000000e-01 : f32
    %938 = vector.broadcast %cst_282 : f32 to vector<2x4xf32>
    %939 = arith.mulf %938, %937 : vector<2x4xf32>
    %940 = arith.addf %939, %890 : vector<2x4xf32>
    %941 = arith.maximumf %898, %905 : vector<2x4xf32>
    %942 = arith.maximumf %941, %912 : vector<2x4xf32>
    %943 = arith.maximumf %942, %919 : vector<2x4xf32>
    %944 = arith.maximumf %943, %926 : vector<2x4xf32>
    %945 = arith.maximumf %944, %933 : vector<2x4xf32>
    %946 = arith.maximumf %945, %940 : vector<2x4xf32>
    %947 = arith.subf %898, %946 : vector<2x4xf32>
    %948 = math.exp %947 : vector<2x4xf32>
    %949 = arith.subf %905, %946 : vector<2x4xf32>
    %950 = math.exp %949 : vector<2x4xf32>
    %951 = arith.addf %948, %950 : vector<2x4xf32>
    %952 = arith.subf %912, %946 : vector<2x4xf32>
    %953 = math.exp %952 : vector<2x4xf32>
    %954 = arith.addf %951, %953 : vector<2x4xf32>
    %955 = arith.subf %919, %946 : vector<2x4xf32>
    %956 = math.exp %955 : vector<2x4xf32>
    %957 = arith.addf %954, %956 : vector<2x4xf32>
    %958 = arith.subf %926, %946 : vector<2x4xf32>
    %959 = math.exp %958 : vector<2x4xf32>
    %960 = arith.addf %957, %959 : vector<2x4xf32>
    %961 = arith.subf %933, %946 : vector<2x4xf32>
    %962 = math.exp %961 : vector<2x4xf32>
    %963 = arith.addf %960, %962 : vector<2x4xf32>
    %964 = arith.subf %940, %946 : vector<2x4xf32>
    %965 = math.exp %964 : vector<2x4xf32>
    %966 = arith.addf %963, %965 : vector<2x4xf32>
    %967 = math.log %966 : vector<2x4xf32>
    %968 = arith.addf %946, %967 : vector<2x4xf32>
    %cst_283 = arith.constant dense<0.000000e+00> : vector<2xf32>
    %969 = vector.multi_reduction <add>, %968, %cst_283 [1] : vector<2x4xf32> to vector<2xf32>
    %970 = vector.shape_cast %969 : vector<2xf32> to vector<2x1xf32>
    %971 = arith.subf %574, %868 : vector<2x4xf32>
    %cst_284 = arith.constant 3.14159274 : f32
    %972 = vector.broadcast %cst_284 : f32 to vector<2x4xf32>
    %973 = arith.addf %971, %972 : vector<2x4xf32>
    %cst_285 = arith.constant 0.159154937 : f32
    %974 = vector.broadcast %cst_285 : f32 to vector<2x4xf32>
    %975 = arith.mulf %973, %974 : vector<2x4xf32>
    %976 = math.floor %975 : vector<2x4xf32>
    %977 = arith.subf %975, %976 : vector<2x4xf32>
    %cst_286 = arith.constant 6.28318548 : f32
    %978 = vector.broadcast %cst_286 : f32 to vector<2x4xf32>
    %979 = arith.mulf %977, %978 : vector<2x4xf32>
    %cst_287 = arith.constant 3.14159274 : f32
    %980 = vector.broadcast %cst_287 : f32 to vector<2x4xf32>
    %981 = arith.subf %979, %980 : vector<2x4xf32>
    %cst_288 = arith.constant 0.000000e+00 : f32
    %982 = vector.broadcast %cst_288 : f32 to vector<2x4xf32>
    %983 = arith.subf %982, %868 : vector<2x4xf32>
    %cst_289 = arith.constant 2.500000e-01 : f32
    %984 = vector.broadcast %cst_289 : f32 to vector<2x4xf32>
    %985 = arith.mulf %983, %984 : vector<2x4xf32>
    %986 = arith.subf %981, %985 : vector<2x4xf32>
    %cst_290 = arith.constant -18.849556 : f32
    %987 = vector.broadcast %cst_290 : f32 to vector<2x4xf32>
    %988 = arith.addf %986, %987 : vector<2x4xf32>
    %cst_291 = arith.constant 3.26598644 : f32
    %989 = vector.broadcast %cst_291 : f32 to vector<2x4xf32>
    %990 = arith.mulf %988, %989 : vector<2x4xf32>
    %991 = arith.mulf %990, %990 : vector<2x4xf32>
    %cst_292 = arith.constant -5.000000e-01 : f32
    %992 = vector.broadcast %cst_292 : f32 to vector<2x4xf32>
    %993 = arith.mulf %992, %991 : vector<2x4xf32>
    %cst_293 = arith.constant 0.264623284 : f32
    %994 = vector.broadcast %cst_293 : f32 to vector<2x4xf32>
    %995 = arith.addf %993, %994 : vector<2x4xf32>
    %cst_294 = arith.constant -12.566371 : f32
    %996 = vector.broadcast %cst_294 : f32 to vector<2x4xf32>
    %997 = arith.addf %986, %996 : vector<2x4xf32>
    %cst_295 = arith.constant 3.26598644 : f32
    %998 = vector.broadcast %cst_295 : f32 to vector<2x4xf32>
    %999 = arith.mulf %997, %998 : vector<2x4xf32>
    %1000 = arith.mulf %999, %999 : vector<2x4xf32>
    %cst_296 = arith.constant -5.000000e-01 : f32
    %1001 = vector.broadcast %cst_296 : f32 to vector<2x4xf32>
    %1002 = arith.mulf %1001, %1000 : vector<2x4xf32>
    %cst_297 = arith.constant 0.264623284 : f32
    %1003 = vector.broadcast %cst_297 : f32 to vector<2x4xf32>
    %1004 = arith.addf %1002, %1003 : vector<2x4xf32>
    %cst_298 = arith.constant -6.28318548 : f32
    %1005 = vector.broadcast %cst_298 : f32 to vector<2x4xf32>
    %1006 = arith.addf %986, %1005 : vector<2x4xf32>
    %cst_299 = arith.constant 3.26598644 : f32
    %1007 = vector.broadcast %cst_299 : f32 to vector<2x4xf32>
    %1008 = arith.mulf %1006, %1007 : vector<2x4xf32>
    %1009 = arith.mulf %1008, %1008 : vector<2x4xf32>
    %cst_300 = arith.constant -5.000000e-01 : f32
    %1010 = vector.broadcast %cst_300 : f32 to vector<2x4xf32>
    %1011 = arith.mulf %1010, %1009 : vector<2x4xf32>
    %cst_301 = arith.constant 0.264623284 : f32
    %1012 = vector.broadcast %cst_301 : f32 to vector<2x4xf32>
    %1013 = arith.addf %1011, %1012 : vector<2x4xf32>
    %cst_302 = arith.constant 0.000000e+00 : f32
    %1014 = vector.broadcast %cst_302 : f32 to vector<2x4xf32>
    %1015 = arith.addf %986, %1014 : vector<2x4xf32>
    %cst_303 = arith.constant 3.26598644 : f32
    %1016 = vector.broadcast %cst_303 : f32 to vector<2x4xf32>
    %1017 = arith.mulf %1015, %1016 : vector<2x4xf32>
    %1018 = arith.mulf %1017, %1017 : vector<2x4xf32>
    %cst_304 = arith.constant -5.000000e-01 : f32
    %1019 = vector.broadcast %cst_304 : f32 to vector<2x4xf32>
    %1020 = arith.mulf %1019, %1018 : vector<2x4xf32>
    %cst_305 = arith.constant 0.264623284 : f32
    %1021 = vector.broadcast %cst_305 : f32 to vector<2x4xf32>
    %1022 = arith.addf %1020, %1021 : vector<2x4xf32>
    %cst_306 = arith.constant 6.28318548 : f32
    %1023 = vector.broadcast %cst_306 : f32 to vector<2x4xf32>
    %1024 = arith.addf %986, %1023 : vector<2x4xf32>
    %cst_307 = arith.constant 3.26598644 : f32
    %1025 = vector.broadcast %cst_307 : f32 to vector<2x4xf32>
    %1026 = arith.mulf %1024, %1025 : vector<2x4xf32>
    %1027 = arith.mulf %1026, %1026 : vector<2x4xf32>
    %cst_308 = arith.constant -5.000000e-01 : f32
    %1028 = vector.broadcast %cst_308 : f32 to vector<2x4xf32>
    %1029 = arith.mulf %1028, %1027 : vector<2x4xf32>
    %cst_309 = arith.constant 0.264623284 : f32
    %1030 = vector.broadcast %cst_309 : f32 to vector<2x4xf32>
    %1031 = arith.addf %1029, %1030 : vector<2x4xf32>
    %cst_310 = arith.constant 12.566371 : f32
    %1032 = vector.broadcast %cst_310 : f32 to vector<2x4xf32>
    %1033 = arith.addf %986, %1032 : vector<2x4xf32>
    %cst_311 = arith.constant 3.26598644 : f32
    %1034 = vector.broadcast %cst_311 : f32 to vector<2x4xf32>
    %1035 = arith.mulf %1033, %1034 : vector<2x4xf32>
    %1036 = arith.mulf %1035, %1035 : vector<2x4xf32>
    %cst_312 = arith.constant -5.000000e-01 : f32
    %1037 = vector.broadcast %cst_312 : f32 to vector<2x4xf32>
    %1038 = arith.mulf %1037, %1036 : vector<2x4xf32>
    %cst_313 = arith.constant 0.264623284 : f32
    %1039 = vector.broadcast %cst_313 : f32 to vector<2x4xf32>
    %1040 = arith.addf %1038, %1039 : vector<2x4xf32>
    %cst_314 = arith.constant 18.849556 : f32
    %1041 = vector.broadcast %cst_314 : f32 to vector<2x4xf32>
    %1042 = arith.addf %986, %1041 : vector<2x4xf32>
    %cst_315 = arith.constant 3.26598644 : f32
    %1043 = vector.broadcast %cst_315 : f32 to vector<2x4xf32>
    %1044 = arith.mulf %1042, %1043 : vector<2x4xf32>
    %1045 = arith.mulf %1044, %1044 : vector<2x4xf32>
    %cst_316 = arith.constant -5.000000e-01 : f32
    %1046 = vector.broadcast %cst_316 : f32 to vector<2x4xf32>
    %1047 = arith.mulf %1046, %1045 : vector<2x4xf32>
    %cst_317 = arith.constant 0.264623284 : f32
    %1048 = vector.broadcast %cst_317 : f32 to vector<2x4xf32>
    %1049 = arith.addf %1047, %1048 : vector<2x4xf32>
    %1050 = arith.maximumf %995, %1004 : vector<2x4xf32>
    %1051 = arith.maximumf %1050, %1013 : vector<2x4xf32>
    %1052 = arith.maximumf %1051, %1022 : vector<2x4xf32>
    %1053 = arith.maximumf %1052, %1031 : vector<2x4xf32>
    %1054 = arith.maximumf %1053, %1040 : vector<2x4xf32>
    %1055 = arith.maximumf %1054, %1049 : vector<2x4xf32>
    %1056 = arith.subf %995, %1055 : vector<2x4xf32>
    %1057 = math.exp %1056 : vector<2x4xf32>
    %1058 = arith.subf %1004, %1055 : vector<2x4xf32>
    %1059 = math.exp %1058 : vector<2x4xf32>
    %1060 = arith.addf %1057, %1059 : vector<2x4xf32>
    %1061 = arith.subf %1013, %1055 : vector<2x4xf32>
    %1062 = math.exp %1061 : vector<2x4xf32>
    %1063 = arith.addf %1060, %1062 : vector<2x4xf32>
    %1064 = arith.subf %1022, %1055 : vector<2x4xf32>
    %1065 = math.exp %1064 : vector<2x4xf32>
    %1066 = arith.addf %1063, %1065 : vector<2x4xf32>
    %1067 = arith.subf %1031, %1055 : vector<2x4xf32>
    %1068 = math.exp %1067 : vector<2x4xf32>
    %1069 = arith.addf %1066, %1068 : vector<2x4xf32>
    %1070 = arith.subf %1040, %1055 : vector<2x4xf32>
    %1071 = math.exp %1070 : vector<2x4xf32>
    %1072 = arith.addf %1069, %1071 : vector<2x4xf32>
    %1073 = arith.subf %1049, %1055 : vector<2x4xf32>
    %1074 = math.exp %1073 : vector<2x4xf32>
    %1075 = arith.addf %1072, %1074 : vector<2x4xf32>
    %1076 = math.log %1075 : vector<2x4xf32>
    %1077 = arith.addf %1055, %1076 : vector<2x4xf32>
    %cst_318 = arith.constant dense<0.000000e+00> : vector<2xf32>
    %1078 = vector.multi_reduction <add>, %1077, %cst_318 [1] : vector<2x4xf32> to vector<2xf32>
    %1079 = vector.shape_cast %1078 : vector<2xf32> to vector<2x1xf32>
    %1080 = vector.extract_strided_slice %10 {offsets = [8, 0], sizes = [2, 4], strides = [1, 1]} : vector<16x4xf32> to vector<2x4xf32>
    %1081 = vector.extract_strided_slice %9 {offsets = [4, 0], sizes = [1, 32], strides = [1, 1]} : vector<8x32xf32> to vector<1x32xf32>
    %cst_319 = arith.constant dense<0.000000e+00> : vector<2x32xf32>
    %1082 = tpu.matmul %868, %0, %cst_319 {dimension_numbers = #tpu.dot_dimension_numbers<[1], [0], [0], [1], [0, 0, 1, 1], [], []>} : vector<2x4xf32>, vector<4x32xf32>, vector<2x32xf32> -> vector<2x32xf32>
    %1083 = vector.broadcast %1 : vector<1x32xf32> to vector<2x32xf32>
    %1084 = arith.addf %1082, %1083 : vector<2x32xf32>
    %cst_320 = arith.constant 5.000000e-01 : f32
    %1085 = vector.broadcast %cst_320 : f32 to vector<2x32xf32>
    %1086 = arith.mulf %1085, %1084 : vector<2x32xf32>
    %cst_321 = arith.constant 4.471500e-02 : f32
    %1087 = vector.broadcast %cst_321 : f32 to vector<2x32xf32>
    %1088 = arith.mulf %1087, %1084 : vector<2x32xf32>
    %1089 = arith.mulf %1088, %1084 : vector<2x32xf32>
    %1090 = arith.mulf %1089, %1084 : vector<2x32xf32>
    %1091 = arith.addf %1084, %1090 : vector<2x32xf32>
    %cst_322 = arith.constant 0.797884583 : f32
    %1092 = vector.broadcast %cst_322 : f32 to vector<2x32xf32>
    %1093 = arith.mulf %1092, %1091 : vector<2x32xf32>
    %1094 = math.tanh %1093 : vector<2x32xf32>
    %cst_323 = arith.constant 1.000000e+00 : f32
    %1095 = vector.broadcast %cst_323 : f32 to vector<2x32xf32>
    %1096 = arith.addf %1095, %1094 : vector<2x32xf32>
    %1097 = arith.mulf %1086, %1096 : vector<2x32xf32>
    %cst_324 = arith.constant dense<0.000000e+00> : vector<2x32xf32>
    %1098 = tpu.matmul %1097, %2, %cst_324 {dimension_numbers = #tpu.dot_dimension_numbers<[1], [0], [0], [1], [0, 0, 1, 1], [], []>} : vector<2x32xf32>, vector<32x32xf32>, vector<2x32xf32> -> vector<2x32xf32>
    %1099 = vector.broadcast %3 : vector<1x32xf32> to vector<2x32xf32>
    %1100 = arith.addf %1098, %1099 : vector<2x32xf32>
    %cst_325 = arith.constant dense<0.000000e+00> : vector<2x32xf32>
    %1101 = tpu.matmul %1100, %4, %cst_325 {dimension_numbers = #tpu.dot_dimension_numbers<[1], [0], [0], [1], [0, 0, 1, 1], [], []>} : vector<2x32xf32>, vector<32x32xf32>, vector<2x32xf32> -> vector<2x32xf32>
    %1102 = vector.broadcast %1081 : vector<1x32xf32> to vector<2x32xf32>
    %1103 = arith.addf %1101, %1102 : vector<2x32xf32>
    %cst_326 = arith.constant 5.000000e-01 : f32
    %1104 = vector.broadcast %cst_326 : f32 to vector<2x32xf32>
    %1105 = arith.mulf %1104, %1103 : vector<2x32xf32>
    %cst_327 = arith.constant 4.471500e-02 : f32
    %1106 = vector.broadcast %cst_327 : f32 to vector<2x32xf32>
    %1107 = arith.mulf %1106, %1103 : vector<2x32xf32>
    %1108 = arith.mulf %1107, %1103 : vector<2x32xf32>
    %1109 = arith.mulf %1108, %1103 : vector<2x32xf32>
    %1110 = arith.addf %1103, %1109 : vector<2x32xf32>
    %cst_328 = arith.constant 0.797884583 : f32
    %1111 = vector.broadcast %cst_328 : f32 to vector<2x32xf32>
    %1112 = arith.mulf %1111, %1110 : vector<2x32xf32>
    %1113 = math.tanh %1112 : vector<2x32xf32>
    %cst_329 = arith.constant 1.000000e+00 : f32
    %1114 = vector.broadcast %cst_329 : f32 to vector<2x32xf32>
    %1115 = arith.addf %1114, %1113 : vector<2x32xf32>
    %1116 = arith.mulf %1105, %1115 : vector<2x32xf32>
    %cst_330 = arith.constant dense<0.000000e+00> : vector<2x32xf32>
    %1117 = tpu.matmul %1116, %5, %cst_330 {dimension_numbers = #tpu.dot_dimension_numbers<[1], [0], [0], [1], [0, 0, 1, 1], [], []>} : vector<2x32xf32>, vector<32x32xf32>, vector<2x32xf32> -> vector<2x32xf32>
    %1118 = vector.broadcast %6 : vector<1x32xf32> to vector<2x32xf32>
    %1119 = arith.addf %1117, %1118 : vector<2x32xf32>
    %cst_331 = arith.constant 5.000000e-01 : f32
    %1120 = vector.broadcast %cst_331 : f32 to vector<2x32xf32>
    %1121 = arith.mulf %1120, %1119 : vector<2x32xf32>
    %cst_332 = arith.constant 4.471500e-02 : f32
    %1122 = vector.broadcast %cst_332 : f32 to vector<2x32xf32>
    %1123 = arith.mulf %1122, %1119 : vector<2x32xf32>
    %1124 = arith.mulf %1123, %1119 : vector<2x32xf32>
    %1125 = arith.mulf %1124, %1119 : vector<2x32xf32>
    %1126 = arith.addf %1119, %1125 : vector<2x32xf32>
    %cst_333 = arith.constant 0.797884583 : f32
    %1127 = vector.broadcast %cst_333 : f32 to vector<2x32xf32>
    %1128 = arith.mulf %1127, %1126 : vector<2x32xf32>
    %1129 = math.tanh %1128 : vector<2x32xf32>
    %cst_334 = arith.constant 1.000000e+00 : f32
    %1130 = vector.broadcast %cst_334 : f32 to vector<2x32xf32>
    %1131 = arith.addf %1130, %1129 : vector<2x32xf32>
    %1132 = arith.mulf %1121, %1131 : vector<2x32xf32>
    %cst_335 = arith.constant dense<0.000000e+00> : vector<2x32xf32>
    %1133 = tpu.matmul %1132, %7, %cst_335 {dimension_numbers = #tpu.dot_dimension_numbers<[1], [0], [0], [1], [0, 0, 1, 1], [], []>} : vector<2x32xf32>, vector<32x32xf32>, vector<2x32xf32> -> vector<2x32xf32>
    %1134 = vector.broadcast %8 : vector<1x32xf32> to vector<2x32xf32>
    %1135 = arith.addf %1133, %1134 : vector<2x32xf32>
    %1136 = vector.extract_strided_slice %1135 {offsets = [0, 0], sizes = [2, 4], strides = [1, 1]} : vector<2x32xf32> to vector<2x4xf32>
    %1137 = vector.extract_strided_slice %1135 {offsets = [0, 4], sizes = [2, 4], strides = [1, 1]} : vector<2x32xf32> to vector<2x4xf32>
    %1138 = math.tanh %1137 : vector<2x4xf32>
    %cst_336 = arith.constant 4.000000e+00 : f32
    %1139 = vector.broadcast %cst_336 : f32 to vector<2x4xf32>
    %1140 = arith.mulf %1138, %1139 : vector<2x4xf32>
    %cst_337 = arith.constant 0.000000e+00 : f32
    %1141 = vector.broadcast %cst_337 : f32 to vector<2x4xf32>
    %1142 = arith.addf %1140, %1141 : vector<2x4xf32>
    %cst_338 = arith.constant 5.000000e-01 : f32
    %1143 = vector.broadcast %cst_338 : f32 to vector<2x4xf32>
    %1144 = arith.mulf %1143, %1142 : vector<2x4xf32>
    %1145 = math.exp %1144 : vector<2x4xf32>
    %cst_339 = arith.constant 1.250000e-01 : f32
    %1146 = vector.broadcast %cst_339 : f32 to vector<2x4xf32>
    %1147 = arith.mulf %1146, %1136 : vector<2x4xf32>
    %1148 = arith.addf %868, %1147 : vector<2x4xf32>
    %cst_340 = arith.constant 0.353553385 : f32
    %1149 = vector.broadcast %cst_340 : f32 to vector<2x4xf32>
    %1150 = arith.mulf %1149, %1145 : vector<2x4xf32>
    %1151 = arith.mulf %1150, %1080 : vector<2x4xf32>
    %1152 = arith.addf %1148, %1151 : vector<2x4xf32>
    %cst_341 = arith.constant 3.14159274 : f32
    %1153 = vector.broadcast %cst_341 : f32 to vector<2x4xf32>
    %1154 = arith.addf %1152, %1153 : vector<2x4xf32>
    %cst_342 = arith.constant 0.159154937 : f32
    %1155 = vector.broadcast %cst_342 : f32 to vector<2x4xf32>
    %1156 = arith.mulf %1154, %1155 : vector<2x4xf32>
    %1157 = math.floor %1156 : vector<2x4xf32>
    %1158 = arith.subf %1156, %1157 : vector<2x4xf32>
    %cst_343 = arith.constant 6.28318548 : f32
    %1159 = vector.broadcast %cst_343 : f32 to vector<2x4xf32>
    %1160 = arith.mulf %1158, %1159 : vector<2x4xf32>
    %cst_344 = arith.constant 3.14159274 : f32
    %1161 = vector.broadcast %cst_344 : f32 to vector<2x4xf32>
    %1162 = arith.subf %1160, %1161 : vector<2x4xf32>
    %1163 = arith.subf %1162, %868 : vector<2x4xf32>
    %cst_345 = arith.constant 3.14159274 : f32
    %1164 = vector.broadcast %cst_345 : f32 to vector<2x4xf32>
    %1165 = arith.addf %1163, %1164 : vector<2x4xf32>
    %cst_346 = arith.constant 0.159154937 : f32
    %1166 = vector.broadcast %cst_346 : f32 to vector<2x4xf32>
    %1167 = arith.mulf %1165, %1166 : vector<2x4xf32>
    %1168 = math.floor %1167 : vector<2x4xf32>
    %1169 = arith.subf %1167, %1168 : vector<2x4xf32>
    %cst_347 = arith.constant 6.28318548 : f32
    %1170 = vector.broadcast %cst_347 : f32 to vector<2x4xf32>
    %1171 = arith.mulf %1169, %1170 : vector<2x4xf32>
    %cst_348 = arith.constant 3.14159274 : f32
    %1172 = vector.broadcast %cst_348 : f32 to vector<2x4xf32>
    %1173 = arith.subf %1171, %1172 : vector<2x4xf32>
    %cst_349 = arith.constant 1.250000e-01 : f32
    %1174 = vector.broadcast %cst_349 : f32 to vector<2x4xf32>
    %1175 = arith.mulf %1174, %1136 : vector<2x4xf32>
    %cst_350 = arith.constant 0.353553385 : f32
    %1176 = vector.broadcast %cst_350 : f32 to vector<2x4xf32>
    %1177 = arith.mulf %1176, %1145 : vector<2x4xf32>
    %cst_351 = arith.constant 1.000000e+00 : f32
    %1178 = vector.broadcast %cst_351 : f32 to vector<2x4xf32>
    %1179 = arith.divf %1178, %1177 : vector<2x4xf32>
    %cst_352 = arith.constant 2.50662827 : f32
    %1180 = vector.broadcast %cst_352 : f32 to vector<2x4xf32>
    %1181 = arith.mulf %1177, %1180 : vector<2x4xf32>
    %1182 = math.log %1181 : vector<2x4xf32>
    %cst_353 = arith.constant 0.000000e+00 : f32
    %1183 = vector.broadcast %cst_353 : f32 to vector<2x4xf32>
    %1184 = arith.subf %1183, %1182 : vector<2x4xf32>
    %1185 = arith.subf %1173, %1175 : vector<2x4xf32>
    %cst_354 = arith.constant -18.849556 : f32
    %1186 = vector.broadcast %cst_354 : f32 to vector<2x4xf32>
    %1187 = arith.addf %1185, %1186 : vector<2x4xf32>
    %1188 = arith.mulf %1187, %1179 : vector<2x4xf32>
    %1189 = arith.mulf %1188, %1188 : vector<2x4xf32>
    %cst_355 = arith.constant -5.000000e-01 : f32
    %1190 = vector.broadcast %cst_355 : f32 to vector<2x4xf32>
    %1191 = arith.mulf %1190, %1189 : vector<2x4xf32>
    %1192 = arith.addf %1191, %1184 : vector<2x4xf32>
    %cst_356 = arith.constant -12.566371 : f32
    %1193 = vector.broadcast %cst_356 : f32 to vector<2x4xf32>
    %1194 = arith.addf %1185, %1193 : vector<2x4xf32>
    %1195 = arith.mulf %1194, %1179 : vector<2x4xf32>
    %1196 = arith.mulf %1195, %1195 : vector<2x4xf32>
    %cst_357 = arith.constant -5.000000e-01 : f32
    %1197 = vector.broadcast %cst_357 : f32 to vector<2x4xf32>
    %1198 = arith.mulf %1197, %1196 : vector<2x4xf32>
    %1199 = arith.addf %1198, %1184 : vector<2x4xf32>
    %cst_358 = arith.constant -6.28318548 : f32
    %1200 = vector.broadcast %cst_358 : f32 to vector<2x4xf32>
    %1201 = arith.addf %1185, %1200 : vector<2x4xf32>
    %1202 = arith.mulf %1201, %1179 : vector<2x4xf32>
    %1203 = arith.mulf %1202, %1202 : vector<2x4xf32>
    %cst_359 = arith.constant -5.000000e-01 : f32
    %1204 = vector.broadcast %cst_359 : f32 to vector<2x4xf32>
    %1205 = arith.mulf %1204, %1203 : vector<2x4xf32>
    %1206 = arith.addf %1205, %1184 : vector<2x4xf32>
    %cst_360 = arith.constant 0.000000e+00 : f32
    %1207 = vector.broadcast %cst_360 : f32 to vector<2x4xf32>
    %1208 = arith.addf %1185, %1207 : vector<2x4xf32>
    %1209 = arith.mulf %1208, %1179 : vector<2x4xf32>
    %1210 = arith.mulf %1209, %1209 : vector<2x4xf32>
    %cst_361 = arith.constant -5.000000e-01 : f32
    %1211 = vector.broadcast %cst_361 : f32 to vector<2x4xf32>
    %1212 = arith.mulf %1211, %1210 : vector<2x4xf32>
    %1213 = arith.addf %1212, %1184 : vector<2x4xf32>
    %cst_362 = arith.constant 6.28318548 : f32
    %1214 = vector.broadcast %cst_362 : f32 to vector<2x4xf32>
    %1215 = arith.addf %1185, %1214 : vector<2x4xf32>
    %1216 = arith.mulf %1215, %1179 : vector<2x4xf32>
    %1217 = arith.mulf %1216, %1216 : vector<2x4xf32>
    %cst_363 = arith.constant -5.000000e-01 : f32
    %1218 = vector.broadcast %cst_363 : f32 to vector<2x4xf32>
    %1219 = arith.mulf %1218, %1217 : vector<2x4xf32>
    %1220 = arith.addf %1219, %1184 : vector<2x4xf32>
    %cst_364 = arith.constant 12.566371 : f32
    %1221 = vector.broadcast %cst_364 : f32 to vector<2x4xf32>
    %1222 = arith.addf %1185, %1221 : vector<2x4xf32>
    %1223 = arith.mulf %1222, %1179 : vector<2x4xf32>
    %1224 = arith.mulf %1223, %1223 : vector<2x4xf32>
    %cst_365 = arith.constant -5.000000e-01 : f32
    %1225 = vector.broadcast %cst_365 : f32 to vector<2x4xf32>
    %1226 = arith.mulf %1225, %1224 : vector<2x4xf32>
    %1227 = arith.addf %1226, %1184 : vector<2x4xf32>
    %cst_366 = arith.constant 18.849556 : f32
    %1228 = vector.broadcast %cst_366 : f32 to vector<2x4xf32>
    %1229 = arith.addf %1185, %1228 : vector<2x4xf32>
    %1230 = arith.mulf %1229, %1179 : vector<2x4xf32>
    %1231 = arith.mulf %1230, %1230 : vector<2x4xf32>
    %cst_367 = arith.constant -5.000000e-01 : f32
    %1232 = vector.broadcast %cst_367 : f32 to vector<2x4xf32>
    %1233 = arith.mulf %1232, %1231 : vector<2x4xf32>
    %1234 = arith.addf %1233, %1184 : vector<2x4xf32>
    %1235 = arith.maximumf %1192, %1199 : vector<2x4xf32>
    %1236 = arith.maximumf %1235, %1206 : vector<2x4xf32>
    %1237 = arith.maximumf %1236, %1213 : vector<2x4xf32>
    %1238 = arith.maximumf %1237, %1220 : vector<2x4xf32>
    %1239 = arith.maximumf %1238, %1227 : vector<2x4xf32>
    %1240 = arith.maximumf %1239, %1234 : vector<2x4xf32>
    %1241 = arith.subf %1192, %1240 : vector<2x4xf32>
    %1242 = math.exp %1241 : vector<2x4xf32>
    %1243 = arith.subf %1199, %1240 : vector<2x4xf32>
    %1244 = math.exp %1243 : vector<2x4xf32>
    %1245 = arith.addf %1242, %1244 : vector<2x4xf32>
    %1246 = arith.subf %1206, %1240 : vector<2x4xf32>
    %1247 = math.exp %1246 : vector<2x4xf32>
    %1248 = arith.addf %1245, %1247 : vector<2x4xf32>
    %1249 = arith.subf %1213, %1240 : vector<2x4xf32>
    %1250 = math.exp %1249 : vector<2x4xf32>
    %1251 = arith.addf %1248, %1250 : vector<2x4xf32>
    %1252 = arith.subf %1220, %1240 : vector<2x4xf32>
    %1253 = math.exp %1252 : vector<2x4xf32>
    %1254 = arith.addf %1251, %1253 : vector<2x4xf32>
    %1255 = arith.subf %1227, %1240 : vector<2x4xf32>
    %1256 = math.exp %1255 : vector<2x4xf32>
    %1257 = arith.addf %1254, %1256 : vector<2x4xf32>
    %1258 = arith.subf %1234, %1240 : vector<2x4xf32>
    %1259 = math.exp %1258 : vector<2x4xf32>
    %1260 = arith.addf %1257, %1259 : vector<2x4xf32>
    %1261 = math.log %1260 : vector<2x4xf32>
    %1262 = arith.addf %1240, %1261 : vector<2x4xf32>
    %cst_368 = arith.constant dense<0.000000e+00> : vector<2xf32>
    %1263 = vector.multi_reduction <add>, %1262, %cst_368 [1] : vector<2x4xf32> to vector<2xf32>
    %1264 = vector.shape_cast %1263 : vector<2xf32> to vector<2x1xf32>
    %1265 = arith.subf %868, %1162 : vector<2x4xf32>
    %cst_369 = arith.constant 3.14159274 : f32
    %1266 = vector.broadcast %cst_369 : f32 to vector<2x4xf32>
    %1267 = arith.addf %1265, %1266 : vector<2x4xf32>
    %cst_370 = arith.constant 0.159154937 : f32
    %1268 = vector.broadcast %cst_370 : f32 to vector<2x4xf32>
    %1269 = arith.mulf %1267, %1268 : vector<2x4xf32>
    %1270 = math.floor %1269 : vector<2x4xf32>
    %1271 = arith.subf %1269, %1270 : vector<2x4xf32>
    %cst_371 = arith.constant 6.28318548 : f32
    %1272 = vector.broadcast %cst_371 : f32 to vector<2x4xf32>
    %1273 = arith.mulf %1271, %1272 : vector<2x4xf32>
    %cst_372 = arith.constant 3.14159274 : f32
    %1274 = vector.broadcast %cst_372 : f32 to vector<2x4xf32>
    %1275 = arith.subf %1273, %1274 : vector<2x4xf32>
    %cst_373 = arith.constant 0.000000e+00 : f32
    %1276 = vector.broadcast %cst_373 : f32 to vector<2x4xf32>
    %1277 = arith.subf %1276, %1162 : vector<2x4xf32>
    %cst_374 = arith.constant 2.000000e-01 : f32
    %1278 = vector.broadcast %cst_374 : f32 to vector<2x4xf32>
    %1279 = arith.mulf %1277, %1278 : vector<2x4xf32>
    %1280 = arith.subf %1275, %1279 : vector<2x4xf32>
    %cst_375 = arith.constant -18.849556 : f32
    %1281 = vector.broadcast %cst_375 : f32 to vector<2x4xf32>
    %1282 = arith.addf %1280, %1281 : vector<2x4xf32>
    %cst_376 = arith.constant 3.1622777 : f32
    %1283 = vector.broadcast %cst_376 : f32 to vector<2x4xf32>
    %1284 = arith.mulf %1282, %1283 : vector<2x4xf32>
    %1285 = arith.mulf %1284, %1284 : vector<2x4xf32>
    %cst_377 = arith.constant -5.000000e-01 : f32
    %1286 = vector.broadcast %cst_377 : f32 to vector<2x4xf32>
    %1287 = arith.mulf %1286, %1285 : vector<2x4xf32>
    %cst_378 = arith.constant 0.232354015 : f32
    %1288 = vector.broadcast %cst_378 : f32 to vector<2x4xf32>
    %1289 = arith.addf %1287, %1288 : vector<2x4xf32>
    %cst_379 = arith.constant -12.566371 : f32
    %1290 = vector.broadcast %cst_379 : f32 to vector<2x4xf32>
    %1291 = arith.addf %1280, %1290 : vector<2x4xf32>
    %cst_380 = arith.constant 3.1622777 : f32
    %1292 = vector.broadcast %cst_380 : f32 to vector<2x4xf32>
    %1293 = arith.mulf %1291, %1292 : vector<2x4xf32>
    %1294 = arith.mulf %1293, %1293 : vector<2x4xf32>
    %cst_381 = arith.constant -5.000000e-01 : f32
    %1295 = vector.broadcast %cst_381 : f32 to vector<2x4xf32>
    %1296 = arith.mulf %1295, %1294 : vector<2x4xf32>
    %cst_382 = arith.constant 0.232354015 : f32
    %1297 = vector.broadcast %cst_382 : f32 to vector<2x4xf32>
    %1298 = arith.addf %1296, %1297 : vector<2x4xf32>
    %cst_383 = arith.constant -6.28318548 : f32
    %1299 = vector.broadcast %cst_383 : f32 to vector<2x4xf32>
    %1300 = arith.addf %1280, %1299 : vector<2x4xf32>
    %cst_384 = arith.constant 3.1622777 : f32
    %1301 = vector.broadcast %cst_384 : f32 to vector<2x4xf32>
    %1302 = arith.mulf %1300, %1301 : vector<2x4xf32>
    %1303 = arith.mulf %1302, %1302 : vector<2x4xf32>
    %cst_385 = arith.constant -5.000000e-01 : f32
    %1304 = vector.broadcast %cst_385 : f32 to vector<2x4xf32>
    %1305 = arith.mulf %1304, %1303 : vector<2x4xf32>
    %cst_386 = arith.constant 0.232354015 : f32
    %1306 = vector.broadcast %cst_386 : f32 to vector<2x4xf32>
    %1307 = arith.addf %1305, %1306 : vector<2x4xf32>
    %cst_387 = arith.constant 0.000000e+00 : f32
    %1308 = vector.broadcast %cst_387 : f32 to vector<2x4xf32>
    %1309 = arith.addf %1280, %1308 : vector<2x4xf32>
    %cst_388 = arith.constant 3.1622777 : f32
    %1310 = vector.broadcast %cst_388 : f32 to vector<2x4xf32>
    %1311 = arith.mulf %1309, %1310 : vector<2x4xf32>
    %1312 = arith.mulf %1311, %1311 : vector<2x4xf32>
    %cst_389 = arith.constant -5.000000e-01 : f32
    %1313 = vector.broadcast %cst_389 : f32 to vector<2x4xf32>
    %1314 = arith.mulf %1313, %1312 : vector<2x4xf32>
    %cst_390 = arith.constant 0.232354015 : f32
    %1315 = vector.broadcast %cst_390 : f32 to vector<2x4xf32>
    %1316 = arith.addf %1314, %1315 : vector<2x4xf32>
    %cst_391 = arith.constant 6.28318548 : f32
    %1317 = vector.broadcast %cst_391 : f32 to vector<2x4xf32>
    %1318 = arith.addf %1280, %1317 : vector<2x4xf32>
    %cst_392 = arith.constant 3.1622777 : f32
    %1319 = vector.broadcast %cst_392 : f32 to vector<2x4xf32>
    %1320 = arith.mulf %1318, %1319 : vector<2x4xf32>
    %1321 = arith.mulf %1320, %1320 : vector<2x4xf32>
    %cst_393 = arith.constant -5.000000e-01 : f32
    %1322 = vector.broadcast %cst_393 : f32 to vector<2x4xf32>
    %1323 = arith.mulf %1322, %1321 : vector<2x4xf32>
    %cst_394 = arith.constant 0.232354015 : f32
    %1324 = vector.broadcast %cst_394 : f32 to vector<2x4xf32>
    %1325 = arith.addf %1323, %1324 : vector<2x4xf32>
    %cst_395 = arith.constant 12.566371 : f32
    %1326 = vector.broadcast %cst_395 : f32 to vector<2x4xf32>
    %1327 = arith.addf %1280, %1326 : vector<2x4xf32>
    %cst_396 = arith.constant 3.1622777 : f32
    %1328 = vector.broadcast %cst_396 : f32 to vector<2x4xf32>
    %1329 = arith.mulf %1327, %1328 : vector<2x4xf32>
    %1330 = arith.mulf %1329, %1329 : vector<2x4xf32>
    %cst_397 = arith.constant -5.000000e-01 : f32
    %1331 = vector.broadcast %cst_397 : f32 to vector<2x4xf32>
    %1332 = arith.mulf %1331, %1330 : vector<2x4xf32>
    %cst_398 = arith.constant 0.232354015 : f32
    %1333 = vector.broadcast %cst_398 : f32 to vector<2x4xf32>
    %1334 = arith.addf %1332, %1333 : vector<2x4xf32>
    %cst_399 = arith.constant 18.849556 : f32
    %1335 = vector.broadcast %cst_399 : f32 to vector<2x4xf32>
    %1336 = arith.addf %1280, %1335 : vector<2x4xf32>
    %cst_400 = arith.constant 3.1622777 : f32
    %1337 = vector.broadcast %cst_400 : f32 to vector<2x4xf32>
    %1338 = arith.mulf %1336, %1337 : vector<2x4xf32>
    %1339 = arith.mulf %1338, %1338 : vector<2x4xf32>
    %cst_401 = arith.constant -5.000000e-01 : f32
    %1340 = vector.broadcast %cst_401 : f32 to vector<2x4xf32>
    %1341 = arith.mulf %1340, %1339 : vector<2x4xf32>
    %cst_402 = arith.constant 0.232354015 : f32
    %1342 = vector.broadcast %cst_402 : f32 to vector<2x4xf32>
    %1343 = arith.addf %1341, %1342 : vector<2x4xf32>
    %1344 = arith.maximumf %1289, %1298 : vector<2x4xf32>
    %1345 = arith.maximumf %1344, %1307 : vector<2x4xf32>
    %1346 = arith.maximumf %1345, %1316 : vector<2x4xf32>
    %1347 = arith.maximumf %1346, %1325 : vector<2x4xf32>
    %1348 = arith.maximumf %1347, %1334 : vector<2x4xf32>
    %1349 = arith.maximumf %1348, %1343 : vector<2x4xf32>
    %1350 = arith.subf %1289, %1349 : vector<2x4xf32>
    %1351 = math.exp %1350 : vector<2x4xf32>
    %1352 = arith.subf %1298, %1349 : vector<2x4xf32>
    %1353 = math.exp %1352 : vector<2x4xf32>
    %1354 = arith.addf %1351, %1353 : vector<2x4xf32>
    %1355 = arith.subf %1307, %1349 : vector<2x4xf32>
    %1356 = math.exp %1355 : vector<2x4xf32>
    %1357 = arith.addf %1354, %1356 : vector<2x4xf32>
    %1358 = arith.subf %1316, %1349 : vector<2x4xf32>
    %1359 = math.exp %1358 : vector<2x4xf32>
    %1360 = arith.addf %1357, %1359 : vector<2x4xf32>
    %1361 = arith.subf %1325, %1349 : vector<2x4xf32>
    %1362 = math.exp %1361 : vector<2x4xf32>
    %1363 = arith.addf %1360, %1362 : vector<2x4xf32>
    %1364 = arith.subf %1334, %1349 : vector<2x4xf32>
    %1365 = math.exp %1364 : vector<2x4xf32>
    %1366 = arith.addf %1363, %1365 : vector<2x4xf32>
    %1367 = arith.subf %1343, %1349 : vector<2x4xf32>
    %1368 = math.exp %1367 : vector<2x4xf32>
    %1369 = arith.addf %1366, %1368 : vector<2x4xf32>
    %1370 = math.log %1369 : vector<2x4xf32>
    %1371 = arith.addf %1349, %1370 : vector<2x4xf32>
    %cst_403 = arith.constant dense<0.000000e+00> : vector<2xf32>
    %1372 = vector.multi_reduction <add>, %1371, %cst_403 [1] : vector<2x4xf32> to vector<2xf32>
    %1373 = vector.shape_cast %1372 : vector<2xf32> to vector<2x1xf32>
    %1374 = vector.extract_strided_slice %10 {offsets = [10, 0], sizes = [2, 4], strides = [1, 1]} : vector<16x4xf32> to vector<2x4xf32>
    %1375 = vector.extract_strided_slice %9 {offsets = [5, 0], sizes = [1, 32], strides = [1, 1]} : vector<8x32xf32> to vector<1x32xf32>
    %cst_404 = arith.constant dense<0.000000e+00> : vector<2x32xf32>
    %1376 = tpu.matmul %1162, %0, %cst_404 {dimension_numbers = #tpu.dot_dimension_numbers<[1], [0], [0], [1], [0, 0, 1, 1], [], []>} : vector<2x4xf32>, vector<4x32xf32>, vector<2x32xf32> -> vector<2x32xf32>
    %1377 = vector.broadcast %1 : vector<1x32xf32> to vector<2x32xf32>
    %1378 = arith.addf %1376, %1377 : vector<2x32xf32>
    %cst_405 = arith.constant 5.000000e-01 : f32
    %1379 = vector.broadcast %cst_405 : f32 to vector<2x32xf32>
    %1380 = arith.mulf %1379, %1378 : vector<2x32xf32>
    %cst_406 = arith.constant 4.471500e-02 : f32
    %1381 = vector.broadcast %cst_406 : f32 to vector<2x32xf32>
    %1382 = arith.mulf %1381, %1378 : vector<2x32xf32>
    %1383 = arith.mulf %1382, %1378 : vector<2x32xf32>
    %1384 = arith.mulf %1383, %1378 : vector<2x32xf32>
    %1385 = arith.addf %1378, %1384 : vector<2x32xf32>
    %cst_407 = arith.constant 0.797884583 : f32
    %1386 = vector.broadcast %cst_407 : f32 to vector<2x32xf32>
    %1387 = arith.mulf %1386, %1385 : vector<2x32xf32>
    %1388 = math.tanh %1387 : vector<2x32xf32>
    %cst_408 = arith.constant 1.000000e+00 : f32
    %1389 = vector.broadcast %cst_408 : f32 to vector<2x32xf32>
    %1390 = arith.addf %1389, %1388 : vector<2x32xf32>
    %1391 = arith.mulf %1380, %1390 : vector<2x32xf32>
    %cst_409 = arith.constant dense<0.000000e+00> : vector<2x32xf32>
    %1392 = tpu.matmul %1391, %2, %cst_409 {dimension_numbers = #tpu.dot_dimension_numbers<[1], [0], [0], [1], [0, 0, 1, 1], [], []>} : vector<2x32xf32>, vector<32x32xf32>, vector<2x32xf32> -> vector<2x32xf32>
    %1393 = vector.broadcast %3 : vector<1x32xf32> to vector<2x32xf32>
    %1394 = arith.addf %1392, %1393 : vector<2x32xf32>
    %cst_410 = arith.constant dense<0.000000e+00> : vector<2x32xf32>
    %1395 = tpu.matmul %1394, %4, %cst_410 {dimension_numbers = #tpu.dot_dimension_numbers<[1], [0], [0], [1], [0, 0, 1, 1], [], []>} : vector<2x32xf32>, vector<32x32xf32>, vector<2x32xf32> -> vector<2x32xf32>
    %1396 = vector.broadcast %1375 : vector<1x32xf32> to vector<2x32xf32>
    %1397 = arith.addf %1395, %1396 : vector<2x32xf32>
    %cst_411 = arith.constant 5.000000e-01 : f32
    %1398 = vector.broadcast %cst_411 : f32 to vector<2x32xf32>
    %1399 = arith.mulf %1398, %1397 : vector<2x32xf32>
    %cst_412 = arith.constant 4.471500e-02 : f32
    %1400 = vector.broadcast %cst_412 : f32 to vector<2x32xf32>
    %1401 = arith.mulf %1400, %1397 : vector<2x32xf32>
    %1402 = arith.mulf %1401, %1397 : vector<2x32xf32>
    %1403 = arith.mulf %1402, %1397 : vector<2x32xf32>
    %1404 = arith.addf %1397, %1403 : vector<2x32xf32>
    %cst_413 = arith.constant 0.797884583 : f32
    %1405 = vector.broadcast %cst_413 : f32 to vector<2x32xf32>
    %1406 = arith.mulf %1405, %1404 : vector<2x32xf32>
    %1407 = math.tanh %1406 : vector<2x32xf32>
    %cst_414 = arith.constant 1.000000e+00 : f32
    %1408 = vector.broadcast %cst_414 : f32 to vector<2x32xf32>
    %1409 = arith.addf %1408, %1407 : vector<2x32xf32>
    %1410 = arith.mulf %1399, %1409 : vector<2x32xf32>
    %cst_415 = arith.constant dense<0.000000e+00> : vector<2x32xf32>
    %1411 = tpu.matmul %1410, %5, %cst_415 {dimension_numbers = #tpu.dot_dimension_numbers<[1], [0], [0], [1], [0, 0, 1, 1], [], []>} : vector<2x32xf32>, vector<32x32xf32>, vector<2x32xf32> -> vector<2x32xf32>
    %1412 = vector.broadcast %6 : vector<1x32xf32> to vector<2x32xf32>
    %1413 = arith.addf %1411, %1412 : vector<2x32xf32>
    %cst_416 = arith.constant 5.000000e-01 : f32
    %1414 = vector.broadcast %cst_416 : f32 to vector<2x32xf32>
    %1415 = arith.mulf %1414, %1413 : vector<2x32xf32>
    %cst_417 = arith.constant 4.471500e-02 : f32
    %1416 = vector.broadcast %cst_417 : f32 to vector<2x32xf32>
    %1417 = arith.mulf %1416, %1413 : vector<2x32xf32>
    %1418 = arith.mulf %1417, %1413 : vector<2x32xf32>
    %1419 = arith.mulf %1418, %1413 : vector<2x32xf32>
    %1420 = arith.addf %1413, %1419 : vector<2x32xf32>
    %cst_418 = arith.constant 0.797884583 : f32
    %1421 = vector.broadcast %cst_418 : f32 to vector<2x32xf32>
    %1422 = arith.mulf %1421, %1420 : vector<2x32xf32>
    %1423 = math.tanh %1422 : vector<2x32xf32>
    %cst_419 = arith.constant 1.000000e+00 : f32
    %1424 = vector.broadcast %cst_419 : f32 to vector<2x32xf32>
    %1425 = arith.addf %1424, %1423 : vector<2x32xf32>
    %1426 = arith.mulf %1415, %1425 : vector<2x32xf32>
    %cst_420 = arith.constant dense<0.000000e+00> : vector<2x32xf32>
    %1427 = tpu.matmul %1426, %7, %cst_420 {dimension_numbers = #tpu.dot_dimension_numbers<[1], [0], [0], [1], [0, 0, 1, 1], [], []>} : vector<2x32xf32>, vector<32x32xf32>, vector<2x32xf32> -> vector<2x32xf32>
    %1428 = vector.broadcast %8 : vector<1x32xf32> to vector<2x32xf32>
    %1429 = arith.addf %1427, %1428 : vector<2x32xf32>
    %1430 = vector.extract_strided_slice %1429 {offsets = [0, 0], sizes = [2, 4], strides = [1, 1]} : vector<2x32xf32> to vector<2x4xf32>
    %1431 = vector.extract_strided_slice %1429 {offsets = [0, 4], sizes = [2, 4], strides = [1, 1]} : vector<2x32xf32> to vector<2x4xf32>
    %1432 = math.tanh %1431 : vector<2x4xf32>
    %cst_421 = arith.constant 4.000000e+00 : f32
    %1433 = vector.broadcast %cst_421 : f32 to vector<2x4xf32>
    %1434 = arith.mulf %1432, %1433 : vector<2x4xf32>
    %cst_422 = arith.constant 0.000000e+00 : f32
    %1435 = vector.broadcast %cst_422 : f32 to vector<2x4xf32>
    %1436 = arith.addf %1434, %1435 : vector<2x4xf32>
    %cst_423 = arith.constant 5.000000e-01 : f32
    %1437 = vector.broadcast %cst_423 : f32 to vector<2x4xf32>
    %1438 = arith.mulf %1437, %1436 : vector<2x4xf32>
    %1439 = math.exp %1438 : vector<2x4xf32>
    %cst_424 = arith.constant 1.250000e-01 : f32
    %1440 = vector.broadcast %cst_424 : f32 to vector<2x4xf32>
    %1441 = arith.mulf %1440, %1430 : vector<2x4xf32>
    %1442 = arith.addf %1162, %1441 : vector<2x4xf32>
    %cst_425 = arith.constant 0.353553385 : f32
    %1443 = vector.broadcast %cst_425 : f32 to vector<2x4xf32>
    %1444 = arith.mulf %1443, %1439 : vector<2x4xf32>
    %1445 = arith.mulf %1444, %1374 : vector<2x4xf32>
    %1446 = arith.addf %1442, %1445 : vector<2x4xf32>
    %cst_426 = arith.constant 3.14159274 : f32
    %1447 = vector.broadcast %cst_426 : f32 to vector<2x4xf32>
    %1448 = arith.addf %1446, %1447 : vector<2x4xf32>
    %cst_427 = arith.constant 0.159154937 : f32
    %1449 = vector.broadcast %cst_427 : f32 to vector<2x4xf32>
    %1450 = arith.mulf %1448, %1449 : vector<2x4xf32>
    %1451 = math.floor %1450 : vector<2x4xf32>
    %1452 = arith.subf %1450, %1451 : vector<2x4xf32>
    %cst_428 = arith.constant 6.28318548 : f32
    %1453 = vector.broadcast %cst_428 : f32 to vector<2x4xf32>
    %1454 = arith.mulf %1452, %1453 : vector<2x4xf32>
    %cst_429 = arith.constant 3.14159274 : f32
    %1455 = vector.broadcast %cst_429 : f32 to vector<2x4xf32>
    %1456 = arith.subf %1454, %1455 : vector<2x4xf32>
    %1457 = arith.subf %1456, %1162 : vector<2x4xf32>
    %cst_430 = arith.constant 3.14159274 : f32
    %1458 = vector.broadcast %cst_430 : f32 to vector<2x4xf32>
    %1459 = arith.addf %1457, %1458 : vector<2x4xf32>
    %cst_431 = arith.constant 0.159154937 : f32
    %1460 = vector.broadcast %cst_431 : f32 to vector<2x4xf32>
    %1461 = arith.mulf %1459, %1460 : vector<2x4xf32>
    %1462 = math.floor %1461 : vector<2x4xf32>
    %1463 = arith.subf %1461, %1462 : vector<2x4xf32>
    %cst_432 = arith.constant 6.28318548 : f32
    %1464 = vector.broadcast %cst_432 : f32 to vector<2x4xf32>
    %1465 = arith.mulf %1463, %1464 : vector<2x4xf32>
    %cst_433 = arith.constant 3.14159274 : f32
    %1466 = vector.broadcast %cst_433 : f32 to vector<2x4xf32>
    %1467 = arith.subf %1465, %1466 : vector<2x4xf32>
    %cst_434 = arith.constant 1.250000e-01 : f32
    %1468 = vector.broadcast %cst_434 : f32 to vector<2x4xf32>
    %1469 = arith.mulf %1468, %1430 : vector<2x4xf32>
    %cst_435 = arith.constant 0.353553385 : f32
    %1470 = vector.broadcast %cst_435 : f32 to vector<2x4xf32>
    %1471 = arith.mulf %1470, %1439 : vector<2x4xf32>
    %cst_436 = arith.constant 1.000000e+00 : f32
    %1472 = vector.broadcast %cst_436 : f32 to vector<2x4xf32>
    %1473 = arith.divf %1472, %1471 : vector<2x4xf32>
    %cst_437 = arith.constant 2.50662827 : f32
    %1474 = vector.broadcast %cst_437 : f32 to vector<2x4xf32>
    %1475 = arith.mulf %1471, %1474 : vector<2x4xf32>
    %1476 = math.log %1475 : vector<2x4xf32>
    %cst_438 = arith.constant 0.000000e+00 : f32
    %1477 = vector.broadcast %cst_438 : f32 to vector<2x4xf32>
    %1478 = arith.subf %1477, %1476 : vector<2x4xf32>
    %1479 = arith.subf %1467, %1469 : vector<2x4xf32>
    %cst_439 = arith.constant -18.849556 : f32
    %1480 = vector.broadcast %cst_439 : f32 to vector<2x4xf32>
    %1481 = arith.addf %1479, %1480 : vector<2x4xf32>
    %1482 = arith.mulf %1481, %1473 : vector<2x4xf32>
    %1483 = arith.mulf %1482, %1482 : vector<2x4xf32>
    %cst_440 = arith.constant -5.000000e-01 : f32
    %1484 = vector.broadcast %cst_440 : f32 to vector<2x4xf32>
    %1485 = arith.mulf %1484, %1483 : vector<2x4xf32>
    %1486 = arith.addf %1485, %1478 : vector<2x4xf32>
    %cst_441 = arith.constant -12.566371 : f32
    %1487 = vector.broadcast %cst_441 : f32 to vector<2x4xf32>
    %1488 = arith.addf %1479, %1487 : vector<2x4xf32>
    %1489 = arith.mulf %1488, %1473 : vector<2x4xf32>
    %1490 = arith.mulf %1489, %1489 : vector<2x4xf32>
    %cst_442 = arith.constant -5.000000e-01 : f32
    %1491 = vector.broadcast %cst_442 : f32 to vector<2x4xf32>
    %1492 = arith.mulf %1491, %1490 : vector<2x4xf32>
    %1493 = arith.addf %1492, %1478 : vector<2x4xf32>
    %cst_443 = arith.constant -6.28318548 : f32
    %1494 = vector.broadcast %cst_443 : f32 to vector<2x4xf32>
    %1495 = arith.addf %1479, %1494 : vector<2x4xf32>
    %1496 = arith.mulf %1495, %1473 : vector<2x4xf32>
    %1497 = arith.mulf %1496, %1496 : vector<2x4xf32>
    %cst_444 = arith.constant -5.000000e-01 : f32
    %1498 = vector.broadcast %cst_444 : f32 to vector<2x4xf32>
    %1499 = arith.mulf %1498, %1497 : vector<2x4xf32>
    %1500 = arith.addf %1499, %1478 : vector<2x4xf32>
    %cst_445 = arith.constant 0.000000e+00 : f32
    %1501 = vector.broadcast %cst_445 : f32 to vector<2x4xf32>
    %1502 = arith.addf %1479, %1501 : vector<2x4xf32>
    %1503 = arith.mulf %1502, %1473 : vector<2x4xf32>
    %1504 = arith.mulf %1503, %1503 : vector<2x4xf32>
    %cst_446 = arith.constant -5.000000e-01 : f32
    %1505 = vector.broadcast %cst_446 : f32 to vector<2x4xf32>
    %1506 = arith.mulf %1505, %1504 : vector<2x4xf32>
    %1507 = arith.addf %1506, %1478 : vector<2x4xf32>
    %cst_447 = arith.constant 6.28318548 : f32
    %1508 = vector.broadcast %cst_447 : f32 to vector<2x4xf32>
    %1509 = arith.addf %1479, %1508 : vector<2x4xf32>
    %1510 = arith.mulf %1509, %1473 : vector<2x4xf32>
    %1511 = arith.mulf %1510, %1510 : vector<2x4xf32>
    %cst_448 = arith.constant -5.000000e-01 : f32
    %1512 = vector.broadcast %cst_448 : f32 to vector<2x4xf32>
    %1513 = arith.mulf %1512, %1511 : vector<2x4xf32>
    %1514 = arith.addf %1513, %1478 : vector<2x4xf32>
    %cst_449 = arith.constant 12.566371 : f32
    %1515 = vector.broadcast %cst_449 : f32 to vector<2x4xf32>
    %1516 = arith.addf %1479, %1515 : vector<2x4xf32>
    %1517 = arith.mulf %1516, %1473 : vector<2x4xf32>
    %1518 = arith.mulf %1517, %1517 : vector<2x4xf32>
    %cst_450 = arith.constant -5.000000e-01 : f32
    %1519 = vector.broadcast %cst_450 : f32 to vector<2x4xf32>
    %1520 = arith.mulf %1519, %1518 : vector<2x4xf32>
    %1521 = arith.addf %1520, %1478 : vector<2x4xf32>
    %cst_451 = arith.constant 18.849556 : f32
    %1522 = vector.broadcast %cst_451 : f32 to vector<2x4xf32>
    %1523 = arith.addf %1479, %1522 : vector<2x4xf32>
    %1524 = arith.mulf %1523, %1473 : vector<2x4xf32>
    %1525 = arith.mulf %1524, %1524 : vector<2x4xf32>
    %cst_452 = arith.constant -5.000000e-01 : f32
    %1526 = vector.broadcast %cst_452 : f32 to vector<2x4xf32>
    %1527 = arith.mulf %1526, %1525 : vector<2x4xf32>
    %1528 = arith.addf %1527, %1478 : vector<2x4xf32>
    %1529 = arith.maximumf %1486, %1493 : vector<2x4xf32>
    %1530 = arith.maximumf %1529, %1500 : vector<2x4xf32>
    %1531 = arith.maximumf %1530, %1507 : vector<2x4xf32>
    %1532 = arith.maximumf %1531, %1514 : vector<2x4xf32>
    %1533 = arith.maximumf %1532, %1521 : vector<2x4xf32>
    %1534 = arith.maximumf %1533, %1528 : vector<2x4xf32>
    %1535 = arith.subf %1486, %1534 : vector<2x4xf32>
    %1536 = math.exp %1535 : vector<2x4xf32>
    %1537 = arith.subf %1493, %1534 : vector<2x4xf32>
    %1538 = math.exp %1537 : vector<2x4xf32>
    %1539 = arith.addf %1536, %1538 : vector<2x4xf32>
    %1540 = arith.subf %1500, %1534 : vector<2x4xf32>
    %1541 = math.exp %1540 : vector<2x4xf32>
    %1542 = arith.addf %1539, %1541 : vector<2x4xf32>
    %1543 = arith.subf %1507, %1534 : vector<2x4xf32>
    %1544 = math.exp %1543 : vector<2x4xf32>
    %1545 = arith.addf %1542, %1544 : vector<2x4xf32>
    %1546 = arith.subf %1514, %1534 : vector<2x4xf32>
    %1547 = math.exp %1546 : vector<2x4xf32>
    %1548 = arith.addf %1545, %1547 : vector<2x4xf32>
    %1549 = arith.subf %1521, %1534 : vector<2x4xf32>
    %1550 = math.exp %1549 : vector<2x4xf32>
    %1551 = arith.addf %1548, %1550 : vector<2x4xf32>
    %1552 = arith.subf %1528, %1534 : vector<2x4xf32>
    %1553 = math.exp %1552 : vector<2x4xf32>
    %1554 = arith.addf %1551, %1553 : vector<2x4xf32>
    %1555 = math.log %1554 : vector<2x4xf32>
    %1556 = arith.addf %1534, %1555 : vector<2x4xf32>
    %cst_453 = arith.constant dense<0.000000e+00> : vector<2xf32>
    %1557 = vector.multi_reduction <add>, %1556, %cst_453 [1] : vector<2x4xf32> to vector<2xf32>
    %1558 = vector.shape_cast %1557 : vector<2xf32> to vector<2x1xf32>
    %1559 = arith.subf %1162, %1456 : vector<2x4xf32>
    %cst_454 = arith.constant 3.14159274 : f32
    %1560 = vector.broadcast %cst_454 : f32 to vector<2x4xf32>
    %1561 = arith.addf %1559, %1560 : vector<2x4xf32>
    %cst_455 = arith.constant 0.159154937 : f32
    %1562 = vector.broadcast %cst_455 : f32 to vector<2x4xf32>
    %1563 = arith.mulf %1561, %1562 : vector<2x4xf32>
    %1564 = math.floor %1563 : vector<2x4xf32>
    %1565 = arith.subf %1563, %1564 : vector<2x4xf32>
    %cst_456 = arith.constant 6.28318548 : f32
    %1566 = vector.broadcast %cst_456 : f32 to vector<2x4xf32>
    %1567 = arith.mulf %1565, %1566 : vector<2x4xf32>
    %cst_457 = arith.constant 3.14159274 : f32
    %1568 = vector.broadcast %cst_457 : f32 to vector<2x4xf32>
    %1569 = arith.subf %1567, %1568 : vector<2x4xf32>
    %cst_458 = arith.constant 0.000000e+00 : f32
    %1570 = vector.broadcast %cst_458 : f32 to vector<2x4xf32>
    %1571 = arith.subf %1570, %1456 : vector<2x4xf32>
    %cst_459 = arith.constant 0.166666672 : f32
    %1572 = vector.broadcast %cst_459 : f32 to vector<2x4xf32>
    %1573 = arith.mulf %1571, %1572 : vector<2x4xf32>
    %1574 = arith.subf %1569, %1573 : vector<2x4xf32>
    %cst_460 = arith.constant -18.849556 : f32
    %1575 = vector.broadcast %cst_460 : f32 to vector<2x4xf32>
    %1576 = arith.addf %1574, %1575 : vector<2x4xf32>
    %cst_461 = arith.constant 3.09838676 : f32
    %1577 = vector.broadcast %cst_461 : f32 to vector<2x4xf32>
    %1578 = arith.mulf %1576, %1577 : vector<2x4xf32>
    %1579 = arith.mulf %1578, %1578 : vector<2x4xf32>
    %cst_462 = arith.constant -5.000000e-01 : f32
    %1580 = vector.broadcast %cst_462 : f32 to vector<2x4xf32>
    %1581 = arith.mulf %1580, %1579 : vector<2x4xf32>
    %cst_463 = arith.constant 0.211943015 : f32
    %1582 = vector.broadcast %cst_463 : f32 to vector<2x4xf32>
    %1583 = arith.addf %1581, %1582 : vector<2x4xf32>
    %cst_464 = arith.constant -12.566371 : f32
    %1584 = vector.broadcast %cst_464 : f32 to vector<2x4xf32>
    %1585 = arith.addf %1574, %1584 : vector<2x4xf32>
    %cst_465 = arith.constant 3.09838676 : f32
    %1586 = vector.broadcast %cst_465 : f32 to vector<2x4xf32>
    %1587 = arith.mulf %1585, %1586 : vector<2x4xf32>
    %1588 = arith.mulf %1587, %1587 : vector<2x4xf32>
    %cst_466 = arith.constant -5.000000e-01 : f32
    %1589 = vector.broadcast %cst_466 : f32 to vector<2x4xf32>
    %1590 = arith.mulf %1589, %1588 : vector<2x4xf32>
    %cst_467 = arith.constant 0.211943015 : f32
    %1591 = vector.broadcast %cst_467 : f32 to vector<2x4xf32>
    %1592 = arith.addf %1590, %1591 : vector<2x4xf32>
    %cst_468 = arith.constant -6.28318548 : f32
    %1593 = vector.broadcast %cst_468 : f32 to vector<2x4xf32>
    %1594 = arith.addf %1574, %1593 : vector<2x4xf32>
    %cst_469 = arith.constant 3.09838676 : f32
    %1595 = vector.broadcast %cst_469 : f32 to vector<2x4xf32>
    %1596 = arith.mulf %1594, %1595 : vector<2x4xf32>
    %1597 = arith.mulf %1596, %1596 : vector<2x4xf32>
    %cst_470 = arith.constant -5.000000e-01 : f32
    %1598 = vector.broadcast %cst_470 : f32 to vector<2x4xf32>
    %1599 = arith.mulf %1598, %1597 : vector<2x4xf32>
    %cst_471 = arith.constant 0.211943015 : f32
    %1600 = vector.broadcast %cst_471 : f32 to vector<2x4xf32>
    %1601 = arith.addf %1599, %1600 : vector<2x4xf32>
    %cst_472 = arith.constant 0.000000e+00 : f32
    %1602 = vector.broadcast %cst_472 : f32 to vector<2x4xf32>
    %1603 = arith.addf %1574, %1602 : vector<2x4xf32>
    %cst_473 = arith.constant 3.09838676 : f32
    %1604 = vector.broadcast %cst_473 : f32 to vector<2x4xf32>
    %1605 = arith.mulf %1603, %1604 : vector<2x4xf32>
    %1606 = arith.mulf %1605, %1605 : vector<2x4xf32>
    %cst_474 = arith.constant -5.000000e-01 : f32
    %1607 = vector.broadcast %cst_474 : f32 to vector<2x4xf32>
    %1608 = arith.mulf %1607, %1606 : vector<2x4xf32>
    %cst_475 = arith.constant 0.211943015 : f32
    %1609 = vector.broadcast %cst_475 : f32 to vector<2x4xf32>
    %1610 = arith.addf %1608, %1609 : vector<2x4xf32>
    %cst_476 = arith.constant 6.28318548 : f32
    %1611 = vector.broadcast %cst_476 : f32 to vector<2x4xf32>
    %1612 = arith.addf %1574, %1611 : vector<2x4xf32>
    %cst_477 = arith.constant 3.09838676 : f32
    %1613 = vector.broadcast %cst_477 : f32 to vector<2x4xf32>
    %1614 = arith.mulf %1612, %1613 : vector<2x4xf32>
    %1615 = arith.mulf %1614, %1614 : vector<2x4xf32>
    %cst_478 = arith.constant -5.000000e-01 : f32
    %1616 = vector.broadcast %cst_478 : f32 to vector<2x4xf32>
    %1617 = arith.mulf %1616, %1615 : vector<2x4xf32>
    %cst_479 = arith.constant 0.211943015 : f32
    %1618 = vector.broadcast %cst_479 : f32 to vector<2x4xf32>
    %1619 = arith.addf %1617, %1618 : vector<2x4xf32>
    %cst_480 = arith.constant 12.566371 : f32
    %1620 = vector.broadcast %cst_480 : f32 to vector<2x4xf32>
    %1621 = arith.addf %1574, %1620 : vector<2x4xf32>
    %cst_481 = arith.constant 3.09838676 : f32
    %1622 = vector.broadcast %cst_481 : f32 to vector<2x4xf32>
    %1623 = arith.mulf %1621, %1622 : vector<2x4xf32>
    %1624 = arith.mulf %1623, %1623 : vector<2x4xf32>
    %cst_482 = arith.constant -5.000000e-01 : f32
    %1625 = vector.broadcast %cst_482 : f32 to vector<2x4xf32>
    %1626 = arith.mulf %1625, %1624 : vector<2x4xf32>
    %cst_483 = arith.constant 0.211943015 : f32
    %1627 = vector.broadcast %cst_483 : f32 to vector<2x4xf32>
    %1628 = arith.addf %1626, %1627 : vector<2x4xf32>
    %cst_484 = arith.constant 18.849556 : f32
    %1629 = vector.broadcast %cst_484 : f32 to vector<2x4xf32>
    %1630 = arith.addf %1574, %1629 : vector<2x4xf32>
    %cst_485 = arith.constant 3.09838676 : f32
    %1631 = vector.broadcast %cst_485 : f32 to vector<2x4xf32>
    %1632 = arith.mulf %1630, %1631 : vector<2x4xf32>
    %1633 = arith.mulf %1632, %1632 : vector<2x4xf32>
    %cst_486 = arith.constant -5.000000e-01 : f32
    %1634 = vector.broadcast %cst_486 : f32 to vector<2x4xf32>
    %1635 = arith.mulf %1634, %1633 : vector<2x4xf32>
    %cst_487 = arith.constant 0.211943015 : f32
    %1636 = vector.broadcast %cst_487 : f32 to vector<2x4xf32>
    %1637 = arith.addf %1635, %1636 : vector<2x4xf32>
    %1638 = arith.maximumf %1583, %1592 : vector<2x4xf32>
    %1639 = arith.maximumf %1638, %1601 : vector<2x4xf32>
    %1640 = arith.maximumf %1639, %1610 : vector<2x4xf32>
    %1641 = arith.maximumf %1640, %1619 : vector<2x4xf32>
    %1642 = arith.maximumf %1641, %1628 : vector<2x4xf32>
    %1643 = arith.maximumf %1642, %1637 : vector<2x4xf32>
    %1644 = arith.subf %1583, %1643 : vector<2x4xf32>
    %1645 = math.exp %1644 : vector<2x4xf32>
    %1646 = arith.subf %1592, %1643 : vector<2x4xf32>
    %1647 = math.exp %1646 : vector<2x4xf32>
    %1648 = arith.addf %1645, %1647 : vector<2x4xf32>
    %1649 = arith.subf %1601, %1643 : vector<2x4xf32>
    %1650 = math.exp %1649 : vector<2x4xf32>
    %1651 = arith.addf %1648, %1650 : vector<2x4xf32>
    %1652 = arith.subf %1610, %1643 : vector<2x4xf32>
    %1653 = math.exp %1652 : vector<2x4xf32>
    %1654 = arith.addf %1651, %1653 : vector<2x4xf32>
    %1655 = arith.subf %1619, %1643 : vector<2x4xf32>
    %1656 = math.exp %1655 : vector<2x4xf32>
    %1657 = arith.addf %1654, %1656 : vector<2x4xf32>
    %1658 = arith.subf %1628, %1643 : vector<2x4xf32>
    %1659 = math.exp %1658 : vector<2x4xf32>
    %1660 = arith.addf %1657, %1659 : vector<2x4xf32>
    %1661 = arith.subf %1637, %1643 : vector<2x4xf32>
    %1662 = math.exp %1661 : vector<2x4xf32>
    %1663 = arith.addf %1660, %1662 : vector<2x4xf32>
    %1664 = math.log %1663 : vector<2x4xf32>
    %1665 = arith.addf %1643, %1664 : vector<2x4xf32>
    %cst_488 = arith.constant dense<0.000000e+00> : vector<2xf32>
    %1666 = vector.multi_reduction <add>, %1665, %cst_488 [1] : vector<2x4xf32> to vector<2xf32>
    %1667 = vector.shape_cast %1666 : vector<2xf32> to vector<2x1xf32>
    %1668 = vector.extract_strided_slice %10 {offsets = [12, 0], sizes = [2, 4], strides = [1, 1]} : vector<16x4xf32> to vector<2x4xf32>
    %1669 = vector.extract_strided_slice %9 {offsets = [6, 0], sizes = [1, 32], strides = [1, 1]} : vector<8x32xf32> to vector<1x32xf32>
    %cst_489 = arith.constant dense<0.000000e+00> : vector<2x32xf32>
    %1670 = tpu.matmul %1456, %0, %cst_489 {dimension_numbers = #tpu.dot_dimension_numbers<[1], [0], [0], [1], [0, 0, 1, 1], [], []>} : vector<2x4xf32>, vector<4x32xf32>, vector<2x32xf32> -> vector<2x32xf32>
    %1671 = vector.broadcast %1 : vector<1x32xf32> to vector<2x32xf32>
    %1672 = arith.addf %1670, %1671 : vector<2x32xf32>
    %cst_490 = arith.constant 5.000000e-01 : f32
    %1673 = vector.broadcast %cst_490 : f32 to vector<2x32xf32>
    %1674 = arith.mulf %1673, %1672 : vector<2x32xf32>
    %cst_491 = arith.constant 4.471500e-02 : f32
    %1675 = vector.broadcast %cst_491 : f32 to vector<2x32xf32>
    %1676 = arith.mulf %1675, %1672 : vector<2x32xf32>
    %1677 = arith.mulf %1676, %1672 : vector<2x32xf32>
    %1678 = arith.mulf %1677, %1672 : vector<2x32xf32>
    %1679 = arith.addf %1672, %1678 : vector<2x32xf32>
    %cst_492 = arith.constant 0.797884583 : f32
    %1680 = vector.broadcast %cst_492 : f32 to vector<2x32xf32>
    %1681 = arith.mulf %1680, %1679 : vector<2x32xf32>
    %1682 = math.tanh %1681 : vector<2x32xf32>
    %cst_493 = arith.constant 1.000000e+00 : f32
    %1683 = vector.broadcast %cst_493 : f32 to vector<2x32xf32>
    %1684 = arith.addf %1683, %1682 : vector<2x32xf32>
    %1685 = arith.mulf %1674, %1684 : vector<2x32xf32>
    %cst_494 = arith.constant dense<0.000000e+00> : vector<2x32xf32>
    %1686 = tpu.matmul %1685, %2, %cst_494 {dimension_numbers = #tpu.dot_dimension_numbers<[1], [0], [0], [1], [0, 0, 1, 1], [], []>} : vector<2x32xf32>, vector<32x32xf32>, vector<2x32xf32> -> vector<2x32xf32>
    %1687 = vector.broadcast %3 : vector<1x32xf32> to vector<2x32xf32>
    %1688 = arith.addf %1686, %1687 : vector<2x32xf32>
    %cst_495 = arith.constant dense<0.000000e+00> : vector<2x32xf32>
    %1689 = tpu.matmul %1688, %4, %cst_495 {dimension_numbers = #tpu.dot_dimension_numbers<[1], [0], [0], [1], [0, 0, 1, 1], [], []>} : vector<2x32xf32>, vector<32x32xf32>, vector<2x32xf32> -> vector<2x32xf32>
    %1690 = vector.broadcast %1669 : vector<1x32xf32> to vector<2x32xf32>
    %1691 = arith.addf %1689, %1690 : vector<2x32xf32>
    %cst_496 = arith.constant 5.000000e-01 : f32
    %1692 = vector.broadcast %cst_496 : f32 to vector<2x32xf32>
    %1693 = arith.mulf %1692, %1691 : vector<2x32xf32>
    %cst_497 = arith.constant 4.471500e-02 : f32
    %1694 = vector.broadcast %cst_497 : f32 to vector<2x32xf32>
    %1695 = arith.mulf %1694, %1691 : vector<2x32xf32>
    %1696 = arith.mulf %1695, %1691 : vector<2x32xf32>
    %1697 = arith.mulf %1696, %1691 : vector<2x32xf32>
    %1698 = arith.addf %1691, %1697 : vector<2x32xf32>
    %cst_498 = arith.constant 0.797884583 : f32
    %1699 = vector.broadcast %cst_498 : f32 to vector<2x32xf32>
    %1700 = arith.mulf %1699, %1698 : vector<2x32xf32>
    %1701 = math.tanh %1700 : vector<2x32xf32>
    %cst_499 = arith.constant 1.000000e+00 : f32
    %1702 = vector.broadcast %cst_499 : f32 to vector<2x32xf32>
    %1703 = arith.addf %1702, %1701 : vector<2x32xf32>
    %1704 = arith.mulf %1693, %1703 : vector<2x32xf32>
    %cst_500 = arith.constant dense<0.000000e+00> : vector<2x32xf32>
    %1705 = tpu.matmul %1704, %5, %cst_500 {dimension_numbers = #tpu.dot_dimension_numbers<[1], [0], [0], [1], [0, 0, 1, 1], [], []>} : vector<2x32xf32>, vector<32x32xf32>, vector<2x32xf32> -> vector<2x32xf32>
    %1706 = vector.broadcast %6 : vector<1x32xf32> to vector<2x32xf32>
    %1707 = arith.addf %1705, %1706 : vector<2x32xf32>
    %cst_501 = arith.constant 5.000000e-01 : f32
    %1708 = vector.broadcast %cst_501 : f32 to vector<2x32xf32>
    %1709 = arith.mulf %1708, %1707 : vector<2x32xf32>
    %cst_502 = arith.constant 4.471500e-02 : f32
    %1710 = vector.broadcast %cst_502 : f32 to vector<2x32xf32>
    %1711 = arith.mulf %1710, %1707 : vector<2x32xf32>
    %1712 = arith.mulf %1711, %1707 : vector<2x32xf32>
    %1713 = arith.mulf %1712, %1707 : vector<2x32xf32>
    %1714 = arith.addf %1707, %1713 : vector<2x32xf32>
    %cst_503 = arith.constant 0.797884583 : f32
    %1715 = vector.broadcast %cst_503 : f32 to vector<2x32xf32>
    %1716 = arith.mulf %1715, %1714 : vector<2x32xf32>
    %1717 = math.tanh %1716 : vector<2x32xf32>
    %cst_504 = arith.constant 1.000000e+00 : f32
    %1718 = vector.broadcast %cst_504 : f32 to vector<2x32xf32>
    %1719 = arith.addf %1718, %1717 : vector<2x32xf32>
    %1720 = arith.mulf %1709, %1719 : vector<2x32xf32>
    %cst_505 = arith.constant dense<0.000000e+00> : vector<2x32xf32>
    %1721 = tpu.matmul %1720, %7, %cst_505 {dimension_numbers = #tpu.dot_dimension_numbers<[1], [0], [0], [1], [0, 0, 1, 1], [], []>} : vector<2x32xf32>, vector<32x32xf32>, vector<2x32xf32> -> vector<2x32xf32>
    %1722 = vector.broadcast %8 : vector<1x32xf32> to vector<2x32xf32>
    %1723 = arith.addf %1721, %1722 : vector<2x32xf32>
    %1724 = vector.extract_strided_slice %1723 {offsets = [0, 0], sizes = [2, 4], strides = [1, 1]} : vector<2x32xf32> to vector<2x4xf32>
    %1725 = vector.extract_strided_slice %1723 {offsets = [0, 4], sizes = [2, 4], strides = [1, 1]} : vector<2x32xf32> to vector<2x4xf32>
    %1726 = math.tanh %1725 : vector<2x4xf32>
    %cst_506 = arith.constant 4.000000e+00 : f32
    %1727 = vector.broadcast %cst_506 : f32 to vector<2x4xf32>
    %1728 = arith.mulf %1726, %1727 : vector<2x4xf32>
    %cst_507 = arith.constant 0.000000e+00 : f32
    %1729 = vector.broadcast %cst_507 : f32 to vector<2x4xf32>
    %1730 = arith.addf %1728, %1729 : vector<2x4xf32>
    %cst_508 = arith.constant 5.000000e-01 : f32
    %1731 = vector.broadcast %cst_508 : f32 to vector<2x4xf32>
    %1732 = arith.mulf %1731, %1730 : vector<2x4xf32>
    %1733 = math.exp %1732 : vector<2x4xf32>
    %cst_509 = arith.constant 1.250000e-01 : f32
    %1734 = vector.broadcast %cst_509 : f32 to vector<2x4xf32>
    %1735 = arith.mulf %1734, %1724 : vector<2x4xf32>
    %1736 = arith.addf %1456, %1735 : vector<2x4xf32>
    %cst_510 = arith.constant 0.353553385 : f32
    %1737 = vector.broadcast %cst_510 : f32 to vector<2x4xf32>
    %1738 = arith.mulf %1737, %1733 : vector<2x4xf32>
    %1739 = arith.mulf %1738, %1668 : vector<2x4xf32>
    %1740 = arith.addf %1736, %1739 : vector<2x4xf32>
    %cst_511 = arith.constant 3.14159274 : f32
    %1741 = vector.broadcast %cst_511 : f32 to vector<2x4xf32>
    %1742 = arith.addf %1740, %1741 : vector<2x4xf32>
    %cst_512 = arith.constant 0.159154937 : f32
    %1743 = vector.broadcast %cst_512 : f32 to vector<2x4xf32>
    %1744 = arith.mulf %1742, %1743 : vector<2x4xf32>
    %1745 = math.floor %1744 : vector<2x4xf32>
    %1746 = arith.subf %1744, %1745 : vector<2x4xf32>
    %cst_513 = arith.constant 6.28318548 : f32
    %1747 = vector.broadcast %cst_513 : f32 to vector<2x4xf32>
    %1748 = arith.mulf %1746, %1747 : vector<2x4xf32>
    %cst_514 = arith.constant 3.14159274 : f32
    %1749 = vector.broadcast %cst_514 : f32 to vector<2x4xf32>
    %1750 = arith.subf %1748, %1749 : vector<2x4xf32>
    %1751 = arith.subf %1750, %1456 : vector<2x4xf32>
    %cst_515 = arith.constant 3.14159274 : f32
    %1752 = vector.broadcast %cst_515 : f32 to vector<2x4xf32>
    %1753 = arith.addf %1751, %1752 : vector<2x4xf32>
    %cst_516 = arith.constant 0.159154937 : f32
    %1754 = vector.broadcast %cst_516 : f32 to vector<2x4xf32>
    %1755 = arith.mulf %1753, %1754 : vector<2x4xf32>
    %1756 = math.floor %1755 : vector<2x4xf32>
    %1757 = arith.subf %1755, %1756 : vector<2x4xf32>
    %cst_517 = arith.constant 6.28318548 : f32
    %1758 = vector.broadcast %cst_517 : f32 to vector<2x4xf32>
    %1759 = arith.mulf %1757, %1758 : vector<2x4xf32>
    %cst_518 = arith.constant 3.14159274 : f32
    %1760 = vector.broadcast %cst_518 : f32 to vector<2x4xf32>
    %1761 = arith.subf %1759, %1760 : vector<2x4xf32>
    %cst_519 = arith.constant 1.250000e-01 : f32
    %1762 = vector.broadcast %cst_519 : f32 to vector<2x4xf32>
    %1763 = arith.mulf %1762, %1724 : vector<2x4xf32>
    %cst_520 = arith.constant 0.353553385 : f32
    %1764 = vector.broadcast %cst_520 : f32 to vector<2x4xf32>
    %1765 = arith.mulf %1764, %1733 : vector<2x4xf32>
    %cst_521 = arith.constant 1.000000e+00 : f32
    %1766 = vector.broadcast %cst_521 : f32 to vector<2x4xf32>
    %1767 = arith.divf %1766, %1765 : vector<2x4xf32>
    %cst_522 = arith.constant 2.50662827 : f32
    %1768 = vector.broadcast %cst_522 : f32 to vector<2x4xf32>
    %1769 = arith.mulf %1765, %1768 : vector<2x4xf32>
    %1770 = math.log %1769 : vector<2x4xf32>
    %cst_523 = arith.constant 0.000000e+00 : f32
    %1771 = vector.broadcast %cst_523 : f32 to vector<2x4xf32>
    %1772 = arith.subf %1771, %1770 : vector<2x4xf32>
    %1773 = arith.subf %1761, %1763 : vector<2x4xf32>
    %cst_524 = arith.constant -18.849556 : f32
    %1774 = vector.broadcast %cst_524 : f32 to vector<2x4xf32>
    %1775 = arith.addf %1773, %1774 : vector<2x4xf32>
    %1776 = arith.mulf %1775, %1767 : vector<2x4xf32>
    %1777 = arith.mulf %1776, %1776 : vector<2x4xf32>
    %cst_525 = arith.constant -5.000000e-01 : f32
    %1778 = vector.broadcast %cst_525 : f32 to vector<2x4xf32>
    %1779 = arith.mulf %1778, %1777 : vector<2x4xf32>
    %1780 = arith.addf %1779, %1772 : vector<2x4xf32>
    %cst_526 = arith.constant -12.566371 : f32
    %1781 = vector.broadcast %cst_526 : f32 to vector<2x4xf32>
    %1782 = arith.addf %1773, %1781 : vector<2x4xf32>
    %1783 = arith.mulf %1782, %1767 : vector<2x4xf32>
    %1784 = arith.mulf %1783, %1783 : vector<2x4xf32>
    %cst_527 = arith.constant -5.000000e-01 : f32
    %1785 = vector.broadcast %cst_527 : f32 to vector<2x4xf32>
    %1786 = arith.mulf %1785, %1784 : vector<2x4xf32>
    %1787 = arith.addf %1786, %1772 : vector<2x4xf32>
    %cst_528 = arith.constant -6.28318548 : f32
    %1788 = vector.broadcast %cst_528 : f32 to vector<2x4xf32>
    %1789 = arith.addf %1773, %1788 : vector<2x4xf32>
    %1790 = arith.mulf %1789, %1767 : vector<2x4xf32>
    %1791 = arith.mulf %1790, %1790 : vector<2x4xf32>
    %cst_529 = arith.constant -5.000000e-01 : f32
    %1792 = vector.broadcast %cst_529 : f32 to vector<2x4xf32>
    %1793 = arith.mulf %1792, %1791 : vector<2x4xf32>
    %1794 = arith.addf %1793, %1772 : vector<2x4xf32>
    %cst_530 = arith.constant 0.000000e+00 : f32
    %1795 = vector.broadcast %cst_530 : f32 to vector<2x4xf32>
    %1796 = arith.addf %1773, %1795 : vector<2x4xf32>
    %1797 = arith.mulf %1796, %1767 : vector<2x4xf32>
    %1798 = arith.mulf %1797, %1797 : vector<2x4xf32>
    %cst_531 = arith.constant -5.000000e-01 : f32
    %1799 = vector.broadcast %cst_531 : f32 to vector<2x4xf32>
    %1800 = arith.mulf %1799, %1798 : vector<2x4xf32>
    %1801 = arith.addf %1800, %1772 : vector<2x4xf32>
    %cst_532 = arith.constant 6.28318548 : f32
    %1802 = vector.broadcast %cst_532 : f32 to vector<2x4xf32>
    %1803 = arith.addf %1773, %1802 : vector<2x4xf32>
    %1804 = arith.mulf %1803, %1767 : vector<2x4xf32>
    %1805 = arith.mulf %1804, %1804 : vector<2x4xf32>
    %cst_533 = arith.constant -5.000000e-01 : f32
    %1806 = vector.broadcast %cst_533 : f32 to vector<2x4xf32>
    %1807 = arith.mulf %1806, %1805 : vector<2x4xf32>
    %1808 = arith.addf %1807, %1772 : vector<2x4xf32>
    %cst_534 = arith.constant 12.566371 : f32
    %1809 = vector.broadcast %cst_534 : f32 to vector<2x4xf32>
    %1810 = arith.addf %1773, %1809 : vector<2x4xf32>
    %1811 = arith.mulf %1810, %1767 : vector<2x4xf32>
    %1812 = arith.mulf %1811, %1811 : vector<2x4xf32>
    %cst_535 = arith.constant -5.000000e-01 : f32
    %1813 = vector.broadcast %cst_535 : f32 to vector<2x4xf32>
    %1814 = arith.mulf %1813, %1812 : vector<2x4xf32>
    %1815 = arith.addf %1814, %1772 : vector<2x4xf32>
    %cst_536 = arith.constant 18.849556 : f32
    %1816 = vector.broadcast %cst_536 : f32 to vector<2x4xf32>
    %1817 = arith.addf %1773, %1816 : vector<2x4xf32>
    %1818 = arith.mulf %1817, %1767 : vector<2x4xf32>
    %1819 = arith.mulf %1818, %1818 : vector<2x4xf32>
    %cst_537 = arith.constant -5.000000e-01 : f32
    %1820 = vector.broadcast %cst_537 : f32 to vector<2x4xf32>
    %1821 = arith.mulf %1820, %1819 : vector<2x4xf32>
    %1822 = arith.addf %1821, %1772 : vector<2x4xf32>
    %1823 = arith.maximumf %1780, %1787 : vector<2x4xf32>
    %1824 = arith.maximumf %1823, %1794 : vector<2x4xf32>
    %1825 = arith.maximumf %1824, %1801 : vector<2x4xf32>
    %1826 = arith.maximumf %1825, %1808 : vector<2x4xf32>
    %1827 = arith.maximumf %1826, %1815 : vector<2x4xf32>
    %1828 = arith.maximumf %1827, %1822 : vector<2x4xf32>
    %1829 = arith.subf %1780, %1828 : vector<2x4xf32>
    %1830 = math.exp %1829 : vector<2x4xf32>
    %1831 = arith.subf %1787, %1828 : vector<2x4xf32>
    %1832 = math.exp %1831 : vector<2x4xf32>
    %1833 = arith.addf %1830, %1832 : vector<2x4xf32>
    %1834 = arith.subf %1794, %1828 : vector<2x4xf32>
    %1835 = math.exp %1834 : vector<2x4xf32>
    %1836 = arith.addf %1833, %1835 : vector<2x4xf32>
    %1837 = arith.subf %1801, %1828 : vector<2x4xf32>
    %1838 = math.exp %1837 : vector<2x4xf32>
    %1839 = arith.addf %1836, %1838 : vector<2x4xf32>
    %1840 = arith.subf %1808, %1828 : vector<2x4xf32>
    %1841 = math.exp %1840 : vector<2x4xf32>
    %1842 = arith.addf %1839, %1841 : vector<2x4xf32>
    %1843 = arith.subf %1815, %1828 : vector<2x4xf32>
    %1844 = math.exp %1843 : vector<2x4xf32>
    %1845 = arith.addf %1842, %1844 : vector<2x4xf32>
    %1846 = arith.subf %1822, %1828 : vector<2x4xf32>
    %1847 = math.exp %1846 : vector<2x4xf32>
    %1848 = arith.addf %1845, %1847 : vector<2x4xf32>
    %1849 = math.log %1848 : vector<2x4xf32>
    %1850 = arith.addf %1828, %1849 : vector<2x4xf32>
    %cst_538 = arith.constant dense<0.000000e+00> : vector<2xf32>
    %1851 = vector.multi_reduction <add>, %1850, %cst_538 [1] : vector<2x4xf32> to vector<2xf32>
    %1852 = vector.shape_cast %1851 : vector<2xf32> to vector<2x1xf32>
    %1853 = arith.subf %1456, %1750 : vector<2x4xf32>
    %cst_539 = arith.constant 3.14159274 : f32
    %1854 = vector.broadcast %cst_539 : f32 to vector<2x4xf32>
    %1855 = arith.addf %1853, %1854 : vector<2x4xf32>
    %cst_540 = arith.constant 0.159154937 : f32
    %1856 = vector.broadcast %cst_540 : f32 to vector<2x4xf32>
    %1857 = arith.mulf %1855, %1856 : vector<2x4xf32>
    %1858 = math.floor %1857 : vector<2x4xf32>
    %1859 = arith.subf %1857, %1858 : vector<2x4xf32>
    %cst_541 = arith.constant 6.28318548 : f32
    %1860 = vector.broadcast %cst_541 : f32 to vector<2x4xf32>
    %1861 = arith.mulf %1859, %1860 : vector<2x4xf32>
    %cst_542 = arith.constant 3.14159274 : f32
    %1862 = vector.broadcast %cst_542 : f32 to vector<2x4xf32>
    %1863 = arith.subf %1861, %1862 : vector<2x4xf32>
    %cst_543 = arith.constant 0.000000e+00 : f32
    %1864 = vector.broadcast %cst_543 : f32 to vector<2x4xf32>
    %1865 = arith.subf %1864, %1750 : vector<2x4xf32>
    %cst_544 = arith.constant 0.142857149 : f32
    %1866 = vector.broadcast %cst_544 : f32 to vector<2x4xf32>
    %1867 = arith.mulf %1865, %1866 : vector<2x4xf32>
    %1868 = arith.subf %1863, %1867 : vector<2x4xf32>
    %cst_545 = arith.constant -18.849556 : f32
    %1869 = vector.broadcast %cst_545 : f32 to vector<2x4xf32>
    %1870 = arith.addf %1868, %1869 : vector<2x4xf32>
    %cst_546 = arith.constant 3.05505037 : f32
    %1871 = vector.broadcast %cst_546 : f32 to vector<2x4xf32>
    %1872 = arith.mulf %1870, %1871 : vector<2x4xf32>
    %1873 = arith.mulf %1872, %1872 : vector<2x4xf32>
    %cst_547 = arith.constant -5.000000e-01 : f32
    %1874 = vector.broadcast %cst_547 : f32 to vector<2x4xf32>
    %1875 = arith.mulf %1874, %1873 : vector<2x4xf32>
    %cst_548 = arith.constant 0.197857574 : f32
    %1876 = vector.broadcast %cst_548 : f32 to vector<2x4xf32>
    %1877 = arith.addf %1875, %1876 : vector<2x4xf32>
    %cst_549 = arith.constant -12.566371 : f32
    %1878 = vector.broadcast %cst_549 : f32 to vector<2x4xf32>
    %1879 = arith.addf %1868, %1878 : vector<2x4xf32>
    %cst_550 = arith.constant 3.05505037 : f32
    %1880 = vector.broadcast %cst_550 : f32 to vector<2x4xf32>
    %1881 = arith.mulf %1879, %1880 : vector<2x4xf32>
    %1882 = arith.mulf %1881, %1881 : vector<2x4xf32>
    %cst_551 = arith.constant -5.000000e-01 : f32
    %1883 = vector.broadcast %cst_551 : f32 to vector<2x4xf32>
    %1884 = arith.mulf %1883, %1882 : vector<2x4xf32>
    %cst_552 = arith.constant 0.197857574 : f32
    %1885 = vector.broadcast %cst_552 : f32 to vector<2x4xf32>
    %1886 = arith.addf %1884, %1885 : vector<2x4xf32>
    %cst_553 = arith.constant -6.28318548 : f32
    %1887 = vector.broadcast %cst_553 : f32 to vector<2x4xf32>
    %1888 = arith.addf %1868, %1887 : vector<2x4xf32>
    %cst_554 = arith.constant 3.05505037 : f32
    %1889 = vector.broadcast %cst_554 : f32 to vector<2x4xf32>
    %1890 = arith.mulf %1888, %1889 : vector<2x4xf32>
    %1891 = arith.mulf %1890, %1890 : vector<2x4xf32>
    %cst_555 = arith.constant -5.000000e-01 : f32
    %1892 = vector.broadcast %cst_555 : f32 to vector<2x4xf32>
    %1893 = arith.mulf %1892, %1891 : vector<2x4xf32>
    %cst_556 = arith.constant 0.197857574 : f32
    %1894 = vector.broadcast %cst_556 : f32 to vector<2x4xf32>
    %1895 = arith.addf %1893, %1894 : vector<2x4xf32>
    %cst_557 = arith.constant 0.000000e+00 : f32
    %1896 = vector.broadcast %cst_557 : f32 to vector<2x4xf32>
    %1897 = arith.addf %1868, %1896 : vector<2x4xf32>
    %cst_558 = arith.constant 3.05505037 : f32
    %1898 = vector.broadcast %cst_558 : f32 to vector<2x4xf32>
    %1899 = arith.mulf %1897, %1898 : vector<2x4xf32>
    %1900 = arith.mulf %1899, %1899 : vector<2x4xf32>
    %cst_559 = arith.constant -5.000000e-01 : f32
    %1901 = vector.broadcast %cst_559 : f32 to vector<2x4xf32>
    %1902 = arith.mulf %1901, %1900 : vector<2x4xf32>
    %cst_560 = arith.constant 0.197857574 : f32
    %1903 = vector.broadcast %cst_560 : f32 to vector<2x4xf32>
    %1904 = arith.addf %1902, %1903 : vector<2x4xf32>
    %cst_561 = arith.constant 6.28318548 : f32
    %1905 = vector.broadcast %cst_561 : f32 to vector<2x4xf32>
    %1906 = arith.addf %1868, %1905 : vector<2x4xf32>
    %cst_562 = arith.constant 3.05505037 : f32
    %1907 = vector.broadcast %cst_562 : f32 to vector<2x4xf32>
    %1908 = arith.mulf %1906, %1907 : vector<2x4xf32>
    %1909 = arith.mulf %1908, %1908 : vector<2x4xf32>
    %cst_563 = arith.constant -5.000000e-01 : f32
    %1910 = vector.broadcast %cst_563 : f32 to vector<2x4xf32>
    %1911 = arith.mulf %1910, %1909 : vector<2x4xf32>
    %cst_564 = arith.constant 0.197857574 : f32
    %1912 = vector.broadcast %cst_564 : f32 to vector<2x4xf32>
    %1913 = arith.addf %1911, %1912 : vector<2x4xf32>
    %cst_565 = arith.constant 12.566371 : f32
    %1914 = vector.broadcast %cst_565 : f32 to vector<2x4xf32>
    %1915 = arith.addf %1868, %1914 : vector<2x4xf32>
    %cst_566 = arith.constant 3.05505037 : f32
    %1916 = vector.broadcast %cst_566 : f32 to vector<2x4xf32>
    %1917 = arith.mulf %1915, %1916 : vector<2x4xf32>
    %1918 = arith.mulf %1917, %1917 : vector<2x4xf32>
    %cst_567 = arith.constant -5.000000e-01 : f32
    %1919 = vector.broadcast %cst_567 : f32 to vector<2x4xf32>
    %1920 = arith.mulf %1919, %1918 : vector<2x4xf32>
    %cst_568 = arith.constant 0.197857574 : f32
    %1921 = vector.broadcast %cst_568 : f32 to vector<2x4xf32>
    %1922 = arith.addf %1920, %1921 : vector<2x4xf32>
    %cst_569 = arith.constant 18.849556 : f32
    %1923 = vector.broadcast %cst_569 : f32 to vector<2x4xf32>
    %1924 = arith.addf %1868, %1923 : vector<2x4xf32>
    %cst_570 = arith.constant 3.05505037 : f32
    %1925 = vector.broadcast %cst_570 : f32 to vector<2x4xf32>
    %1926 = arith.mulf %1924, %1925 : vector<2x4xf32>
    %1927 = arith.mulf %1926, %1926 : vector<2x4xf32>
    %cst_571 = arith.constant -5.000000e-01 : f32
    %1928 = vector.broadcast %cst_571 : f32 to vector<2x4xf32>
    %1929 = arith.mulf %1928, %1927 : vector<2x4xf32>
    %cst_572 = arith.constant 0.197857574 : f32
    %1930 = vector.broadcast %cst_572 : f32 to vector<2x4xf32>
    %1931 = arith.addf %1929, %1930 : vector<2x4xf32>
    %1932 = arith.maximumf %1877, %1886 : vector<2x4xf32>
    %1933 = arith.maximumf %1932, %1895 : vector<2x4xf32>
    %1934 = arith.maximumf %1933, %1904 : vector<2x4xf32>
    %1935 = arith.maximumf %1934, %1913 : vector<2x4xf32>
    %1936 = arith.maximumf %1935, %1922 : vector<2x4xf32>
    %1937 = arith.maximumf %1936, %1931 : vector<2x4xf32>
    %1938 = arith.subf %1877, %1937 : vector<2x4xf32>
    %1939 = math.exp %1938 : vector<2x4xf32>
    %1940 = arith.subf %1886, %1937 : vector<2x4xf32>
    %1941 = math.exp %1940 : vector<2x4xf32>
    %1942 = arith.addf %1939, %1941 : vector<2x4xf32>
    %1943 = arith.subf %1895, %1937 : vector<2x4xf32>
    %1944 = math.exp %1943 : vector<2x4xf32>
    %1945 = arith.addf %1942, %1944 : vector<2x4xf32>
    %1946 = arith.subf %1904, %1937 : vector<2x4xf32>
    %1947 = math.exp %1946 : vector<2x4xf32>
    %1948 = arith.addf %1945, %1947 : vector<2x4xf32>
    %1949 = arith.subf %1913, %1937 : vector<2x4xf32>
    %1950 = math.exp %1949 : vector<2x4xf32>
    %1951 = arith.addf %1948, %1950 : vector<2x4xf32>
    %1952 = arith.subf %1922, %1937 : vector<2x4xf32>
    %1953 = math.exp %1952 : vector<2x4xf32>
    %1954 = arith.addf %1951, %1953 : vector<2x4xf32>
    %1955 = arith.subf %1931, %1937 : vector<2x4xf32>
    %1956 = math.exp %1955 : vector<2x4xf32>
    %1957 = arith.addf %1954, %1956 : vector<2x4xf32>
    %1958 = math.log %1957 : vector<2x4xf32>
    %1959 = arith.addf %1937, %1958 : vector<2x4xf32>
    %cst_573 = arith.constant dense<0.000000e+00> : vector<2xf32>
    %1960 = vector.multi_reduction <add>, %1959, %cst_573 [1] : vector<2x4xf32> to vector<2xf32>
    %1961 = vector.shape_cast %1960 : vector<2xf32> to vector<2x1xf32>
    %1962 = vector.extract_strided_slice %10 {offsets = [14, 0], sizes = [2, 4], strides = [1, 1]} : vector<16x4xf32> to vector<2x4xf32>
    %1963 = vector.extract_strided_slice %9 {offsets = [7, 0], sizes = [1, 32], strides = [1, 1]} : vector<8x32xf32> to vector<1x32xf32>
    %cst_574 = arith.constant dense<0.000000e+00> : vector<2x32xf32>
    %1964 = tpu.matmul %1750, %0, %cst_574 {dimension_numbers = #tpu.dot_dimension_numbers<[1], [0], [0], [1], [0, 0, 1, 1], [], []>} : vector<2x4xf32>, vector<4x32xf32>, vector<2x32xf32> -> vector<2x32xf32>
    %1965 = vector.broadcast %1 : vector<1x32xf32> to vector<2x32xf32>
    %1966 = arith.addf %1964, %1965 : vector<2x32xf32>
    %cst_575 = arith.constant 5.000000e-01 : f32
    %1967 = vector.broadcast %cst_575 : f32 to vector<2x32xf32>
    %1968 = arith.mulf %1967, %1966 : vector<2x32xf32>
    %cst_576 = arith.constant 4.471500e-02 : f32
    %1969 = vector.broadcast %cst_576 : f32 to vector<2x32xf32>
    %1970 = arith.mulf %1969, %1966 : vector<2x32xf32>
    %1971 = arith.mulf %1970, %1966 : vector<2x32xf32>
    %1972 = arith.mulf %1971, %1966 : vector<2x32xf32>
    %1973 = arith.addf %1966, %1972 : vector<2x32xf32>
    %cst_577 = arith.constant 0.797884583 : f32
    %1974 = vector.broadcast %cst_577 : f32 to vector<2x32xf32>
    %1975 = arith.mulf %1974, %1973 : vector<2x32xf32>
    %1976 = math.tanh %1975 : vector<2x32xf32>
    %cst_578 = arith.constant 1.000000e+00 : f32
    %1977 = vector.broadcast %cst_578 : f32 to vector<2x32xf32>
    %1978 = arith.addf %1977, %1976 : vector<2x32xf32>
    %1979 = arith.mulf %1968, %1978 : vector<2x32xf32>
    %cst_579 = arith.constant dense<0.000000e+00> : vector<2x32xf32>
    %1980 = tpu.matmul %1979, %2, %cst_579 {dimension_numbers = #tpu.dot_dimension_numbers<[1], [0], [0], [1], [0, 0, 1, 1], [], []>} : vector<2x32xf32>, vector<32x32xf32>, vector<2x32xf32> -> vector<2x32xf32>
    %1981 = vector.broadcast %3 : vector<1x32xf32> to vector<2x32xf32>
    %1982 = arith.addf %1980, %1981 : vector<2x32xf32>
    %cst_580 = arith.constant dense<0.000000e+00> : vector<2x32xf32>
    %1983 = tpu.matmul %1982, %4, %cst_580 {dimension_numbers = #tpu.dot_dimension_numbers<[1], [0], [0], [1], [0, 0, 1, 1], [], []>} : vector<2x32xf32>, vector<32x32xf32>, vector<2x32xf32> -> vector<2x32xf32>
    %1984 = vector.broadcast %1963 : vector<1x32xf32> to vector<2x32xf32>
    %1985 = arith.addf %1983, %1984 : vector<2x32xf32>
    %cst_581 = arith.constant 5.000000e-01 : f32
    %1986 = vector.broadcast %cst_581 : f32 to vector<2x32xf32>
    %1987 = arith.mulf %1986, %1985 : vector<2x32xf32>
    %cst_582 = arith.constant 4.471500e-02 : f32
    %1988 = vector.broadcast %cst_582 : f32 to vector<2x32xf32>
    %1989 = arith.mulf %1988, %1985 : vector<2x32xf32>
    %1990 = arith.mulf %1989, %1985 : vector<2x32xf32>
    %1991 = arith.mulf %1990, %1985 : vector<2x32xf32>
    %1992 = arith.addf %1985, %1991 : vector<2x32xf32>
    %cst_583 = arith.constant 0.797884583 : f32
    %1993 = vector.broadcast %cst_583 : f32 to vector<2x32xf32>
    %1994 = arith.mulf %1993, %1992 : vector<2x32xf32>
    %1995 = math.tanh %1994 : vector<2x32xf32>
    %cst_584 = arith.constant 1.000000e+00 : f32
    %1996 = vector.broadcast %cst_584 : f32 to vector<2x32xf32>
    %1997 = arith.addf %1996, %1995 : vector<2x32xf32>
    %1998 = arith.mulf %1987, %1997 : vector<2x32xf32>
    %cst_585 = arith.constant dense<0.000000e+00> : vector<2x32xf32>
    %1999 = tpu.matmul %1998, %5, %cst_585 {dimension_numbers = #tpu.dot_dimension_numbers<[1], [0], [0], [1], [0, 0, 1, 1], [], []>} : vector<2x32xf32>, vector<32x32xf32>, vector<2x32xf32> -> vector<2x32xf32>
    %2000 = vector.broadcast %6 : vector<1x32xf32> to vector<2x32xf32>
    %2001 = arith.addf %1999, %2000 : vector<2x32xf32>
    %cst_586 = arith.constant 5.000000e-01 : f32
    %2002 = vector.broadcast %cst_586 : f32 to vector<2x32xf32>
    %2003 = arith.mulf %2002, %2001 : vector<2x32xf32>
    %cst_587 = arith.constant 4.471500e-02 : f32
    %2004 = vector.broadcast %cst_587 : f32 to vector<2x32xf32>
    %2005 = arith.mulf %2004, %2001 : vector<2x32xf32>
    %2006 = arith.mulf %2005, %2001 : vector<2x32xf32>
    %2007 = arith.mulf %2006, %2001 : vector<2x32xf32>
    %2008 = arith.addf %2001, %2007 : vector<2x32xf32>
    %cst_588 = arith.constant 0.797884583 : f32
    %2009 = vector.broadcast %cst_588 : f32 to vector<2x32xf32>
    %2010 = arith.mulf %2009, %2008 : vector<2x32xf32>
    %2011 = math.tanh %2010 : vector<2x32xf32>
    %cst_589 = arith.constant 1.000000e+00 : f32
    %2012 = vector.broadcast %cst_589 : f32 to vector<2x32xf32>
    %2013 = arith.addf %2012, %2011 : vector<2x32xf32>
    %2014 = arith.mulf %2003, %2013 : vector<2x32xf32>
    %cst_590 = arith.constant dense<0.000000e+00> : vector<2x32xf32>
    %2015 = tpu.matmul %2014, %7, %cst_590 {dimension_numbers = #tpu.dot_dimension_numbers<[1], [0], [0], [1], [0, 0, 1, 1], [], []>} : vector<2x32xf32>, vector<32x32xf32>, vector<2x32xf32> -> vector<2x32xf32>
    %2016 = vector.broadcast %8 : vector<1x32xf32> to vector<2x32xf32>
    %2017 = arith.addf %2015, %2016 : vector<2x32xf32>
    %2018 = vector.extract_strided_slice %2017 {offsets = [0, 0], sizes = [2, 4], strides = [1, 1]} : vector<2x32xf32> to vector<2x4xf32>
    %2019 = vector.extract_strided_slice %2017 {offsets = [0, 4], sizes = [2, 4], strides = [1, 1]} : vector<2x32xf32> to vector<2x4xf32>
    %2020 = math.tanh %2019 : vector<2x4xf32>
    %cst_591 = arith.constant 4.000000e+00 : f32
    %2021 = vector.broadcast %cst_591 : f32 to vector<2x4xf32>
    %2022 = arith.mulf %2020, %2021 : vector<2x4xf32>
    %cst_592 = arith.constant 0.000000e+00 : f32
    %2023 = vector.broadcast %cst_592 : f32 to vector<2x4xf32>
    %2024 = arith.addf %2022, %2023 : vector<2x4xf32>
    %cst_593 = arith.constant 5.000000e-01 : f32
    %2025 = vector.broadcast %cst_593 : f32 to vector<2x4xf32>
    %2026 = arith.mulf %2025, %2024 : vector<2x4xf32>
    %2027 = math.exp %2026 : vector<2x4xf32>
    %cst_594 = arith.constant 1.250000e-01 : f32
    %2028 = vector.broadcast %cst_594 : f32 to vector<2x4xf32>
    %2029 = arith.mulf %2028, %2018 : vector<2x4xf32>
    %2030 = arith.addf %1750, %2029 : vector<2x4xf32>
    %cst_595 = arith.constant 0.353553385 : f32
    %2031 = vector.broadcast %cst_595 : f32 to vector<2x4xf32>
    %2032 = arith.mulf %2031, %2027 : vector<2x4xf32>
    %2033 = arith.mulf %2032, %1962 : vector<2x4xf32>
    %2034 = arith.addf %2030, %2033 : vector<2x4xf32>
    %cst_596 = arith.constant 3.14159274 : f32
    %2035 = vector.broadcast %cst_596 : f32 to vector<2x4xf32>
    %2036 = arith.addf %2034, %2035 : vector<2x4xf32>
    %cst_597 = arith.constant 0.159154937 : f32
    %2037 = vector.broadcast %cst_597 : f32 to vector<2x4xf32>
    %2038 = arith.mulf %2036, %2037 : vector<2x4xf32>
    %2039 = math.floor %2038 : vector<2x4xf32>
    %2040 = arith.subf %2038, %2039 : vector<2x4xf32>
    %cst_598 = arith.constant 6.28318548 : f32
    %2041 = vector.broadcast %cst_598 : f32 to vector<2x4xf32>
    %2042 = arith.mulf %2040, %2041 : vector<2x4xf32>
    %cst_599 = arith.constant 3.14159274 : f32
    %2043 = vector.broadcast %cst_599 : f32 to vector<2x4xf32>
    %2044 = arith.subf %2042, %2043 : vector<2x4xf32>
    %2045 = arith.subf %2044, %1750 : vector<2x4xf32>
    %cst_600 = arith.constant 3.14159274 : f32
    %2046 = vector.broadcast %cst_600 : f32 to vector<2x4xf32>
    %2047 = arith.addf %2045, %2046 : vector<2x4xf32>
    %cst_601 = arith.constant 0.159154937 : f32
    %2048 = vector.broadcast %cst_601 : f32 to vector<2x4xf32>
    %2049 = arith.mulf %2047, %2048 : vector<2x4xf32>
    %2050 = math.floor %2049 : vector<2x4xf32>
    %2051 = arith.subf %2049, %2050 : vector<2x4xf32>
    %cst_602 = arith.constant 6.28318548 : f32
    %2052 = vector.broadcast %cst_602 : f32 to vector<2x4xf32>
    %2053 = arith.mulf %2051, %2052 : vector<2x4xf32>
    %cst_603 = arith.constant 3.14159274 : f32
    %2054 = vector.broadcast %cst_603 : f32 to vector<2x4xf32>
    %2055 = arith.subf %2053, %2054 : vector<2x4xf32>
    %cst_604 = arith.constant 1.250000e-01 : f32
    %2056 = vector.broadcast %cst_604 : f32 to vector<2x4xf32>
    %2057 = arith.mulf %2056, %2018 : vector<2x4xf32>
    %cst_605 = arith.constant 0.353553385 : f32
    %2058 = vector.broadcast %cst_605 : f32 to vector<2x4xf32>
    %2059 = arith.mulf %2058, %2027 : vector<2x4xf32>
    %cst_606 = arith.constant 1.000000e+00 : f32
    %2060 = vector.broadcast %cst_606 : f32 to vector<2x4xf32>
    %2061 = arith.divf %2060, %2059 : vector<2x4xf32>
    %cst_607 = arith.constant 2.50662827 : f32
    %2062 = vector.broadcast %cst_607 : f32 to vector<2x4xf32>
    %2063 = arith.mulf %2059, %2062 : vector<2x4xf32>
    %2064 = math.log %2063 : vector<2x4xf32>
    %cst_608 = arith.constant 0.000000e+00 : f32
    %2065 = vector.broadcast %cst_608 : f32 to vector<2x4xf32>
    %2066 = arith.subf %2065, %2064 : vector<2x4xf32>
    %2067 = arith.subf %2055, %2057 : vector<2x4xf32>
    %cst_609 = arith.constant -18.849556 : f32
    %2068 = vector.broadcast %cst_609 : f32 to vector<2x4xf32>
    %2069 = arith.addf %2067, %2068 : vector<2x4xf32>
    %2070 = arith.mulf %2069, %2061 : vector<2x4xf32>
    %2071 = arith.mulf %2070, %2070 : vector<2x4xf32>
    %cst_610 = arith.constant -5.000000e-01 : f32
    %2072 = vector.broadcast %cst_610 : f32 to vector<2x4xf32>
    %2073 = arith.mulf %2072, %2071 : vector<2x4xf32>
    %2074 = arith.addf %2073, %2066 : vector<2x4xf32>
    %cst_611 = arith.constant -12.566371 : f32
    %2075 = vector.broadcast %cst_611 : f32 to vector<2x4xf32>
    %2076 = arith.addf %2067, %2075 : vector<2x4xf32>
    %2077 = arith.mulf %2076, %2061 : vector<2x4xf32>
    %2078 = arith.mulf %2077, %2077 : vector<2x4xf32>
    %cst_612 = arith.constant -5.000000e-01 : f32
    %2079 = vector.broadcast %cst_612 : f32 to vector<2x4xf32>
    %2080 = arith.mulf %2079, %2078 : vector<2x4xf32>
    %2081 = arith.addf %2080, %2066 : vector<2x4xf32>
    %cst_613 = arith.constant -6.28318548 : f32
    %2082 = vector.broadcast %cst_613 : f32 to vector<2x4xf32>
    %2083 = arith.addf %2067, %2082 : vector<2x4xf32>
    %2084 = arith.mulf %2083, %2061 : vector<2x4xf32>
    %2085 = arith.mulf %2084, %2084 : vector<2x4xf32>
    %cst_614 = arith.constant -5.000000e-01 : f32
    %2086 = vector.broadcast %cst_614 : f32 to vector<2x4xf32>
    %2087 = arith.mulf %2086, %2085 : vector<2x4xf32>
    %2088 = arith.addf %2087, %2066 : vector<2x4xf32>
    %cst_615 = arith.constant 0.000000e+00 : f32
    %2089 = vector.broadcast %cst_615 : f32 to vector<2x4xf32>
    %2090 = arith.addf %2067, %2089 : vector<2x4xf32>
    %2091 = arith.mulf %2090, %2061 : vector<2x4xf32>
    %2092 = arith.mulf %2091, %2091 : vector<2x4xf32>
    %cst_616 = arith.constant -5.000000e-01 : f32
    %2093 = vector.broadcast %cst_616 : f32 to vector<2x4xf32>
    %2094 = arith.mulf %2093, %2092 : vector<2x4xf32>
    %2095 = arith.addf %2094, %2066 : vector<2x4xf32>
    %cst_617 = arith.constant 6.28318548 : f32
    %2096 = vector.broadcast %cst_617 : f32 to vector<2x4xf32>
    %2097 = arith.addf %2067, %2096 : vector<2x4xf32>
    %2098 = arith.mulf %2097, %2061 : vector<2x4xf32>
    %2099 = arith.mulf %2098, %2098 : vector<2x4xf32>
    %cst_618 = arith.constant -5.000000e-01 : f32
    %2100 = vector.broadcast %cst_618 : f32 to vector<2x4xf32>
    %2101 = arith.mulf %2100, %2099 : vector<2x4xf32>
    %2102 = arith.addf %2101, %2066 : vector<2x4xf32>
    %cst_619 = arith.constant 12.566371 : f32
    %2103 = vector.broadcast %cst_619 : f32 to vector<2x4xf32>
    %2104 = arith.addf %2067, %2103 : vector<2x4xf32>
    %2105 = arith.mulf %2104, %2061 : vector<2x4xf32>
    %2106 = arith.mulf %2105, %2105 : vector<2x4xf32>
    %cst_620 = arith.constant -5.000000e-01 : f32
    %2107 = vector.broadcast %cst_620 : f32 to vector<2x4xf32>
    %2108 = arith.mulf %2107, %2106 : vector<2x4xf32>
    %2109 = arith.addf %2108, %2066 : vector<2x4xf32>
    %cst_621 = arith.constant 18.849556 : f32
    %2110 = vector.broadcast %cst_621 : f32 to vector<2x4xf32>
    %2111 = arith.addf %2067, %2110 : vector<2x4xf32>
    %2112 = arith.mulf %2111, %2061 : vector<2x4xf32>
    %2113 = arith.mulf %2112, %2112 : vector<2x4xf32>
    %cst_622 = arith.constant -5.000000e-01 : f32
    %2114 = vector.broadcast %cst_622 : f32 to vector<2x4xf32>
    %2115 = arith.mulf %2114, %2113 : vector<2x4xf32>
    %2116 = arith.addf %2115, %2066 : vector<2x4xf32>
    %2117 = arith.maximumf %2074, %2081 : vector<2x4xf32>
    %2118 = arith.maximumf %2117, %2088 : vector<2x4xf32>
    %2119 = arith.maximumf %2118, %2095 : vector<2x4xf32>
    %2120 = arith.maximumf %2119, %2102 : vector<2x4xf32>
    %2121 = arith.maximumf %2120, %2109 : vector<2x4xf32>
    %2122 = arith.maximumf %2121, %2116 : vector<2x4xf32>
    %2123 = arith.subf %2074, %2122 : vector<2x4xf32>
    %2124 = math.exp %2123 : vector<2x4xf32>
    %2125 = arith.subf %2081, %2122 : vector<2x4xf32>
    %2126 = math.exp %2125 : vector<2x4xf32>
    %2127 = arith.addf %2124, %2126 : vector<2x4xf32>
    %2128 = arith.subf %2088, %2122 : vector<2x4xf32>
    %2129 = math.exp %2128 : vector<2x4xf32>
    %2130 = arith.addf %2127, %2129 : vector<2x4xf32>
    %2131 = arith.subf %2095, %2122 : vector<2x4xf32>
    %2132 = math.exp %2131 : vector<2x4xf32>
    %2133 = arith.addf %2130, %2132 : vector<2x4xf32>
    %2134 = arith.subf %2102, %2122 : vector<2x4xf32>
    %2135 = math.exp %2134 : vector<2x4xf32>
    %2136 = arith.addf %2133, %2135 : vector<2x4xf32>
    %2137 = arith.subf %2109, %2122 : vector<2x4xf32>
    %2138 = math.exp %2137 : vector<2x4xf32>
    %2139 = arith.addf %2136, %2138 : vector<2x4xf32>
    %2140 = arith.subf %2116, %2122 : vector<2x4xf32>
    %2141 = math.exp %2140 : vector<2x4xf32>
    %2142 = arith.addf %2139, %2141 : vector<2x4xf32>
    %2143 = math.log %2142 : vector<2x4xf32>
    %2144 = arith.addf %2122, %2143 : vector<2x4xf32>
    %cst_623 = arith.constant dense<0.000000e+00> : vector<2xf32>
    %2145 = vector.multi_reduction <add>, %2144, %cst_623 [1] : vector<2x4xf32> to vector<2xf32>
    %2146 = vector.shape_cast %2145 : vector<2xf32> to vector<2x1xf32>
    %2147 = arith.subf %1750, %2044 : vector<2x4xf32>
    %cst_624 = arith.constant 3.14159274 : f32
    %2148 = vector.broadcast %cst_624 : f32 to vector<2x4xf32>
    %2149 = arith.addf %2147, %2148 : vector<2x4xf32>
    %cst_625 = arith.constant 0.159154937 : f32
    %2150 = vector.broadcast %cst_625 : f32 to vector<2x4xf32>
    %2151 = arith.mulf %2149, %2150 : vector<2x4xf32>
    %2152 = math.floor %2151 : vector<2x4xf32>
    %2153 = arith.subf %2151, %2152 : vector<2x4xf32>
    %cst_626 = arith.constant 6.28318548 : f32
    %2154 = vector.broadcast %cst_626 : f32 to vector<2x4xf32>
    %2155 = arith.mulf %2153, %2154 : vector<2x4xf32>
    %cst_627 = arith.constant 3.14159274 : f32
    %2156 = vector.broadcast %cst_627 : f32 to vector<2x4xf32>
    %2157 = arith.subf %2155, %2156 : vector<2x4xf32>
    %cst_628 = arith.constant 0.000000e+00 : f32
    %2158 = vector.broadcast %cst_628 : f32 to vector<2x4xf32>
    %2159 = arith.subf %2158, %2044 : vector<2x4xf32>
    %cst_629 = arith.constant 1.250000e-01 : f32
    %2160 = vector.broadcast %cst_629 : f32 to vector<2x4xf32>
    %2161 = arith.mulf %2159, %2160 : vector<2x4xf32>
    %2162 = arith.subf %2157, %2161 : vector<2x4xf32>
    %cst_630 = arith.constant -18.849556 : f32
    %2163 = vector.broadcast %cst_630 : f32 to vector<2x4xf32>
    %2164 = arith.addf %2162, %2163 : vector<2x4xf32>
    %cst_631 = arith.constant 3.02371573 : f32
    %2165 = vector.broadcast %cst_631 : f32 to vector<2x4xf32>
    %2166 = arith.mulf %2164, %2165 : vector<2x4xf32>
    %2167 = arith.mulf %2166, %2166 : vector<2x4xf32>
    %cst_632 = arith.constant -5.000000e-01 : f32
    %2168 = vector.broadcast %cst_632 : f32 to vector<2x4xf32>
    %2169 = arith.mulf %2168, %2167 : vector<2x4xf32>
    %cst_633 = arith.constant 0.187547937 : f32
    %2170 = vector.broadcast %cst_633 : f32 to vector<2x4xf32>
    %2171 = arith.addf %2169, %2170 : vector<2x4xf32>
    %cst_634 = arith.constant -12.566371 : f32
    %2172 = vector.broadcast %cst_634 : f32 to vector<2x4xf32>
    %2173 = arith.addf %2162, %2172 : vector<2x4xf32>
    %cst_635 = arith.constant 3.02371573 : f32
    %2174 = vector.broadcast %cst_635 : f32 to vector<2x4xf32>
    %2175 = arith.mulf %2173, %2174 : vector<2x4xf32>
    %2176 = arith.mulf %2175, %2175 : vector<2x4xf32>
    %cst_636 = arith.constant -5.000000e-01 : f32
    %2177 = vector.broadcast %cst_636 : f32 to vector<2x4xf32>
    %2178 = arith.mulf %2177, %2176 : vector<2x4xf32>
    %cst_637 = arith.constant 0.187547937 : f32
    %2179 = vector.broadcast %cst_637 : f32 to vector<2x4xf32>
    %2180 = arith.addf %2178, %2179 : vector<2x4xf32>
    %cst_638 = arith.constant -6.28318548 : f32
    %2181 = vector.broadcast %cst_638 : f32 to vector<2x4xf32>
    %2182 = arith.addf %2162, %2181 : vector<2x4xf32>
    %cst_639 = arith.constant 3.02371573 : f32
    %2183 = vector.broadcast %cst_639 : f32 to vector<2x4xf32>
    %2184 = arith.mulf %2182, %2183 : vector<2x4xf32>
    %2185 = arith.mulf %2184, %2184 : vector<2x4xf32>
    %cst_640 = arith.constant -5.000000e-01 : f32
    %2186 = vector.broadcast %cst_640 : f32 to vector<2x4xf32>
    %2187 = arith.mulf %2186, %2185 : vector<2x4xf32>
    %cst_641 = arith.constant 0.187547937 : f32
    %2188 = vector.broadcast %cst_641 : f32 to vector<2x4xf32>
    %2189 = arith.addf %2187, %2188 : vector<2x4xf32>
    %cst_642 = arith.constant 0.000000e+00 : f32
    %2190 = vector.broadcast %cst_642 : f32 to vector<2x4xf32>
    %2191 = arith.addf %2162, %2190 : vector<2x4xf32>
    %cst_643 = arith.constant 3.02371573 : f32
    %2192 = vector.broadcast %cst_643 : f32 to vector<2x4xf32>
    %2193 = arith.mulf %2191, %2192 : vector<2x4xf32>
    %2194 = arith.mulf %2193, %2193 : vector<2x4xf32>
    %cst_644 = arith.constant -5.000000e-01 : f32
    %2195 = vector.broadcast %cst_644 : f32 to vector<2x4xf32>
    %2196 = arith.mulf %2195, %2194 : vector<2x4xf32>
    %cst_645 = arith.constant 0.187547937 : f32
    %2197 = vector.broadcast %cst_645 : f32 to vector<2x4xf32>
    %2198 = arith.addf %2196, %2197 : vector<2x4xf32>
    %cst_646 = arith.constant 6.28318548 : f32
    %2199 = vector.broadcast %cst_646 : f32 to vector<2x4xf32>
    %2200 = arith.addf %2162, %2199 : vector<2x4xf32>
    %cst_647 = arith.constant 3.02371573 : f32
    %2201 = vector.broadcast %cst_647 : f32 to vector<2x4xf32>
    %2202 = arith.mulf %2200, %2201 : vector<2x4xf32>
    %2203 = arith.mulf %2202, %2202 : vector<2x4xf32>
    %cst_648 = arith.constant -5.000000e-01 : f32
    %2204 = vector.broadcast %cst_648 : f32 to vector<2x4xf32>
    %2205 = arith.mulf %2204, %2203 : vector<2x4xf32>
    %cst_649 = arith.constant 0.187547937 : f32
    %2206 = vector.broadcast %cst_649 : f32 to vector<2x4xf32>
    %2207 = arith.addf %2205, %2206 : vector<2x4xf32>
    %cst_650 = arith.constant 12.566371 : f32
    %2208 = vector.broadcast %cst_650 : f32 to vector<2x4xf32>
    %2209 = arith.addf %2162, %2208 : vector<2x4xf32>
    %cst_651 = arith.constant 3.02371573 : f32
    %2210 = vector.broadcast %cst_651 : f32 to vector<2x4xf32>
    %2211 = arith.mulf %2209, %2210 : vector<2x4xf32>
    %2212 = arith.mulf %2211, %2211 : vector<2x4xf32>
    %cst_652 = arith.constant -5.000000e-01 : f32
    %2213 = vector.broadcast %cst_652 : f32 to vector<2x4xf32>
    %2214 = arith.mulf %2213, %2212 : vector<2x4xf32>
    %cst_653 = arith.constant 0.187547937 : f32
    %2215 = vector.broadcast %cst_653 : f32 to vector<2x4xf32>
    %2216 = arith.addf %2214, %2215 : vector<2x4xf32>
    %cst_654 = arith.constant 18.849556 : f32
    %2217 = vector.broadcast %cst_654 : f32 to vector<2x4xf32>
    %2218 = arith.addf %2162, %2217 : vector<2x4xf32>
    %cst_655 = arith.constant 3.02371573 : f32
    %2219 = vector.broadcast %cst_655 : f32 to vector<2x4xf32>
    %2220 = arith.mulf %2218, %2219 : vector<2x4xf32>
    %2221 = arith.mulf %2220, %2220 : vector<2x4xf32>
    %cst_656 = arith.constant -5.000000e-01 : f32
    %2222 = vector.broadcast %cst_656 : f32 to vector<2x4xf32>
    %2223 = arith.mulf %2222, %2221 : vector<2x4xf32>
    %cst_657 = arith.constant 0.187547937 : f32
    %2224 = vector.broadcast %cst_657 : f32 to vector<2x4xf32>
    %2225 = arith.addf %2223, %2224 : vector<2x4xf32>
    %2226 = arith.maximumf %2171, %2180 : vector<2x4xf32>
    %2227 = arith.maximumf %2226, %2189 : vector<2x4xf32>
    %2228 = arith.maximumf %2227, %2198 : vector<2x4xf32>
    %2229 = arith.maximumf %2228, %2207 : vector<2x4xf32>
    %2230 = arith.maximumf %2229, %2216 : vector<2x4xf32>
    %2231 = arith.maximumf %2230, %2225 : vector<2x4xf32>
    %2232 = arith.subf %2171, %2231 : vector<2x4xf32>
    %2233 = math.exp %2232 : vector<2x4xf32>
    %2234 = arith.subf %2180, %2231 : vector<2x4xf32>
    %2235 = math.exp %2234 : vector<2x4xf32>
    %2236 = arith.addf %2233, %2235 : vector<2x4xf32>
    %2237 = arith.subf %2189, %2231 : vector<2x4xf32>
    %2238 = math.exp %2237 : vector<2x4xf32>
    %2239 = arith.addf %2236, %2238 : vector<2x4xf32>
    %2240 = arith.subf %2198, %2231 : vector<2x4xf32>
    %2241 = math.exp %2240 : vector<2x4xf32>
    %2242 = arith.addf %2239, %2241 : vector<2x4xf32>
    %2243 = arith.subf %2207, %2231 : vector<2x4xf32>
    %2244 = math.exp %2243 : vector<2x4xf32>
    %2245 = arith.addf %2242, %2244 : vector<2x4xf32>
    %2246 = arith.subf %2216, %2231 : vector<2x4xf32>
    %2247 = math.exp %2246 : vector<2x4xf32>
    %2248 = arith.addf %2245, %2247 : vector<2x4xf32>
    %2249 = arith.subf %2225, %2231 : vector<2x4xf32>
    %2250 = math.exp %2249 : vector<2x4xf32>
    %2251 = arith.addf %2248, %2250 : vector<2x4xf32>
    %2252 = math.log %2251 : vector<2x4xf32>
    %2253 = arith.addf %2231, %2252 : vector<2x4xf32>
    %cst_658 = arith.constant dense<0.000000e+00> : vector<2xf32>
    %2254 = vector.multi_reduction <add>, %2253, %cst_658 [1] : vector<2x4xf32> to vector<2xf32>
    %2255 = vector.shape_cast %2254 : vector<2xf32> to vector<2x1xf32>
    %2256 = tpu.concatenate %94, %280, %574, %868, %1162, %1456, %1750, %2044 in 0 : vector<2x4xf32>, vector<2x4xf32>, vector<2x4xf32>, vector<2x4xf32>, vector<2x4xf32>, vector<2x4xf32>, vector<2x4xf32>, vector<2x4xf32> -> vector<16x4xf32>
    %2257 = tpu.concatenate %196, %382, %676, %970, %1264, %1558, %1852, %2146 in 0 : vector<2x1xf32>, vector<2x1xf32>, vector<2x1xf32>, vector<2x1xf32>, vector<2x1xf32>, vector<2x1xf32>, vector<2x1xf32>, vector<2x1xf32> -> vector<16x1xf32>
    %2258 = tpu.concatenate %197, %491, %785, %1079, %1373, %1667, %1961, %2255 in 0 : vector<2x1xf32>, vector<2x1xf32>, vector<2x1xf32>, vector<2x1xf32>, vector<2x1xf32>, vector<2x1xf32>, vector<2x1xf32>, vector<2x1xf32> -> vector<16x1xf32>
    %cst_659 = arith.constant 0.000000e+00 : f32
    %2259 = vector.broadcast %cst_659 : f32 to vector<16x122xf32>
    %2260 = tpu.concatenate %2256, %2257, %2258, %2259 in 1 : vector<16x4xf32>, vector<16x1xf32>, vector<16x1xf32>, vector<16x122xf32> -> vector<16x128xf32>
    %c0_660 = arith.constant 0 : index
    %c0_661 = arith.constant 0 : index
    %2261 = vector.load %arg4[%c0_660, %c0_661] : memref<16x128xf32, #tpu.memory_space<vmem>>, vector<16x128xf32>
    tpu.vector_store %arg4[%c0_660, %c0_661], %2260 {strides = array<i32>} : memref<16x128xf32, #tpu.memory_space<vmem>>, vector<16x128xf32>,
    return
  }
  func.func @transform_0(%arg0: i32) -> (i32, i32) {
    %c0_i32 = arith.constant 0 : i32
    %c0_i32_0 = arith.constant 0 : i32
    %c0_i32_1 = arith.constant 0 : i32
    return %c0_i32, %c0_i32_0 : i32, i32
  }
  func.func @transform_1(%arg0: i32) -> (i32, i32) {
    %c0_i32 = arith.constant 0 : i32
    %c0_i32_0 = arith.constant 0 : i32
    %c0_i32_1 = arith.constant 0 : i32
    return %c0_i32, %c0_i32_0 : i32, i32
  }
  func.func @transform_2(%arg0: i32) -> (i32, i32) {
    %c0_i32 = arith.constant 0 : i32
    %c0_i32_0 = arith.constant 0 : i32
    %c0_i32_1 = arith.constant 0 : i32
    return %c0_i32, %c0_i32_0 : i32, i32
  }
  func.func @transform_3(%arg0: i32) -> (i32, i32) {
    %c0_i32 = arith.constant 0 : i32
    %c0_i32_0 = arith.constant 0 : i32
    %c0_i32_1 = arith.constant 0 : i32
    return %c0_i32, %c0_i32_0 : i32, i32
  }
}

</mosaic_0001>

<bundles_post_ra>
// kernel: tpu_custom_call.1
= control target key start
LH: loop header
LB: loop body
LE: loop exit
PB: predicated region body
PF: predicated region fallthrough
CT: control target
= control target key end

     0   :  { %vm45_vm0 = vcmask 1043456   ;;  %vm41_vm1 = vcmask 31744   ;;  %s4966_s0 = inlined_call_operand.vmem [shape: f32[2,4], index: 0, kind: input, shape index: {}]   ;;  %s4967_s1 = inlined_call_operand.vmem [shape: f32[16,4], index: 1, kind: input, shape index: {}]   ;;  %s4968_s2 = inlined_call_operand.vmem [shape: f32[176,32], index: 2, kind: input, shape index: {}]   ;;  %s4969_s3 = inlined_call_operand.hbm [shape: f32[16,128], index: 3, kind: output, shape index: {}]  }
   0x1   :  { %v3480_v0 = vld [vmem:[%s4968_s2] sm:$0xf] }
   0x2   :  { %v3485_v1 = vld [vmem:[%s4966_s0] sm:$0x3]  ;;  %2968 = vmatpush.msk.msra.mxu0 %vm45_vm0, %v3480_v0 }
   0x3   :  { %2969 = vmatmul.msk.f32.vlgmr.msra.gmra.mxu0 %vm41_vm1, %v3485_v1 }
   0x4   :  { %8 = vsyncpa [#allocation3], 0  ;;  %v3494_v2 = vld [vmem:[%s4968_s2 + $0x28] sm:$0xff]  ;;  %v3499_v3 = vld [vmem:[%s4968_s2 + $0x20] sm:$0xff]  ;;  %vm79_vm2 = vcmask 261120   ;;  %s3451_s29 = smov 4  }
   0x5   :  { %95 = vmatpush.msra.mxu1 %v3494_v2  ;;  %v3505_v4 = vld [vmem:[%s4968_s2 + $0x18] sm:$0xff]  ;;  %v3511_v5 = vld [vmem:[%s4968_s2 + $0x10] sm:$0xff]  ;;  %v3525_v7 = vld [vmem:[%s4968_s2 + $0x48] sm:$0xff]  ;;  %s3452_s7 = smov 124   ;;  %s2956_s6 = sshll.u32 %s4969_s3, 4  ;;  %s2957_s6 = int_to_ptr.hbm [resolvable:$true] %s2956_s6 }
   0x6   :  { %v3520_v6 = vld [vmem:[%s4968_s2 + $0x50] sm:$0xff]  ;;  %v3532_v8 = vld [vmem:[%s4968_s2 + $0x8] ss:$0 sm:$0xff]  ;;  %v3539_v20 = vld [vmem:[%s4968_s2 + $0x40] sm:$0xff]  ;;  %s3455_s8 = smov 128   ;;  %s3456_s9 = smov 8  }
   0x7   :  { %96 = vmatpush.msra.mxu1 %v3499_v3  ;;  %119 = vmatpush.msra.mxu2 %v3520_v6  ;;  %v3545_v21 = vld [vmem:[%s4968_s2 + $0x38] sm:$0xff]  ;;  %v3555_v22 = vld [vmem:[%s4968_s2 + $0x30] ss:$0 sm:$0xff]  ;;  %v3569_v26 = vld [vmem:[%s4968_s2 + $0x68] sm:$0xff] }
   0x8   :  { %v3564_v25 = vld [vmem:[%s4968_s2 + $0x70] sm:$0xff]  ;;  %v3575_v27 = vld [vmem:[%s4968_s2 + $0x60] sm:$0xff]  ;;  %v3581_v28 = vld [vmem:[%s4968_s2 + $0x58] sm:$0xff] }
   0x9   :  { %97 = vmatpush.msra.mxu1 %v3505_v4  ;;  %120 = vmatpush.msra.mxu2 %v3525_v7  ;;  %v3592_v29 = vld [vmem:[%s4968_s2 + $0xa8] sm:$0xff]  ;;  %v3603_v42 = vld [vmem:[%s4968_s2 + $0x98] sm:$0xff]  ;;  %v3608_v43 = vld [vmem:[%s4968_s2 + $0x90] sm:$0xff] }
   0xa   :  { %152 = vmatpush.msra.mxu3 %v3564_v25  ;;  %v103_v30 = vperm.slane %v3592_v29, 0  ;;  %185 = vmatpush.msrb.mxu0 %v3603_v42  ;;  %v3615_v44 = vld [vmem:[%s4968_s2 + $0x88] sm:$0xff]  ;;  %v3622_v45 = vld [vmem:[%s4968_s2 + $0x80] sm:$0xff]  ;;  %v3642_v47 = vld [vmem:[%s4968_s2 + $0x78] ss:$0 sm:$0xff] }
   0xb   :  { %98 = vmatpush.msra.mxu1 %v3511_v5  ;;  %121 = vmatpush.msra.mxu2 %v3539_v20  ;;  %v3635_v46 = vld [vmem:[%s4967_s1] sm:$0xff] }
   0xc   :  { %153 = vmatpush.msra.mxu3 %v3569_v26  ;;  %186 = vmatpush.msrb.mxu0 %v3608_v43  ;;  %v3653_v59 = vld [vmem:[%s4968_s2 + $0xa0] ss:$0 sm:$0xff] }
   0xd   :  { %2976 = vmatpush.msk.msrb.mxu1 %vm45_vm0, %v3480_v0  ;;  %122 = vmatpush.msra.mxu2 %v3545_v21 }
   0xe   :  { %154 = vmatpush.msra.mxu3 %v3575_v27  ;;  %187 = vmatpush.msrb.mxu0 %v3615_v44 }
   0xf   :  { %375 = vmatpush.msrb.mxu2 %v3494_v2  ;;  %203 = vrot.lane.b32.xlu0 %v3635_v46, %s3451_s29 }
  0x10   :  { %155 = vmatpush.msra.mxu3 %v3581_v28  ;;  %188 = vmatpush.msrb.mxu0 %v3622_v45 }
  0x11   :  { %376 = vmatpush.msrb.mxu2 %v3499_v3 }
  0x12   :  { %399 = vmatpush.msrb.mxu3 %v3520_v6  ;;  %431 = vmatpush.msra.mxu0 %v3564_v25 }
  0x13   :  { %377 = vmatpush.msrb.mxu2 %v3505_v4 }
  0x14   :  { %400 = vmatpush.msrb.mxu3 %v3525_v7  ;;  %432 = vmatpush.msra.mxu0 %v3569_v26 }
  0x15   :  { %378 = vmatpush.msrb.mxu2 %v3511_v5 }
  0x16   :  { %401 = vmatpush.msrb.mxu3 %v3539_v20  ;;  %433 = vmatpush.msra.mxu0 %v3575_v27 }
  0x18   :  { %402 = vmatpush.msrb.mxu3 %v3545_v21  ;;  %434 = vmatpush.msra.mxu0 %v3581_v28 }
  0x80   :  { %v66_v9 = vpop.f32.mrf.mxu0 }
  0x81   :  { %v67_v10 = vadd.f32 %v3532_v8, %v66_v9 }
  0x83   :  { %v70_v11 = vmul.f32 0.044715, %v67_v10  ;;  %v69_v17 = vmul.f32 0.5, %v67_v10 }
  0x85   :  { %v71_v12 = vmul.f32 %v70_v11, %v67_v10 }
  0x87   :  { %v72_v13 = vmul.f32 %v71_v12, %v67_v10  ;;  %v204_v12 = vpop.permute.xlu0 %203 }
  0x89   :  { %v73_v14 = vadd.f32 %v72_v13, %v67_v10 }
  0x8b   :  { %v74_v15 = vmul.f32 0.7978846, %v73_v14 }
  0x8d   :  { %3049 = vtanh.f32 %v74_v15 }
  0x93   :  { %v3050_v16 = vpop.eup %3049 }
  0x94   :  { %v76_v18 = vadd.f32 1.0, %v3050_v16 }
  0x96   :  { %v77_v19 = vmul.f32 %v76_v18, %v69_v17 }
  0x98   :  { %2970 = vmatmul.msk.f32.vlgmr.msra.gmra.mxu1 %vm79_vm2, %v77_v19 }
  0x99   :  { %463 = vmatpush.msra.mxu1 %v3603_v42 }
  0x9b   :  { %464 = vmatpush.msra.mxu1 %v3608_v43 }
  0x9d   :  { %465 = vmatpush.msra.mxu1 %v3615_v44 }
  0x9f   :  { %466 = vmatpush.msra.mxu1 %v3622_v45 }
 0x115   :  { %v100_v23 = vpop.f32.mrf.mxu1 }
 0x116   :  { %v101_v24 = vadd.f32 %v3555_v22, %v100_v23 }
 0x118   :  { %2971 = vmatmul.msk.f32.vlgmr.msra.gmra.mxu2 %vm79_vm2, %v101_v24 }
 0x119   :  { %2985 = vmatpush.msk.msra.mxu2 %vm45_vm0, %v3480_v0 }
 0x19b   :  { %v124_v31 = vpop.f32.mrf.mxu2 }
 0x19c   :  { %v125_v32 = vadd.f32 %v124_v31, %v103_v30 }
 0x19e   :  { %v128_v33 = vmul.f32 0.044715, %v125_v32  ;;  %v127_v39 = vmul.f32 0.5, %v125_v32 }
 0x1a0   :  { %v129_v34 = vmul.f32 %v128_v33, %v125_v32 }
 0x1a2   :  { %v130_v35 = vmul.f32 %v129_v34, %v125_v32 }
 0x1a4   :  { %v131_v36 = vadd.f32 %v130_v35, %v125_v32 }
 0x1a6   :  { %v132_v37 = vmul.f32 0.7978846, %v131_v36 }
 0x1a8   :  { %3051 = vtanh.f32 %v132_v37 }
 0x1ae   :  { %v3052_v38 = vpop.eup %3051 }
 0x1af   :  { %v134_v40 = vadd.f32 1.0, %v3052_v38 }
 0x1b1   :  { %v135_v41 = vmul.f32 %v134_v40, %v127_v39 }
 0x1b3   :  { %2972 = vmatmul.msk.f32.vlgmr.msra.gmra.mxu3 %vm79_vm2, %v135_v41 }
 0x1b4   :  { %736 = vmatpush.msra.mxu3 %v3494_v2 }
 0x1b6   :  { %737 = vmatpush.msra.mxu3 %v3499_v3 }
 0x1b8   :  { %738 = vmatpush.msra.mxu3 %v3505_v4 }
 0x1ba   :  { %739 = vmatpush.msra.mxu3 %v3511_v5 }
 0x236   :  { %v157_v48 = vpop.f32.mrf.mxu3 }
 0x237   :  { %v158_v49 = vadd.f32 %v3642_v47, %v157_v48 }
 0x239   :  { %v161_v50 = vmul.f32 0.044715, %v158_v49  ;;  %v160_v56 = vmul.f32 0.5, %v158_v49 }
 0x23b   :  { %v162_v51 = vmul.f32 %v161_v50, %v158_v49 }
 0x23d   :  { %v163_v52 = vmul.f32 %v162_v51, %v158_v49  ;;  %v383_v51 = vperm.slane %v3592_v29, 1 }
 0x23f   :  { %v164_v53 = vadd.f32 %v163_v52, %v158_v49 }
 0x241   :  { %v165_v54 = vmul.f32 0.7978846, %v164_v53 }
 0x243   :  { %3053 = vtanh.f32 %v165_v54 }
 0x249   :  { %v3054_v55 = vpop.eup %3053 }
 0x24a   :  { %v167_v57 = vadd.f32 1.0, %v3054_v55 }
 0x24c   :  { %v168_v58 = vmul.f32 %v167_v57, %v160_v56 }
 0x24e   :  { %2973 = vmatmul.msk.f32.vlgmr.msrb.gmra.mxu0 %vm79_vm2, %v168_v58 }
 0x24f   :  { %760 = vmatpush.msrb.mxu0 %v3520_v6 }
 0x251   :  { %761 = vmatpush.msrb.mxu0 %v3525_v7 }
 0x253   :  { %762 = vmatpush.msrb.mxu0 %v3539_v20 }
 0x255   :  { %763 = vmatpush.msrb.mxu0 %v3545_v21 }
 0x2cb   :  { %v190_v60 = vpop.f32.mrf.mxu0 }
 0x2cc   :  { %v191_v61 = vadd.f32 %v3653_v59, %v190_v60 }
 0x2ce   :  { %3055 = vtanh.f32 %v191_v61  ;;  %v3660_v15 = vmul.f32 0.125, %v191_v61 }
 0x2d0   :  { %v200_v16 = vadd.f32 %v3660_v15, %v3485_v1 }
 0x2d4   :  { %v3056_v62 = vpop.eup %3055 }
 0x2d5   :  { %v194_v63 = vmul.f32 4.0, %v3056_v62 }
 0x2d7   :  { %v196_v9 = vmul.f32 0.5, %v194_v63 }
 0x2d9   :  { %v197_v10 = vmul.f32 1.442695, %v196_v9  ;;  %v480_v9 = vrot.slane %v3635_v46, 2 }
 0x2db   :  { %3057 = vpow2.f32 %v197_v10  ;;  %481 = vrot.lane.b32.xlu1 %v480_v9, %s3451_s29 }
 0x2e1   :  { %v3058_v11 = vpop.eup %3057 }
 0x2e2   :  { %v3656_v13 = vmul.f32 0.35355338, %v3058_v11 }
 0x2e4   :  { %v206_v14 = vmul.f32 %v204_v12, %v3656_v13  ;;  %vm230_vm4 = vweird.f32 %v3656_v13 }
 0x2e6   :  { %208 = vrot.lane.b32.xlu0 %v206_v14, %s3452_s7 }
 0x358   :  { %v209_v17 = vpop.permute.xlu0 %208 }
 0x359   :  { %v211_v18 = vadd.f32 %v209_v17, %v200_v16 }
 0x35b   :  { %v212_v19 = vadd.f32 3.1415927, %v211_v18 }
 0x35d   :  { %v213_v23 = vmul.f32 0.15915494, %v212_v19 }
 0x35f   :  { %v214_v24 = vfloor.f32 %v213_v23 }
 0x361   :  { %v215_v30 = vsub.f32 %v213_v23, %v214_v24 }
 0x363   :  { %v216_v31 = vmul.f32 6.2831855, %v215_v30 }
 0x365   :  { %v3664_v32 = vadd.f32 -3.1415927, %v216_v31 }
 0x367   :  { %4983 = vst [vmem:[#allocation5_spill] sm:$0xff] %v3664_v32  ;;  %2977 = vmatmul.msk.f32.vlgmr.msrb.gmra.mxu1 %vm41_vm1, %v3664_v32 }
 0x368   :  { %792 = vmatpush.msrb.mxu1 %v3564_v25 }
 0x36a   :  { %793 = vmatpush.msrb.mxu1 %v3569_v26 }
 0x36c   :  { %794 = vmatpush.msrb.mxu1 %v3575_v27 }
 0x36e   :  { %795 = vmatpush.msrb.mxu1 %v3581_v28 }
 0x3e4   :  { %v348_v1 = vpop.f32.mrf.mxu1 }
 0x3e5   :  { %v349_v33 = vadd.f32 %v3532_v8, %v348_v1 }
 0x3e7   :  { %v352_v34 = vmul.f32 0.044715, %v349_v33  ;;  %v351_v40 = vmul.f32 0.5, %v349_v33 }
 0x3e9   :  { %v353_v35 = vmul.f32 %v352_v34, %v349_v33 }
 0x3eb   :  { %v354_v36 = vmul.f32 %v353_v35, %v349_v33 }
 0x3ed   :  { %v355_v37 = vadd.f32 %v354_v36, %v349_v33 }
 0x3ef   :  { %v356_v38 = vmul.f32 0.7978846, %v355_v37 }
 0x3f1   :  { %3059 = vtanh.f32 %v356_v38  ;;  %v482_v38 = vpop.permute.xlu1 %481 }
 0x3f7   :  { %v3060_v39 = vpop.eup %3059 }
 0x3f8   :  { %v358_v41 = vadd.f32 1.0, %v3060_v39 }
 0x3fa   :  { %v359_v48 = vmul.f32 %v358_v41, %v351_v40 }
 0x3fc   :  { %2978 = vmatmul.msk.f32.vlgmr.msrb.gmra.mxu2 %vm79_vm2, %v359_v48 }
 0x3fd   :  { %824 = vmatpush.msrb.mxu2 %v3603_v42 }
 0x3ff   :  { %825 = vmatpush.msrb.mxu2 %v3608_v43 }
 0x401   :  { %826 = vmatpush.msrb.mxu2 %v3615_v44 }
 0x403   :  { %827 = vmatpush.msrb.mxu2 %v3622_v45 }
 0x47f   :  { %v380_v49 = vpop.f32.mrf.mxu2 }
 0x480   :  { %v381_v50 = vadd.f32 %v3555_v22, %v380_v49 }
 0x482   :  { %2979 = vmatmul.msk.f32.vlgmr.msrb.gmra.mxu3 %vm79_vm2, %v381_v50 }
 0x483   :  { %2994 = vmatpush.msk.msrb.mxu3 %vm45_vm0, %v3480_v0 }
 0x505   :  { %v404_v52 = vpop.f32.mrf.mxu3 }
 0x506   :  { %v405_v53 = vadd.f32 %v404_v52, %v383_v51 }
 0x508   :  { %v408_v54 = vmul.f32 0.044715, %v405_v53  ;;  %v407_v61 = vmul.f32 0.5, %v405_v53 }
 0x50a   :  { %v409_v55 = vmul.f32 %v408_v54, %v405_v53 }
 0x50c   :  { %v410_v56 = vmul.f32 %v409_v55, %v405_v53 }
 0x50e   :  { %v411_v57 = vadd.f32 %v410_v56, %v405_v53 }
 0x510   :  { %v412_v58 = vmul.f32 0.7978846, %v411_v57 }
 0x512   :  { %3061 = vtanh.f32 %v412_v58 }
 0x518   :  { %v3062_v60 = vpop.eup %3061 }
 0x519   :  { %v414_v62 = vadd.f32 1.0, %v3062_v60 }
 0x51b   :  { %v415_v63 = vmul.f32 %v414_v62, %v407_v61 }
 0x51d   :  { %2980 = vmatmul.msk.f32.vlgmr.msra.gmra.mxu0 %vm79_vm2, %v415_v63 }
 0x51e   :  { %1097 = vmatpush.msra.mxu0 %v3494_v2 }
 0x520   :  { %1098 = vmatpush.msra.mxu0 %v3499_v3 }
 0x522   :  { %1099 = vmatpush.msra.mxu0 %v3505_v4 }
 0x524   :  { %1100 = vmatpush.msra.mxu0 %v3511_v5 }
 0x59a   :  { %v436_v10 = vpop.f32.mrf.mxu0 }
 0x59b   :  { %v437_v11 = vadd.f32 %v3642_v47, %v436_v10 }
 0x59d   :  { %v440_v12 = vmul.f32 0.044715, %v437_v11  ;;  %v439_v23 = vmul.f32 0.5, %v437_v11 }
 0x59f   :  { %v441_v14 = vmul.f32 %v440_v12, %v437_v11 }
 0x5a1   :  { %v442_v16 = vmul.f32 %v441_v14, %v437_v11 }
 0x5a3   :  { %v443_v17 = vadd.f32 %v442_v16, %v437_v11 }
 0x5a5   :  { %v444_v18 = vmul.f32 0.7978846, %v443_v17 }
 0x5a7   :  { %3063 = vtanh.f32 %v444_v18  ;;  %v744_v18 = vperm.slane %v3592_v29, 2 }
 0x5ad   :  { %v3064_v19 = vpop.eup %3063 }
 0x5ae   :  { %v446_v24 = vadd.f32 1.0, %v3064_v19 }
 0x5b0   :  { %v447_v30 = vmul.f32 %v446_v24, %v439_v23 }
 0x5b2   :  { %2981 = vmatmul.msk.f32.vlgmr.msra.gmra.mxu1 %vm79_vm2, %v447_v30 }
 0x5b3   :  { %1121 = vmatpush.msra.mxu1 %v3520_v6 }
 0x5b5   :  { %1122 = vmatpush.msra.mxu1 %v3525_v7 }
 0x5b7   :  { %1123 = vmatpush.msra.mxu1 %v3539_v20 }
 0x5b9   :  { %1124 = vmatpush.msra.mxu1 %v3545_v21 }
 0x62f   :  { %v468_v31 = vpop.f32.mrf.mxu1 }
 0x630   :  { %v469_v1 = vadd.f32 %v3653_v59, %v468_v31 }
 0x632   :  { %3065 = vtanh.f32 %v469_v1  ;;  %v3701_v41 = vmul.f32 0.125, %v469_v1 }
 0x634   :  { %v478_v48 = vadd.f32 %v3664_v32, %v3701_v41 }
 0x638   :  { %v3066_v33 = vpop.eup %3065 }
 0x639   :  { %v472_v34 = vmul.f32 4.0, %v3066_v33 }
 0x63b   :  { %v474_v35 = vmul.f32 0.5, %v472_v34 }
 0x63d   :  { %v475_v36 = vmul.f32 1.442695, %v474_v35 }
 0x63f   :  { %3067 = vpow2.f32 %v475_v36 }
 0x645   :  { %v3068_v37 = vpop.eup %3067 }
 0x646   :  { %v3697_v39 = vmul.f32 0.35355338, %v3068_v37 }
 0x648   :  { %v484_v40 = vmul.f32 %v482_v38, %v3697_v39  ;;  %v841_v38 = vrot.slane %v3635_v46, 4 }
 0x64a   :  { %486 = vrot.lane.b32.xlu1 %v484_v40, %s3452_s7  ;;  %842 = vrot.lane.b32.xlu2 %v841_v38, %s3451_s29 }
 0x6bc   :  { %v487_v49 = vpop.permute.xlu1 %486 }
 0x6bd   :  { %v489_v50 = vadd.f32 %v487_v49, %v478_v48 }
 0x6bf   :  { %v490_v51 = vadd.f32 3.1415927, %v489_v50 }
 0x6c1   :  { %v491_v52 = vmul.f32 0.15915494, %v490_v51 }
 0x6c3   :  { %v492_v53 = vfloor.f32 %v491_v52 }
 0x6c5   :  { %v493_v54 = vsub.f32 %v491_v52, %v492_v53 }
 0x6c7   :  { %v494_v55 = vmul.f32 6.2831855, %v493_v54 }
 0x6c9   :  { %v3705_v56 = vadd.f32 -3.1415927, %v494_v55 }
 0x6cb   :  { %4984 = vst [vmem:[#allocation6_spill] sm:$0xff] %v3705_v56  ;;  %2986 = vmatmul.msk.f32.vlgmr.msra.gmra.mxu2 %vm41_vm1, %v3705_v56 }
 0x6cc   :  { %1153 = vmatpush.msra.mxu2 %v3564_v25 }
 0x6ce   :  { %1154 = vmatpush.msra.mxu2 %v3569_v26 }
 0x6d0   :  { %1155 = vmatpush.msra.mxu2 %v3575_v27 }
 0x6d2   :  { %1156 = vmatpush.msra.mxu2 %v3581_v28 }
 0x74e   :  { %v709_v57 = vpop.f32.mrf.mxu2 }
 0x74f   :  { %v710_v58 = vadd.f32 %v3532_v8, %v709_v57 }
 0x751   :  { %v713_v60 = vmul.f32 0.044715, %v710_v58  ;;  %v712_v11 = vmul.f32 0.5, %v710_v58 }
 0x753   :  { %v714_v61 = vmul.f32 %v713_v60, %v710_v58 }
 0x755   :  { %v715_v62 = vmul.f32 %v714_v61, %v710_v58 }
 0x757   :  { %v716_v63 = vadd.f32 %v715_v62, %v710_v58 }
 0x759   :  { %v717_v9 = vmul.f32 0.7978846, %v716_v63 }
 0x75b   :  { %3069 = vtanh.f32 %v717_v9 }
 0x761   :  { %v3070_v10 = vpop.eup %3069 }
 0x762   :  { %v719_v12 = vadd.f32 1.0, %v3070_v10 }
 0x764   :  { %v720_v14 = vmul.f32 %v719_v12, %v712_v11  ;;  %v843_v12 = vpop.permute.xlu2 %842 }
 0x766   :  { %2987 = vmatmul.msk.f32.vlgmr.msra.gmra.mxu3 %vm79_vm2, %v720_v14 }
 0x767   :  { %1185 = vmatpush.msra.mxu3 %v3603_v42 }
 0x769   :  { %1186 = vmatpush.msra.mxu3 %v3608_v43 }
 0x76b   :  { %1187 = vmatpush.msra.mxu3 %v3615_v44 }
 0x76d   :  { %1188 = vmatpush.msra.mxu3 %v3622_v45 }
 0x7e9   :  { %v741_v16 = vpop.f32.mrf.mxu3 }
 0x7ea   :  { %v742_v17 = vadd.f32 %v3555_v22, %v741_v16 }
 0x7ec   :  { %2988 = vmatmul.msk.f32.vlgmr.msrb.gmra.mxu0 %vm79_vm2, %v742_v17 }
 0x7ed   :  { %3003 = vmatpush.msk.msrb.mxu0 %vm45_vm0, %v3480_v0 }
 0x869   :  { %v765_v19 = vpop.f32.mrf.mxu0 }
 0x86a   :  { %v766_v23 = vadd.f32 %v765_v19, %v744_v18 }
 0x86c   :  { %v769_v24 = vmul.f32 0.044715, %v766_v23  ;;  %v768_v35 = vmul.f32 0.5, %v766_v23 }
 0x86e   :  { %v770_v30 = vmul.f32 %v769_v24, %v766_v23 }
 0x870   :  { %v771_v31 = vmul.f32 %v770_v30, %v766_v23 }
 0x872   :  { %v772_v1 = vadd.f32 %v771_v31, %v766_v23 }
 0x874   :  { %v773_v33 = vmul.f32 0.7978846, %v772_v1 }
 0x876   :  { %3071 = vtanh.f32 %v773_v33 }
 0x87c   :  { %v3072_v34 = vpop.eup %3071 }
 0x87d   :  { %v775_v36 = vadd.f32 1.0, %v3072_v34 }
 0x87f   :  { %v776_v37 = vmul.f32 %v775_v36, %v768_v35 }
 0x881   :  { %2989 = vmatmul.msk.f32.vlgmr.msrb.gmra.mxu1 %vm79_vm2, %v776_v37 }
 0x882   :  { %1458 = vmatpush.msrb.mxu1 %v3494_v2 }
 0x884   :  { %1459 = vmatpush.msrb.mxu1 %v3499_v3 }
 0x886   :  { %1460 = vmatpush.msrb.mxu1 %v3505_v4 }
 0x888   :  { %1461 = vmatpush.msrb.mxu1 %v3511_v5 }
 0x8fe   :  { %v797_v40 = vpop.f32.mrf.mxu1 }
 0x8ff   :  { %v798_v48 = vadd.f32 %v3642_v47, %v797_v40 }
 0x901   :  { %v801_v49 = vmul.f32 0.044715, %v798_v48  ;;  %v800_v55 = vmul.f32 0.5, %v798_v48 }
 0x903   :  { %v802_v50 = vmul.f32 %v801_v49, %v798_v48 }
 0x905   :  { %v803_v51 = vmul.f32 %v802_v50, %v798_v48 }
 0x907   :  { %v804_v52 = vadd.f32 %v803_v51, %v798_v48 }
 0x909   :  { %v805_v53 = vmul.f32 0.7978846, %v804_v52 }
 0x90b   :  { %3073 = vtanh.f32 %v805_v53 }
 0x911   :  { %v3074_v54 = vpop.eup %3073 }
 0x912   :  { %v807_v57 = vadd.f32 1.0, %v3074_v54 }
 0x914   :  { %v808_v58 = vmul.f32 %v807_v57, %v800_v55  ;;  %v1105_v57 = vperm.slane %v3592_v29, 3 }
 0x916   :  { %2990 = vmatmul.msk.f32.vlgmr.msrb.gmra.mxu2 %vm79_vm2, %v808_v58 }
 0x917   :  { %1482 = vmatpush.msrb.mxu2 %v3520_v6 }
 0x919   :  { %1483 = vmatpush.msrb.mxu2 %v3525_v7 }
 0x91b   :  { %1484 = vmatpush.msrb.mxu2 %v3539_v20 }
 0x91d   :  { %1485 = vmatpush.msrb.mxu2 %v3545_v21 }
 0x999   :  { %v829_v60 = vpop.f32.mrf.mxu2 }
 0x99a   :  { %v830_v61 = vadd.f32 %v3653_v59, %v829_v60 }
 0x99c   :  { %3075 = vtanh.f32 %v830_v61  ;;  %v3742_v17 = vmul.f32 0.125, %v830_v61 }
 0x99e   :  { %v839_v18 = vadd.f32 %v3705_v56, %v3742_v17 }
 0x9a2   :  { %v3076_v62 = vpop.eup %3075 }
 0x9a3   :  { %v833_v63 = vmul.f32 4.0, %v3076_v62 }
 0x9a5   :  { %v835_v9 = vmul.f32 0.5, %v833_v63 }
 0x9a7   :  { %v836_v10 = vmul.f32 1.442695, %v835_v9 }
 0x9a9   :  { %3077 = vpow2.f32 %v836_v10 }
 0x9af   :  { %v3078_v11 = vpop.eup %3077 }
 0x9b0   :  { %v3738_v14 = vmul.f32 0.35355338, %v3078_v11 }
 0x9b2   :  { %v845_v16 = vmul.f32 %v843_v12, %v3738_v14  ;;  %vm869_vm12 = vweird.f32 %v3738_v14 }
 0x9b4   :  { %847 = vrot.lane.b32.xlu2 %v845_v16, %s3452_s7 }
 0xa0e   :  { %v848_v19 = vpop.permute.xlu2 %847 }
 0xa0f   :  { %v850_v23 = vadd.f32 %v848_v19, %v839_v18  ;;  %v1202_v19 = vrot.slane %v3635_v46, 6 }
 0xa11   :  { %v851_v24 = vadd.f32 3.1415927, %v850_v23  ;;  %1203 = vrot.lane.b32.xlu0 %v1202_v19, %s3451_s29 }
 0xa13   :  { %v852_v30 = vmul.f32 0.15915494, %v851_v24 }
 0xa15   :  { %v853_v31 = vfloor.f32 %v852_v30 }
 0xa17   :  { %v854_v1 = vsub.f32 %v852_v30, %v853_v31 }
 0xa19   :  { %v855_v33 = vmul.f32 6.2831855, %v854_v1 }
 0xa1b   :  { %v3746_v34 = vadd.f32 -3.1415927, %v855_v33 }
 0xa1d   :  { %4985 = vst [vmem:[#allocation7_spill] sm:$0xff] %v3746_v34  ;;  %2995 = vmatmul.msk.f32.vlgmr.msrb.gmra.mxu3 %vm41_vm1, %v3746_v34 }
 0xa1e   :  { %1514 = vmatpush.msrb.mxu3 %v3564_v25 }
 0xa20   :  { %1515 = vmatpush.msrb.mxu3 %v3569_v26 }
 0xa22   :  { %1516 = vmatpush.msrb.mxu3 %v3575_v27 }
 0xa24   :  { %1517 = vmatpush.msrb.mxu3 %v3581_v28 }
 0xaa0   :  { %v1070_v35 = vpop.f32.mrf.mxu3 }
 0xaa1   :  { %v1071_v36 = vadd.f32 %v3532_v8, %v1070_v35 }
 0xaa3   :  { %v1074_v37 = vmul.f32 0.044715, %v1071_v36  ;;  %v1073_v51 = vmul.f32 0.5, %v1071_v36 }
 0xaa5   :  { %v1075_v38 = vmul.f32 %v1074_v37, %v1071_v36 }
 0xaa7   :  { %v1076_v40 = vmul.f32 %v1075_v38, %v1071_v36 }
 0xaa9   :  { %v1077_v48 = vadd.f32 %v1076_v40, %v1071_v36 }
 0xaab   :  { %v1078_v49 = vmul.f32 0.7978846, %v1077_v48 }
 0xaad   :  { %3079 = vtanh.f32 %v1078_v49 }
 0xab3   :  { %v3080_v50 = vpop.eup %3079 }
 0xab4   :  { %v1080_v52 = vadd.f32 1.0, %v3080_v50 }
 0xab6   :  { %v1081_v53 = vmul.f32 %v1080_v52, %v1073_v51 }
 0xab8   :  { %2996 = vmatmul.msk.f32.vlgmr.msra.gmra.mxu0 %vm79_vm2, %v1081_v53 }
 0xab9   :  { %1546 = vmatpush.msra.mxu0 %v3603_v42 }
 0xabb   :  { %1547 = vmatpush.msra.mxu0 %v3608_v43 }
 0xabd   :  { %1548 = vmatpush.msra.mxu0 %v3615_v44 }
 0xabf   :  { %1549 = vmatpush.msra.mxu0 %v3622_v45 }
 0xb35   :  { %v1102_v54 = vpop.f32.mrf.mxu0 }
 0xb36   :  { %v1103_v55 = vadd.f32 %v3555_v22, %v1102_v54  ;;  %v1204_v54 = vpop.permute.xlu0 %1203 }
 0xb38   :  { %2997 = vmatmul.msk.f32.vlgmr.msra.gmra.mxu1 %vm79_vm2, %v1103_v55 }
 0xb39   :  { %3012 = vmatpush.msk.msra.mxu1 %vm45_vm0, %v3480_v0 }
 0xbb5   :  { %v1126_v58 = vpop.f32.mrf.mxu1 }
 0xbb6   :  { %v1127_v60 = vadd.f32 %v1126_v58, %v1105_v57 }
 0xbb8   :  { %v1130_v61 = vmul.f32 0.044715, %v1127_v60  ;;  %v1129_v12 = vmul.f32 0.5, %v1127_v60 }
 0xbba   :  { %v1131_v62 = vmul.f32 %v1130_v61, %v1127_v60 }
 0xbbc   :  { %v1132_v63 = vmul.f32 %v1131_v62, %v1127_v60 }
 0xbbe   :  { %v1133_v9 = vadd.f32 %v1132_v63, %v1127_v60 }
 0xbc0   :  { %v1134_v10 = vmul.f32 0.7978846, %v1133_v9 }
 0xbc2   :  { %3081 = vtanh.f32 %v1134_v10 }
 0xbc8   :  { %v3082_v11 = vpop.eup %3081 }
 0xbc9   :  { %v1136_v16 = vadd.f32 1.0, %v3082_v11 }
 0xbcb   :  { %v1137_v18 = vmul.f32 %v1136_v16, %v1129_v12 }
 0xbcd   :  { %2998 = vmatmul.msk.f32.vlgmr.msra.gmra.mxu2 %vm79_vm2, %v1137_v18 }
 0xbce   :  { %1819 = vmatpush.msra.mxu2 %v3494_v2 }
 0xbd0   :  { %1820 = vmatpush.msra.mxu2 %v3499_v3 }
 0xbd2   :  { %1821 = vmatpush.msra.mxu2 %v3505_v4 }
 0xbd4   :  { %1822 = vmatpush.msra.mxu2 %v3511_v5 }
 0xc50   :  { %v1158_v23 = vpop.f32.mrf.mxu2 }
 0xc51   :  { %v1159_v24 = vadd.f32 %v3642_v47, %v1158_v23 }
 0xc53   :  { %v1162_v30 = vmul.f32 0.044715, %v1159_v24  ;;  %v1161_v37 = vmul.f32 0.5, %v1159_v24 }
 0xc55   :  { %v1163_v31 = vmul.f32 %v1162_v30, %v1159_v24 }
 0xc57   :  { %v1164_v1 = vmul.f32 %v1163_v31, %v1159_v24 }
 0xc59   :  { %v1165_v33 = vadd.f32 %v1164_v1, %v1159_v24 }
 0xc5b   :  { %v1166_v35 = vmul.f32 0.7978846, %v1165_v33 }
 0xc5d   :  { %3083 = vtanh.f32 %v1166_v35 }
 0xc63   :  { %v3084_v36 = vpop.eup %3083 }
 0xc64   :  { %v1168_v38 = vadd.f32 1.0, %v3084_v36 }
 0xc66   :  { %v1169_v40 = vmul.f32 %v1168_v38, %v1161_v37 }
 0xc68   :  { %2999 = vmatmul.msk.f32.vlgmr.msra.gmra.mxu3 %vm79_vm2, %v1169_v40 }
 0xc69   :  { %1843 = vmatpush.msra.mxu3 %v3520_v6 }
 0xc6b   :  { %1844 = vmatpush.msra.mxu3 %v3525_v7 }
 0xc6d   :  { %1845 = vmatpush.msra.mxu3 %v3539_v20 }
 0xc6f   :  { %1846 = vmatpush.msra.mxu3 %v3545_v21 }
 0xceb   :  { %v1190_v46 = vpop.f32.mrf.mxu3 }
 0xcec   :  { %v1191_v48 = vadd.f32 %v3653_v59, %v1190_v46  ;;  %v1466_v46 = vperm.slane %v3592_v29, 4 }
 0xcee   :  { %3085 = vtanh.f32 %v1191_v48  ;;  %v3783_v58 = vmul.f32 0.125, %v1191_v48 }
 0xcf0   :  { %v1200_v60 = vadd.f32 %v3746_v34, %v3783_v58 }
 0xcf4   :  { %v3086_v49 = vpop.eup %3085 }
 0xcf5   :  { %v1194_v50 = vmul.f32 4.0, %v3086_v49 }
 0xcf7   :  { %v1196_v51 = vmul.f32 0.5, %v1194_v50 }
 0xcf9   :  { %v1197_v52 = vmul.f32 1.442695, %v1196_v51 }
 0xcfb   :  { %3087 = vpow2.f32 %v1197_v52 }
 0xd01   :  { %v3088_v53 = vpop.eup %3087 }
 0xd02   :  { %v3779_v55 = vmul.f32 0.35355338, %v3088_v53 }
 0xd04   :  { %v1206_v57 = vmul.f32 %v1204_v54, %v3779_v55 }
 0xd06   :  { %1208 = vrot.lane.b32.xlu1 %v1206_v57, %s3452_s7 }
 0xd78   :  { %v1209_v61 = vpop.permute.xlu1 %1208 }
 0xd79   :  { %v1211_v62 = vadd.f32 %v1209_v61, %v1200_v60 }
 0xd7b   :  { %v1212_v63 = vadd.f32 3.1415927, %v1211_v62 }
 0xd7d   :  { %v1213_v9 = vmul.f32 0.15915494, %v1212_v63 }
 0xd7f   :  { %v1214_v10 = vfloor.f32 %v1213_v9 }
 0xd81   :  { %v1215_v11 = vsub.f32 %v1213_v9, %v1214_v10 }
 0xd83   :  { %v1216_v12 = vmul.f32 6.2831855, %v1215_v11 }
 0xd85   :  { %v3787_v16 = vadd.f32 -3.1415927, %v1216_v12 }
 0xd87   :  { %4986 = vst [vmem:[#allocation8_spill] sm:$0xff] %v3787_v16  ;;  %3004 = vmatmul.msk.f32.vlgmr.msrb.gmra.mxu0 %vm41_vm1, %v3787_v16 }
 0xd88   :  { %1875 = vmatpush.msrb.mxu0 %v3564_v25 }
 0xd8a   :  { %1876 = vmatpush.msrb.mxu0 %v3569_v26 }
 0xd8c   :  { %1877 = vmatpush.msrb.mxu0 %v3575_v27 }
 0xd8e   :  { %1878 = vmatpush.msrb.mxu0 %v3581_v28 }
 0xe04   :  { %v1431_v18 = vpop.f32.mrf.mxu0 }
 0xe05   :  { %v1432_v19 = vadd.f32 %v3532_v8, %v1431_v18 }
 0xe07   :  { %v1435_v23 = vmul.f32 0.044715, %v1432_v19  ;;  %v1434_v35 = vmul.f32 0.5, %v1432_v19 }
 0xe09   :  { %v1436_v24 = vmul.f32 %v1435_v23, %v1432_v19 }
 0xe0b   :  { %v1437_v30 = vmul.f32 %v1436_v24, %v1432_v19 }
 0xe0d   :  { %v1438_v31 = vadd.f32 %v1437_v30, %v1432_v19 }
 0xe0f   :  { %v1439_v1 = vmul.f32 0.7978846, %v1438_v31 }
 0xe11   :  { %3089 = vtanh.f32 %v1439_v1 }
 0xe17   :  { %v3090_v33 = vpop.eup %3089 }
 0xe18   :  { %v1441_v36 = vadd.f32 1.0, %v3090_v33 }
 0xe1a   :  { %v1442_v37 = vmul.f32 %v1441_v36, %v1434_v35 }
 0xe1c   :  { %3005 = vmatmul.msk.f32.vlgmr.msrb.gmra.mxu1 %vm79_vm2, %v1442_v37 }
 0xe1d   :  { %1907 = vmatpush.msrb.mxu1 %v3603_v42 }
 0xe1f   :  { %1908 = vmatpush.msrb.mxu1 %v3608_v43 }
 0xe21   :  { %1909 = vmatpush.msrb.mxu1 %v3615_v44 }
 0xe23   :  { %1910 = vmatpush.msrb.mxu1 %v3622_v45 }
 0xe99   :  { %v1463_v38 = vpop.f32.mrf.mxu1 }
 0xe9a   :  { %v1464_v40 = vadd.f32 %v3555_v22, %v1463_v38 }
 0xe9c   :  { %3006 = vmatmul.msk.f32.vlgmr.msrb.gmra.mxu2 %vm79_vm2, %v1464_v40 }
 0xe9d   :  { %3021 = vmatpush.msk.msrb.mxu2 %vm45_vm0, %v3480_v0  ;;  %v3814_v0 = vld [vmem:[%s4967_s1 + $0x8] sm:$0xff] }
 0xe9e   :  { %1564 = vrot.lane.b32.xlu2 %v3814_v0, %s3451_s29  ;;  %v2285_v38 = vrot.slane %v3814_v0, 4 }
 0xf1f   :  { %v1487_v48 = vpop.f32.mrf.mxu2 }
 0xf20   :  { %v1488_v49 = vadd.f32 %v1487_v48, %v1466_v46  ;;  %v518_v46 = vmul.f32 2.5066283, %v3697_v39 }
 0xf22   :  { %v1491_v50 = vmul.f32 0.044715, %v1488_v49  ;;  %v1490_v60 = vmul.f32 0.5, %v1488_v49 }
 0xf24   :  { %v1492_v51 = vmul.f32 %v1491_v50, %v1488_v49  ;;  %v234_v50 = vand.u32 2147483647, %v3656_v13 }
 0xf26   :  { %v1493_v52 = vmul.f32 %v1492_v51, %v1488_v49  ;;  %vm235_vm6 = vcmp.eq.f32.partialorder %v234_v50, 8.507059e+37 }
 0xf28   :  { %v1494_v53 = vadd.f32 %v1493_v52, %v1488_v49  ;;  %v236_v49 = vand.u32 2147483648, %v3656_v13 }
 0xf2a   :  { %v1495_v54 = vmul.f32 0.7978846, %v1494_v53  ;;  %v237_v52 = vor.u32 1.1754944e-38, %v236_v49  ;;  %v1924_v49 = vrot.slane %v3814_v0, 2 }
 0xf2c   :  { %3091 = vtanh.f32 %v1495_v54  ;;  %1925 = vrot.lane.b32.xlu1 %v1924_v49, %s3451_s29 }
 0xf32   :  { %v3092_v57 = vpop.eup %3091 }
 0xf33   :  { %v1497_v61 = vadd.f32 1.0, %v3092_v57 }
 0xf35   :  { %v1498_v62 = vmul.f32 %v1497_v61, %v1490_v60 }
 0xf37   :  { %3007 = vmatmul.msk.f32.vlgmr.msrb.gmra.mxu3 %vm79_vm2, %v1498_v62 }
 0xf38   :  { %2180 = vmatpush.msrb.mxu3 %v3494_v2 }
 0xf3a   :  { %2181 = vmatpush.msrb.mxu3 %v3499_v3 }
 0xf3c   :  { %2182 = vmatpush.msrb.mxu3 %v3505_v4 }
 0xf3e   :  { %2183 = vmatpush.msrb.mxu3 %v3511_v5 }
 0xfba   :  { %v1519_v63 = vpop.f32.mrf.mxu3 }
 0xfbb   :  { %v1520_v9 = vadd.f32 %v3642_v47, %v1519_v63 }
 0xfbd   :  { %v1523_v10 = vmul.f32 0.044715, %v1520_v9  ;;  %v1522_v18 = vmul.f32 0.5, %v1520_v9 }
 0xfbf   :  { %v1524_v11 = vmul.f32 %v1523_v10, %v1520_v9 }
 0xfc1   :  { %v1525_v2 = vmul.f32 %v1524_v11, %v1520_v9 }
 0xfc3   :  { %v1526_v12 = vadd.f32 %v1525_v2, %v1520_v9 }
 0xfc5   :  { %v1527_v3 = vmul.f32 0.7978846, %v1526_v12 }
 0xfc7   :  { %3093 = vtanh.f32 %v1527_v3 }
 0xfcd   :  { %v3094_v4 = vpop.eup %3093 }
 0xfce   :  { %v1529_v5 = vadd.f32 1.0, %v3094_v4 }
 0xfd0   :  { %v1530_v19 = vmul.f32 %v1529_v5, %v1522_v18 }
 0xfd2   :  { %3008 = vmatmul.msk.f32.vlgmr.msra.gmra.mxu0 %vm79_vm2, %v1530_v19 }
 0xfd3   :  { %2204 = vmatpush.msra.mxu0 %v3520_v6  ;;  %v1565_v6 = vpop.permute.xlu2 %1564 }
 0xfd5   :  { %2205 = vmatpush.msra.mxu0 %v3525_v7 }
 0xfd7   :  { %2206 = vmatpush.msra.mxu0 %v3539_v20 }
 0xfd9   :  { %2207 = vmatpush.msra.mxu0 %v3545_v21 }
0x104f   :  { %v1551_v23 = vpop.f32.mrf.mxu0 }
0x1050   :  { %v1552_v24 = vadd.f32 %v3653_v59, %v1551_v23 }
0x1052   :  { %3095 = vtanh.f32 %v1552_v24  ;;  %v3839_v61 = vmul.f32 0.125, %v1552_v24 }
0x1053   :  { %3097 = vrcp.f32 %v3656_v13 }
0x1054   :  { %v1561_v62 = vadd.f32 %v3787_v16, %v3839_v61 }
0x1058   :  { %v3096_v30 = vpop.eup %3095 }
0x1059   :  { %v1555_v31 = vmul.f32 4.0, %v3096_v30  ;;  %v3098_v35 = vpop.eup %3097 }
0x105a   :  { %v226_v7 = vmul.f32 %v3098_v35, %v3656_v13  ;;  %vm231_vm3 = vweird.f32 %v3098_v35 }
0x105b   :  { %v1557_v1 = vmul.f32 0.5, %v1555_v31  ;;  %vm232_vm5 = vmor %vm230_vm4, %vm231_vm3  ;;  %vm508_vm4 = vweird.f32 %v3697_v39 }
0x105c   :  { %v227_v21 = vsub.f32 1.0, %v226_v7 }
0x105d   :  { %v1558_v33 = vmul.f32 1.442695, %v1557_v1 }
0x105e   :  { %v228_v40 = vmul.f32 %v3098_v35, %v227_v21 }
0x105f   :  { %3099 = vpow2.f32 %v1558_v33 }
0x1060   :  { %v229_v48 = vadd.f32 %v3098_v35, %v228_v40  ;;  %3101 = vlog2.f32 %v518_v46  ;;  %v3402_v40 = vld [vmem:[%s4968_s2 + $0x28] sm:$0xff]  ;;  %v3404_v46 = vld [vmem:[%s4968_s2 + $0x18] sm:$0xff] }
0x1062   :  { %v233_v51 = vsel %vm232_vm5, %v3098_v35, %v229_v48  ;;  %v3405_v48 = vld [vmem:[%s4968_s2 + $0x10] sm:$0xff] }
0x1063   :  { %v238_v54 = vsel %vm235_vm6, %v237_v52, %v233_v51 }
0x1065   :  { %v3100_v36 = vpop.eup %3099 }
0x1066   :  { %v3826_v37 = vmul.f32 0.35355338, %v3100_v36  ;;  %v3102_v53 = vpop.eup %3101 }
0x1067   :  { %v520_v57 = vmul.f32 0.6931472, %v3102_v53 }
0x1068   :  { %v1567_v20 = vmul.f32 %v1565_v6, %v3826_v37 }
0x1069   :  { %v521_v60 = vsub.f32 0.0, %v520_v57 }
0x106a   :  { %1569 = vrot.lane.b32.xlu0 %v1567_v20, %s3452_s7 }
0x1072   :  { %2286 = vrot.lane.b32.xlu0 %v2285_v38, %s3451_s29 }
0x107a   :  { %247 = vrot.lane.b32.xlu0 %v238_v54, %s3452_s7 }
0x1082   :  { %532 = vrot.lane.b32.xlu0 %v521_v60, %s3452_s7 }
0x10dc   :  { %v1570_v63 = vpop.permute.xlu0 %1569 }
0x10dd   :  { %v1572_v9 = vadd.f32 %v1570_v63, %v1561_v62 }
0x10df   :  { %v1573_v10 = vadd.f32 3.1415927, %v1572_v9 }
0x10e1   :  { %v1574_v11 = vmul.f32 0.15915494, %v1573_v10 }
0x10e3   :  { %v1575_v2 = vfloor.f32 %v1574_v11 }
0x10e5   :  { %v1576_v12 = vsub.f32 %v1574_v11, %v1575_v2  ;;  %v3406_v11 = vld [vmem:[%s4968_s2 + $0x50] sm:$0xff]  ;;  %v3408_v2 = vld [vmem:[%s4968_s2 + $0x40] sm:$0xff] }
0x10e7   :  { %v1577_v3 = vmul.f32 6.2831855, %v1576_v12  ;;  %v3409_v12 = vld [vmem:[%s4968_s2 + $0x38] sm:$0xff] }
0x10e9   :  { %v3843_v4 = vadd.f32 -3.1415927, %v1577_v3 }
0x10eb   :  { %4987 = vst [vmem:[#allocation9_spill] sm:$0xff] %v3843_v4  ;;  %3013 = vmatmul.msk.f32.vlgmr.msra.gmra.mxu1 %vm41_vm1, %v3843_v4 }
0x10ec   :  { %2236 = vmatpush.msra.mxu1 %v3564_v25 }
0x10ee   :  { %2237 = vmatpush.msra.mxu1 %v3569_v26  ;;  %v3401_v26 = vld [vmem:[%s4968_s2] sm:$0xf] }
0x10f0   :  { %2238 = vmatpush.msra.mxu1 %v3575_v27  ;;  %v1827_v27 = vperm.slane %v3592_v29, 5  ;;  %v3403_v29 = vld [vmem:[%s4968_s2 + $0x20] sm:$0xff] }
0x10f2   :  { %2239 = vmatpush.msra.mxu1 %v3581_v28 }
0x1168   :  { %v1792_v18 = vpop.f32.mrf.mxu1 }
0x1169   :  { %v1793_v5 = vadd.f32 %v3532_v8, %v1792_v18 }
0x116b   :  { %v1796_v19 = vmul.f32 0.044715, %v1793_v5  ;;  %v1795_v33 = vmul.f32 0.5, %v1793_v5 }
0x116d   :  { %v1797_v23 = vmul.f32 %v1796_v19, %v1793_v5 }
0x116f   :  { %v1798_v24 = vmul.f32 %v1797_v23, %v1793_v5 }
0x1171   :  { %v1799_v30 = vadd.f32 %v1798_v24, %v1793_v5 }
0x1173   :  { %v1800_v31 = vmul.f32 0.7978846, %v1799_v30 }
0x1175   :  { %3103 = vtanh.f32 %v1800_v31  ;;  %v1926_v31 = vpop.permute.xlu1 %1925 }
0x117b   :  { %v3104_v1 = vpop.eup %3103 }
0x117c   :  { %v1802_v35 = vadd.f32 1.0, %v3104_v1 }
0x117e   :  { %v1803_v36 = vmul.f32 %v1802_v35, %v1795_v33 }
0x1180   :  { %3014 = vmatmul.msk.f32.vlgmr.msra.gmra.mxu2 %vm79_vm2, %v1803_v36 }
0x1181   :  { %2268 = vmatpush.msra.mxu2 %v3603_v42 }
0x1183   :  { %2269 = vmatpush.msra.mxu2 %v3608_v43 }
0x1185   :  { %2270 = vmatpush.msra.mxu2 %v3615_v44 }
0x1187   :  { %2271 = vmatpush.msra.mxu2 %v3622_v45 }
0x1203   :  { %v1824_v8 = vpop.f32.mrf.mxu2 }
0x1204   :  { %v1825_v25 = vadd.f32 %v3555_v22, %v1824_v8 }
0x1206   :  { %3015 = vmatmul.msk.f32.vlgmr.msra.gmra.mxu3 %vm79_vm2, %v1825_v25 }
0x1207   :  { %3030 = vmatpush.msk.msra.mxu3 %vm45_vm0, %v3401_v26 }
0x1289   :  { %v1848_v28 = vpop.f32.mrf.mxu3 }
0x128a   :  { %v1849_v42 = vadd.f32 %v1848_v28, %v1827_v27 }
0x128c   :  { %v1852_v43 = vmul.f32 0.044715, %v1849_v42  ;;  %v1851_v22 = vmul.f32 0.5, %v1849_v42 }
0x128e   :  { %v1853_v6 = vmul.f32 %v1852_v43, %v1849_v42 }
0x1290   :  { %v1854_v44 = vmul.f32 %v1853_v6, %v1849_v42 }
0x1292   :  { %v1855_v7 = vadd.f32 %v1854_v44, %v1849_v42 }
0x1294   :  { %v1856_v45 = vmul.f32 0.7978846, %v1855_v7 }
0x1296   :  { %3105 = vtanh.f32 %v1856_v45 }
0x129c   :  { %v3106_v20 = vpop.eup %3105 }
0x129d   :  { %v1858_v21 = vadd.f32 1.0, %v3106_v20 }
0x129f   :  { %v1859_v38 = vmul.f32 %v1858_v21, %v1851_v22  ;;  %v875_v22 = vand.u32 2147483648, %v3738_v14  ;;  %v873_v21 = vand.u32 2147483647, %v3738_v14 }
0x12a1   :  { %3016 = vmatmul.msk.f32.vlgmr.msrb.gmra.mxu0 %vm79_vm2, %v1859_v38  ;;  %vm874_vm14 = vcmp.eq.f32.partialorder %v873_v21, 8.507059e+37 }
0x12a2   :  { %2541 = vmatpush.msrb.mxu0 %v3402_v40  ;;  %v876_v40 = vor.u32 1.1754944e-38, %v875_v22 }
0x12a4   :  { %2542 = vmatpush.msrb.mxu0 %v3403_v29 }
0x12a6   :  { %2543 = vmatpush.msrb.mxu0 %v3404_v46 }
0x12a8   :  { %2544 = vmatpush.msrb.mxu0 %v3405_v48 }
0x131e   :  { %v1880_v50 = vpop.f32.mrf.mxu0 }
0x131f   :  { %v1881_v51 = vadd.f32 %v3642_v47, %v1880_v50  ;;  %v3407_v47 = vld [vmem:[%s4968_s2 + $0x48] sm:$0xff] }
0x1321   :  { %v1884_v52 = vmul.f32 0.044715, %v1881_v51  ;;  %v1883_v63 = vmul.f32 0.5, %v1881_v51 }
0x1323   :  { %v1885_v53 = vmul.f32 %v1884_v52, %v1881_v51 }
0x1325   :  { %v1886_v54 = vmul.f32 %v1885_v53, %v1881_v51 }
0x1327   :  { %v1887_v57 = vadd.f32 %v1886_v54, %v1881_v51 }
0x1329   :  { %v1888_v60 = vmul.f32 0.7978846, %v1887_v57 }
0x132b   :  { %3107 = vtanh.f32 %v1888_v60 }
0x1331   :  { %v3108_v62 = vpop.eup %3107 }
0x1332   :  { %v1890_v9 = vadd.f32 1.0, %v3108_v62  ;;  %v3410_v62 = vld [vmem:[%s4968_s2 + $0x70] sm:$0xff] }
0x1334   :  { %v1891_v10 = vmul.f32 %v1890_v9, %v1883_v63  ;;  %v3411_v63 = vld [vmem:[%s4968_s2 + $0x68] sm:$0xff]  ;;  %v3412_v9 = vld [vmem:[%s4968_s2 + $0x60] sm:$0xff] }
0x1336   :  { %3017 = vmatmul.msk.f32.vlgmr.msrb.gmra.mxu1 %vm79_vm2, %v1891_v10  ;;  %v3413_v10 = vld [vmem:[%s4968_s2 + $0x58] sm:$0xff] }
0x1337   :  { %2565 = vmatpush.msrb.mxu1 %v3406_v11 }
0x1339   :  { %2566 = vmatpush.msrb.mxu1 %v3407_v47  ;;  %v3933_v47 = vld [vmem:[%s4968_s2 + $0x8] ss:$0 sm:$0xff] }
0x133b   :  { %2567 = vmatpush.msrb.mxu1 %v3408_v2 }
0x133d   :  { %2568 = vmatpush.msrb.mxu1 %v3409_v12 }
0x13b3   :  { %v1912_v3 = vpop.f32.mrf.mxu1 }
0x13b4   :  { %v1913_v18 = vadd.f32 %v3653_v59, %v1912_v3 }
0x13b6   :  { %3109 = vtanh.f32 %v1913_v18  ;;  %v3910_v46 = vmul.f32 0.125, %v1913_v18 }
0x13b8   :  { %v1922_v48 = vadd.f32 %v3843_v4, %v3910_v46 }
0x13bc   :  { %v3110_v5 = vpop.eup %3109 }
0x13bd   :  { %v1916_v19 = vmul.f32 4.0, %v3110_v5 }
0x13bf   :  { %v1918_v23 = vmul.f32 0.5, %v1916_v19 }
0x13c1   :  { %v1919_v24 = vmul.f32 1.442695, %v1918_v23 }
0x13c3   :  { %3111 = vpow2.f32 %v1919_v24 }
0x13c4   :  { %3113 = vrcp.f32 %v3738_v14 }
0x13c9   :  { %v3112_v30 = vpop.eup %3111 }
0x13ca   :  { %v3895_v1 = vmul.f32 0.35355338, %v3112_v30  ;;  %v3114_v35 = vpop.eup %3113 }
0x13cb   :  { %v865_v59 = vmul.f32 %v3114_v35, %v3738_v14  ;;  %vm870_vm11 = vweird.f32 %v3114_v35 }
0x13cc   :  { %3115 = vrcp.f32 %v3895_v1  ;;  %v1928_v33 = vmul.f32 %v1926_v31, %v3895_v1  ;;  %v1958_v27 = vand.u32 2147483648, %v3895_v1  ;;  %v1956_v42 = vand.u32 2147483647, %v3895_v1  ;;  %vm871_vm13 = vmor %vm869_vm12, %vm870_vm11 }
0x13cd   :  { %v866_v26 = vsub.f32 1.0, %v865_v59  ;;  %vm1952_vm8 = vweird.f32 %v3895_v1  ;;  %v3417_v59 = vld [vmem:[%s4968_s2 + $0x88] sm:$0xff]  ;;  %vm1230_vm12 = vweird.f32 %v3779_v55 }
0x13ce   :  { %1930 = vrot.lane.b32.xlu2 %v1928_v33, %s3452_s7  ;;  %v1959_v44 = vor.u32 1.1754944e-38, %v1958_v27  ;;  %vm1957_vm10 = vcmp.eq.f32.partialorder %v1956_v42, 8.507059e+37  ;;  %v3415_v33 = vld [vmem:[%s4968_s2 + $0x98] sm:$0xff]  ;;  %v3959_v27 = vld [vmem:[%s4968_s2 + $0xa8] sm:$0xff] }
0x13cf   :  { %v867_v6 = vmul.f32 %v3114_v35, %v866_v26 }
0x13d1   :  { %v868_v20 = vadd.f32 %v3114_v35, %v867_v6 }
0x13d2   :  { %v3116_v36 = vpop.eup %3115 }
0x13d3   :  { %v1948_v8 = vmul.f32 %v3116_v36, %v3895_v1  ;;  %vm1953_vm7 = vweird.f32 %v3116_v36  ;;  %v872_v38 = vsel %vm871_vm13, %v3114_v35, %v868_v20  ;;  %v3416_v35 = vld [vmem:[%s4968_s2 + $0x90] sm:$0xff] }
0x13d4   :  { %vm1954_vm9 = vmor %vm1952_vm8, %vm1953_vm7  ;;  %v877_v29 = vsel %vm874_vm14, %v876_v40, %v872_v38 }
0x13d5   :  { %v1949_v25 = vsub.f32 1.0, %v1948_v8 }
0x13d7   :  { %v1950_v28 = vmul.f32 %v3116_v36, %v1949_v25  ;;  %v3952_v25 = vld [vmem:[%s4968_s2 + $0x30] ss:$0 sm:$0xff] }
0x13d9   :  { %v1951_v43 = vadd.f32 %v3116_v36, %v1950_v28  ;;  %v2188_v28 = vperm.slane %v3959_v27, 6 }
0x13db   :  { %v1955_v7 = vsel %vm1954_vm9, %v3116_v36, %v1951_v43  ;;  %v3418_v36 = vld [vmem:[%s4968_s2 + $0x80] sm:$0xff] }
0x13dc   :  { %v1960_v45 = vsel %vm1957_vm10, %v1959_v44, %v1955_v7  ;;  %vm324_vm10 = vcmask 25600  }
0x13dd   :  { %1969 = vrot.lane.b32.xlu0 %v1960_v45, %s3452_s7 }
0x13e5   :  { %886 = vrot.lane.b32.xlu0 %v877_v29, %s3452_s7 }
0x1428   :  { %v1931_v49 = vpop.permute.xlu2 %1930 }
0x1429   :  { %v1933_v50 = vadd.f32 %v1931_v49, %v1922_v48  ;;  %v3966_v48 = vld [vmem:[%s4968_s2 + $0x78] ss:$0 sm:$0xff] }
0x142b   :  { %v1934_v51 = vadd.f32 3.1415927, %v1933_v50 }
0x142d   :  { %v1935_v52 = vmul.f32 0.15915494, %v1934_v51 }
0x142f   :  { %v1936_v53 = vfloor.f32 %v1935_v52 }
0x1431   :  { %v1937_v54 = vsub.f32 %v1935_v52, %v1936_v53 }
0x1433   :  { %v1938_v57 = vmul.f32 6.2831855, %v1937_v54 }
0x1435   :  { %v3914_v60 = vadd.f32 -3.1415927, %v1938_v57 }
0x1437   :  { %4988 = vst [vmem:[#allocation10_spill] sm:$0xff] %v3914_v60  ;;  %3022 = vmatmul.msk.f32.vlgmr.msrb.gmra.mxu2 %vm41_vm1, %v3914_v60 }
0x1438   :  { %2597 = vmatpush.msrb.mxu2 %v3410_v62 }
0x143a   :  { %2598 = vmatpush.msrb.mxu2 %v3411_v63 }
0x143c   :  { %2599 = vmatpush.msrb.mxu2 %v3412_v9 }
0x143e   :  { %2600 = vmatpush.msrb.mxu2 %v3413_v10 }
0x14ba   :  { %v2153_v11 = vpop.f32.mrf.mxu2 }
0x14bb   :  { %v2154_v2 = vadd.f32 %v3933_v47, %v2153_v11  ;;  %v3422_v11 = vld [vmem:[%s4968_s2 + $0xa0] ss:$0 sm:$0xff] }
0x14bd   :  { %v2157_v12 = vmul.f32 0.044715, %v2154_v2  ;;  %v2156_v24 = vmul.f32 0.5, %v2154_v2 }
0x14bf   :  { %v2158_v3 = vmul.f32 %v2157_v12, %v2154_v2 }
0x14c1   :  { %v2159_v18 = vmul.f32 %v2158_v3, %v2154_v2 }
0x14c3   :  { %v2160_v5 = vadd.f32 %v2159_v18, %v2154_v2 }
0x14c5   :  { %v2161_v19 = vmul.f32 0.7978846, %v2160_v5 }
0x14c7   :  { %3117 = vtanh.f32 %v2161_v19  ;;  %v240_v19 = vmul.f32 2.5066283, %v3656_v13 }
0x14cd   :  { %v3118_v23 = vpop.eup %3117 }
0x14ce   :  { %v2163_v30 = vadd.f32 1.0, %v3118_v23 }
0x14d0   :  { %v2164_v31 = vmul.f32 %v2163_v30, %v2156_v24 }
0x14d2   :  { %3023 = vmatmul.msk.f32.vlgmr.msrb.gmra.mxu3 %vm79_vm2, %v2164_v31 }
0x14d3   :  { %2629 = vmatpush.msrb.mxu3 %v3415_v33  ;;  %v2287_v33 = vpop.permute.xlu0 %2286 }
0x14d5   :  { %2630 = vmatpush.msrb.mxu3 %v3416_v35 }
0x14d7   :  { %2631 = vmatpush.msrb.mxu3 %v3417_v59 }
0x14d9   :  { %2632 = vmatpush.msrb.mxu3 %v3418_v36 }
0x1555   :  { %v2185_v8 = vpop.f32.mrf.mxu3 }
0x1556   :  { %v2186_v26 = vadd.f32 %v3952_v25, %v2185_v8 }
0x1558   :  { %3024 = vmatmul.msk.f32.vlgmr.msra.gmra.mxu0 %vm79_vm2, %v2186_v26 }
0x15d5   :  { %v2209_v42 = vpop.f32.mrf.mxu0 }
0x15d6   :  { %v2210_v43 = vadd.f32 %v2209_v42, %v2188_v28 }
0x15d8   :  { %v2213_v6 = vmul.f32 0.044715, %v2210_v43  ;;  %v2212_v21 = vmul.f32 0.5, %v2210_v43 }
0x15da   :  { %v2214_v44 = vmul.f32 %v2213_v6, %v2210_v43 }
0x15dc   :  { %v2215_v7 = vmul.f32 %v2214_v44, %v2210_v43 }
0x15de   :  { %v2216_v45 = vadd.f32 %v2215_v7, %v2210_v43 }
0x15e0   :  { %v2217_v20 = vmul.f32 0.7978846, %v2216_v45 }
0x15e2   :  { %3119 = vtanh.f32 %v2217_v20  ;;  %v514_v20 = vand.u32 2147483648, %v3697_v39 }
0x15e8   :  { %v3120_v22 = vpop.eup %3119 }
0x15e9   :  { %v2219_v38 = vadd.f32 1.0, %v3120_v22  ;;  %v512_v22 = vand.u32 2147483647, %v3697_v39 }
0x15eb   :  { %v2220_v40 = vmul.f32 %v2219_v38, %v2212_v21  ;;  %vm513_vm9 = vcmp.eq.f32.partialorder %v512_v22, 8.507059e+37 }
0x15ed   :  { %3025 = vmatmul.msk.f32.vlgmr.msra.gmra.mxu1 %vm79_vm2, %v2220_v40 }
0x166a   :  { %v2241_v29 = vpop.f32.mrf.mxu1 }
0x166b   :  { %v2242_v49 = vadd.f32 %v3966_v48, %v2241_v29 }
0x166d   :  { %v2245_v50 = vmul.f32 0.044715, %v2242_v49  ;;  %v2244_v62 = vmul.f32 0.5, %v2242_v49 }
0x166f   :  { %v2246_v51 = vmul.f32 %v2245_v50, %v2242_v49 }
0x1671   :  { %v2247_v52 = vmul.f32 %v2246_v51, %v2242_v49 }
0x1673   :  { %v2248_v53 = vadd.f32 %v2247_v52, %v2242_v49  ;;  %v515_v49 = vor.u32 1.1754944e-38, %v514_v20 }
0x1675   :  { %v2249_v54 = vmul.f32 0.7978846, %v2248_v53 }
0x1677   :  { %3121 = vtanh.f32 %v2249_v54 }
0x167d   :  { %v3122_v57 = vpop.eup %3121 }
0x167e   :  { %v2251_v63 = vadd.f32 1.0, %v3122_v57 }
0x1680   :  { %v2252_v9 = vmul.f32 %v2251_v63, %v2244_v62  ;;  %v496_v63 = vsub.f32 %v3705_v56, %v3664_v32 }
0x1682   :  { %3026 = vmatmul.msk.f32.vlgmr.msra.gmra.mxu2 %vm79_vm2, %v2252_v9 }
0x1705   :  { %v2273_v10 = vpop.f32.mrf.mxu2 }
0x1706   :  { %v2274_v2 = vadd.f32 %v3422_v11, %v2273_v10  ;;  %v497_v10 = vadd.f32 3.1415927, %v496_v63 }
0x1708   :  { %3123 = vtanh.f32 %v2274_v2 }
0x1709   :  { %3125 = vrcp.f32 %v3697_v39 }
0x170e   :  { %v3124_v12 = vpop.eup %3123 }
0x170f   :  { %v2277_v3 = vmul.f32 4.0, %v3124_v12  ;;  %v3126_v23 = vpop.eup %3125  ;;  %v498_v12 = vmul.f32 0.15915494, %v497_v10 }
0x1710   :  { %v504_v31 = vmul.f32 %v3126_v23, %v3697_v39  ;;  %vm509_vm15 = vweird.f32 %v3126_v23  ;;  %v3423_v39 = vld [vmem:[%s4966_s0] sm:$0x3] }
0x1711   :  { %v2279_v18 = vmul.f32 0.5, %v2277_v3  ;;  %vm510_vm6 = vmor %vm508_vm4, %vm509_vm15  ;;  %v218_v52 = vsub.f32 %v3664_v32, %v3423_v39  ;;  %vm2868_vm15 = vcmask 1041408  }
0x1712   :  { %v505_v36 = vsub.f32 1.0, %v504_v31 }
0x1713   :  { %v2280_v5 = vmul.f32 1.442695, %v2279_v18  ;;  %v219_v53 = vadd.f32 3.1415927, %v218_v52  ;;  %v3998_v18 = vmul.f32 0.125, %v2274_v2 }
0x1714   :  { %v506_v28 = vmul.f32 %v3126_v23, %v505_v36  ;;  %v2646_v36 = vrot.slane %v3814_v0, 6 }
0x1715   :  { %3127 = vpow2.f32 %v2280_v5  ;;  %v220_v54 = vmul.f32 0.15915494, %v219_v53  ;;  %v499_v5 = vfloor.f32 %v498_v12 }
0x1716   :  { %3129 = vlog2.f32 %v240_v19  ;;  %v507_v44 = vadd.f32 %v3126_v23, %v506_v28  ;;  %v248_v19 = vpop.permute.xlu0 %247  ;;  %2647 = vrot.lane.b32.xlu2 %v2646_v36, %s3451_s29 }
0x1717   :  { %v221_v57 = vfloor.f32 %v220_v54 }
0x1718   :  { %v511_v40 = vsel %vm510_vm6, %v3126_v23, %v507_v44 }
0x1719   :  { %v516_v51 = vsel %vm513_vm9, %v515_v49, %v511_v40  ;;  %v222_v62 = vsub.f32 %v220_v54, %v221_v57 }
0x171b   :  { %v3128_v24 = vpop.eup %3127  ;;  %v223_v9 = vmul.f32 6.2831855, %v222_v62 }
0x171c   :  { %v3975_v30 = vmul.f32 0.35355338, %v3128_v24  ;;  %v3130_v59 = vpop.eup %3129 }
0x171d   :  { %v242_v8 = vmul.f32 0.6931472, %v3130_v59  ;;  %v2975_v11 = vadd.f32 -3.1415927, %v223_v9  ;;  %v2283_v59 = vadd.f32 %v3914_v60, %v3998_v18 }
0x171e   :  { %3131 = vrcp.f32 %v3975_v30  ;;  %v2289_v35 = vmul.f32 %v2287_v33, %v3975_v30  ;;  %v2319_v6 = vand.u32 2147483648, %v3975_v30  ;;  %v2317_v45 = vand.u32 2147483647, %v3975_v30 }
0x171f   :  { %v243_v42 = vsub.f32 0.0, %v242_v8  ;;  %vm2313_vm5 = vweird.f32 %v3975_v30  ;;  %v244_v3 = vsub.f32 %v2975_v11, %v3660_v15  ;;  %v500_v8 = vsub.f32 %v498_v12, %v499_v5 }
0x1720   :  { %2291 = vrot.lane.b32.xlu1 %v2289_v35, %s3452_s7  ;;  %v2320_v38 = vor.u32 1.1754944e-38, %v2319_v6  ;;  %vm2318_vm8 = vcmp.eq.f32.partialorder %v2317_v45, 8.507059e+37 }
0x1721   :  { %v245_v23 = vadd.f32 -18.849556, %v244_v3  ;;  %v258_v24 = vadd.f32 -12.566371, %v244_v3  ;;  %v263_v31 = vadd.f32 -6.2831855, %v244_v3 }
0x1722   :  { %v273_v15 = vadd.f32 6.2831855, %v244_v3  ;;  %v501_v44 = vmul.f32 6.2831855, %v500_v8  ;;  %v283_v0 = vadd.f32 18.849556, %v244_v3 }
0x1723   :  { %v250_v33 = vmul.f32 %v248_v19, %v245_v23  ;;  %v259_v35 = vmul.f32 %v258_v24, %v248_v19 }
0x1724   :  { %v3132_v26 = vpop.eup %3131  ;;  %v274_v20 = vmul.f32 %v273_v15, %v248_v19  ;;  %v284_v54 = vmul.f32 %v283_v0, %v248_v19 }
0x1725   :  { %v2309_v13 = vmul.f32 %v3132_v26, %v3975_v30  ;;  %vm2314_vm3 = vweird.f32 %v3132_v26  ;;  %v251_v2 = vmul.f32 %v250_v33, %v250_v33 }
0x1726   :  { %vm2315_vm7 = vmor %vm2313_vm5, %vm2314_vm3  ;;  %v275_v52 = vmul.f32 %v274_v20, %v274_v20  ;;  %vm1591_vm3 = vweird.f32 %v3826_v37 }
0x1727   :  { %v2310_v43 = vsub.f32 1.0, %v2309_v13  ;;  %v252_v40 = vmul.f32 -0.5, %v251_v2 }
0x1728   :  { %254 = vrot.lane.b32.xlu1 %v243_v42, %s3452_s7  ;;  %v260_v42 = vmul.f32 %v259_v35, %v259_v35 }
0x1729   :  { %v2311_v7 = vmul.f32 %v3132_v26, %v2310_v43  ;;  %v269_v43 = vmul.f32 %v248_v19, %v244_v3 }
0x172b   :  { %v2312_v21 = vadd.f32 %v3132_v26, %v2311_v7  ;;  %v278_v7 = vadd.f32 12.566371, %v244_v3  ;;  %v270_v49 = vmul.f32 %v269_v43, %v269_v43  ;;  %v276_v3 = vmul.f32 -0.5, %v275_v52 }
0x172d   :  { %v2316_v29 = vsel %vm2315_vm7, %v3132_v26, %v2312_v21  ;;  %v264_v26 = vmul.f32 %v263_v31, %v248_v19  ;;  %v605_v21 = vsub.f32 %v3664_v32, %v3705_v56  ;;  %v271_v11 = vmul.f32 -0.5, %v270_v49 }
0x172e   :  { %v2321_v50 = vsel %vm2318_vm8, %v2320_v38, %v2316_v29  ;;  %v279_v38 = vmul.f32 %v278_v7, %v248_v19  ;;  %v261_v29 = vmul.f32 -0.5, %v260_v42  ;;  %v285_v31 = vmul.f32 %v284_v54, %v284_v54 }
0x172f   :  { %2330 = vrot.lane.b32.xlu0 %v2321_v50, %s3452_s7  ;;  %v265_v45 = vmul.f32 %v264_v26, %v264_v26  ;;  %v606_v9 = vadd.f32 3.1415927, %v605_v21 }
0x1730   :  { %525 = vrot.lane.b32.xlu1 %v516_v51, %s3452_s7  ;;  %v2983_v51 = vadd.f32 -3.1415927, %v501_v44  ;;  %v280_v10 = vmul.f32 %v279_v38, %v279_v38  ;;  %v286_v2 = vmul.f32 -0.5, %v285_v31 }
0x1731   :  { %v266_v39 = vmul.f32 -0.5, %v265_v45  ;;  %v607_v36 = vmul.f32 0.15915494, %v606_v9 }
0x1732   :  { %v522_v24 = vsub.f32 %v2983_v51, %v3701_v41  ;;  %v281_v8 = vmul.f32 -0.5, %v280_v10  ;;  %v533_v10 = vpop.permute.xlu0 %532 }
0x1733   :  { %v608_v44 = vfloor.f32 %v607_v36 }
0x1734   :  { %v541_v21 = vadd.f32 -6.2831855, %v522_v24  ;;  %v551_v54 = vadd.f32 6.2831855, %v522_v24 }
0x1735   :  { %v609_v38 = vsub.f32 %v607_v36, %v608_v44 }
0x1737   :  { %v610_v9 = vmul.f32 6.2831855, %v609_v38 }
0x1792   :  { %v2292_v28 = vpop.permute.xlu1 %2291 }
0x1793   :  { %v2294_v13 = vadd.f32 %v2292_v28, %v2283_v59  ;;  %v523_v28 = vadd.f32 -18.849556, %v522_v24 }
0x1795   :  { %v2295_v6 = vadd.f32 3.1415927, %v2294_v13  ;;  %v536_v13 = vadd.f32 -12.566371, %v522_v24 }
0x1797   :  { %v2296_v22 = vmul.f32 0.15915494, %v2295_v6 }
0x1799   :  { %v2297_v50 = vfloor.f32 %v2296_v22 }
0x179a   :  { %v255_v53 = vpop.permute.xlu1 %254 }
0x179b   :  { %v2298_v57 = vsub.f32 %v2296_v22, %v2297_v50  ;;  %v257_v62 = vadd.f32 %v255_v53, %v252_v40  ;;  %v262_v63 = vadd.f32 %v261_v29, %v255_v53  ;;  %v267_v5 = vadd.f32 %v266_v39, %v255_v53 }
0x179c   :  { %v272_v35 = vadd.f32 %v271_v11, %v255_v53  ;;  %v277_v19 = vadd.f32 %v276_v3, %v255_v53  ;;  %v4011_v42 = vadd.f32 %v281_v8, %v255_v53  ;;  %v4013_v7 = vadd.f32 %v286_v2, %v255_v53 }
0x179d   :  { %v2299_v12 = vmul.f32 6.2831855, %v2298_v57  ;;  %v288_v23 = vmax.f32 %v257_v62, %v262_v63 }
0x179f   :  { %v4007_v33 = vadd.f32 -3.1415927, %v2299_v12  ;;  %v289_v59 = vmax.f32 %v288_v23, %v267_v5  ;;  %v556_v12 = vadd.f32 12.566371, %v522_v24 }
0x17a1   :  { %4989 = vst [vmem:[#allocation11_spill] sm:$0xff] %v4007_v33  ;;  %v290_v26 = vmax.f32 %v289_v59, %v272_v35  ;;  %3031 = vmatmul.msk.f32.vlgmr.msra.gmra.mxu3 %vm41_vm1, %v4007_v33 }
0x17a2   :  { %v526_v15 = vpop.permute.xlu1 %525 }
0x17a3   :  { %v291_v43 = vmax.f32 %v290_v26, %v277_v19  ;;  %v528_v41 = vmul.f32 %v526_v15, %v523_v28  ;;  %v537_v6 = vmul.f32 %v536_v13, %v526_v15  ;;  %v542_v49 = vmul.f32 %v541_v21, %v526_v15 }
0x17a4   :  { %v547_v39 = vmul.f32 %v526_v15, %v522_v24  ;;  %v552_v3 = vmul.f32 %v551_v54, %v526_v15  ;;  %v557_v8 = vmul.f32 %v556_v12, %v526_v15  ;;  %v612_v26 = vsub.f32 0.0, %v3705_v56 }
0x17a5   :  { %v292_v45 = vmax.f32 %v291_v43, %v4011_v42  ;;  %v529_v22 = vmul.f32 %v528_v41, %v528_v41  ;;  %v538_v0 = vmul.f32 %v537_v6, %v537_v6  ;;  %v543_v23 = vmul.f32 %v542_v49, %v542_v49 }
0x17a6   :  { %v553_v2 = vmul.f32 %v552_v3, %v552_v3  ;;  %v558_v6 = vmul.f32 %v557_v8, %v557_v8 }
0x17a7   :  { %v4017_v20 = vmax.f32 %v292_v45, %v4013_v7  ;;  %v530_v51 = vmul.f32 -0.5, %v529_v22  ;;  %v539_v57 = vmul.f32 -0.5, %v538_v0  ;;  %v544_v13 = vmul.f32 -0.5, %v543_v23 }
0x17a8   :  { %v613_v45 = vmul.f32 0.5, %v612_v26  ;;  %v554_v38 = vmul.f32 -0.5, %v553_v2  ;;  %v559_v49 = vmul.f32 -0.5, %v558_v6 }
0x17a9   :  { %v294_v40 = vsub.f32 %v257_v62, %v4017_v20  ;;  %v297_v29 = vsub.f32 %v262_v63, %v4017_v20  ;;  %v301_v53 = vsub.f32 %v267_v5, %v4017_v20  ;;  %v305_v11 = vsub.f32 %v272_v35, %v4017_v20 }
0x17aa   :  { %v561_v62 = vadd.f32 18.849556, %v522_v24  ;;  %v535_v31 = vadd.f32 %v533_v10, %v530_v51  ;;  %v548_v63 = vmul.f32 %v547_v39, %v547_v39  ;;  %v540_v36 = vadd.f32 %v539_v57, %v533_v10 }
0x17ab   :  { %v295_v50 = vmul.f32 1.442695, %v294_v40  ;;  %v298_v52 = vmul.f32 1.442695, %v297_v29  ;;  %v302_v59 = vmul.f32 1.442695, %v301_v53  ;;  %v309_v5 = vsub.f32 %v277_v19, %v4017_v20 }
0x17ac   :  { %v306_v28 = vmul.f32 1.442695, %v305_v11  ;;  %v562_v43 = vmul.f32 %v561_v62, %v526_v15  ;;  %v2984_v35 = vadd.f32 -3.1415927, %v610_v9  ;;  %v549_v41 = vmul.f32 -0.5, %v548_v63 }
0x17ad   :  { %3133 = vpow2.f32 %v295_v50  ;;  %v566_v44 = vmax.f32 %v535_v31, %v540_v36  ;;  %v310_v22 = vmul.f32 1.442695, %v309_v5  ;;  %v545_v0 = vadd.f32 %v544_v13, %v533_v10 }
0x17ae   :  { %3135 = vpow2.f32 %v298_v52  ;;  %v563_v40 = vmul.f32 %v562_v43, %v562_v43  ;;  %v4025_v29 = vsub.f32 %v2984_v35, %v613_v45  ;;  %v550_v19 = vadd.f32 %v549_v41, %v533_v10 }
0x17af   :  { %3137 = vpow2.f32 %v302_v59  ;;  %v567_v50 = vmax.f32 %v566_v44, %v545_v0  ;;  %v313_v15 = vsub.f32 %v4011_v42, %v4017_v20  ;;  %v317_v39 = vsub.f32 %v4013_v7, %v4017_v20 }
0x17b0   :  { %3139 = vpow2.f32 %v306_v28  ;;  %v555_v53 = vadd.f32 %v554_v38, %v533_v10  ;;  %v564_v54 = vmul.f32 -0.5, %v563_v40  ;;  %v560_v3 = vadd.f32 %v559_v49, %v533_v10 }
0x17b1   :  { %3141 = vpow2.f32 %v310_v22  ;;  %v568_v57 = vmax.f32 %v567_v50, %v550_v19  ;;  %v314_v11 = vmul.f32 1.442695, %v313_v15  ;;  %v318_v12 = vmul.f32 1.442695, %v317_v39 }
0x17b2   :  { %v615_v63 = vadd.f32 -18.849556, %v4025_v29  ;;  %v620_v8 = vadd.f32 -12.566371, %v4025_v29  ;;  %v565_v26 = vadd.f32 %v564_v54, %v533_v10  ;;  %v631_v54 = vmul.f32 4.0, %v4025_v29 }
0x17b3   :  { %v3134_v24 = vpop.eup %3133  ;;  %v569_v62 = vmax.f32 %v568_v57, %v555_v53  ;;  %3143 = vpow2.f32 %v314_v11 }
0x17b4   :  { %v3136_v21 = vpop.eup %3135  ;;  %3145 = vpow2.f32 %v318_v12  ;;  %v616_v13 = vmul.f32 4.0, %v615_v63  ;;  %v621_v2 = vmul.f32 4.0, %v620_v8  ;;  %v632_v8 = vmul.f32 %v631_v54, %v631_v54 }
0x17b5   :  { %v300_v51 = vadd.f32 %v3136_v21, %v3134_v24  ;;  %v3138_v52 = vpop.eup %3137  ;;  %v570_v42 = vmax.f32 %v569_v62, %v560_v3  ;;  %v625_v24 = vadd.f32 -6.2831855, %v4025_v29 }
0x17b6   :  { %v3140_v23 = vpop.eup %3139  ;;  %v617_v21 = vmul.f32 %v616_v13, %v616_v13  ;;  %v622_v50 = vmul.f32 %v621_v2, %v621_v2 }
0x17b7   :  { %v304_v9 = vadd.f32 %v3138_v52, %v300_v51  ;;  %v3142_v5 = vpop.eup %3141  ;;  %v4033_v28 = vmax.f32 %v570_v42, %v565_v26  ;;  %v640_v42 = vadd.f32 12.566371, %v4025_v29 }
0x17b8   :  { %v623_v52 = vmul.f32 -0.5, %v622_v50 }
0x17b9   :  { %v308_v59 = vadd.f32 %v3140_v23, %v304_v9  ;;  %v572_v43 = vsub.f32 %v535_v31, %v4033_v28  ;;  %v575_v35 = vsub.f32 %v540_v36, %v4033_v28  ;;  %v579_v41 = vsub.f32 %v545_v0, %v4033_v28  ;;  %v3144_v6 = vpop.eup %3143 }
0x17ba   :  { %v583_v44 = vsub.f32 %v550_v19, %v4033_v28  ;;  %v3146_v38 = vpop.eup %3145  ;;  %v587_v49 = vsub.f32 %v555_v53, %v4033_v28  ;;  %v591_v36 = vsub.f32 %v560_v3, %v4033_v28  ;;  %v626_v0 = vmul.f32 4.0, %v625_v24 }
0x17bb   :  { %v312_v7 = vadd.f32 %v3142_v5, %v308_v59  ;;  %v573_v10 = vmul.f32 1.442695, %v572_v43  ;;  %v576_v22 = vmul.f32 1.442695, %v575_v35  ;;  %v580_v40 = vmul.f32 1.442695, %v579_v41 }
0x17bc   :  { %v584_v31 = vmul.f32 1.442695, %v583_v44  ;;  %v618_v19 = vmul.f32 -0.5, %v617_v21  ;;  %v588_v15 = vmul.f32 1.442695, %v587_v49  ;;  %v595_v39 = vsub.f32 %v565_v26, %v4033_v28 }
0x17bd   :  { %v316_v45 = vadd.f32 %v3144_v6, %v312_v7  ;;  %3147 = vpow2.f32 %v573_v10  ;;  %v592_v57 = vmul.f32 1.442695, %v591_v36  ;;  %v627_v53 = vmul.f32 %v626_v0, %v626_v0 }
0x17be   :  { %3149 = vpow2.f32 %v576_v22  ;;  %v635_v9 = vadd.f32 6.2831855, %v4025_v29  ;;  %v596_v23 = vmul.f32 1.442695, %v595_v39  ;;  %v4045_v3 = vadd.f32 0.46735582, %v618_v19 }
0x17bf   :  { %v320_v51 = vadd.f32 %v3146_v38, %v316_v45  ;;  %v4047_v62 = vadd.f32 0.46735582, %v623_v52  ;;  %v628_v7 = vmul.f32 -0.5, %v627_v53  ;;  %v641_v44 = vmul.f32 4.0, %v640_v42 }
0x17c0   :  { %v636_v13 = vmul.f32 4.0, %v635_v9  ;;  %v645_v24 = vadd.f32 18.849556, %v4025_v29  ;;  %v633_v21 = vmul.f32 -0.5, %v632_v8  ;;  %v2323_v42 = vmul.f32 2.5066283, %v3975_v30 }
0x17c1   :  { %3151 = vlog2.f32 %v320_v51  ;;  %v650_v41 = vmax.f32 %v4045_v3, %v4047_v62  ;;  %v4056_v22 = vadd.f32 0.46735582, %v628_v7  ;;  %v642_v19 = vmul.f32 %v641_v44, %v641_v44 }
0x17c2   :  { %3153 = vpow2.f32 %v580_v40  ;;  %v637_v38 = vmul.f32 %v636_v13, %v636_v13  ;;  %v634_v36 = vadd.f32 0.46735582, %v633_v21  ;;  %v1962_v21 = vmul.f32 2.5066283, %v3895_v1 }
0x17c3   :  { %3155 = vpow2.f32 %v584_v31  ;;  %v3148_v11 = vpop.eup %3147  ;;  %v651_v50 = vmax.f32 %v650_v41, %v4056_v22  ;;  %v1234_v41 = vand.u32 2147483647, %v3779_v55 }
0x17c4   :  { %v3150_v12 = vpop.eup %3149  ;;  %3157 = vpow2.f32 %v588_v15  ;;  %v638_v0 = vmul.f32 -0.5, %v637_v38  ;;  %v646_v15 = vmul.f32 4.0, %v645_v24 }
0x17c5   :  { %3159 = vrcp.f32 %v3779_v55  ;;  %v578_v59 = vadd.f32 %v3150_v12, %v3148_v11  ;;  %v652_v52 = vmax.f32 %v651_v50, %v634_v36  ;;  %vm1235_vm14 = vcmp.eq.f32.partialorder %v1234_v41, 8.507059e+37 }
0x17c6   :  { %3161 = vpow2.f32 %v592_v57  ;;  %v639_v54 = vadd.f32 0.46735582, %v638_v0  ;;  %v643_v57 = vmul.f32 -0.5, %v642_v19  ;;  %v647_v53 = vmul.f32 %v646_v15, %v646_v15 }
0x17c7   :  { %v3152_v63 = vpop.eup %3151  ;;  %3163 = vpow2.f32 %v596_v23 }
0x17c8   :  { %v3154_v26 = vpop.eup %3153  ;;  %v322_v5 = vmul.f32 0.6931472, %v3152_v63  ;;  %v653_v11 = vmax.f32 %v652_v52, %v639_v54  ;;  %v644_v12 = vadd.f32 0.46735582, %v643_v57  ;;  %v648_v23 = vmul.f32 -0.5, %v647_v53 }
0x17c9   :  { %v582_v2 = vadd.f32 %v3154_v26, %v578_v59  ;;  %v3156_v43 = vpop.eup %3155 }
0x17ca   :  { %v323_v35 = vadd.f32 %v322_v5, %v4017_v20  ;;  %v3158_v45 = vpop.eup %3157  ;;  %v654_v26 = vmax.f32 %v653_v11, %v644_v12  ;;  %v649_v7 = vadd.f32 0.46735582, %v648_v23 }
0x17cb   :  { %v586_v6 = vadd.f32 %v3156_v43, %v582_v2  ;;  %v3160_v40 = vpop.eup %3159  ;;  %v1236_v43 = vand.u32 2147483648, %v3779_v55 }
0x17cc   :  { %v325_v10 = vsel %vm324_vm10, %v323_v35, 0.0  ;;  %v3162_v20 = vpop.eup %3161  ;;  %v1226_v39 = vmul.f32 %v3160_v40, %v3779_v55  ;;  %vm1231_vm11 = vweird.f32 %v3160_v40  ;;  %v4064_v35 = vmax.f32 %v654_v26, %v649_v7 }
0x17cd   :  { %326 = vadd.xlane.f32.xlu2 %v325_v10  ;;  %v590_v49 = vadd.f32 %v3158_v45, %v586_v6  ;;  %v3164_v31 = vpop.eup %3163  ;;  %vm1232_vm13 = vmor %vm1230_vm12, %vm1231_vm11  ;;  %v1237_v6 = vor.u32 1.1754944e-38, %v1236_v43  ;;  %vm2871_vm11 = vcmask 1045504   ;;  %vm2945_vm12 = vcmask 48128  }
0x17ce   :  { %v1227_v9 = vsub.f32 1.0, %v1226_v39  ;;  %v656_v44 = vsub.f32 %v4045_v3, %v4064_v35  ;;  %v659_v24 = vsub.f32 %v4047_v62, %v4064_v35  ;;  %v675_v53 = vsub.f32 %v644_v12, %v4064_v35 }
0x17cf   :  { %v594_v51 = vadd.f32 %v3162_v20, %v590_v49  ;;  %v663_v20 = vsub.f32 %v4056_v22, %v4064_v35 }
0x17d0   :  { %v1228_v59 = vmul.f32 %v3160_v40, %v1227_v9  ;;  %v657_v38 = vmul.f32 1.442695, %v656_v44  ;;  %v676_v23 = vmul.f32 1.442695, %v675_v53 }
0x17d1   :  { %v598_v29 = vadd.f32 %v3164_v31, %v594_v51  ;;  %v664_v62 = vmul.f32 1.442695, %v663_v20  ;;  %v667_v51 = vsub.f32 %v634_v36, %v4064_v35 }
0x17d2   :  { %v1229_v13 = vadd.f32 %v3160_v40, %v1228_v59 }
0x17d3   :  { %3165 = vlog2.f32 %v598_v29  ;;  %v668_v15 = vmul.f32 1.442695, %v667_v51  ;;  %v671_v29 = vsub.f32 %v639_v54, %v4064_v35 }
0x17d4   :  { %3167 = vlog2.f32 %v2323_v42  ;;  %v1233_v30 = vsel %vm1232_vm13, %v3160_v40, %v1229_v13  ;;  %v660_v40 = vmul.f32 1.442695, %v659_v24 }
0x17d5   :  { %v1238_v10 = vsel %vm1235_vm14, %v1237_v6, %v1233_v30  ;;  %v672_v57 = vmul.f32 1.442695, %v671_v29 }
0x17d9   :  { %v3166_v63 = vpop.eup %3165 }
0x17da   :  { %v600_v8 = vmul.f32 0.6931472, %v3166_v63  ;;  %v3168_v45 = vpop.eup %3167  ;;  %v679_v63 = vsub.f32 %v649_v7, %v4064_v35 }
0x17db   :  { %v2325_v49 = vmul.f32 0.6931472, %v3168_v45 }
0x17dc   :  { %v601_v5 = vadd.f32 %v600_v8, %v4033_v28  ;;  %v1601_v28 = vmul.f32 2.5066283, %v3826_v37  ;;  %v680_v8 = vmul.f32 1.442695, %v679_v63 }
0x17dd   :  { %v2326_v3 = vsub.f32 0.0, %v2325_v49 }
0x17de   :  { %v602_v2 = vsel %vm324_vm10, %v601_v5, 0.0  ;;  %3169 = vlog2.f32 %v1601_v28 }
0x17df   :  { %603 = vadd.xlane.f32.xlu1 %v602_v2  ;;  %3171 = vlog2.f32 %v1962_v21 }
0x17e0   :  { %3173 = vpow2.f32 %v657_v38 }
0x17e1   :  { %3175 = vpow2.f32 %v660_v40 }
0x17e2   :  { %3177 = vpow2.f32 %v664_v62 }
0x17e3   :  { %3179 = vpow2.f32 %v668_v15 }
0x17e4   :  { %v3170_v50 = vpop.eup %3169  ;;  %3181 = vpow2.f32 %v672_v57 }
0x17e5   :  { %1247 = vrot.lane.b32.xlu2 %v1238_v10, %s3452_s7  ;;  %v3172_v31 = vpop.eup %3171  ;;  %v1603_v0 = vmul.f32 0.6931472, %v3170_v50  ;;  %3183 = vpow2.f32 %v676_v23 }
0x17e6   :  { %v3174_v1 = vpop.eup %3173  ;;  %v1964_v39 = vmul.f32 0.6931472, %v3172_v31  ;;  %3185 = vpow2.f32 %v680_v8 }
0x17e7   :  { %v3176_v19 = vpop.eup %3175  ;;  %v1604_v52 = vsub.f32 0.0, %v1603_v0  ;;  %v2549_v0 = vperm.slane %v3959_v27, 7 }
0x17e8   :  { %v662_v22 = vadd.f32 %v3176_v19, %v3174_v1  ;;  %v1965_v9 = vsub.f32 0.0, %v1964_v39  ;;  %v3178_v11 = vpop.eup %3177 }
0x17e9   :  { %v3180_v59 = vpop.eup %3179 }
0x17ea   :  { %v666_v36 = vadd.f32 %v3178_v11, %v662_v22  ;;  %v3182_v42 = vpop.eup %3181 }
0x17eb   :  { %v3184_v5 = vpop.eup %3183 }
0x17ec   :  { %v670_v54 = vadd.f32 %v3180_v59, %v666_v36  ;;  %v3186_v2 = vpop.eup %3185 }
0x17ed   :  { %2337 = vrot.lane.b32.xlu2 %v2326_v3, %s3452_s7  ;;  %v4088_v3 = vpop.permute.xlu2 %2647 }
0x17ee   :  { %v674_v26 = vadd.f32 %v3182_v42, %v670_v54 }
0x17f0   :  { %v678_v13 = vadd.f32 %v3184_v5, %v674_v26 }
0x17f2   :  { %v682_v12 = vadd.f32 %v3186_v2, %v678_v13  ;;  %v966_v13 = vsub.f32 %v3705_v56, %v3746_v34 }
0x17f4   :  { %3187 = vlog2.f32 %v682_v12  ;;  %v967_v2 = vadd.f32 3.1415927, %v966_v13  ;;  %v1334_v13 = vsub.f32 0.0, %v3787_v16 }
0x17f5   :  { %1615 = vrot.lane.b32.xlu2 %v1604_v52, %s3452_s7 }
0x17f6   :  { %v968_v12 = vmul.f32 0.15915494, %v967_v2 }
0x17f8   :  { %1976 = vrot.lane.b32.xlu1 %v1965_v9, %s3452_s7 }
0x17fa   :  { %v3188_v43 = vpop.eup %3187 }
0x17fb   :  { %v684_v41 = vmul.f32 0.6931472, %v3188_v43  ;;  %v969_v43 = vfloor.f32 %v968_v12 }
0x17fd   :  { %v685_v30 = vadd.f32 %v684_v41, %v4064_v35  ;;  %v970_v41 = vsub.f32 %v968_v12, %v969_v43 }
0x17ff   :  { %v686_v6 = vsel %vm324_vm10, %v685_v30, 0.0  ;;  %v973_v30 = vsub.f32 0.0, %v3746_v34 }
0x181e   :  { %687 = vadd.xlane.f32.xlu2 %v686_v6 }
0x1824   :  { %v2514_v28 = vpop.f32.mrf.mxu3 }
0x1825   :  { %v2515_v7 = vadd.f32 %v3933_v47, %v2514_v28  ;;  %v974_v28 = vmul.f32 0.33333334, %v973_v30  ;;  %v1335_v30 = vmul.f32 0.25, %v1334_v13 }
0x1827   :  { %v2518_v44 = vmul.f32 0.044715, %v2515_v7  ;;  %v2517_v49 = vmul.f32 0.5, %v2515_v7 }
0x1829   :  { %v2519_v24 = vmul.f32 %v2518_v44, %v2515_v7 }
0x182b   :  { %v2520_v45 = vmul.f32 %v2519_v24, %v2515_v7 }
0x182d   :  { %v2521_v10 = vadd.f32 %v2520_v45, %v2515_v7 }
0x182f   :  { %v2522_v21 = vmul.f32 0.7978846, %v2521_v10 }
0x1831   :  { %3189 = vtanh.f32 %v2522_v21 }
0x1837   :  { %v3190_v38 = vpop.eup %3189 }
0x1838   :  { %v2524_v40 = vadd.f32 1.0, %v3190_v38  ;;  %v1327_v38 = vsub.f32 %v3746_v34, %v3787_v16 }
0x183a   :  { %v2525_v20 = vmul.f32 %v2524_v40, %v2517_v49 }
0x183c   :  { %3032 = vmatmul.msk.f32.vlgmr.msrb.gmra.mxu0 %vm79_vm2, %v2525_v20 }
0x1840   :  { %v327_v62 = vpop.xlane.xlu2 %326 }
0x1852   :  { %v604_v35 = vpop.xlane.xlu1 %603 }
0x1853   :  { %v2877_v50 = vrot.slane %v604_v35, 6  ;;  %v1328_v35 = vadd.f32 3.1415927, %v1327_v38 }
0x1855   :  { %v4091_v47 = vsel %vm2868_vm15, %v327_v62, %v2877_v50 }
0x1856   :  { %4990 = vst [vmem:[#allocation12_spill] sm:$0xff] %v4091_v47 }
0x18b9   :  { %v2546_v51 = vpop.f32.mrf.mxu0 }
0x18ba   :  { %v2547_v31 = vadd.f32 %v3952_v25, %v2546_v51 }
0x18bc   :  { %3033 = vmatmul.msk.f32.vlgmr.msrb.gmra.mxu1 %vm79_vm2, %v2547_v31 }
0x1939   :  { %v2570_v1 = vpop.f32.mrf.mxu1 }
0x193a   :  { %v2571_v19 = vadd.f32 %v2570_v1, %v2549_v0  ;;  %v1329_v1 = vmul.f32 0.15915494, %v1328_v35 }
0x193c   :  { %v2574_v15 = vmul.f32 0.044715, %v2571_v19  ;;  %v2573_v53 = vmul.f32 0.5, %v2571_v19 }
0x193e   :  { %v2575_v29 = vmul.f32 %v2574_v15, %v2571_v19 }
0x1940   :  { %v2576_v39 = vmul.f32 %v2575_v29, %v2571_v19 }
0x1942   :  { %v2577_v52 = vadd.f32 %v2576_v39, %v2571_v19 }
0x1944   :  { %v2578_v22 = vmul.f32 0.7978846, %v2577_v52 }
0x1946   :  { %3191 = vtanh.f32 %v2578_v22 }
0x194c   :  { %v3192_v57 = vpop.eup %3191 }
0x194d   :  { %v2580_v9 = vadd.f32 1.0, %v3192_v57  ;;  %v1330_v57 = vfloor.f32 %v1329_v1 }
0x194f   :  { %v2581_v11 = vmul.f32 %v2580_v9, %v2573_v53 }
0x1951   :  { %3034 = vmatmul.msk.f32.vlgmr.msrb.gmra.mxu2 %vm79_vm2, %v2581_v11 }
0x19d4   :  { %v2602_v36 = vpop.f32.mrf.mxu2 }
0x19d5   :  { %v2603_v25 = vadd.f32 %v3966_v48, %v2602_v36  ;;  %v971_v48 = vmul.f32 6.2831855, %v970_v41 }
0x19d7   :  { %v2606_v23 = vmul.f32 0.044715, %v2603_v25  ;;  %v2605_v42 = vmul.f32 0.5, %v2603_v25  ;;  %v2993_v6 = vadd.f32 -3.1415927, %v971_v48 }
0x19d9   :  { %v2607_v63 = vmul.f32 %v2606_v23, %v2603_v25  ;;  %v975_v7 = vsub.f32 %v2993_v6, %v974_v28 }
0x19db   :  { %v2608_v27 = vmul.f32 %v2607_v63, %v2603_v25  ;;  %v976_v44 = vadd.f32 -18.849556, %v975_v7  ;;  %v981_v24 = vadd.f32 -12.566371, %v975_v7  ;;  %v986_v21 = vadd.f32 -6.2831855, %v975_v7 }
0x19dc   :  { %v992_v31 = vmul.f32 3.4641016, %v975_v7  ;;  %v996_v0 = vadd.f32 6.2831855, %v975_v7  ;;  %v1001_v29 = vadd.f32 12.566371, %v975_v7  ;;  %v1331_v63 = vsub.f32 %v1329_v1, %v1330_v57 }
0x19dd   :  { %v2609_v59 = vadd.f32 %v2608_v27, %v2603_v25  ;;  %v977_v45 = vmul.f32 3.4641016, %v976_v44  ;;  %v982_v10 = vmul.f32 3.4641016, %v981_v24  ;;  %v987_v20 = vmul.f32 3.4641016, %v986_v21 }
0x19de   :  { %v993_v52 = vmul.f32 %v992_v31, %v992_v31  ;;  %v997_v22 = vmul.f32 3.4641016, %v996_v0  ;;  %v1002_v9 = vmul.f32 3.4641016, %v1001_v29  ;;  %v1006_v23 = vadd.f32 18.849556, %v975_v7 }
0x19df   :  { %v2610_v54 = vmul.f32 0.7978846, %v2609_v59  ;;  %v978_v49 = vmul.f32 %v977_v45, %v977_v45  ;;  %v983_v40 = vmul.f32 %v982_v10, %v982_v10  ;;  %v988_v51 = vmul.f32 %v987_v20, %v987_v20 }
0x19e0   :  { %v994_v36 = vmul.f32 -0.5, %v993_v52  ;;  %v998_v25 = vmul.f32 %v997_v22, %v997_v22  ;;  %v1688_v52 = vsub.f32 %v3787_v16, %v3843_v4 }
0x19e1   :  { %3193 = vtanh.f32 %v2610_v54  ;;  %v979_v50 = vmul.f32 -0.5, %v978_v49  ;;  %v984_v62 = vmul.f32 -0.5, %v983_v40  ;;  %v989_v39 = vmul.f32 -0.5, %v988_v51 }
0x19e2   :  { %v995_v59 = vadd.f32 0.3235148, %v994_v36  ;;  %v999_v54 = vmul.f32 -0.5, %v998_v25 }
0x19e3   :  { %v980_v19 = vadd.f32 0.3235148, %v979_v50  ;;  %v985_v15 = vadd.f32 0.3235148, %v984_v62  ;;  %v990_v11 = vadd.f32 0.3235148, %v989_v39 }
0x19e4   :  { %v1000_v2 = vadd.f32 0.3235148, %v999_v54 }
0x19e5   :  { %v1011_v53 = vmax.f32 %v980_v19, %v985_v15 }
0x19e7   :  { %v3194_v8 = vpop.eup %3193  ;;  %v1012_v27 = vmax.f32 %v1011_v53, %v990_v11 }
0x19e8   :  { %v2612_v26 = vadd.f32 1.0, %v3194_v8  ;;  %v1003_v8 = vmul.f32 %v1002_v9, %v1002_v9 }
0x19ea   :  { %v2613_v5 = vmul.f32 %v2612_v26, %v2605_v42  ;;  %v1007_v42 = vmul.f32 3.4641016, %v1006_v23  ;;  %v1332_v26 = vmul.f32 6.2831855, %v1331_v63  ;;  %v1004_v12 = vmul.f32 -0.5, %v1003_v8 }
0x19eb   :  { %v1689_v23 = vadd.f32 3.1415927, %v1688_v52  ;;  %v857_v8 = vsub.f32 %v3746_v34, %v3705_v56 }
0x19ec   :  { %3035 = vmatmul.msk.f32.vlgmr.msrb.gmra.mxu3 %vm79_vm2, %v2613_v5  ;;  %v1013_v5 = vmax.f32 %v1012_v27, %v995_v59  ;;  %v1008_v43 = vmul.f32 %v1007_v42, %v1007_v42  ;;  %v3002_v41 = vadd.f32 -3.1415927, %v1332_v26  ;;  %v4105_v6 = vadd.f32 0.3235148, %v1004_v12 }
0x19ee   :  { %v1014_v48 = vmax.f32 %v1013_v5, %v1000_v2  ;;  %v1009_v28 = vmul.f32 -0.5, %v1008_v43  ;;  %v1336_v7 = vsub.f32 %v3002_v41, %v1335_v30 }
0x19f0   :  { %v1015_v44 = vmax.f32 %v1014_v48, %v4105_v6  ;;  %v4108_v24 = vadd.f32 0.3235148, %v1009_v28  ;;  %v1337_v45 = vadd.f32 -18.849556, %v1336_v7  ;;  %v1342_v10 = vadd.f32 -12.566371, %v1336_v7 }
0x19f1   :  { %v1347_v20 = vadd.f32 -6.2831855, %v1336_v7  ;;  %v1353_v57 = vmul.f32 3.2659864, %v1336_v7  ;;  %v1357_v53 = vadd.f32 6.2831855, %v1336_v7 }
0x19f2   :  { %v4111_v21 = vmax.f32 %v1015_v44, %v4108_v24  ;;  %v1338_v38 = vmul.f32 3.2659864, %v1337_v45  ;;  %v1343_v49 = vmul.f32 3.2659864, %v1342_v10  ;;  %v1362_v25 = vadd.f32 12.566371, %v1336_v7 }
0x19f3   :  { %v1348_v31 = vmul.f32 3.2659864, %v1347_v20  ;;  %v1354_v27 = vmul.f32 %v1353_v57, %v1353_v57  ;;  %v1358_v54 = vmul.f32 3.2659864, %v1357_v53  ;;  %v1367_v43 = vadd.f32 18.849556, %v1336_v7 }
0x19f4   :  { %v1017_v40 = vsub.f32 %v980_v19, %v4111_v21  ;;  %v1020_v35 = vsub.f32 %v985_v15, %v4111_v21  ;;  %v1339_v50 = vmul.f32 %v1338_v38, %v1338_v38  ;;  %v1344_v62 = vmul.f32 %v1343_v49, %v1343_v49  ;;  %v3424_v45 = vld [vmem:[%s4968_s2 + $0xa0] ss:$0 sm:$0xff]  ;;  %s3453_s2 = smov 5  }
0x19f5   :  { %v1024_v39 = vsub.f32 %v990_v11, %v4111_v21  ;;  %v1349_v22 = vmul.f32 %v1348_v31, %v1348_v31  ;;  %v1028_v36 = vsub.f32 %v995_v59, %v4111_v21  ;;  %v1032_v42 = vsub.f32 %v1000_v2, %v4111_v21 }
0x19f6   :  { %v1018_v51 = vmul.f32 1.442695, %v1017_v40  ;;  %v1021_v0 = vmul.f32 1.442695, %v1020_v35  ;;  %v1340_v1 = vmul.f32 -0.5, %v1339_v50  ;;  %v1345_v29 = vmul.f32 -0.5, %v1344_v62 }
0x19f7   :  { %v1025_v9 = vmul.f32 1.442695, %v1024_v39  ;;  %v1350_v63 = vmul.f32 -0.5, %v1349_v22  ;;  %v1029_v13 = vmul.f32 1.442695, %v1028_v36  ;;  %v1355_v48 = vmul.f32 -0.5, %v1354_v27 }
0x19f8   :  { %3195 = vpow2.f32 %v1018_v51  ;;  %v4118_v19 = vadd.f32 0.26462328, %v1340_v1  ;;  %v4120_v15 = vadd.f32 0.26462328, %v1345_v29  ;;  %v1363_v12 = vmul.f32 3.2659864, %v1362_v25 }
0x19f9   :  { %3197 = vpow2.f32 %v1021_v0  ;;  %v1690_v59 = vmul.f32 0.15915494, %v1689_v23  ;;  %v4128_v41 = vadd.f32 0.26462328, %v1350_v63  ;;  %v1359_v30 = vmul.f32 %v1358_v54, %v1358_v54 }
0x19fa   :  { %v1372_v26 = vmax.f32 %v4118_v19, %v4120_v15  ;;  %3199 = vpow2.f32 %v1025_v9  ;;  %v858_v28 = vadd.f32 3.1415927, %v857_v8  ;;  %v1033_v38 = vmul.f32 1.442695, %v1032_v42 }
0x19fb   :  { %3201 = vpow2.f32 %v1029_v13  ;;  %v1036_v7 = vsub.f32 %v4105_v6, %v4111_v21  ;;  %v1364_v40 = vmul.f32 %v1363_v12, %v1363_v12  ;;  %v1368_v20 = vmul.f32 3.2659864, %v1367_v43 }
0x19fc   :  { %v1373_v49 = vmax.f32 %v1372_v26, %v4128_v41  ;;  %v1691_v35 = vfloor.f32 %v1690_v59  ;;  %v4139_v50 = vadd.f32 0.26462328, %v1355_v48  ;;  %v1360_v62 = vmul.f32 -0.5, %v1359_v30 }
0x19fd   :  { %v859_v31 = vmul.f32 0.15915494, %v858_v28  ;;  %v1037_v29 = vmul.f32 1.442695, %v1036_v7  ;;  %v1040_v6 = vsub.f32 %v4108_v24, %v4111_v21  ;;  %v1365_v22 = vmul.f32 -0.5, %v1364_v40 }
0x19fe   :  { %v3196_v11 = vpop.eup %3195  ;;  %v1374_v1 = vmax.f32 %v1373_v49, %v4139_v50  ;;  %v1692_v39 = vsub.f32 %v1690_v59, %v1691_v35  ;;  %v4145_v52 = vadd.f32 0.26462328, %v1360_v62  ;;  %v1369_v57 = vmul.f32 %v1368_v20, %v1368_v20 }
0x19ff   :  { %v3198_v5 = vpop.eup %3197  ;;  %v860_v36 = vfloor.f32 %v859_v31  ;;  %v2049_v63 = vsub.f32 %v3843_v4, %v3914_v60  ;;  %v1041_v54 = vmul.f32 1.442695, %v1040_v6  ;;  %v4150_v24 = vadd.f32 0.26462328, %v1365_v22 }
0x1a00   :  { %v1023_v10 = vadd.f32 %v3198_v5, %v3196_v11  ;;  %v3200_v51 = vpop.eup %3199  ;;  %v1375_v23 = vmax.f32 %v1374_v1, %v4145_v52  ;;  %v1693_v8 = vmul.f32 6.2831855, %v1692_v39  ;;  %v1370_v42 = vmul.f32 -0.5, %v1369_v57 }
0x1a01   :  { %v3202_v53 = vpop.eup %3201  ;;  %v1695_v13 = vsub.f32 0.0, %v3843_v4  ;;  %v861_v59 = vsub.f32 %v859_v31, %v860_v36  ;;  %v2050_v48 = vadd.f32 3.1415927, %v2049_v63  ;;  %v1240_v39 = vmul.f32 2.5066283, %v3779_v55 }
0x1a02   :  { %v1027_v0 = vadd.f32 %v3200_v51, %v1023_v10  ;;  %v1376_v43 = vmax.f32 %v1375_v23, %v4150_v24  ;;  %v3011_v28 = vadd.f32 -3.1415927, %v1693_v8  ;;  %v4159_v10 = vadd.f32 0.26462328, %v1370_v42 }
0x1a03   :  { %v1696_v49 = vmul.f32 0.2, %v1695_v13  ;;  %v862_v20 = vmul.f32 6.2831855, %v861_v59  ;;  %v2051_v35 = vmul.f32 0.15915494, %v2050_v48 }
0x1a04   :  { %v1031_v25 = vadd.f32 %v3202_v53, %v1027_v0  ;;  %v4162_v40 = vmax.f32 %v1376_v43, %v4159_v10 }
0x1a05   :  { %v4164_v62 = vsub.f32 %v3011_v28, %v1696_v49  ;;  %v2052_v6 = vfloor.f32 %v2051_v35 }
0x1a06   :  { %4992 = vst [vmem:[#allocation14_spill] sm:$0xff] %v4162_v40  ;;  %v1381_v22 = vsub.f32 %v4120_v15, %v4162_v40  ;;  %v1385_v13 = vsub.f32 %v4128_v41, %v4162_v40  ;;  %v1397_v48 = vsub.f32 %v4150_v24, %v4162_v40 }
0x1a07   :  { %v1703_v36 = vadd.f32 -12.566371, %v4164_v62  ;;  %v2053_v63 = vsub.f32 %v2051_v35, %v2052_v6  ;;  %v2410_v6 = vsub.f32 %v3914_v60, %v4007_v33 }
0x1a08   :  { %v1386_v35 = vmul.f32 1.442695, %v1385_v13 }
0x1a09   :  { %v1704_v8 = vmul.f32 3.1622777, %v1703_v36  ;;  %v2054_v43 = vmul.f32 6.2831855, %v2053_v63  ;;  %v1718_v63 = vadd.f32 6.2831855, %v4164_v62 }
0x1a0b   :  { %v1705_v28 = vmul.f32 %v1704_v8, %v1704_v8  ;;  %v1723_v8 = vadd.f32 12.566371, %v4164_v62 }
0x1a6f   :  { %v2634_v44 = vpop.f32.mrf.mxu3 }
0x1a70   :  { %v4133_v2 = vadd.f32 %v3424_v45, %v2634_v44  ;;  %v879_v45 = vmul.f32 2.5066283, %v3738_v14  ;;  %v1378_v14 = vsub.f32 %v4118_v19, %v4162_v40 }
0x1a72   :  { %4991 = vst [vmem:[#allocation13_spill] sm:$0xff] %v4133_v2  ;;  %3203 = vtanh.f32 %v4133_v2  ;;  %v1379_v55 = vmul.f32 1.442695, %v1378_v14  ;;  %v1389_v14 = vsub.f32 %v4139_v50, %v4162_v40 }
0x1a73   :  { %3205 = vpow2.f32 %v1033_v38 }
0x1a74   :  { %3207 = vrcp.f32 %v3826_v37 }
0x1a75   :  { %3209 = vpow2.f32 %v1037_v29  ;;  %v2992_v29 = vadd.f32 -3.1415927, %v862_v20 }
0x1a76   :  { %3211 = vpow2.f32 %v1041_v54 }
0x1a77   :  { %v4181_v15 = vsub.f32 %v2992_v29, %v3742_v17  ;;  %v1595_v17 = vand.u32 2147483647, %v3826_v37 }
0x1a78   :  { %v3204_v9 = vpop.eup %3203 }
0x1a79   :  { %v2638_v27 = vmul.f32 4.0, %v3204_v9  ;;  %v3206_v11 = vpop.eup %3205  ;;  %v1698_v9 = vadd.f32 -18.849556, %v4164_v62  ;;  %v4195_v59 = vadd.f32 -18.849556, %v4181_v15  ;;  %vm1596_vm5 = vcmp.eq.f32.partialorder %v1595_v17, 8.507059e+37 }
0x1a7a   :  { %v4152_v26 = vpop.eup %3207  ;;  %v1035_v12 = vadd.f32 %v3206_v11, %v1031_v25  ;;  %v1218_v25 = vsub.f32 %v3787_v16, %v3746_v34  ;;  %v4207_v49 = vadd.f32 -12.566371, %v4181_v15  ;;  %v4216_v29 = vadd.f32 6.2831855, %v4181_v15 }
0x1a7b   :  { %v2640_v5 = vmul.f32 0.5, %v2638_v27  ;;  %v1587_v44 = vmul.f32 %v4152_v26, %v3826_v37  ;;  %v3210_v38 = vpop.eup %3209  ;;  %v1382_v27 = vmul.f32 1.442695, %v1381_v22  ;;  %vm1592_vm2 = vweird.f32 %v4152_v26 }
0x1a7c   :  { %v1039_v7 = vadd.f32 %v3210_v38, %v1035_v12  ;;  %v3212_v31 = vpop.eup %3211  ;;  %v1699_v11 = vmul.f32 3.1622777, %v1698_v9  ;;  %v1219_v42 = vadd.f32 3.1415927, %v1218_v25  ;;  %v1708_v12 = vadd.f32 -6.2831855, %v4164_v62  ;;  %vm4198_vm4 = vmor %vm1591_vm3, %vm1592_vm2 }
0x1a7d   :  { %v2641_v30 = vmul.f32 1.442695, %v2640_v5  ;;  %v1588_v51 = vsub.f32 1.0, %v1587_v44  ;;  %v1597_v5 = vand.u32 2147483648, %v3826_v37  ;;  %v2056_v38 = vsub.f32 0.0, %v3914_v60 }
0x1a7e   :  { %v1043_v0 = vadd.f32 %v3212_v31, %v1039_v7  ;;  %v1700_v37 = vmul.f32 %v1699_v11, %v1699_v11  ;;  %v3020_v31 = vadd.f32 -3.1415927, %v2054_v43  ;;  %v1706_v22 = vmul.f32 -0.5, %v1705_v28 }
0x1a7f   :  { %3213 = vpow2.f32 %v2641_v30  ;;  %v1589_v53 = vmul.f32 %v4152_v26, %v1588_v51  ;;  %v1598_v7 = vor.u32 1.1754944e-38, %v1597_v5  ;;  %v1709_v51 = vmul.f32 3.1622777, %v1708_v12 }
0x1a80   :  { %3215 = vlog2.f32 %v879_v45  ;;  %v1220_v45 = vmul.f32 0.15915494, %v1219_v42  ;;  %v2057_v36 = vmul.f32 0.16666667, %v2056_v38  ;;  %v1393_v11 = vsub.f32 %v4145_v52, %v4162_v40 }
0x1a81   :  { %3217 = vlog2.f32 %v1043_v0  ;;  %v1590_v54 = vadd.f32 %v4152_v26, %v1589_v53  ;;  %v4211_v0 = vadd.f32 -6.2831855, %v4181_v15  ;;  %v2411_v42 = vadd.f32 3.1415927, %v2410_v6 }
0x1a82   :  { %3219 = vlog2.f32 %v1240_v39  ;;  %v1701_v39 = vmul.f32 -0.5, %v1700_v37  ;;  %v1221_v9 = vfloor.f32 %v1220_v45  ;;  %v4238_v13 = vadd.f32 0.23235402, %v1706_v22 }
0x1a83   :  { %3221 = vpow2.f32 %v1379_v55  ;;  %v1594_v41 = vsel %vm4198_vm4, %v4152_v26, %v1590_v54  ;;  %v1714_v55 = vmul.f32 3.1622777, %v4164_v62  ;;  %v1390_v54 = vmul.f32 1.442695, %v1389_v14 }
0x1a84   :  { %v1599_v26 = vsel %vm1596_vm5, %v1598_v7, %v1594_v41  ;;  %v1222_v17 = vsub.f32 %v1220_v45, %v1221_v9  ;;  %v1401_v52 = vsub.f32 %v4159_v10, %v4162_v40  ;;  %v1719_v37 = vmul.f32 3.1622777, %v1718_v63 }
0x1a85   :  { %v3214_v1 = vpop.eup %3213  ;;  %v1715_v41 = vmul.f32 %v1714_v55, %v1714_v55  ;;  %v1724_v38 = vmul.f32 3.1622777, %v1723_v8  ;;  %v2412_v45 = vmul.f32 0.15915494, %v2411_v42  ;;  %v2301_v10 = vsub.f32 %v4007_v33, %v3914_v60 }
0x1a86   :  { %v4171_v57 = vmul.f32 0.35355338, %v3214_v1  ;;  %v3216_v19 = vpop.eup %3215  ;;  %v1398_v14 = vmul.f32 1.442695, %v1397_v48  ;;  %v1728_v22 = vadd.f32 18.849556, %v4164_v62 }
0x1a87   :  { %v3218_v30 = vpop.eup %3217  ;;  %v1716_v6 = vmul.f32 -0.5, %v1715_v41 }
0x1a88   :  { %v2650_v23 = vmul.f32 %v4088_v3, %v4171_v57  ;;  %v4187_v3 = vmul.f32 0.6931472, %v3216_v19  ;;  %3223 = vrcp.f32 %v4171_v57  ;;  %v3220_v44 = vpop.eup %3219  ;;  %v4225_v19 = vmul.f32 0.6931472, %v3218_v30 }
0x1a89   :  { %3225 = vpow2.f32 %v1382_v27  ;;  %v3222_v1 = vpop.eup %3221  ;;  %v4223_v25 = vmul.f32 0.6931472, %v3220_v44  ;;  %v4229_v27 = vsub.f32 %v3020_v31, %v2057_v36  ;;  %v4250_v31 = vmul.f32 6.2831855, %v1222_v17 }
0x1a8a   :  { %2652 = vrot.lane.b32.xlu0 %v2650_v23, %s3452_s7  ;;  %v882_v20 = vsub.f32 0.0, %v4187_v3  ;;  %3227 = vpow2.f32 %v1386_v35  ;;  %v1710_v23 = vmul.f32 %v1709_v51, %v1709_v51  ;;  %v4236_v3 = vadd.f32 0.23235402, %v1701_v39 }
0x1a8b   :  { %v1243_v12 = vsub.f32 0.0, %v4223_v25  ;;  %v2059_v28 = vadd.f32 -18.849556, %v4229_v27  ;;  %v2064_v44 = vadd.f32 -12.566371, %v4229_v27  ;;  %3229 = vpow2.f32 %v1390_v54 }
0x1a8c   :  { %v1711_v30 = vmul.f32 -0.5, %v1710_v23  ;;  %v1394_v51 = vmul.f32 1.442695, %v1393_v11  ;;  %v1733_v24 = vmax.f32 %v4236_v3, %v4238_v13  ;;  %v1720_v39 = vmul.f32 %v1719_v37, %v1719_v37 }
0x1a8d   :  { %v2060_v9 = vmul.f32 3.0983868, %v2059_v28  ;;  %v1402_v36 = vmul.f32 1.442695, %v1401_v52  ;;  %v1725_v25 = vmul.f32 %v1724_v38, %v1724_v38  ;;  %v2302_v54 = vadd.f32 3.1415927, %v2301_v10 }
0x1a8e   :  { %v4221_v53 = vpop.eup %3223  ;;  %3231 = vpow2.f32 %v1394_v51  ;;  %v2684_v11 = vmul.f32 2.5066283, %v4171_v57  ;;  %v2069_v8 = vadd.f32 -6.2831855, %v4229_v27  ;;  %v1721_v62 = vmul.f32 -0.5, %v1720_v39 }
0x1a8f   :  { %v3226_v50 = vpop.eup %3225  ;;  %v2670_v5 = vmul.f32 %v4221_v53, %v4171_v57  ;;  %3233 = vpow2.f32 %v1398_v14  ;;  %v1729_v17 = vmul.f32 3.1622777, %v1728_v22  ;;  %v2061_v48 = vmul.f32 %v2060_v9, %v2060_v9 }
0x1a90   :  { %v1384_v43 = vadd.f32 %v3226_v50, %v3222_v1  ;;  %v3228_v7 = vpop.eup %3227  ;;  %v4254_v1 = vadd.f32 0.23235402, %v1711_v30  ;;  %v2413_v50 = vfloor.f32 %v2412_v45  ;;  %v1726_v30 = vmul.f32 -0.5, %v1725_v25 }
0x1a91   :  { %v2671_v35 = vsub.f32 1.0, %v2670_v5  ;;  %v3230_v63 = vpop.eup %3229  ;;  %v4261_v5 = vadd.f32 0.23235402, %v1716_v6  ;;  %vm2675_vm6 = vweird.f32 %v4221_v53  ;;  %v2680_v38 = vand.u32 2147483648, %v4171_v57 }
0x1a92   :  { %1608 = vrot.lane.b32.xlu0 %v1599_v26, %s3452_s7  ;;  %v1388_v26 = vadd.f32 %v3228_v7, %v1384_v43  ;;  %v1734_v55 = vmax.f32 %v1733_v24, %v4254_v1  ;;  %v1940_v43 = vsub.f32 %v3914_v60, %v3843_v4  ;;  %v2414_v41 = vsub.f32 %v2412_v45, %v2413_v50 }
0x1a93   :  { %v2672_v23 = vmul.f32 %v4221_v53, %v2671_v35  ;;  %3235 = vlog2.f32 %v2684_v11  ;;  %v2070_v7 = vmul.f32 3.0983868, %v2069_v8  ;;  %vm2674_vm7 = vweird.f32 %v4171_v57 }
0x1a94   :  { %v1392_v42 = vadd.f32 %v3230_v63, %v1388_v26  ;;  %v1735_v28 = vmax.f32 %v1734_v55, %v4261_v5  ;;  %v3232_v35 = vpop.eup %3231  ;;  %v2678_v51 = vand.u32 2147483647, %v4171_v57  ;;  %v4272_v24 = vadd.f32 0.23235402, %v1721_v62  ;;  %vm4274_vm8 = vmor %vm2674_vm7, %vm2675_vm6 }
0x1a95   :  { %v2673_v37 = vadd.f32 %v4221_v53, %v2672_v23  ;;  %v1730_v45 = vmul.f32 %v1729_v17, %v1729_v17  ;;  %v1941_v10 = vadd.f32 3.1415927, %v1940_v43  ;;  %v2062_v14 = vmul.f32 -0.5, %v2061_v48 }
0x1a96   :  { %v1396_v39 = vadd.f32 %v3232_v35, %v1392_v42  ;;  %v2415_v22 = vmul.f32 6.2831855, %v2414_v41  ;;  %v1736_v57 = vmax.f32 %v1735_v28, %v4272_v24  ;;  %v2681_v50 = vor.u32 1.1754944e-38, %v2680_v38 }
0x1a97   :  { %v2677_v9 = vsel %vm4274_vm8, %v4221_v53, %v2673_v37  ;;  %v2071_v23 = vmul.f32 %v2070_v7, %v2070_v7  ;;  %v2079_v55 = vadd.f32 6.2831855, %v4229_v27  ;;  %v2417_v63 = vsub.f32 0.0, %v4007_v33  ;;  %v4296_v7 = vpop.permute.xlu0 %1969 }
0x1a98   :  { %vm2679_vm9 = vcmp.eq.f32.partialorder %v2678_v51, 8.507059e+37  ;;  %v1731_v11 = vmul.f32 -0.5, %v1730_v45  ;;  %v1942_v42 = vmul.f32 0.15915494, %v1941_v10  ;;  %v4287_v17 = vadd.f32 0.21194302, %v2062_v14 }
0x1a99   :  { %v2682_v62 = vsel %vm2679_vm9, %v2681_v50, %v2677_v9  ;;  %v3029_v43 = vadd.f32 -3.1415927, %v2415_v22  ;;  %v2084_v48 = vadd.f32 12.566371, %v4229_v27  ;;  %3237 = vpow2.f32 %v1402_v36 }
0x1a9a   :  { %893 = vrot.lane.b32.xlu0 %v882_v20, %s3452_s7  ;;  %v2065_v20 = vmul.f32 3.0983868, %v2064_v44  ;;  %v2303_v44 = vmul.f32 0.15915494, %v2302_v54  ;;  %v4285_v54 = vadd.f32 0.23235402, %v1726_v30  ;;  %v1579_v38 = vsub.f32 %v3843_v4, %v3787_v16 }
0x1a9b   :  { %v2072_v37 = vmul.f32 -0.5, %v2071_v23  ;;  %v2080_v28 = vmul.f32 3.0983868, %v2079_v55  ;;  %v2418_v35 = vmul.f32 0.14285715, %v2417_v63  ;;  %v1943_v26 = vfloor.f32 %v1942_v42 }
0x1a9c   :  { %v2066_v52 = vmul.f32 %v2065_v20, %v2065_v20  ;;  %v2075_v20 = vmul.f32 3.0983868, %v4229_v27  ;;  %v2304_v25 = vfloor.f32 %v2303_v44  ;;  %v4298_v45 = vadd.f32 0.23235402, %v1731_v11 }
0x1a9d   :  { %v3001_v10 = vadd.f32 -3.1415927, %v4250_v31  ;;  %v2089_v22 = vadd.f32 18.849556, %v4229_v27  ;;  %v2081_v50 = vmul.f32 %v2080_v28, %v2080_v28  ;;  %v1580_v31 = vadd.f32 3.1415927, %v1579_v38 }
0x1a9e   :  { %v2067_v6 = vmul.f32 -0.5, %v2066_v52  ;;  %v1737_v52 = vmax.f32 %v1736_v57, %v4285_v54  ;;  %v2305_v41 = vsub.f32 %v2303_v44, %v2304_v25  ;;  %v2076_v30 = vmul.f32 %v2075_v20, %v2075_v20 }
0x1a9f   :  { %v4303_v44 = vsub.f32 %v3029_v43, %v2418_v35  ;;  %v4309_v57 = vadd.f32 0.21194302, %v2072_v37  ;;  %v4312_v55 = vadd.f32 12.566371, %v4181_v15  ;;  %v4317_v27 = vsub.f32 %v3001_v10, %v3783_v58  ;;  %v4339_v10 = vpop.permute.xlu0 %886 }
0x1aa0   :  { %v4289_v53 = vadd.f32 0.21194302, %v2067_v6  ;;  %v2085_v6 = vmul.f32 3.0983868, %v2084_v48  ;;  %v4307_v9 = vmax.f32 %v1737_v52, %v4298_v45  ;;  %v2306_v20 = vmul.f32 6.2831855, %v2305_v41 }
0x1aa1   :  { %v2077_v25 = vmul.f32 -0.5, %v2076_v30  ;;  %v2090_v43 = vmul.f32 3.0983868, %v2089_v22  ;;  %v2420_v48 = vadd.f32 -18.849556, %v4303_v44  ;;  %v2082_v30 = vmul.f32 -0.5, %v2081_v50 }
0x1aa2   :  { %1254 = vrot.lane.b32.xlu0 %v1243_v12, %s3452_s7  ;;  %v3234_v12 = vpop.eup %3233  ;;  %v2094_v36 = vmax.f32 %v4287_v17, %v4289_v53  ;;  %4997 = vst [vmem:[#allocation15_spill] sm:$0xff] %v4307_v9  ;;  %v2425_v52 = vadd.f32 -12.566371, %v4303_v44  ;;  %v3028_v41 = vadd.f32 -3.1415927, %v2306_v20  ;;  %v1742_v28 = vsub.f32 %v4238_v13, %v4307_v9 }
0x1aa3   :  { %v3236_v8 = vpop.eup %3235  ;;  %v1400_v14 = vadd.f32 %v3234_v12, %v1396_v39  ;;  %v1046_v12 = vadd.f32 %v4225_v19, %v4111_v21  ;;  %v1944_v39 = vsub.f32 %v1942_v42, %v1943_v26  ;;  %v4323_v37 = vadd.f32 0.21194302, %v2077_v25 }
0x1aa4   :  { %v2686_v51 = vmul.f32 0.6931472, %v3236_v8  ;;  %v3238_v23 = vpop.eup %3237  ;;  %v2095_v11 = vmax.f32 %v2094_v36, %v4309_v57  ;;  %v1739_v21 = vsub.f32 %v4236_v3, %v4307_v9  ;;  %v1581_v58 = vmul.f32 0.15915494, %v1580_v31 }
0x1aa5   :  { %v1404_v8 = vadd.f32 %v3238_v23, %v1400_v14  ;;  %v4328_v19 = vadd.f32 18.849556, %v4181_v15  ;;  %v4331_v42 = vsel %vm324_vm10, %v1046_v12, 0.0  ;;  %v1945_v38 = vmul.f32 6.2831855, %v1944_v39 }
0x1aa6   :  { %v2687_v63 = vsub.f32 0.0, %v2686_v51  ;;  %v4336_v35 = vadd.f32 -18.849556, %v4317_v27  ;;  %v2096_v51 = vmax.f32 %v2095_v11, %v4323_v37  ;;  %v1746_v26 = vsub.f32 %v4254_v1, %v4307_v9 }
0x1aa7   :  { %3239 = vlog2.f32 %v1404_v8  ;;  %v2421_v36 = vmul.f32 3.0550504, %v2420_v48  ;;  %v2426_v14 = vmul.f32 3.0550504, %v2425_v52  ;;  %v4346_v22 = vadd.f32 0.21194302, %v2082_v30 }
0x1aa8   :  { %4998 = vst [vmem:[#allocation16_spill] sm:$0xff] %v4336_v35  ;;  %v2091_v13 = vmul.f32 %v2090_v43, %v2090_v43  ;;  %v1740_v20 = vmul.f32 1.442695, %v1739_v21  ;;  %v1582_v25 = vfloor.f32 %v1581_v58  ;;  %v1743_v50 = vmul.f32 1.442695, %v1742_v28  ;;  %v4369_v28 = vpop.permute.xlu2 %1247 }
0x1aa9   :  { %v1750_v23 = vsub.f32 %v4261_v5, %v4307_v9  ;;  %v2430_v31 = vadd.f32 -6.2831855, %v4303_v44  ;;  %v2097_v12 = vmax.f32 %v2096_v51, %v4346_v22  ;;  %v1754_v1 = vsub.f32 %v4272_v24, %v4307_v9  ;;  %4999 = vst [vmem:[#allocation17_spill] sm:$0xff] %v4369_v28 }
0x1aaa   :  { %2691 = vrot.lane.b32.xlu0 %v2682_v62, %s3452_s7  ;;  %v2086_v62 = vmul.f32 %v2085_v6, %v2085_v6  ;;  %v4344_v6 = vsub.f32 %v3028_v41, %v3998_v18  ;;  %v1758_v18 = vsub.f32 %v4285_v54, %v4307_v9  ;;  %v1747_v11 = vmul.f32 1.442695, %v1746_v26 }
0x1aab   :  { %v2422_v8 = vmul.f32 %v2421_v36, %v2421_v36  ;;  %v2092_v52 = vmul.f32 -0.5, %v2091_v13  ;;  %3241 = vpow2.f32 %v1740_v20  ;;  %v1751_v41 = vmul.f32 1.442695, %v1750_v23 }
0x1aac   :  { %v2087_v3 = vmul.f32 -0.5, %v2086_v62  ;;  %v2427_v62 = vmul.f32 %v2426_v14, %v2426_v14  ;;  %v2328_v5 = vadd.f32 -18.849556, %v4344_v6  ;;  %v2341_v48 = vadd.f32 -12.566371, %v4344_v6 }
0x1aad   :  { %v4358_v43 = vpop.eup %3239  ;;  %3243 = vpow2.f32 %v1743_v50  ;;  %v1762_v24 = vsub.f32 %v4298_v45, %v4307_v9  ;;  %v2431_v30 = vmul.f32 3.0550504, %v2430_v31  ;;  %v4364_v54 = vsub.f32 %v1581_v58, %v1582_v25 }
0x1aae   :  { %v4356_v39 = vadd.f32 0.21194302, %v2087_v3  ;;  %v1755_v51 = vmul.f32 1.442695, %v1754_v1  ;;  %v4372_v3 = vpop.permute.xlu0 %2330  ;;  %3245 = vpow2.f32 %v1747_v11  ;;  %v1759_v26 = vmul.f32 1.442695, %v1758_v18 }
0x1aaf   :  { %v2423_v36 = vmul.f32 -0.5, %v2422_v8  ;;  %v2428_v14 = vmul.f32 -0.5, %v2427_v62  ;;  %v2333_v13 = vmul.f32 %v4372_v3, %v2328_v5  ;;  %v2342_v45 = vmul.f32 %v2341_v48, %v4372_v3 }
0x1ab0   :  { %v4376_v58 = vadd.f32 0.21194302, %v2092_v52  ;;  %3247 = vpow2.f32 %v1751_v41  ;;  %v1763_v20 = vmul.f32 1.442695, %v1762_v24  ;;  %v2432_v25 = vmul.f32 %v2431_v30, %v2431_v30  ;;  %v4407_v60 = vpop.permute.xlu2 %2337 }
0x1ab1   :  { %v2440_v50 = vadd.f32 6.2831855, %v4303_v44  ;;  %v3242_v23 = vpop.eup %3241  ;;  %3249 = vpow2.f32 %v1755_v51  ;;  %v2346_v18 = vadd.f32 -6.2831855, %v4344_v6  ;;  %v4386_v11 = vadd.f32 0.19785757, %v2423_v36 }
0x1ab2   :  { %2698 = vrot.lane.b32.xlu0 %v2687_v63, %s3452_s7  ;;  %v3019_v63 = vadd.f32 -3.1415927, %v1945_v38  ;;  %v2098_v38 = vmax.f32 %v2097_v12, %v4356_v39  ;;  %3251 = vpow2.f32 %v1759_v26  ;;  %v4388_v8 = vadd.f32 0.19785757, %v2428_v14 }
0x1ab3   :  { %v3244_v1 = vpop.eup %3243  ;;  %v2334_v5 = vmul.f32 %v2333_v13, %v2333_v13  ;;  %v2343_v48 = vmul.f32 %v2342_v45, %v2342_v45  ;;  %3253 = vpow2.f32 %v1763_v20  ;;  %v2433_v24 = vmul.f32 -0.5, %v2432_v25 }
0x1ab4   :  { %v4367_v21 = vsub.f32 %v3019_v63, %v3910_v46  ;;  %v2436_v46 = vmul.f32 3.0550504, %v4303_v44  ;;  %v4383_v12 = vmax.f32 %v2098_v38, %v4376_v58  ;;  %v4391_v41 = vpop.eup %3245  ;;  %v2441_v30 = vmul.f32 3.0550504, %v2440_v50 }
0x1ab5   :  { %v2445_v38 = vadd.f32 12.566371, %v4303_v44  ;;  %v1745_v14 = vadd.f32 %v3244_v1, %v3242_v23  ;;  %v2455_v20 = vmax.f32 %v4386_v11, %v4388_v8  ;;  %v2335_v50 = vmul.f32 -0.5, %v2334_v5 }
0x1ab6   :  { %v1967_v31 = vadd.f32 -18.849556, %v4367_v21  ;;  %v1980_v63 = vadd.f32 -12.566371, %v4367_v21  ;;  %v1985_v62 = vadd.f32 -6.2831855, %v4367_v21  ;;  %v2437_v52 = vmul.f32 %v2436_v46, %v2436_v46  ;;  %v4398_v4 = vpop.eup %3247 }
0x1ab7   :  { %v1995_v26 = vadd.f32 6.2831855, %v4367_v21  ;;  %v2100_v36 = vsub.f32 %v4287_v17, %v4383_v12  ;;  %v2347_v46 = vmul.f32 %v2346_v18, %v4372_v3  ;;  %v4405_v25 = vpop.eup %3249  ;;  %v2103_v17 = vsub.f32 %v4289_v53, %v4383_v12 }
0x1ab8   :  { %v1972_v51 = vmul.f32 %v4296_v7, %v1967_v31  ;;  %v1981_v13 = vmul.f32 %v1980_v63, %v4296_v7  ;;  %v1986_v45 = vmul.f32 %v1985_v62, %v4296_v7  ;;  %v2344_v31 = vmul.f32 -0.5, %v2343_v48  ;;  %v4411_v1 = vpop.eup %3251 }
0x1ab9   :  { %v2438_v23 = vmul.f32 -0.5, %v2437_v52  ;;  %v4413_v63 = vadd.f32 0.19785757, %v2433_v24  ;;  %v2442_v62 = vmul.f32 %v2441_v30, %v2441_v30  ;;  %v2446_v32 = vmul.f32 3.0550504, %v2445_v38  ;;  %v4421_v56 = vpop.eup %3253 }
0x1aba   :  { %v2450_v18 = vadd.f32 18.849556, %v4303_v44  ;;  %v1991_v16 = vmul.f32 %v4296_v7, %v4367_v21  ;;  %v2352_v5 = vmul.f32 %v4372_v3, %v4344_v6  ;;  %v2356_v48 = vadd.f32 6.2831855, %v4344_v6 }
0x1abb   :  { %v2101_v34 = vmul.f32 1.442695, %v2100_v36  ;;  %v2348_v53 = vmul.f32 %v2347_v46, %v2347_v46  ;;  %v4424_v52 = vadd.f32 %v4407_v60, %v2335_v50  ;;  %v4427_v24 = vadd.f32 %v2344_v31, %v4407_v60 }
0x1abc   :  { %v2456_v44 = vmax.f32 %v2455_v20, %v4413_v63  ;;  %v1973_v30 = vmul.f32 %v1972_v51, %v1972_v51  ;;  %v1982_v38 = vmul.f32 %v1981_v13, %v1981_v13  ;;  %v2104_v47 = vmul.f32 1.442695, %v2103_v17  ;;  %v4439_v17 = vpop.permute.xlu1 %1976 }
0x1abd   :  { %v2107_v9 = vsub.f32 %v4309_v57, %v4383_v12  ;;  %v4432_v40 = vadd.f32 0.19785757, %v2438_v23  ;;  %v2443_v36 = vmul.f32 -0.5, %v2442_v62  ;;  %v2447_v33 = vmul.f32 %v2446_v32, %v2446_v32 }
0x1abe   :  { %v2451_v28 = vmul.f32 3.0550504, %v2450_v18  ;;  %v1987_v46 = vmul.f32 %v1986_v45, %v1986_v45  ;;  %v2353_v35 = vmul.f32 %v2352_v5, %v2352_v5  ;;  %v2357_v50 = vmul.f32 %v2356_v48, %v4372_v3 }
0x1abf   :  { %v2361_v31 = vadd.f32 12.566371, %v4344_v6  ;;  %v2349_v2 = vmul.f32 -0.5, %v2348_v53  ;;  %v2371_v51 = vmax.f32 %v4424_v52, %v4427_v24  ;;  %3255 = vpow2.f32 %v2101_v34 }
0x1ac0   :  { %v2457_v13 = vmax.f32 %v2456_v44, %v4432_v40  ;;  %v1974_v20 = vmul.f32 -0.5, %v1973_v30  ;;  %v1983_v57 = vmul.f32 -0.5, %v1982_v38  ;;  %3257 = vpow2.f32 %v2104_v47 }
0x1ac1   :  { %v2108_v32 = vmul.f32 1.442695, %v2107_v9  ;;  %v4442_v45 = vadd.f32 %v2349_v2, %v4407_v60  ;;  %v4444_v23 = vadd.f32 0.19785757, %v2443_v36  ;;  %v2448_v62 = vmul.f32 -0.5, %v2447_v33 }
0x1ac2   :  { %v2452_v18 = vmul.f32 %v2451_v28, %v2451_v28  ;;  %v2354_v5 = vmul.f32 -0.5, %v2353_v35  ;;  %v2358_v48 = vmul.f32 %v2357_v50, %v2357_v50  ;;  %v2362_v53 = vmul.f32 %v2361_v31, %v4372_v3 }
0x1ac3   :  { %5000 = vst [vmem:[#allocation18_spill] sm:$0xff] %v4442_v45  ;;  %v2366_v34 = vadd.f32 18.849556, %v4344_v6  ;;  %v2372_v44 = vmax.f32 %v2371_v51, %v4442_v45  ;;  %v4450_v30 = vadd.f32 %v4439_v17, %v1974_v20  ;;  %v4453_v47 = vadd.f32 %v1983_v57, %v4439_v17 }
0x1ac4   :  { %v2458_v2 = vmax.f32 %v2457_v13, %v4444_v23  ;;  %v1996_v9 = vmul.f32 %v1995_v26, %v4296_v7  ;;  %v2000_v33 = vadd.f32 12.566371, %v4367_v21  ;;  %v2111_v35 = vsub.f32 %v4323_v37, %v4383_v12 }
0x1ac5   :  { %v1749_v28 = vadd.f32 %v4391_v41, %v1745_v14  ;;  %v3256_v6 = vpop.eup %3255  ;;  %v1992_v38 = vmul.f32 %v1991_v16, %v1991_v16  ;;  %v4462_v36 = vadd.f32 %v2354_v5, %v4407_v60  ;;  %v4464_v50 = vadd.f32 0.19785757, %v2448_v62 }
0x1ac6   :  { %v2453_v31 = vmul.f32 -0.5, %v2452_v18  ;;  %v3258_v51 = vpop.eup %3257  ;;  %v1988_v20 = vmul.f32 -0.5, %v1987_v46  ;;  %v2363_v13 = vmul.f32 %v2362_v53, %v2362_v53  ;;  %v2367_v26 = vmul.f32 %v2366_v34, %v4372_v3 }
0x1ac7   :  { %3259 = vpow2.f32 %v2108_v32  ;;  %v2359_v57 = vmul.f32 -0.5, %v2358_v48  ;;  %v2373_v45 = vmax.f32 %v2372_v44, %v4462_v36  ;;  %v2010_v37 = vmax.f32 %v4450_v30, %v4453_v47 }
0x1ac8   :  { %v2459_v16 = vmax.f32 %v2458_v2, %v4464_v50  ;;  %v2005_v41 = vadd.f32 18.849556, %v4367_v21  ;;  %v2112_v14 = vmul.f32 1.442695, %v2111_v35  ;;  %v2115_v62 = vsub.f32 %v4346_v22, %v4383_v12 }
0x1ac9   :  { %v1753_v46 = vadd.f32 %v4398_v4, %v1749_v28  ;;  %v2001_v18 = vmul.f32 %v2000_v33, %v4296_v7  ;;  %v4477_v3 = vadd.f32 %v2359_v57, %v4407_v60  ;;  %v4480_v32 = vadd.f32 %v1988_v20, %v4439_v17 }
0x1aca   :  { %v4482_v5 = vadd.f32 0.19785757, %v2453_v31  ;;  %v1993_v48 = vmul.f32 -0.5, %v1992_v38  ;;  %v1997_v53 = vmul.f32 %v1996_v9, %v1996_v9  ;;  %v2368_v34 = vmul.f32 %v2367_v26, %v2367_v26 }
0x1acb   :  { %v2106_v21 = vadd.f32 %v3258_v51, %v3256_v6  ;;  %v2364_v44 = vmul.f32 -0.5, %v2363_v13  ;;  %v2374_v2 = vmax.f32 %v2373_v45, %v4477_v3  ;;  %v2011_v22 = vmax.f32 %v2010_v37, %v4480_v32 }
0x1acc   :  { %v4487_v4 = vmax.f32 %v2459_v16, %v4482_v5  ;;  %v1584_v35 = vmul.f32 6.2831855, %v4364_v54  ;;  %3261 = vpow2.f32 %v2112_v14  ;;  %v2116_v28 = vmul.f32 1.442695, %v2115_v62 }
0x1acd   :  { %v3260_v33 = vpop.eup %3259  ;;  %v2119_v31 = vsub.f32 %v4356_v39, %v4383_v12  ;;  %v2006_v9 = vmul.f32 %v2005_v41, %v4296_v7  ;;  %v4494_v6 = vadd.f32 %v2364_v44, %v4407_v60  ;;  %v4497_v45 = vadd.f32 %v1993_v48, %v4439_v17 }
0x1ace   :  { %v1757_v38 = vadd.f32 %v4405_v25, %v1753_v46  ;;  %v1998_v51 = vmul.f32 -0.5, %v1997_v53  ;;  %v2002_v20 = vmul.f32 %v2001_v18, %v2001_v18  ;;  %v2110_v54 = vadd.f32 %v3260_v33, %v2106_v21 }
0x1acf   :  { %v2123_v13 = vsub.f32 %v4376_v58, %v4383_v12  ;;  %v2369_v26 = vmul.f32 -0.5, %v2368_v34  ;;  %v2375_v39 = vmax.f32 %v2374_v2, %v4494_v6  ;;  %v2012_v7 = vmax.f32 %v2011_v22, %v4497_v45 }
0x1ad0   :  { %v2461_v57 = vsub.f32 %v4386_v11, %v4487_v4  ;;  %v3010_v37 = vadd.f32 -3.1415927, %v1584_v35  ;;  %3263 = vpow2.f32 %v2116_v28  ;;  %v2120_v16 = vmul.f32 1.442695, %v2119_v31 }
0x1ad1   :  { %v4510_v25 = vadd.f32 -12.566371, %v4317_v27  ;;  %v4513_v41 = vadd.f32 -6.2831855, %v4317_v27  ;;  %v4516_v58 = vadd.f32 %v2369_v26, %v4407_v60  ;;  %v4519_v14 = vadd.f32 %v1998_v51, %v4439_v17 }
0x1ad2   :  { %v3262_v62 = vpop.eup %3261  ;;  %v2003_v11 = vmul.f32 -0.5, %v2002_v20  ;;  %v2007_v46 = vmul.f32 %v2006_v9, %v2006_v9  ;;  %v2124_v18 = vmul.f32 1.442695, %v2123_v13  ;;  %v1761_v48 = vadd.f32 %v4411_v1, %v1757_v38 }
0x1ad3   :  { %v2013_v53 = vmax.f32 %v2012_v7, %v4519_v14  ;;  %v2114_v34 = vadd.f32 %v3262_v62, %v2110_v54  ;;  %v2462_v21 = vmul.f32 1.442695, %v2461_v57  ;;  %v4527_v44 = vadd.f32 6.2831855, %v4317_v27 }
0x1ad4   :  { %v4530_v60 = vsub.f32 %v3010_v37, %v3839_v61  ;;  %3265 = vpow2.f32 %v2120_v16  ;;  %v4533_v22 = vadd.f32 12.566371, %v4317_v27  ;;  %v4536_v1 = vadd.f32 18.849556, %v4317_v27 }
0x1ad5   :  { %v4539_v33 = vadd.f32 %v2003_v11, %v4439_v17  ;;  %v4542_v35 = vmul.f32 0.6931472, %v4358_v43  ;;  %v2008_v31 = vmul.f32 -0.5, %v2007_v46  ;;  %3267 = vpow2.f32 %v2124_v18 }
0x1ad6   :  { %v3264_v28 = vpop.eup %3263  ;;  %v1765_v61 = vadd.f32 %v4421_v56, %v1761_v48  ;;  %v2468_v9 = vsub.f32 %v4413_v63, %v4487_v4  ;;  %3269 = vpow2.f32 %v2462_v21  ;;  %v4553_v43 = vadd.f32 -18.849556, %v4530_v60 }
0x1ad7   :  { %v2014_v51 = vmax.f32 %v2013_v53, %v4539_v33  ;;  %v2118_v20 = vadd.f32 %v3264_v28, %v2114_v34  ;;  %v4556_v13 = vadd.f32 -12.566371, %v4530_v60  ;;  %v4559_v56 = vadd.f32 %v2008_v31, %v4439_v17 }
0x1ad8   :  { %v4562_v63 = vadd.f32 -6.2831855, %v4530_v60  ;;  %v4568_v26 = vadd.f32 12.566371, %v4530_v60  ;;  %v2469_v7 = vmul.f32 1.442695, %v2468_v9  ;;  %v2472_v57 = vsub.f32 %v4432_v40, %v4487_v4 }
0x1ad9   :  { %v889_v17 = vmul.f32 %v4339_v10, %v4195_v59  ;;  %v4578_v16 = vmax.f32 %v2014_v51, %v4559_v56  ;;  %v898_v11 = vmul.f32 %v4207_v49, %v4339_v10  ;;  %v903_v46 = vmul.f32 %v4211_v0, %v4339_v10 }
0x1ada   :  { %v2476_v48 = vsub.f32 %v4444_v23, %v4487_v4  ;;  %v908_v59 = vmul.f32 %v4339_v10, %v4181_v15  ;;  %v913_v53 = vmul.f32 %v4216_v29, %v4339_v10  ;;  %v918_v34 = vmul.f32 %v4312_v55, %v4339_v10 }
0x1adb   :  { %v2480_v49 = vsub.f32 %v4464_v50, %v4487_v4  ;;  %v923_v0 = vmul.f32 %v4328_v19, %v4339_v10  ;;  %v2473_v28 = vmul.f32 1.442695, %v2472_v57  ;;  %v890_v31 = vmul.f32 %v889_v17, %v889_v17 }
0x1adc   :  { %1048 = vadd.xlane.f32.xlu0 %v4331_v42  ;;  %v2464_v42 = vsub.f32 %v4388_v8, %v4487_v4  ;;  %v4523_v8 = vmax.f32 %v2375_v39, %v4516_v58  ;;  %v4571_v39 = vadd.f32 18.849556, %v4530_v60  ;;  %v2016_v15 = vsub.f32 %v4450_v30, %v4578_v16 }
0x1add   :  { %v899_v55 = vmul.f32 %v898_v11, %v898_v11  ;;  %v2019_v50 = vsub.f32 %v4453_v47, %v4578_v16  ;;  %v2477_v9 = vmul.f32 1.442695, %v2476_v48  ;;  %v904_v19 = vmul.f32 %v903_v46, %v903_v46 }
0x1ade   :  { %v2465_v2 = vmul.f32 1.442695, %v2464_v42  ;;  %v2377_v38 = vsub.f32 %v4424_v52, %v4523_v8  ;;  %v2380_v54 = vsub.f32 %v4427_v24, %v4523_v8  ;;  %v4565_v52 = vadd.f32 6.2831855, %v4530_v60  ;;  %v3266_v24 = vpop.eup %3265 }
0x1adf   :  { %v2122_v42 = vadd.f32 %v3266_v24, %v2118_v20  ;;  %v3268_v62 = vpop.eup %3267  ;;  %v909_v10 = vmul.f32 %v908_v59, %v908_v59  ;;  %v2481_v51 = vmul.f32 1.442695, %v2480_v49  ;;  %v914_v20 = vmul.f32 %v913_v53, %v913_v53 }
0x1ae0   :  { %3271 = vpow2.f32 %v2465_v2  ;;  %v2378_v37 = vmul.f32 1.442695, %v2377_v38  ;;  %v2381_v18 = vmul.f32 1.442695, %v2380_v54  ;;  %v3270_v40 = vpop.eup %3269  ;;  %v5001_v2 = vld [vmem:[#allocation18_spill] sm:$0xff]  ;;  %v2388_v24 = vsub.f32 %v4462_v36, %v4523_v8 }
0x1ae1   :  { %3273 = vlog2.f32 %v1765_v61  ;;  %v2384_v23 = vsub.f32 %v5001_v2, %v4523_v8  ;;  %v2126_v29 = vadd.f32 %v3268_v62, %v2122_v42  ;;  %v919_v30 = vmul.f32 %v918_v34, %v918_v34 }
0x1ae2   :  { %3275 = vpow2.f32 %v2469_v7  ;;  %v924_v7 = vmul.f32 %v923_v0, %v923_v0  ;;  %v2017_v57 = vmul.f32 1.442695, %v2016_v15  ;;  %v2020_v42 = vmul.f32 1.442695, %v2019_v50 }
0x1ae3   :  { %3277 = vpow2.f32 %v2378_v37  ;;  %v2385_v54 = vmul.f32 1.442695, %v2384_v23  ;;  %v4606_v37 = vmul.f32 -0.5, %v890_v31  ;;  %v2484_v47 = vsub.f32 %v4482_v5, %v4487_v4 }
0x1ae4   :  { %3279 = vpow2.f32 %v2381_v18  ;;  %v4610_v11 = vmul.f32 -0.5, %v899_v55  ;;  %v2392_v46 = vsub.f32 %v4477_v3, %v4523_v8  ;;  %v4614_v48 = vmul.f32 -0.5, %v904_v19  ;;  %v5002_v3 = vld [vmem:[#allocation13_spill] sm:$0xff] }
0x1ae5   :  { %3281 = vpow2.f32 %v2473_v28  ;;  %v2023_v59 = vsub.f32 %v4480_v32, %v4578_v16  ;;  %v4618_v53 = vmul.f32 -0.5, %v909_v10  ;;  %v4620_v34 = vmul.f32 -0.5, %v914_v20  ;;  %v5003_v28 = vld [vmem:[#allocation16_spill] sm:$0xff]  ;;  %v5004_v32 = vld [vmem:[#allocation17_spill] sm:$0xff] }
0x1ae6   :  { %v3272_v21 = vpop.eup %3271  ;;  %3283 = vlog2.f32 %v2126_v29  ;;  %v4622_v5 = vmul.f32 -0.5, %v919_v30  ;;  %v4627_v0 = vmul.f32 0.125, %v5002_v3  ;;  %v4629_v2 = vmul.f32 1.442695, %v2484_v47 }
0x1ae7   :  { %v4600_v61 = vpop.eup %3273  ;;  %v2467_v38 = vadd.f32 %v3272_v21, %v3270_v40  ;;  %3285 = vpow2.f32 %v2477_v9  ;;  %v2389_v40 = vmul.f32 1.442695, %v2388_v24  ;;  %v4624_v21 = vmul.f32 -0.5, %v924_v7  ;;  %v5005_v7 = vld [vmem:[#allocation11_spill] sm:$0xff] }
0x1ae8   :  { %v3276_v17 = vpop.eup %3275  ;;  %3287 = vpow2.f32 %v2481_v51  ;;  %v1250_v31 = vmul.f32 %v5004_v32, %v5003_v28  ;;  %v2393_v15 = vmul.f32 1.442695, %v2392_v46  ;;  %v1259_v9 = vmul.f32 %v4510_v25, %v5004_v32 }
0x1ae9   :  { %v3278_v62 = vpop.eup %3277  ;;  %v2471_v36 = vadd.f32 %v3276_v17, %v2467_v38  ;;  %3289 = vpow2.f32 %v2385_v54  ;;  %v2024_v19 = vmul.f32 1.442695, %v2023_v59  ;;  %v2027_v10 = vsub.f32 %v4497_v45, %v4578_v16 }
0x1aea   :  { %v3280_v18 = vpop.eup %3279  ;;  %3291 = vpow2.f32 %v2017_v57  ;;  %v1264_v51 = vmul.f32 %v4513_v41, %v5004_v32  ;;  %v1269_v20 = vmul.f32 %v5004_v32, %v4317_v27  ;;  %v1274_v54 = vmul.f32 %v4527_v44, %v5004_v32 }
0x1aeb   :  { %v3282_v49 = vpop.eup %3281  ;;  %3293 = vpow2.f32 %v2020_v42  ;;  %v2383_v55 = vadd.f32 %v3280_v18, %v3278_v62  ;;  %v2396_v24 = vsub.f32 %v4494_v6, %v4523_v8  ;;  %v1279_v30 = vmul.f32 %v4533_v22, %v5004_v32 }
0x1aec   :  { %v4631_v23 = vpop.eup %3283  ;;  %v2475_v29 = vadd.f32 %v3282_v49, %v2471_v36  ;;  %3295 = vpow2.f32 %v2389_v40  ;;  %v1284_v45 = vmul.f32 %v4536_v1, %v5004_v32  ;;  %v2644_v57 = vadd.f32 %v5005_v7, %v4627_v0 }
0x1aed   :  { %v3286_v50 = vpop.eup %3285  ;;  %v2400_v41 = vsub.f32 %v4516_v58, %v4523_v8  ;;  %v1251_v17 = vmul.f32 %v1250_v31, %v1250_v31  ;;  %v2031_v44 = vsub.f32 %v4519_v14, %v4578_v16  ;;  %3297 = vpow2.f32 %v2393_v15 }
0x1aee   :  { %v4639_v38 = vpop.eup %3287  ;;  %v1260_v62 = vmul.f32 %v1259_v9, %v1259_v9  ;;  %3299 = vpow2.f32 %v2024_v19  ;;  %v2028_v22 = vmul.f32 1.442695, %v2027_v10  ;;  %v1265_v1 = vmul.f32 %v1264_v51, %v1264_v51 }
0x1aef   :  { %v3290_v25 = vpop.eup %3289  ;;  %v1270_v36 = vmul.f32 %v1269_v20, %v1269_v20  ;;  %v4659_v18 = vadd.f32 %v3286_v50, %v2475_v29  ;;  %v2397_v40 = vmul.f32 1.442695, %v2396_v24  ;;  %v1275_v58 = vmul.f32 %v1274_v54, %v1274_v54 }
0x1af0   :  { %v3292_v27 = vpop.eup %3291  ;;  %v2387_v6 = vadd.f32 %v3290_v25, %v2383_v55  ;;  %v1280_v49 = vmul.f32 %v1279_v30, %v1279_v30  ;;  %v2401_v28 = vmul.f32 1.442695, %v2400_v41  ;;  %v1285_v32 = vmul.f32 %v1284_v45, %v1284_v45 }
0x1af1   :  { %v3294_v47 = vpop.eup %3293  ;;  %v2032_v14 = vmul.f32 1.442695, %v2031_v44  ;;  %v4661_v15 = vmul.f32 -0.5, %v1251_v17  ;;  %v4663_v9 = vmul.f32 -0.5, %v1260_v62  ;;  %3301 = vpow2.f32 %v2028_v22 }
0x1af2   :  { %v3296_v59 = vpop.eup %3295  ;;  %v2022_v31 = vadd.f32 %v3294_v47, %v3292_v27  ;;  %v4665_v51 = vmul.f32 -0.5, %v1265_v1  ;;  %v4667_v29 = vmul.f32 -0.5, %v1270_v36  ;;  %v2035_v50 = vsub.f32 %v4539_v33, %v4578_v16 }
0x1af3   :  { %v2391_v55 = vadd.f32 %v3296_v59, %v2387_v6  ;;  %v3298_v10 = vpop.eup %3297  ;;  %3303 = vpow2.f32 %v2397_v40  ;;  %v4671_v54 = vmul.f32 -0.5, %v1275_v58  ;;  %v4673_v24 = vmul.f32 -0.5, %v1280_v49 }
0x1af4   :  { %v3300_v20 = vpop.eup %3299  ;;  %3305 = vpow2.f32 %v2401_v28  ;;  %v2036_v62 = vmul.f32 1.442695, %v2035_v50  ;;  %v4688_v28 = vmul.f32 -0.5, %v1285_v32 }
0x1af5   :  { %v2026_v45 = vadd.f32 %v3300_v20, %v2022_v31  ;;  %3307 = vpow2.f32 %v2032_v14  ;;  %v2395_v41 = vadd.f32 %v3298_v10, %v2391_v55  ;;  %v1616_v14 = vpop.permute.xlu2 %1615 }
0x1af6   :  { %3309 = vpow2.f32 %v2036_v62 }
0x1af7   :  { %v3302_v22 = vpop.eup %3301 }
0x1af8   :  { %v2030_v58 = vadd.f32 %v3302_v22, %v2026_v45 }
0x1af9   :  { %v3304_v40 = vpop.eup %3303 }
0x1afa   :  { %v4684_v49 = vpop.eup %3305  ;;  %v4690_v55 = vadd.f32 %v3304_v40, %v2395_v41 }
0x1afc   :  { %v2653_v42 = vpop.permute.xlu0 %2652 }
0x1afd   :  { %v2655_v46 = vadd.f32 %v2653_v42, %v2644_v57  ;;  %v2039_v57 = vsub.f32 %v4559_v56, %v4578_v16 }
0x1aff   :  { %v2656_v3 = vadd.f32 3.1415927, %v2655_v46 }
0x1b01   :  { %v2657_v19 = vmul.f32 0.15915494, %v2656_v3 }
0x1b03   :  { %v2658_v25 = vfloor.f32 %v2657_v19 }
0x1b04   :  { %v1609_v30 = vpop.permute.xlu0 %1608 }
0x1b05   :  { %v2659_v27 = vsub.f32 %v2657_v19, %v2658_v25  ;;  %v1611_v17 = vmul.f32 %v1609_v30, %v4553_v43  ;;  %v1620_v33 = vmul.f32 %v4556_v13, %v1609_v30  ;;  %v1625_v44 = vmul.f32 %v4562_v63, %v1609_v30 }
0x1b06   :  { %v1630_v42 = vmul.f32 %v1609_v30, %v4530_v60  ;;  %v1635_v6 = vmul.f32 %v4565_v52, %v1609_v30  ;;  %v1640_v47 = vmul.f32 %v4568_v26, %v1609_v30  ;;  %v1645_v43 = vmul.f32 %v4571_v39, %v1609_v30  ;;  %v3308_v26 = vpop.eup %3307 }
0x1b07   :  { %v2660_v46 = vmul.f32 6.2831855, %v2659_v27  ;;  %v1612_v1 = vmul.f32 %v1611_v17, %v1611_v17  ;;  %v1621_v36 = vmul.f32 %v1620_v33, %v1620_v33  ;;  %v1626_v56 = vmul.f32 %v1625_v44, %v1625_v44 }
0x1b08   :  { %v1631_v59 = vmul.f32 %v1630_v42, %v1630_v42  ;;  %v2040_v13 = vmul.f32 1.442695, %v2039_v57  ;;  %v1636_v3 = vmul.f32 %v1635_v6, %v1635_v6  ;;  %v1641_v50 = vmul.f32 %v1640_v47, %v1640_v47 }
0x1b09   :  { %v4686_v63 = vadd.f32 -3.1415927, %v2660_v46  ;;  %v1613_v60 = vmul.f32 -0.5, %v1612_v1  ;;  %v1622_v52 = vmul.f32 -0.5, %v1621_v36  ;;  %v1627_v31 = vmul.f32 -0.5, %v1626_v56  ;;  %v3310_v46 = vpop.eup %3309 }
0x1b0a   :  { %v1632_v25 = vmul.f32 -0.5, %v1631_v59  ;;  %v2034_v32 = vadd.f32 %v3308_v26, %v2030_v58  ;;  %3311 = vpow2.f32 %v2040_v13  ;;  %v1637_v27 = vmul.f32 -0.5, %v1636_v3 }
0x1b0b   :  { %v2662_v39 = vsub.f32 %v4686_v63, %v5005_v7  ;;  %v2771_v19 = vsub.f32 %v5005_v7, %v4686_v63  ;;  %v4696_v10 = vadd.f32 %v1616_v14, %v1613_v60  ;;  %v4698_v20 = vadd.f32 %v1622_v52, %v1616_v14 }
0x1b0c   :  { %v894_v30 = vpop.permute.xlu0 %893  ;;  %v1646_v41 = vmul.f32 %v1645_v43, %v1645_v43  ;;  %v4700_v17 = vadd.f32 %v1627_v31, %v1616_v14  ;;  %v2778_v62 = vsub.f32 0.0, %v4686_v63  ;;  %v1642_v22 = vmul.f32 -0.5, %v1641_v50 }
0x1b0d   :  { %v2663_v45 = vadd.f32 3.1415927, %v2662_v39  ;;  %v2772_v57 = vadd.f32 3.1415927, %v2771_v19  ;;  %v1649_v33 = vmax.f32 %v4696_v10, %v4698_v20  ;;  %v4705_v44 = vadd.f32 %v894_v30, %v4606_v37 }
0x1b0e   :  { %v4708_v42 = vadd.f32 %v4610_v11, %v894_v30  ;;  %v4711_v1 = vadd.f32 %v1632_v25, %v1616_v14  ;;  %v906_v56 = vadd.f32 %v4614_v48, %v894_v30  ;;  %v1647_v43 = vmul.f32 -0.5, %v1646_v41 }
0x1b0f   :  { %v2664_v6 = vmul.f32 0.15915494, %v2663_v45  ;;  %v2773_v47 = vmul.f32 0.15915494, %v2772_v57  ;;  %v1650_v36 = vmax.f32 %v1649_v33, %v4700_v17  ;;  %v4717_v11 = vadd.f32 %v3310_v46, %v2034_v32 }
0x1b10   :  { %v927_v40 = vmax.f32 %v4705_v44, %v4708_v42  ;;  %v4719_v58 = vpop.eup %3311  ;;  %v4721_v13 = vadd.f32 %v1637_v27, %v1616_v14  ;;  %v911_v52 = vadd.f32 %v4618_v53, %v894_v30  ;;  %v2779_v48 = vmul.f32 0.125, %v2778_v62 }
0x1b11   :  { %v2665_v37 = vfloor.f32 %v2664_v6  ;;  %v2774_v59 = vfloor.f32 %v2773_v47  ;;  %v1651_v60 = vmax.f32 %v1650_v36, %v4711_v1  ;;  %v4725_v39 = vadd.f32 %v1642_v22, %v1616_v14 }
0x1b12   :  { %v928_v3 = vmax.f32 %v927_v40, %v906_v56  ;;  %v916_v50 = vadd.f32 %v4620_v34, %v894_v30  ;;  %v4730_v25 = vadd.f32 %v4622_v5, %v894_v30  ;;  %v4742_v34 = vadd.f32 %v1647_v43, %v1616_v14 }
0x1b13   :  { %v2666_v26 = vsub.f32 %v2664_v6, %v2665_v37  ;;  %v2775_v31 = vsub.f32 %v2773_v47, %v2774_v59  ;;  %v1652_v19 = vmax.f32 %v1651_v60, %v4721_v13  ;;  %v4740_v6 = vadd.f32 %v4624_v21, %v894_v30 }
0x1b14   :  { %v929_v32 = vmax.f32 %v928_v3, %v911_v52  ;;  %v1255_v45 = vpop.permute.xlu0 %1254 }
0x1b15   :  { %v2667_v57 = vmul.f32 6.2831855, %v2666_v26  ;;  %v2776_v27 = vmul.f32 6.2831855, %v2775_v31  ;;  %v4733_v41 = vadd.f32 %v1255_v45, %v4661_v15  ;;  %v4736_v53 = vadd.f32 %v4663_v9, %v1255_v45 }
0x1b16   :  { %v1653_v33 = vmax.f32 %v1652_v19, %v4725_v39  ;;  %v930_v47 = vmax.f32 %v929_v32, %v916_v50  ;;  %v4745_v22 = vadd.f32 %v4665_v51, %v1255_v45  ;;  %v4748_v46 = vadd.f32 %v4667_v29, %v1255_v45 }
0x1b17   :  { %v3037_v5 = vadd.f32 -3.1415927, %v2667_v57  ;;  %v3038_v62 = vadd.f32 -3.1415927, %v2776_v27  ;;  %v4752_v9 = vadd.f32 %v4671_v54, %v1255_v45  ;;  %v1288_v21 = vmax.f32 %v4733_v41, %v4736_v53 }
0x1b18   :  { %v931_v15 = vmax.f32 %v930_v47, %v4730_v25  ;;  %v4757_v30 = vmax.f32 %v1653_v33, %v4742_v34  ;;  %v4763_v51 = vadd.f32 %v4673_v24, %v1255_v45  ;;  %v4766_v29 = vadd.f32 %v4688_v28, %v1255_v45 }
0x1b19   :  { %v2688_v14 = vsub.f32 %v3037_v5, %v4627_v0  ;;  %v4760_v36 = vsub.f32 %v3038_v62, %v2779_v48  ;;  %v1289_v54 = vmax.f32 %v1288_v21, %v4745_v22 }
0x1b1a   :  { %v4769_v40 = vmax.f32 %v931_v15, %v4740_v6  ;;  %v1655_v37 = vsub.f32 %v4696_v10, %v4757_v30  ;;  %v1674_v10 = vsub.f32 %v4725_v39, %v4757_v30 }
0x1b1b   :  { %v2689_v0 = vadd.f32 -18.849556, %v2688_v14  ;;  %v2702_v43 = vadd.f32 -12.566371, %v2688_v14  ;;  %v2707_v60 = vadd.f32 -6.2831855, %v2688_v14  ;;  %v1290_v32 = vmax.f32 %v1289_v54, %v4748_v46 }
0x1b1c   :  { %v933_v28 = vsub.f32 %v4705_v44, %v4769_v40  ;;  %v936_v3 = vsub.f32 %v4708_v42, %v4769_v40  ;;  %v940_v26 = vsub.f32 %v906_v56, %v4769_v40  ;;  %v944_v31 = vsub.f32 %v911_v52, %v4769_v40  ;;  %v2692_v48 = vpop.permute.xlu0 %2691 }
0x1b1d   :  { %v948_v19 = vsub.f32 %v916_v50, %v4769_v40  ;;  %v2717_v45 = vadd.f32 6.2831855, %v2688_v14  ;;  %v2722_v57 = vadd.f32 12.566371, %v2688_v14  ;;  %v2694_v5 = vmul.f32 %v2692_v48, %v2689_v0 }
0x1b1e   :  { %v934_v27 = vmul.f32 1.442695, %v933_v28  ;;  %v937_v33 = vmul.f32 1.442695, %v936_v3  ;;  %v941_v47 = vmul.f32 1.442695, %v940_v26  ;;  %v1291_v42 = vmax.f32 %v1290_v32, %v4752_v9 }
0x1b1f   :  { %v945_v62 = vmul.f32 1.442695, %v944_v31  ;;  %v4786_v44 = vmul.f32 1.442695, %v948_v19  ;;  %v2727_v15 = vadd.f32 18.849556, %v2688_v14  ;;  %v2695_v56 = vmul.f32 %v2694_v5, %v2694_v5 }
0x1b20   :  { %3313 = vpow2.f32 %v934_v27  ;;  %v2703_v52 = vmul.f32 %v2702_v43, %v2692_v48  ;;  %v2708_v21 = vmul.f32 %v2707_v60, %v2692_v48  ;;  %v1292_v50 = vmax.f32 %v1291_v42, %v4763_v51 }
0x1b21   :  { %3315 = vpow2.f32 %v937_v33  ;;  %v2713_v54 = vmul.f32 %v2692_v48, %v2688_v14  ;;  %v2718_v24 = vmul.f32 %v2717_v45, %v2692_v48  ;;  %v2696_v28 = vmul.f32 -0.5, %v2695_v56 }
0x1b22   :  { %3317 = vpow2.f32 %v941_v47  ;;  %v2704_v3 = vmul.f32 %v2703_v52, %v2703_v52  ;;  %v2709_v26 = vmul.f32 %v2708_v21, %v2708_v21  ;;  %v4791_v0 = vmax.f32 %v1292_v50, %v4766_v29 }
0x1b23   :  { %3319 = vpow2.f32 %v945_v62  ;;  %v2714_v31 = vmul.f32 %v2713_v54, %v2713_v54  ;;  %v2719_v19 = vmul.f32 %v2718_v24, %v2718_v24  ;;  %v2723_v5 = vmul.f32 %v2722_v57, %v2692_v48 }
0x1b24   :  { %v2705_v32 = vmul.f32 -0.5, %v2704_v3  ;;  %v2710_v27 = vmul.f32 -0.5, %v2709_v26  ;;  %v2728_v43 = vmul.f32 %v2727_v15, %v2692_v48  ;;  %v1294_v60 = vsub.f32 %v4733_v41, %v4791_v0  ;;  %v2699_v47 = vpop.permute.xlu0 %2698 }
0x1b25   :  { %v1297_v14 = vsub.f32 %v4736_v53, %v4791_v0  ;;  %v1301_v45 = vsub.f32 %v4745_v22, %v4791_v0  ;;  %v1305_v33 = vsub.f32 %v4748_v46, %v4791_v0  ;;  %v1309_v24 = vsub.f32 %v4752_v9, %v4791_v0 }
0x1b26   :  { %v3314_v62 = vpop.eup %3313  ;;  %v2715_v42 = vmul.f32 -0.5, %v2714_v31  ;;  %v2720_v57 = vmul.f32 -0.5, %v2719_v19  ;;  %v2724_v48 = vmul.f32 %v2723_v5, %v2723_v5  ;;  %v1295_v56 = vmul.f32 1.442695, %v1294_v60 }
0x1b27   :  { %v3316_v15 = vpop.eup %3315  ;;  %v1298_v41 = vmul.f32 1.442695, %v1297_v14  ;;  %v1302_v52 = vmul.f32 1.442695, %v1301_v45  ;;  %v2729_v21 = vmul.f32 %v2728_v43, %v2728_v43  ;;  %v1306_v50 = vmul.f32 1.442695, %v1305_v33 }
0x1b28   :  { %v3318_v53 = vpop.eup %3317  ;;  %v4803_v54 = vmul.f32 1.442695, %v1309_v24  ;;  %v2725_v22 = vmul.f32 -0.5, %v2724_v48  ;;  %v4805_v3 = vadd.f32 %v2699_v47, %v2696_v28  ;;  %3321 = vpow2.f32 %v1295_v56 }
0x1b29   :  { %v3320_v46 = vpop.eup %3319  ;;  %v2730_v26 = vmul.f32 -0.5, %v2729_v21  ;;  %v4807_v59 = vadd.f32 %v2705_v32, %v2699_v47  ;;  %v4809_v9 = vadd.f32 %v2710_v27, %v2699_v47  ;;  %3323 = vpow2.f32 %v1298_v41 }
0x1b2a   :  { %v4811_v31 = vadd.f32 %v2715_v42, %v2699_v47  ;;  %v4813_v19 = vadd.f32 %v2720_v57, %v2699_v47  ;;  %v4815_v5 = vadd.f32 %v2725_v22, %v2699_v47  ;;  %3325 = vpow2.f32 %v1302_v52 }
0x1b2b   :  { %v4817_v43 = vadd.f32 %v2730_v26, %v2699_v47  ;;  %v2732_v28 = vmax.f32 %v4805_v3, %v4807_v59  ;;  %v1656_v32 = vmul.f32 1.442695, %v1655_v37  ;;  %3327 = vpow2.f32 %v1306_v50 }
0x1b2c   :  { %v5006_v27 = vsub.f32 %v4698_v20, %v4757_v30  ;;  %v5007_v14 = vsub.f32 %v4700_v17, %v4757_v30  ;;  %v1666_v33 = vsub.f32 %v4711_v1, %v4757_v30  ;;  %v1670_v24 = vsub.f32 %v4721_v13, %v4757_v30 }
0x1b2d   :  { %v2733_v47 = vmax.f32 %v2732_v28, %v4809_v9  ;;  %3329 = vpow2.f32 %v1656_v32  ;;  %v1678_v20 = vsub.f32 %v4742_v34, %v4757_v30  ;;  %v939_v42 = vadd.f32 %v3316_v15, %v3314_v62 }
0x1b2e   :  { %v1659_v60 = vmul.f32 1.442695, %v5006_v27  ;;  %v1663_v45 = vmul.f32 1.442695, %v5007_v14  ;;  %v1667_v37 = vmul.f32 1.442695, %v1666_v33  ;;  %v3322_v17 = vpop.eup %3321  ;;  %v952_v13 = vsub.f32 %v4730_v25, %v4769_v40 }
0x1b2f   :  { %v2734_v57 = vmax.f32 %v2733_v47, %v4811_v31  ;;  %v1671_v1 = vmul.f32 1.442695, %v1670_v24  ;;  %v1675_v48 = vmul.f32 1.442695, %v1674_v10  ;;  %v3324_v56 = vpop.eup %3323  ;;  %v1679_v41 = vmul.f32 1.442695, %v1678_v20 }
0x1b30   :  { %3331 = vpow2.f32 %v1659_v60  ;;  %v943_v52 = vadd.f32 %v3318_v53, %v939_v42  ;;  %v3326_v39 = vpop.eup %3325  ;;  %v956_v34 = vsub.f32 %v4740_v6, %v4769_v40  ;;  %v1300_v62 = vadd.f32 %v3324_v56, %v3322_v17 }
0x1b31   :  { %3333 = vpow2.f32 %v1663_v45  ;;  %v2735_v21 = vmax.f32 %v2734_v57, %v4813_v19  ;;  %v3328_v15 = vpop.eup %3327  ;;  %v953_v22 = vmul.f32 1.442695, %v952_v13  ;;  %v1313_v26 = vsub.f32 %v4763_v51, %v4791_v0 }
0x1b32   :  { %3335 = vpow2.f32 %v1667_v37  ;;  %v947_v50 = vadd.f32 %v3320_v46, %v943_v52  ;;  %v957_v25 = vmul.f32 1.442695, %v956_v34  ;;  %v1304_v32 = vadd.f32 %v3326_v39, %v1300_v62 }
0x1b33   :  { %3337 = vpow2.f32 %v1671_v1  ;;  %v3330_v28 = vpop.eup %3329  ;;  %v2736_v53 = vmax.f32 %v2735_v21, %v4815_v5  ;;  %v1314_v60 = vmul.f32 1.442695, %v1313_v26  ;;  %v1317_v6 = vsub.f32 %v4766_v29, %v4791_v0 }
0x1b34   :  { %3339 = vpow2.f32 %v1675_v48  ;;  %v2781_v14 = vadd.f32 -18.849556, %v4760_v36  ;;  %v1308_v33 = vadd.f32 %v3328_v15, %v1304_v32  ;;  %v2786_v37 = vadd.f32 -12.566371, %v4760_v36 }
0x1b35   :  { %3341 = vpow2.f32 %v1679_v41  ;;  %v4853_v45 = vmax.f32 %v2736_v53, %v4817_v43  ;;  %v1318_v24 = vmul.f32 1.442695, %v1317_v6  ;;  %v2791_v53 = vadd.f32 -6.2831855, %v4760_v36 }
0x1b36   :  { %v3332_v27 = vpop.eup %3331  ;;  %3343 = vpow2.f32 %v4786_v44  ;;  %v2782_v10 = vmul.f32 3.0237157, %v2781_v14 }
0x1b37   :  { %v3334_v46 = vpop.eup %3333  ;;  %v1661_v51 = vadd.f32 %v3332_v27, %v3330_v28  ;;  %3345 = vpow2.f32 %v953_v22  ;;  %v2738_v20 = vsub.f32 %v4805_v3, %v4853_v45  ;;  %v2741_v29 = vsub.f32 %v4807_v59, %v4853_v45 }
0x1b38   :  { %v3336_v47 = vpop.eup %3335  ;;  %3347 = vpow2.f32 %v957_v25  ;;  %v2745_v42 = vsub.f32 %v4809_v9, %v4853_v45  ;;  %v2749_v17 = vsub.f32 %v4811_v31, %v4853_v45  ;;  %v2753_v1 = vsub.f32 %v4813_v19, %v4853_v45 }
0x1b39   :  { %v3338_v44 = vpop.eup %3337  ;;  %v1665_v48 = vadd.f32 %v3334_v46, %v1661_v51  ;;  %3349 = vpow2.f32 %v4803_v54  ;;  %v2757_v56 = vsub.f32 %v4815_v5, %v4853_v45  ;;  %v2739_v41 = vmul.f32 1.442695, %v2738_v20 }
0x1b3a   :  { %v3340_v57 = vpop.eup %3339  ;;  %v2742_v52 = vmul.f32 1.442695, %v2741_v29  ;;  %v2746_v59 = vmul.f32 1.442695, %v2745_v42  ;;  %3351 = vpow2.f32 %v1314_v60  ;;  %v2750_v9 = vmul.f32 1.442695, %v2749_v17 }
0x1b3b   :  { %v3342_v3 = vpop.eup %3341  ;;  %v2754_v39 = vmul.f32 1.442695, %v2753_v1  ;;  %v1669_v21 = vadd.f32 %v3336_v47, %v1665_v48  ;;  %3353 = vpow2.f32 %v1318_v24  ;;  %v2758_v19 = vmul.f32 1.442695, %v2757_v56 }
0x1b3c   :  { %v3344_v13 = vpop.eup %3343  ;;  %3355 = vpow2.f32 %v2739_v41  ;;  %v2761_v54 = vsub.f32 %v4817_v43, %v4853_v45  ;;  %v2783_v15 = vmul.f32 %v2782_v10, %v2782_v10  ;;  %v2787_v22 = vmul.f32 3.0237157, %v2786_v37 }
0x1b3d   :  { %v3346_v31 = vpop.eup %3345  ;;  %v951_v34 = vadd.f32 %v3344_v13, %v947_v50  ;;  %3357 = vpow2.f32 %v2742_v52  ;;  %v1673_v5 = vadd.f32 %v3338_v44, %v1669_v21  ;;  %v2792_v43 = vmul.f32 3.0237157, %v2791_v53 }
0x1b3e   :  { %v3348_v62 = vpop.eup %3347  ;;  %3359 = vpow2.f32 %v2746_v59  ;;  %v2762_v28 = vmul.f32 1.442695, %v2761_v54  ;;  %v2784_v27 = vmul.f32 -0.5, %v2783_v15  ;;  %v2788_v60 = vmul.f32 %v2787_v22, %v2787_v22 }
0x1b3f   :  { %v955_v26 = vadd.f32 %v3346_v31, %v951_v34  ;;  %v3350_v25 = vpop.eup %3349  ;;  %3361 = vpow2.f32 %v2750_v9  ;;  %v1677_v32 = vadd.f32 %v3340_v57, %v1673_v5  ;;  %v2793_v44 = vmul.f32 %v2792_v43, %v2792_v43 }
0x1b40   :  { %v3352_v50 = vpop.eup %3351  ;;  %v1312_v14 = vadd.f32 %v3350_v25, %v1308_v33  ;;  %3363 = vpow2.f32 %v2754_v39  ;;  %v4872_v47 = vadd.f32 0.18754794, %v2784_v27  ;;  %v2789_v24 = vmul.f32 -0.5, %v2788_v60 }
0x1b41   :  { %v959_v6 = vadd.f32 %v3348_v62, %v955_v26  ;;  %v3354_v46 = vpop.eup %3353  ;;  %v1681_v51 = vadd.f32 %v3342_v3, %v1677_v32  ;;  %3365 = vpow2.f32 %v2758_v19  ;;  %v2797_v20 = vmul.f32 3.0237157, %v4760_v36 }
0x1b42   :  { %v3356_v10 = vpop.eup %3355  ;;  %v1316_v37 = vadd.f32 %v3352_v50, %v1312_v14  ;;  %v4875_v42 = vadd.f32 0.18754794, %v2789_v24  ;;  %v2801_v33 = vadd.f32 6.2831855, %v4760_v36  ;;  %v2806_v17 = vadd.f32 12.566371, %v4760_v36 }
0x1b43   :  { %3367 = vlog2.f32 %v959_v6  ;;  %v3358_v29 = vpop.eup %3357  ;;  %v2794_v56 = vmul.f32 -0.5, %v2793_v44  ;;  %v2798_v41 = vmul.f32 %v2797_v20, %v2797_v20  ;;  %v2811_v13 = vadd.f32 18.849556, %v4760_v36 }
0x1b44   :  { %3369 = vlog2.f32 %v1681_v51  ;;  %v3360_v57 = vpop.eup %3359  ;;  %v1320_v1 = vadd.f32 %v3354_v46, %v1316_v37  ;;  %v2744_v48 = vadd.f32 %v3358_v29, %v3356_v10  ;;  %v2802_v52 = vmul.f32 3.0237157, %v2801_v33 }
0x1b45   :  { %3371 = vpow2.f32 %v2762_v28  ;;  %v3362_v3 = vpop.eup %3361  ;;  %v2807_v59 = vmul.f32 3.0237157, %v2806_v17  ;;  %v4880_v21 = vadd.f32 0.18754794, %v2794_v56  ;;  %v2816_v31 = vmax.f32 %v4872_v47, %v4875_v42 }
0x1b46   :  { %v3364_v9 = vpop.eup %3363  ;;  %3373 = vlog2.f32 %v1320_v1  ;;  %v2748_v39 = vadd.f32 %v3360_v57, %v2744_v48  ;;  %v2799_v19 = vmul.f32 -0.5, %v2798_v41  ;;  %v2803_v54 = vmul.f32 %v2802_v52, %v2802_v52  ;;  %v5008_v57 = vld [vmem:[#allocation14_spill] sm:$0xff] }
0x1b47   :  { %v3366_v34 = vpop.eup %3365  ;;  %v2808_v62 = vmul.f32 %v2807_v59, %v2807_v59  ;;  %v2812_v5 = vmul.f32 3.0237157, %v2811_v13  ;;  %v2042_v22 = vadd.f32 %v4719_v58, %v4717_v11  ;;  %3375 = vpow2.f32 %v4629_v2 }
0x1b48   :  { %v2752_v36 = vadd.f32 %v3362_v3, %v2748_v39  ;;  %v2817_v26 = vmax.f32 %v2816_v31, %v4880_v21  ;;  %v2800_v25 = vadd.f32 0.18754794, %v2799_v19  ;;  %v2804_v32 = vmul.f32 -0.5, %v2803_v54  ;;  %v5009_v31 = vld [vmem:[#allocation15_spill] sm:$0xff] }
0x1b49   :  { %v3368_v15 = vpop.eup %3367  ;;  %v2809_v27 = vmul.f32 -0.5, %v2808_v62  ;;  %v2483_v6 = vadd.f32 %v4639_v38, %v4659_v18  ;;  %v2813_v43 = vmul.f32 %v2812_v5, %v2812_v5  ;;  %v2403_v2 = vadd.f32 %v4684_v49, %v4690_v55 }
0x1b4a   :  { %v3370_v28 = vpop.eup %3369  ;;  %v961_v53 = vmul.f32 0.6931472, %v3368_v15  ;;  %v2756_v14 = vadd.f32 %v3364_v9, %v2752_v36  ;;  %v2805_v11 = vadd.f32 0.18754794, %v2804_v32  ;;  %v2818_v58 = vmax.f32 %v2817_v26, %v2800_v25 }
0x1b4b   :  { %v3372_v60 = vpop.eup %3371  ;;  %v1683_v50 = vmul.f32 0.6931472, %v3370_v28  ;;  %3377 = vlog2.f32 %v2042_v22  ;;  %v2814_v37 = vmul.f32 -0.5, %v2813_v43  ;;  %v2810_v29 = vadd.f32 0.18754794, %v2809_v27 }
0x1b4c   :  { %v962_v46 = vadd.f32 %v961_v53, %v4769_v40  ;;  %v3374_v51 = vpop.eup %3373  ;;  %v2760_v10 = vadd.f32 %v3366_v34, %v2756_v14  ;;  %v2819_v38 = vmax.f32 %v2818_v58, %v2805_v11  ;;  %v2128_v40 = vmul.f32 0.6931472, %v4631_v23 }
0x1b4d   :  { %v1684_v24 = vadd.f32 %v1683_v50, %v4757_v30  ;;  %v1322_v20 = vmul.f32 0.6931472, %v3374_v51  ;;  %v3376_v18 = vpop.eup %3375  ;;  %3379 = vlog2.f32 %v2403_v2  ;;  %v2815_v30 = vadd.f32 0.18754794, %v2814_v37 }
0x1b4e   :  { %v963_v44 = vsel %vm324_vm10, %v962_v46, 0.0  ;;  %v2764_v49 = vadd.f32 %v3372_v60, %v2760_v10  ;;  %v2820_v17 = vmax.f32 %v2819_v38, %v2810_v29  ;;  %v1407_v1 = vadd.f32 %v4542_v35, %v5008_v57 }
0x1b4f   :  { %v1685_v33 = vsel %vm324_vm10, %v1684_v24, 0.0  ;;  %964 = vadd.xlane.f32.xlu1 %v963_v44  ;;  %v1323_v55 = vadd.f32 %v1322_v20, %v4791_v0  ;;  %v2487_v48 = vadd.f32 %v3376_v18, %v2483_v6  ;;  %v1767_v3 = vmul.f32 0.6931472, %v4600_v61 }
0x1b50   :  { %1686 = vadd.xlane.f32.xlu0 %v1685_v33  ;;  %3381 = vlog2.f32 %v2764_v49  ;;  %v4902_v41 = vmax.f32 %v2820_v17, %v2815_v30  ;;  %v2129_v23 = vadd.f32 %v2128_v40, %v4383_v12  ;;  %v1408_v13 = vsel %vm324_vm10, %v1407_v1, 0.0 }
0x1b51   :  { %v1324_v56 = vsel %vm324_vm10, %v1323_v55, 0.0  ;;  %v3378_v52 = vpop.eup %3377  ;;  %3383 = vlog2.f32 %v2487_v48  ;;  %v1768_v34 = vadd.f32 %v1767_v3, %v5009_v31  ;;  %v1049_v55 = vpop.xlane.xlu0 %1048 }
0x1b52   :  { %1325 = vadd.xlane.f32.xlu2 %v1324_v56  ;;  %v2822_v0 = vsub.f32 %v4872_v47, %v4902_v41  ;;  %v2825_v59 = vsub.f32 %v4875_v42, %v4902_v41  ;;  %v2829_v35 = vsub.f32 %v4880_v21, %v4902_v41  ;;  %v2833_v61 = vsub.f32 %v2800_v25, %v4902_v41 }
0x1b53   :  { %v3380_v9 = vpop.eup %3379  ;;  %v2044_v39 = vmul.f32 0.6931472, %v3378_v52  ;;  %v2130_v47 = vsel %vm324_vm10, %v2129_v23, 0.0  ;;  %v2837_v42 = vsub.f32 %v2805_v11, %v4902_v41  ;;  %v2841_v15 = vsub.f32 %v2810_v29, %v4902_v41  ;;  %v5010_v23 = vld [vmem:[#allocation12_spill] sm:$0xff] }
0x1b54   :  { %v2823_v12 = vmul.f32 1.442695, %v2822_v0  ;;  %v2826_v19 = vmul.f32 1.442695, %v2825_v59  ;;  %v2830_v62 = vmul.f32 1.442695, %v2829_v35  ;;  %v2845_v32 = vsub.f32 %v2815_v30, %v4902_v41  ;;  %v688_v30 = vpop.xlane.xlu2 %687 }
0x1b55   :  { %v2834_v5 = vmul.f32 1.442695, %v2833_v61  ;;  %v2045_v22 = vadd.f32 %v2044_v39, %v4578_v16  ;;  %v1769_v36 = vsel %vm324_vm10, %v1768_v34, 0.0  ;;  %v2405_v26 = vmul.f32 0.6931472, %v3380_v9 }
0x1b56   :  { %v3382_v54 = vpop.eup %3381  ;;  %3385 = vpow2.f32 %v2823_v12  ;;  %v2838_v25 = vmul.f32 1.442695, %v2837_v42  ;;  %v2842_v60 = vmul.f32 1.442695, %v2841_v15  ;;  %v2901_v56 = vrot.slane %v688_v30, 6 }
0x1b57   :  { %1409 = vadd.xlane.f32.xlu1 %v1408_v13  ;;  %v2766_v21 = vmul.f32 0.6931472, %v3382_v54  ;;  %3387 = vpow2.f32 %v2826_v19  ;;  %v3384_v53 = vpop.eup %3383  ;;  %v2046_v6 = vsel %vm324_vm10, %v2045_v22, 0.0  ;;  %v2406_v16 = vadd.f32 %v2405_v26, %v4523_v8 }
0x1b58   :  { %2131 = vadd.xlane.f32.xlu0 %v2130_v47  ;;  %3389 = vpow2.f32 %v2830_v62  ;;  %v2489_v14 = vmul.f32 0.6931472, %v3384_v53  ;;  %v2904_v52 = vrot.slane %v1049_v55, 4 }
0x1b59   :  { %v2767_v28 = vadd.f32 %v2766_v21, %v4853_v45  ;;  %3391 = vpow2.f32 %v2834_v5  ;;  %v2846_v45 = vmul.f32 1.442695, %v2845_v32  ;;  %v2407_v58 = vsel %vm324_vm10, %v2406_v16, 0.0 }
0x1b5a   :  { %1770 = vadd.xlane.f32.xlu2 %v1769_v36  ;;  %3393 = vpow2.f32 %v2838_v25  ;;  %v2490_v11 = vadd.f32 %v2489_v14, %v4487_v4  ;;  %v5013_v14 = vld [vmem:[#allocation8_spill] sm:$0xff] }
0x1b5b   :  { %v2768_v27 = vsel %vm324_vm10, %v2767_v28, 0.0  ;;  %3395 = vpow2.f32 %v2842_v60  ;;  %v2859_v16 = vrot.slane %v5013_v14, 2 }
0x1b5c   :  { %v3386_v50 = vpop.eup %3385  ;;  %3397 = vpow2.f32 %v2846_v45  ;;  %v2491_v8 = vsel %vm324_vm10, %v2490_v11, 0.0 }
0x1b5d   :  { %v3388_v43 = vpop.eup %3387 }
0x1b5e   :  { %v2828_v46 = vadd.f32 %v3388_v43, %v3386_v50  ;;  %v3390_v2 = vpop.eup %3389  ;;  %v5012_v50 = vld [vmem:[#allocation7_spill] sm:$0xff]  ;;  %v5014_v43 = vld [vmem:[#allocation5_spill] sm:$0xff] }
0x1b5f   :  { %2047 = vadd.xlane.f32.xlu1 %v2046_v6  ;;  %v3392_v24 = vpop.eup %3391  ;;  %v2857_v6 = vrot.slane %v5012_v50, 4 }
0x1b60   :  { %2769 = vadd.xlane.f32.xlu0 %v2768_v27  ;;  %v2832_v51 = vadd.f32 %v3390_v2, %v2828_v46  ;;  %v3394_v37 = vpop.eup %3393  ;;  %v5011_v27 = vld [vmem:[#allocation6_spill] sm:$0xff] }
0x1b61   :  { %v3396_v20 = vpop.eup %3395  ;;  %v2855_v60 = vrot.slane %v5011_v27, 6 }
0x1b62   :  { %2408 = vadd.xlane.f32.xlu2 %v2407_v58  ;;  %v2836_v10 = vadd.f32 %v3392_v24, %v2832_v51  ;;  %v3398_v38 = vpop.eup %3397 }
0x1b63   :  { %v2869_v45 = vsel %vm2868_vm15, %v5014_v43, %v2855_v60 }
0x1b64   :  { %v2840_v44 = vadd.f32 %v3394_v37, %v2836_v10  ;;  %v2870_v46 = vsel %vm45_vm0, %v2869_v45, %v2857_v6 }
0x1b65   :  { %v2872_v2 = vsel %vm2871_vm11, %v2870_v46, %v2859_v16 }
0x1b66   :  { %v2844_v29 = vadd.f32 %v3396_v20, %v2840_v44  ;;  %v2863_v20 = vrot.slane %v5005_v7, 4 }
0x1b67   :  { %2492 = vadd.xlane.f32.xlu1 %v2491_v8  ;;  %v5015_v8 = vld [vmem:[#allocation10_spill] sm:$0xff] }
0x1b68   :  { %v2848_v18 = vadd.f32 %v3398_v38, %v2844_v29  ;;  %v2861_v44 = vrot.slane %v5015_v8, 6  ;;  %v2866_v29 = vrot.slane %v4686_v63, 2  ;;  %v5016_v38 = vld [vmem:[#allocation9_spill] sm:$0xff] }
0x1b6a   :  { %3399 = vlog2.f32 %v2848_v18  ;;  %v2873_v18 = vsel %vm2868_vm15, %v5016_v38, %v2861_v44 }
0x1b70   :  { %v3400_v33 = vpop.eup %3399 }
0x1b71   :  { %v2850_v40 = vmul.f32 0.6931472, %v3400_v33  ;;  %v2874_v33 = vsel %vm45_vm0, %v2873_v18, %v2863_v20 }
0x1b73   :  { %v2851_v4 = vadd.f32 %v2850_v40, %v4902_v41  ;;  %v2918_v41 = vsel %vm2868_vm15, 0.0, %v2901_v56  ;;  %v2875_v40 = vsel %vm2871_vm11, %v2874_v33, %v2866_v29 }
0x1b74   :  { %v2919_v9 = vsel %vm45_vm0, %v2918_v41, %v2904_v52 }
0x1b75   :  { %v2852_v49 = vsel %vm324_vm10, %v2851_v4, 0.0  ;;  %vm2942_vm10 = vcmask 39936  }
0x1b76   :  { %2853 = vadd.xlane.f32.xlu2 %v2852_v49 }
0x1bc2   :  { %v965_v17 = vpop.xlane.xlu1 %964 }
0x1bc3   :  { %v1687_v57 = vpop.xlane.xlu0 %1686  ;;  %v2880_v1 = vrot.slane %v965_v17, 4 }
0x1bc5   :  { %v1326_v48 = vpop.xlane.xlu2 %1325  ;;  %v2895_v0 = vsel %vm45_vm0, %v5010_v23, %v2880_v1 }
0x1bc6   :  { %v2883_v3 = vrot.slane %v1326_v48, 2 }
0x1bc8   :  { %v2896_v59 = vsel %vm2871_vm11, %v2895_v0, %v2883_v3 }
0x1bc9   :  { %2926 = vrot.lane.b32.xlu1 %v2896_v59, %s3451_s29 }
0x1bca   :  { %v1410_v35 = vpop.xlane.xlu1 %1409 }
0x1bcb   :  { %v2132_v13 = vpop.xlane.xlu0 %2131  ;;  %v2907_v61 = vrot.slane %v1410_v35, 2 }
0x1bcc   :  { %v2910_v36 = vrot.slane %v2132_v13, 6 }
0x1bcd   :  { %v2920_v39 = vsel %vm2871_vm11, %v2919_v9, %v2907_v61  ;;  %v1771_v31 = vpop.xlane.xlu2 %1770 }
0x1bce   :  { %2934 = vrot.lane.b32.xlu2 %v2920_v39, %s3453_s2  ;;  %v2921_v28 = vsel %vm2868_vm15, %v1771_v31, %v2910_v36 }
0x1bd2   :  { %v2048_v34 = vpop.xlane.xlu1 %2047 }
0x1bd3   :  { %v2770_v12 = vpop.xlane.xlu0 %2769  ;;  %v2886_v19 = vrot.slane %v2048_v34, 6 }
0x1bd4   :  { %v2892_v54 = vrot.slane %v2770_v12, 2 }
0x1bd5   :  { %v2409_v47 = vpop.xlane.xlu2 %2408  ;;  %v2897_v42 = vsel %vm2868_vm15, %v1687_v57, %v2886_v19 }
0x1bd6   :  { %v2889_v62 = vrot.slane %v2409_v47, 4 }
0x1bd8   :  { %v2898_v21 = vsel %vm45_vm0, %v2897_v42, %v2889_v62 }
0x1bd9   :  { %v2899_v5 = vsel %vm2871_vm11, %v2898_v21, %v2892_v54 }
0x1bda   :  { %2928 = vrot.lane.b32.xlu0 %v2899_v5, %s3451_s29  ;;  %v2493_v15 = vpop.xlane.xlu1 %2492  ;;  %s3454_s29 = smov [#allocation2]  }
0x1bdb   :  { %v2913_v22 = vrot.slane %v2493_v15, 4  ;;  %s2954_s7 = sshll.u32 %s3454_s29, 4  ;;  %s2955_s7 = int_to_ptr.vmem [resolvable:$true] %s2954_s7 }
0x1bdd   :  { %v2922_v25 = vsel %vm45_vm0, %v2921_v28, %v2913_v22 }
0x1be9   :  { %v2854_v26 = vpop.xlane.xlu2 %2853 }
0x1bea   :  { %v2916_v53 = vrot.slane %v2854_v26, 2 }
0x1bec   :  { %v2923_v32 = vsel %vm2871_vm11, %v2922_v25, %v2916_v53 }
0x1bed   :  { %2936 = vrot.lane.b32.xlu0 %v2923_v32, %s3453_s2 }
0x1c28   :  { %v2935_v51 = vpop.permute.xlu2 %2934 }
0x1c3b   :  { %v2927_v11 = vpop.permute.xlu1 %2926 }
0x1c3c   :  { %v2940_v58 = vsel %vm41_vm1, %v2872_v2, %v2927_v11 }
0x1c3d   :  { %v2943_v24 = vsel %vm2942_vm10, %v2940_v58, %v2935_v51 }
0x1c3e   :  { %v2946_v10 = vsel %vm2945_vm12, %v2943_v24, 0.0 }
0x1c3f   :  { %2948 = vst [vmem:[#allocation2] sm:$0xff] %v2946_v10 }
0x1c4c   :  { %v2929_v37 = vpop.permute.xlu0 %2928 }
0x1c4d   :  { %v2941_v4 = vsel %vm41_vm1, %v2875_v40, %v2929_v37 }
0x1c5f   :  { %v2937_v49 = vpop.permute.xlu0 %2936 }
0x1c60   :  { %v2944_v7 = vsel %vm2942_vm10, %v2941_v4, %v2937_v49 }
0x1c61   :  { %v2947_v63 = vsel %vm2945_vm12, %v2944_v7, 0.0 }
0x1c62   :  { %2949 = vst [vmem:[#allocation2 + $0x8] sm:$0xff] %v2947_v63 }
0x1c63   :  { %2962 = dma.vmem_to_hbm [thread:$0]  %s2955_s7, 256, %s2957_s6, [#allocation3], %s3455_s8, %s3455_s8, %s3456_s9  }
0x1c64   :  { %3449 = dma.done.wait [#allocation3], 256  }
0x1c65   :  { %3450 = vsyncadd [#allocation3], 4294967040 }
0x1c66   :  { %2967 = vsyncpa [#allocation3], 1 }

</bundles_post_ra>
